<compile_context>
chip_gen: v6e
topology: v6e:2x2x1
jax: 0.10.0
libtpu: 0.0.40
codegen_flags: <defaults>
</compile_context>

<pallas_src>
import functools

import jax
import jax.numpy as jnp
from jax.experimental import pallas as pl
from jax.experimental.pallas import tpu as pltpu


def _round_up(x, m):
    return ((x + m - 1) // m) * m


def _classifier_kernel(x_ref,
                       w1_ref, s1_ref,
                       w2_ref, s2_ref,
                       w3_ref, s3_ref,
                       w4_ref, b4_ref,
                       o_ref, *, bf16_epilogue):
    act_dt = jnp.bfloat16 if bf16_epilogue else jnp.float32

    def epilogue(h_f32, s_ref, leaky):
        # bias/BN shift + activation, optionally in bf16 (halves spill traffic on
        # v6e/v7x whose VPUs have native bf16; keep f32 on v5e).
        h = h_f32.astype(act_dt)
        h = h + s_ref[...].astype(act_dt)
        if leaky:
            return jnp.maximum(h, h * 0.01)     # LeakyReLU(0.01): single vmax
        return jnp.maximum(h, 0.0)              # ReLU

    # Layer 1: Linear(in, 2048) + BatchNorm1d(2048, eps=0.8) + LeakyReLU(0.01)
    # (BN scale pre-folded into w1; shift s1 = (bias - mean)*scale + beta)
    x = x_ref[...].astype(jnp.bfloat16)          # in-kernel cast (no wrapper pass)
    h = jnp.dot(x, w1_ref[...], preferred_element_type=jnp.float32)
    h = epilogue(h, s1_ref, leaky=True)

    # Layer 2: Linear(2048, 1024) + BatchNorm1d(1024, eps=0.8) + ReLU
    h = jnp.dot(h.astype(jnp.bfloat16), w2_ref[...],
                preferred_element_type=jnp.float32)
    h = epilogue(h, s2_ref, leaky=False)

    # Layer 3: Linear(1024, 512) + BatchNorm1d(512, eps=1e-5) + LeakyReLU(0.01)
    h = jnp.dot(h.astype(jnp.bfloat16), w3_ref[...],
                preferred_element_type=jnp.float32)
    h = epilogue(h, s3_ref, leaky=True)

    # Layer 4: Linear(512, out_dim_padded) + Softmax(dim=1), f32.
    # Padded lanes carry bias -1e30 so their softmax probability is exactly 0.
    logits = jnp.dot(h.astype(jnp.bfloat16), w4_ref[...],
                     preferred_element_type=jnp.float32)
    logits = logits + b4_ref[...]
    m = jnp.max(logits, axis=-1, keepdims=True)
    e = jnp.exp(logits - m)
    denom = jnp.sum(e, axis=-1, keepdims=True)
    o_ref[...] = (e * pl.reciprocal(denom, approx=False)).astype(o_ref.dtype)


def init_params(key, in_dim, out_dim):
    """PyTorch-like initialization of the raw (untransposed, unfolded) params."""
    dims = [in_dim, 2048, 1024, 512, out_dim]
    params = {}
    keys = jax.random.split(key, 4 * 6)
    ki = 0
    for li in range(4):
        fan_in, fan_out = dims[li], dims[li + 1]
        bound = 1.0 / jnp.sqrt(jnp.float32(fan_in))
        # nn.Linear default init: U(-1/sqrt(fan_in), 1/sqrt(fan_in)).
        w = jax.random.uniform(keys[ki], (fan_out, fan_in), jnp.float32,
                               -bound, bound); ki += 1
        b = jax.random.uniform(keys[ki], (fan_out,), jnp.float32,
                               -bound, bound); ki += 1
        params[f"w{li+1}"] = w
        params[f"b{li+1}"] = b
        if li < 3:  # the first three Linears are followed by BatchNorm1d
            gamma = 1.0 + 0.1 * jax.random.normal(keys[ki], (fan_out,), jnp.float32); ki += 1
            beta = 0.1 * jax.random.normal(keys[ki], (fan_out,), jnp.float32); ki += 1
            mean = 0.1 * jax.random.normal(keys[ki], (fan_out,), jnp.float32); ki += 1
            var = 1.0 + 0.1 * jax.random.uniform(keys[ki], (fan_out,), jnp.float32); ki += 1
            params[f"bn{li+1}"] = (gamma, beta, mean, var)
    return params


def prepare_params(params):
    """One-time prep: transpose, fold BN scale into weight columns, fold
    bias/mean/beta into a single shift, cast weights to bf16, and pad the last
    layer to a lane-dense (multiple-of-128) output width.

    Returns (prepared_arrays, out_dim) -- out_dim is a static Python int.
    """
    def fold(w, b, bn, eps):
        gamma, beta, mean, var = bn
        scale = gamma / jnp.sqrt(var + eps)                       # (out,)
        wt = (w.T * scale[None, :]).astype(jnp.bfloat16)          # (in, out)
        shift = ((b - mean) * scale + beta).reshape(1, -1).astype(jnp.float32)
        return wt, shift

    w1, s1 = fold(params["w1"], params["b1"], params["bn1"], eps=0.8)
    w2, s2 = fold(params["w2"], params["b2"], params["bn2"], eps=0.8)
    w3, s3 = fold(params["w3"], params["b3"], params["bn3"], eps=1e-5)

    w4 = params["w4"].T.astype(jnp.bfloat16)      # (512, out_dim)
    b4 = params["b4"].astype(jnp.float32)         # (out_dim,)
    out_dim = int(w4.shape[1])
    out_pad = _round_up(out_dim, 128)
    if out_pad != out_dim:
        # zero weight columns + -1e30 bias => softmax(pad lane) == 0 exactly.
        w4 = jnp.pad(w4, ((0, 0), (0, out_pad - out_dim)))
        b4 = jnp.pad(b4, (0, out_pad - out_dim), constant_values=-1e30)
    b4 = b4.reshape(1, -1)

    return (w1, s1, w2, s2, w3, s3, w4, b4), out_dim


def _const_spec(shape):
    """Whole-array, VMEM-resident BlockSpec for weights/shifts; single-buffered
    (constants never change across batch tiles, so double-buffering only wastes
    VMEM -- ~5.8 MiB for the bf16 weights, which matters on v7x's 64 MiB VMEM)."""
    buffered = getattr(pl, "Buffered", None)
    if buffered is not None:
        try:
            return pl.BlockSpec(shape, lambda i: (0, 0), pipeline_mode=buffered(1))
        except TypeError:
            pass  # older BlockSpec without pipeline_mode kwarg
    return pl.BlockSpec(shape, lambda i: (0, 0))


def classifier_forward(x, prepared, *, out_dim, block_b=256, bf16_epilogue=None):
    w1, s1, w2, s2, w3, s3, w4, b4 = prepared
    B, in_dim = x.shape
    out_pad = w4.shape[1]

    if bf16_epilogue is None:
        # v5e's VPU has no native bf16 elementwise -> keep its epilogue in f32.
        kind = jax.devices()[0].device_kind.lower()
        bf16_epilogue = not ("v5 lite" in kind or "v5lite" in kind or "v5e" in kind)

    # Batch tile: 8-row aligned, capped at block_b (256 feeds the 256-wide MXU of
    # v6e/v7x; per-step ~0.35us overhead is amortized).  Chosen so the grid has
    # >= 2 steps whenever the batch allows, so "parallel" can use both v7x TCs.
    if B <= 8:
        tb = B
    else:
        tb = min(block_b, max(8, _round_up(pl.cdiv(B, 2), 8)))
    grid = (pl.cdiv(B, tb),)   # ragged last tile handled by Pallas masked writeback

    in_specs = [
        pl.BlockSpec((tb, in_dim), lambda i: (i, 0)),
        _const_spec(w1.shape), _const_spec(s1.shape),
        _const_spec(w2.shape), _const_spec(s2.shape),
        _const_spec(w3.shape), _const_spec(s3.shape),
        _const_spec(w4.shape), _const_spec(b4.shape),
    ]
    out_specs = pl.BlockSpec((tb, out_pad), lambda i: (i, 0))

    flops = 2 * B * (in_dim * 2048 + 2048 * 1024 + 1024 * 512 + 512 * out_pad)
    weight_bytes = sum(int(a.size) * a.dtype.itemsize
                       for a in (w1, s1, w2, s2, w3, s3, w4, b4))
    bytes_accessed = (weight_bytes
                      + int(x.size) * x.dtype.itemsize
                      + B * out_pad * 4)

    out = pl.pallas_call(
        functools.partial(_classifier_kernel, bf16_epilogue=bf16_epilogue),
        out_shape=jax.ShapeDtypeStruct((B, out_pad), jnp.float32),
        grid=grid,
        in_specs=in_specs,
        out_specs=out_specs,
        compiler_params=pltpu.CompilerParams(
            dimension_semantics=("parallel",),
            # Actual need is ~6 MiB single-buffered weights + activation tiles;
            # 32 MiB leaves headroom even on v7x's 64 MiB physical VMEM.
            vmem_limit_bytes=32 * 1024 * 1024,
        ),
        cost_estimate=pl.CostEstimate(
            flops=flops,
            transcendentals=B * out_pad,
            bytes_accessed=bytes_accessed,
        ),
    )(x, w1, s1, w2, s2, w3, s3, w4, b4)

    return out[:, :out_dim]   # drop the lane-padding columns (static slice)


if __name__ == "__main__":
    key = jax.random.PRNGKey(0)
    kx, kp = jax.random.split(key)

    batch, in_dim, out_dim = 16, 128, 10   # small, MNIST-like (out_dim=10 classes)
    x = jax.random.normal(kx, (batch, in_dim), dtype=jnp.float32)

    params = init_params(kp, in_dim, out_dim)
    prepared, real_out_dim = prepare_params(params)   # one-time fold/transpose/bf16

    fwd = jax.jit(functools.partial(classifier_forward,
                                    out_dim=real_out_dim, block_b=256))
    probs = fwd(x, prepared)
    probs = jax.block_until_ready(probs)

    # Sanity checks: finite, softmax rows sum to ~1 (bf16 weights give slight
    # drift in the logits but normalization itself is exact f32).
    assert probs.shape == (batch, out_dim)
    assert bool(jnp.all(jnp.isfinite(probs)))
    assert bool(jnp.allclose(jnp.sum(probs, axis=1), 1.0, atol=2e-3))

    print("KERNEL_OK")
</pallas_src>

<mosaic_0001>
module attributes {stable_mosaic.version = 11 : i64} {
  func.func @_classifier_kernel(%arg0: i32, %arg1: memref<8x128xf32, #tpu.memory_space<vmem>>, %arg2: memref<128x2048xbf16, #tpu.memory_space<vmem>>, %arg3: memref<1x2048xf32, #tpu.memory_space<vmem>>, %arg4: memref<2048x1024xbf16, #tpu.memory_space<vmem>>, %arg5: memref<1x1024xf32, #tpu.memory_space<vmem>>, %arg6: memref<1024x512xbf16, #tpu.memory_space<vmem>>, %arg7: memref<1x512xf32, #tpu.memory_space<vmem>>, %arg8: memref<512x128xbf16, #tpu.memory_space<vmem>>, %arg9: memref<1x128xf32, #tpu.memory_space<vmem>>, %arg10: memref<8x128xf32, #tpu.memory_space<vmem>>) attributes {dimension_semantics = [#tpu.dimension_semantics<parallel>], iteration_bounds = array<i64: 2>, scalar_prefetch = 0 : i64, scratch_operands = 0 : i64, tpu.core_type = #tpu.core_type<tc>, window_params = [{transform_indices = @transform_0, window_bounds = array<i64: 8, 128>}, {pipeline_mode = #tpu.pipeline_mode<synchronous>, transform_indices = @transform_1, window_bounds = array<i64: 128, 2048>}, {pipeline_mode = #tpu.pipeline_mode<synchronous>, transform_indices = @transform_2, window_bounds = array<i64: 1, 2048>}, {pipeline_mode = #tpu.pipeline_mode<synchronous>, transform_indices = @transform_3, window_bounds = array<i64: 2048, 1024>}, {pipeline_mode = #tpu.pipeline_mode<synchronous>, transform_indices = @transform_4, window_bounds = array<i64: 1, 1024>}, {pipeline_mode = #tpu.pipeline_mode<synchronous>, transform_indices = @transform_5, window_bounds = array<i64: 1024, 512>}, {pipeline_mode = #tpu.pipeline_mode<synchronous>, transform_indices = @transform_6, window_bounds = array<i64: 1, 512>}, {pipeline_mode = #tpu.pipeline_mode<synchronous>, transform_indices = @transform_7, window_bounds = array<i64: 512, 128>}, {pipeline_mode = #tpu.pipeline_mode<synchronous>, transform_indices = @transform_8, window_bounds = array<i64: 1, 128>}, {transform_indices = @transform_9, window_bounds = array<i64: 8, 128>}]} {
    %c0 = arith.constant 0 : index
    %c0_0 = arith.constant 0 : index
    %0 = vector.load %arg1[%c0, %c0_0] : memref<8x128xf32, #tpu.memory_space<vmem>>, vector<8x128xf32>
    %1 = arith.truncf %0 : vector<8x128xf32> to vector<8x128xbf16>
    %c0_1 = arith.constant 0 : index
    %c0_2 = arith.constant 0 : index
    %2 = vector.load %arg2[%c0_1, %c0_2] : memref<128x2048xbf16, #tpu.memory_space<vmem>>, vector<128x2048xbf16>
    %cst = arith.constant dense<0.000000e+00> : vector<8x2048xf32>
    %3 = tpu.matmul %1, %2, %cst {dimension_numbers = #tpu.dot_dimension_numbers<[1], [0], [0], [1], [0, 0, 1, 1], [], []>} : vector<8x128xbf16>, vector<128x2048xbf16>, vector<8x2048xf32> -> vector<8x2048xf32>
    %4 = arith.truncf %3 : vector<8x2048xf32> to vector<8x2048xbf16>
    %c0_3 = arith.constant 0 : index
    %c0_4 = arith.constant 0 : index
    %5 = vector.load %arg3[%c0_3, %c0_4] : memref<1x2048xf32, #tpu.memory_space<vmem>>, vector<1x2048xf32>
    %6 = arith.truncf %5 : vector<1x2048xf32> to vector<1x2048xbf16>
    %7 = vector.broadcast %6 : vector<1x2048xbf16> to vector<8x2048xbf16>
    %8 = arith.addf %4, %7 : vector<8x2048xbf16>
    %cst_5 = arith.constant 1.000980e-02 : bf16
    %9 = vector.broadcast %cst_5 : bf16 to vector<8x2048xbf16>
    %10 = arith.mulf %8, %9 : vector<8x2048xbf16>
    %11 = arith.maximumf %8, %10 : vector<8x2048xbf16>
    %c0_6 = arith.constant 0 : index
    %c0_7 = arith.constant 0 : index
    %12 = vector.load %arg4[%c0_6, %c0_7] : memref<2048x1024xbf16, #tpu.memory_space<vmem>>, vector<2048x1024xbf16>
    %cst_8 = arith.constant dense<0.000000e+00> : vector<8x1024xf32>
    %13 = tpu.matmul %11, %12, %cst_8 {dimension_numbers = #tpu.dot_dimension_numbers<[1], [0], [0], [1], [0, 0, 1, 1], [], []>} : vector<8x2048xbf16>, vector<2048x1024xbf16>, vector<8x1024xf32> -> vector<8x1024xf32>
    %14 = arith.truncf %13 : vector<8x1024xf32> to vector<8x1024xbf16>
    %c0_9 = arith.constant 0 : index
    %c0_10 = arith.constant 0 : index
    %15 = vector.load %arg5[%c0_9, %c0_10] : memref<1x1024xf32, #tpu.memory_space<vmem>>, vector<1x1024xf32>
    %16 = arith.truncf %15 : vector<1x1024xf32> to vector<1x1024xbf16>
    %17 = vector.broadcast %16 : vector<1x1024xbf16> to vector<8x1024xbf16>
    %18 = arith.addf %14, %17 : vector<8x1024xbf16>
    %cst_11 = arith.constant 0.000000e+00 : bf16
    %19 = vector.broadcast %cst_11 : bf16 to vector<8x1024xbf16>
    %20 = arith.maximumf %18, %19 : vector<8x1024xbf16>
    %c0_12 = arith.constant 0 : index
    %c0_13 = arith.constant 0 : index
    %21 = vector.load %arg6[%c0_12, %c0_13] : memref<1024x512xbf16, #tpu.memory_space<vmem>>, vector<1024x512xbf16>
    %cst_14 = arith.constant dense<0.000000e+00> : vector<8x512xf32>
    %22 = tpu.matmul %20, %21, %cst_14 {dimension_numbers = #tpu.dot_dimension_numbers<[1], [0], [0], [1], [0, 0, 1, 1], [], []>} : vector<8x1024xbf16>, vector<1024x512xbf16>, vector<8x512xf32> -> vector<8x512xf32>
    %23 = arith.truncf %22 : vector<8x512xf32> to vector<8x512xbf16>
    %c0_15 = arith.constant 0 : index
    %c0_16 = arith.constant 0 : index
    %24 = vector.load %arg7[%c0_15, %c0_16] : memref<1x512xf32, #tpu.memory_space<vmem>>, vector<1x512xf32>
    %25 = arith.truncf %24 : vector<1x512xf32> to vector<1x512xbf16>
    %26 = vector.broadcast %25 : vector<1x512xbf16> to vector<8x512xbf16>
    %27 = arith.addf %23, %26 : vector<8x512xbf16>
    %cst_17 = arith.constant 1.000980e-02 : bf16
    %28 = vector.broadcast %cst_17 : bf16 to vector<8x512xbf16>
    %29 = arith.mulf %27, %28 : vector<8x512xbf16>
    %30 = arith.maximumf %27, %29 : vector<8x512xbf16>
    %c0_18 = arith.constant 0 : index
    %c0_19 = arith.constant 0 : index
    %31 = vector.load %arg8[%c0_18, %c0_19] : memref<512x128xbf16, #tpu.memory_space<vmem>>, vector<512x128xbf16>
    %cst_20 = arith.constant dense<0.000000e+00> : vector<8x128xf32>
    %32 = tpu.matmul %30, %31, %cst_20 {dimension_numbers = #tpu.dot_dimension_numbers<[1], [0], [0], [1], [0, 0, 1, 1], [], []>} : vector<8x512xbf16>, vector<512x128xbf16>, vector<8x128xf32> -> vector<8x128xf32>
    %c0_21 = arith.constant 0 : index
    %c0_22 = arith.constant 0 : index
    %33 = vector.load %arg9[%c0_21, %c0_22] : memref<1x128xf32, #tpu.memory_space<vmem>>, vector<1x128xf32>
    %34 = vector.broadcast %33 : vector<1x128xf32> to vector<8x128xf32>
    %35 = arith.addf %32, %34 : vector<8x128xf32>
    %cst_23 = arith.constant dense<0xFF800000> : vector<8xf32>
    %36 = vector.multi_reduction <maximumf>, %35, %cst_23 [1] : vector<8x128xf32> to vector<8xf32>
    %37 = vector.shape_cast %36 : vector<8xf32> to vector<8x1xf32>
    %38 = vector.broadcast %37 : vector<8x1xf32> to vector<8x128xf32>
    %39 = arith.subf %35, %38 : vector<8x128xf32>
    %40 = math.exp %39 : vector<8x128xf32>
    %cst_24 = arith.constant dense<0.000000e+00> : vector<8xf32>
    %41 = vector.multi_reduction <add>, %40, %cst_24 [1] : vector<8x128xf32> to vector<8xf32>
    %42 = vector.shape_cast %41 : vector<8xf32> to vector<8x1xf32>
    %43 = tpu.reciprocal %42 : vector<8x1xf32> -> vector<8x1xf32>
    %44 = vector.broadcast %43 : vector<8x1xf32> to vector<8x128xf32>
    %45 = arith.mulf %40, %44 : vector<8x128xf32>
    %c0_25 = arith.constant 0 : index
    %c0_26 = arith.constant 0 : index
    %46 = vector.load %arg10[%c0_25, %c0_26] : memref<8x128xf32, #tpu.memory_space<vmem>>, vector<8x128xf32>
    tpu.vector_store %arg10[%c0_25, %c0_26], %45 {strides = array<i32>} : memref<8x128xf32, #tpu.memory_space<vmem>>, vector<8x128xf32>,
    return
  }
  func.func @transform_0(%arg0: i32) -> (i32, i32) {
    %c0_i32 = arith.constant 0 : i32
    %c0_i32_0 = arith.constant 0 : i32
    return %arg0, %c0_i32 : i32, i32
  }
  func.func @transform_1(%arg0: i32) -> (i32, i32) {
    %c0_i32 = arith.constant 0 : i32
    %c0_i32_0 = arith.constant 0 : i32
    %c0_i32_1 = arith.constant 0 : i32
    return %c0_i32, %c0_i32_0 : i32, i32
  }
  func.func @transform_2(%arg0: i32) -> (i32, i32) {
    %c0_i32 = arith.constant 0 : i32
    %c0_i32_0 = arith.constant 0 : i32
    %c0_i32_1 = arith.constant 0 : i32
    return %c0_i32, %c0_i32_0 : i32, i32
  }
  func.func @transform_3(%arg0: i32) -> (i32, i32) {
    %c0_i32 = arith.constant 0 : i32
    %c0_i32_0 = arith.constant 0 : i32
    %c0_i32_1 = arith.constant 0 : i32
    return %c0_i32, %c0_i32_0 : i32, i32
  }
  func.func @transform_4(%arg0: i32) -> (i32, i32) {
    %c0_i32 = arith.constant 0 : i32
    %c0_i32_0 = arith.constant 0 : i32
    %c0_i32_1 = arith.constant 0 : i32
    return %c0_i32, %c0_i32_0 : i32, i32
  }
  func.func @transform_5(%arg0: i32) -> (i32, i32) {
    %c0_i32 = arith.constant 0 : i32
    %c0_i32_0 = arith.constant 0 : i32
    %c0_i32_1 = arith.constant 0 : i32
    return %c0_i32, %c0_i32_0 : i32, i32
  }
  func.func @transform_6(%arg0: i32) -> (i32, i32) {
    %c0_i32 = arith.constant 0 : i32
    %c0_i32_0 = arith.constant 0 : i32
    %c0_i32_1 = arith.constant 0 : i32
    return %c0_i32, %c0_i32_0 : i32, i32
  }
  func.func @transform_7(%arg0: i32) -> (i32, i32) {
    %c0_i32 = arith.constant 0 : i32
    %c0_i32_0 = arith.constant 0 : i32
    %c0_i32_1 = arith.constant 0 : i32
    return %c0_i32, %c0_i32_0 : i32, i32
  }
  func.func @transform_8(%arg0: i32) -> (i32, i32) {
    %c0_i32 = arith.constant 0 : i32
    %c0_i32_0 = arith.constant 0 : i32
    %c0_i32_1 = arith.constant 0 : i32
    return %c0_i32, %c0_i32_0 : i32, i32
  }
  func.func @transform_9(%arg0: i32) -> (i32, i32) {
    %c0_i32 = arith.constant 0 : i32
    %c0_i32_0 = arith.constant 0 : i32
    return %arg0, %c0_i32 : i32, i32
  }
}

</mosaic_0001>

<bundles_post_ra>
// kernel: classifier_forward.1
= control target key start
LH: loop header
LB: loop body
LE: loop exit
PB: predicated region body
PF: predicated region fallthrough
CT: control target
= control target key end

     0   :  { %s14977_s0 = inlined_call_operand.hbm [shape: f32[16,128], index: 0, kind: input, shape index: {}]   ;;  %s14978_s1 = inlined_call_operand.hbm [shape: bf16[128,2048], index: 1, kind: input, shape index: {}]   ;;  %s14979_s2 = inlined_call_operand.hbm [shape: f32[1,2048], index: 2, kind: input, shape index: {}]   ;;  %s14980_s3 = inlined_call_operand.hbm [shape: bf16[2048,1024], index: 3, kind: input, shape index: {}]   ;;  %s14981_s4 = inlined_call_operand.hbm [shape: f32[1,1024], index: 4, kind: input, shape index: {}]   ;;  %s14982_s5 = inlined_call_operand.hbm [shape: bf16[1024,512], index: 5, kind: input, shape index: {}]   ;;  %s14983_s6 = inlined_call_operand.hbm [shape: f32[1,512], index: 6, kind: input, shape index: {}]   ;;  %s14984_s7 = inlined_call_operand.hbm [shape: bf16[512,128], index: 7, kind: input, shape index: {}]   ;;  %s14985_s8 = inlined_call_operand.hbm [shape: f32[1,128], index: 8, kind: input, shape index: {}]   ;;  %s14986_s9 = inlined_call_operand.hbm [shape: f32[16,128], index: 9, kind: output, shape index: {}]  }
   0x1   :  { %14991 = sst [smem:[#allocation24_spill]] %s14978_s1 }
   0x2   :  { %14992 = sst [smem:[#allocation25_spill]] %s14979_s2 }
   0x3   :  { %14993 = sst [smem:[#allocation26_spill]] %s14980_s3 }
   0x4   :  { %14994 = sst [smem:[#allocation27_spill]] %s14981_s4 }
   0x5   :  { %14 = vsyncpa [#allocation3], 0 }
   0x6   :  { %16 = vsyncpa [#allocation3 + $0x1], 0 }
   0x7   :  { %17 = vsyncpa [#allocation6], 0 }
   0x8   :  { %18 = vsyncpa [#allocation9], 0 }
   0x9   :  { %19 = vsyncpa [#allocation12], 0 }
   0xa   :  { %20 = vsyncpa [#allocation15], 0 }
   0xb   :  { %21 = vsyncpa [#allocation4], 0 }
   0xc   :  { %23 = vsyncpa [#allocation4 + $0x1], 0  ;;  %s14319_s30 = smov 0   ;;  %s14321_s10 = smov 0  }
   0xd   :  { %s14323_s11 = smov 0   ;;  %s14325_s12 = smov 0  }
   0xe LB: > { %s14251_s13 = smov [#allocation5]   ;;  %s14340_s15 = sadd.s32 4294967295, %s14249_s12   ;;  %s14249_s12 = sphi %s14325_s12, %s15023_s12   ;;  %s14245_s11 = sphi %s14323_s11, %s15022_s11   ;;  %s14241_s10 = sphi %s14321_s10, %s15021_s10   ;;  %s14237_s30 = sphi %s14319_s30, %s15020_s30  }
   0xf   : > { %s266_s14 = sshll.u32 %s14251_s13, 4  ;;  %p11866_p0 = scmp.ge.s32.totalorder %s14249_s12, 1  ;;  %s267_s14 = int_to_ptr.vmem [resolvable:$true] %s266_s14 }
  0x10   : > { %p14987_p1 = scmp.eq.s32.totalorder %s14340_s15, 0  ;;  %p254_p2 = scmp.lt.s32.totalorder %s14249_s12, 3 }
  0x11   : > { %s14252_s17 = smov [#allocation8]   ;;  %s14253_s20 = smov [#allocation11]  }
  0x12   : > { %p14345_p3 = pnand %p11866_p0, %p254_p2  ;;  %s290_s18 = sshll.u32 %s14252_s17, 4  ;;  %s14358_s18 = int_to_ptr.vmem [resolvable:$true] %s290_s18 }
  0x13   : > { %s14360_s21 = sshll.u32 %s14253_s20, 4  ;;  %s13944_s23 = scalar_lea.vmem %s267_s14, 16384  ;;  %s315_s21 = int_to_ptr.vmem [resolvable:$true] %s14360_s21 }
  0x14   : > { %s14995_s16 = scalar_select %p14345_p3, 1, 0 }
  0x15   : > { %p13414_p5 = pneg %p14345_p3  ;;  %p13945_p8 = scmp.ne.s32.totalorder %s267_s14, %s13944_s23 }
  0x16   : > { %p13952_p11 = scmp.lt.s32.totalorder %s267_s14, %s267_s14  ;;  %p13953_p12 = scmp.lt.s32.totalorder %s13944_s23, %s13944_s23 }
  0x17   : > { %p14354_p6 = pnand %p13414_p5, %p14987_p1 }
  0x18   : > { %p13954_p13 = por %p13953_p12, %p13952_p11 }
  0x19   : > { %p14364_p7 = pneg %p14354_p6 }
  0x1b   : > { %p13947_p9 = pnand %p13945_p8, %p14364_p7 }
  0x1d   : > { %p13948_p10 = pneg %p13947_p9 }
  0x1f   : > { %p13955_p0 = pnand %p13954_p13, %p13948_p10 }
  0x21   : > { %13958 = shalt.err (!%p13955_p0)
}
  0x22   : > { %s14254_s24 = smov 1024   ;;  %s14255_s25 = smov 64  }
  0x23   : > { %s14998_s1 = sld [smem:[#allocation24_spill]]  ;;  %s13970_s28 = scalar_lea.vmem %s14358_s18, 131072 }
  0x24   : > { %p13971_p2 = scmp.ne.s32.totalorder %s14358_s18, %s13970_s28  ;;  %p13978_p9 = scmp.lt.s32.totalorder %s14358_s18, %s14358_s18 }
  0x25   : > { %p13979_p10 = scmp.lt.s32.totalorder %s13970_s28, %s13970_s28 }
  0x26   : > { %p13973_p5 = pnand %p13971_p2, %p14364_p7 }
  0x27   : > { %p13980_p11 = por %p13979_p10, %p13978_p9 }
  0x28   : > { %p13974_p8 = pneg %p13973_p5 }
  0x29   : > { %13417 = dma.hbm_to_vmem [thread:$0]  (!%p14354_p6), %s14998_s1, 16384, %s267_s14, [#allocation6], %s14254_s24, %s14254_s24, %s14255_s25  }
  0x2a   : > { %p13981_p12 = pnand %p13980_p11, %p13974_p8 }
  0x2c   : > { %13984 = shalt.err (!%p13981_p12)
}
  0x2d   : > { %s14256_s29 = smov 512   ;;  %s14257_s13 = smov 32  }
  0x2e   : > { %s14999_s3 = sld [smem:[#allocation26_spill]]  ;;  %s13996_s20 = scalar_lea.vmem %s315_s21, 32768 }
  0x2f   : > { %p13997_p13 = scmp.ne.s32.totalorder %s315_s21, %s13996_s20  ;;  %p14004_p5 = scmp.lt.s32.totalorder %s315_s21, %s315_s21 }
  0x30   : > { %p14005_p8 = scmp.lt.s32.totalorder %s13996_s20, %s13996_s20 }
  0x31   : > { %p13999_p0 = pnand %p13997_p13, %p14364_p7 }
  0x32   : > { %p14006_p9 = por %p14005_p8, %p14004_p5 }
  0x33   : > { %p14000_p2 = pneg %p13999_p0 }
  0x34   : > { %13423 = dma.hbm_to_vmem [thread:$0]  (!%p14354_p6), %s14999_s3, 131072, %s14358_s18, [#allocation9], %s14256_s29, %s14256_s29, %s14257_s13  }
  0x35   : > { %p14007_p10 = pnand %p14006_p9, %p14000_p2 }
  0x37   : > { %14010 = shalt.err (!%p14007_p10)
}
  0x38   : > { %s14258_s23 = smov 256   ;;  %s14259_s24 = smov 16  }
  0x39   : > { %13429 = dma.hbm_to_vmem [thread:$0]  (!%p14354_p6), %s14982_s5, 32768, %s315_s21, [#allocation12], %s14258_s23, %s14258_s23, %s14259_s24  }
  0x3a   : > { %s14260_s18 = smov [#allocation14]  }
  0x3b   : > { %s338_s28 = sshll.u32 %s14260_s18, 4  ;;  %s339_s28 = int_to_ptr.vmem [resolvable:$true] %s338_s28 }
  0x3c   : > { %s14022_s29 = scalar_lea.vmem %s339_s28, 4096  ;;  %p14030_p0 = scmp.lt.s32.totalorder %s339_s28, %s339_s28 }
  0x3d   : > { %p14023_p11 = scmp.ne.s32.totalorder %s339_s28, %s14022_s29  ;;  %p14031_p2 = scmp.lt.s32.totalorder %s14022_s29, %s14022_s29 }
  0x3f   : > { %p14025_p12 = pnand %p14023_p11, %p14364_p7  ;;  %p14032_p5 = por %p14031_p2, %p14030_p0 }
  0x41   : > { %p14026_p13 = pneg %p14025_p12 }
  0x43   : > { %p14033_p8 = pnand %p14032_p5, %p14026_p13 }
  0x45   : > { %14036 = shalt.err (!%p14033_p8)
}
  0x46   : > { %s14261_s13 = smov 4   ;;  %s14262_s14 = smov [#allocation7]  }
  0x47   : > { %13435 = dma.hbm_to_vmem [thread:$0]  (!%p14354_p6), %s14984_s7, 4096, %s339_s28, [#allocation15], %s14255_s25, %s14255_s25, %s14261_s13  }
  0x48   : > { %s280_s20 = sshll.u32 %s14262_s14, 4  ;;  %s14263_s23 = smov [#allocation10]   ;;  %s281_s20 = int_to_ptr.vmem [resolvable:$true] %s280_s20 }
  0x49   : > { %s304_s24 = sshll.u32 %s14263_s23, 4  ;;  %s14048_s26 = scalar_lea.vmem %s281_s20, 256  ;;  %s305_s24 = int_to_ptr.vmem [resolvable:$true] %s304_s24 }
  0x4a   : > { %p14049_p9 = scmp.ne.s32.totalorder %s281_s20, %s14048_s26  ;;  %p14056_p12 = scmp.lt.s32.totalorder %s281_s20, %s281_s20 }
  0x4b   : > { %p14057_p13 = scmp.lt.s32.totalorder %s14048_s26, %s14048_s26 }
  0x4c   : > { %p14051_p10 = pnand %p14049_p9, %p14364_p7 }
  0x4d   : > { %p14058_p0 = por %p14057_p13, %p14056_p12 }
  0x4e   : > { %p14052_p11 = pneg %p14051_p10 }
  0x50   : > { %p14059_p2 = pnand %p14058_p0, %p14052_p11 }
  0x52   : > { %14062 = shalt.err (!%p14059_p2)
}
  0x53   : > { %s15000_s2 = sld [smem:[#allocation25_spill]]  ;;  %s14074_s25 = scalar_lea.vmem %s305_s24, 128 }
  0x54   : > { %p14075_p5 = scmp.ne.s32.totalorder %s305_s24, %s14074_s25  ;;  %p14082_p9 = scmp.lt.s32.totalorder %s305_s24, %s305_s24 }
  0x55   : > { %p14083_p10 = scmp.lt.s32.totalorder %s14074_s25, %s14074_s25 }
  0x56   : > { %p14077_p8 = pnand %p14075_p5, %p14364_p7 }
  0x57   : > { %p14084_p1 = por %p14083_p10, %p14082_p9 }
  0x58   : > { %p14078_p4 = pneg %p14077_p8 }
  0x59   : > { %13420 = dma.hbm_to_vmem [thread:$0]  (!%p14354_p6), %s15000_s2, 256, %s281_s20, [#allocation6]  }
  0x5a   : > { %p14085_p3 = pnand %p14084_p1, %p14078_p4 }
  0x5c   : > { %14088 = shalt.err (!%p14085_p3)
}
  0x5d   : > { %s15001_s4 = sld [smem:[#allocation27_spill]]  ;;  %s14264_s13 = smov [#allocation13]  }
  0x5e   : > { %s328_s17 = sshll.u32 %s14264_s13, 4  ;;  %s14265_s21 = smov [#allocation16]   ;;  %s329_s17 = int_to_ptr.vmem [resolvable:$true] %s328_s17 }
  0x5f   : > { %s352_s14 = sshll.u32 %s14265_s21, 4  ;;  %s14100_s20 = scalar_lea.vmem %s329_s17, 64  ;;  %s353_s14 = int_to_ptr.vmem [resolvable:$true] %s352_s14 }
  0x60   : > { %p14101_p11 = scmp.ne.s32.totalorder %s329_s17, %s14100_s20  ;;  %p14108_p0 = scmp.lt.s32.totalorder %s329_s17, %s329_s17 }
  0x61   : > { %p14109_p1 = scmp.lt.s32.totalorder %s14100_s20, %s14100_s20 }
  0x62   : > { %p14103_p12 = pnand %p14101_p11, %p14364_p7 }
  0x63   : > { %13426 = dma.hbm_to_vmem [thread:$0]  (!%p14354_p6), %s15001_s4, 128, %s305_s24, [#allocation9]  }
  0x64   : > { %p14104_p13 = pneg %p14103_p12  ;;  %p14110_p3 = por %p14109_p1, %p14108_p0 }
  0x66   : > { %p14111_p4 = pnand %p14110_p3, %p14104_p13 }
  0x68   : > { %14114 = shalt.err (!%p14111_p4)
}
  0x69   : > { %13432 = dma.hbm_to_vmem [thread:$0]  (!%p14354_p6), %s14983_s6, 64, %s329_s17, [#allocation12]  }
  0x6a   : > { %s14126_s24 = scalar_lea.vmem %s353_s14, 16  ;;  %s14133_s27 = scalar_lea.vmem %s353_s14, 32 }
  0x6b   : > { %p14127_p2 = scmp.ne.s32.totalorder %s353_s14, %s14126_s24  ;;  %p14134_p9 = scmp.lt.s32.totalorder %s353_s14, %s353_s14 }
  0x6c   : > { %p14135_p10 = scmp.lt.s32.totalorder %s14133_s27, %s14126_s24 }
  0x6d   : > { %p14129_p5 = pnand %p14127_p2, %p14364_p7 }
  0x6e   : > { %p14136_p11 = por %p14135_p10, %p14134_p9 }
  0x6f   : > { %p14130_p8 = pneg %p14129_p5 }
  0x71   : > { %p14137_p12 = pnand %p14136_p11, %p14130_p8 }
  0x73   : > { %14140 = shalt.err (!%p14137_p12)
}
  0x74   : > { %13438 = dma.hbm_to_vmem [thread:$0]  (!%p14354_p6), %s14985_s8, 16, %s353_s14, [#allocation15]  }
  0x75   : > { %s11865_s22 = sadd.s32 4294967294, %s14249_s12   ;;  %s14435_s19 = sadd.s32 1, %s14249_s12  }
  0x76   : > { %s36_s28 = sadd.s32 1, %s14245_s11  ;;  %s33_s29 = ssub.s32 %s14249_s12, %s14435_s19 }
  0x77   : > { %p43_p7 = scmp.ne.s32.totalorder %s14245_s11, %s14241_s10  ;;  %p34_p13 = scmp.eq.s32.totalorder %s33_s29, 0 }
  0x78   : > { %p44_p0 = scmp.eq.s32.totalorder %s14249_s12, 0  ;;  %p49_p1 = scmp.ne.s32.totalorder %s14241_s10, %s14237_s30 }
  0x79   : > { %p241_p3 = scmp.eq.s32.totalorder %s14340_s15, 1  ;;  %p15002_p2 = scmp.eq.s32.totalorder %s14340_s15, 0 }
  0x7a   : > { %s14447_s13 = scalar_select %p34_p13, %s14245_s11, %s36_s28  }
  0x7b   : > { %p45_p4 = por %p44_p0, %p43_p7  ;;  %p14451_p5 = por %p15002_p2, %p49_p1 }
  0x7c   : > { %p14455_p6 = por %p241_p3, %p43_p7  ;;  %p247_p8 = scmp.eq.s32.totalorder %s11865_s22, 1 }
  0x7d   : > { %s15003_s17 = scalar_select %p14451_p5, 1, 0 }
  0x7e   : > { %s15004_s21 = scalar_select %p14455_p6, 1, 0 }
  0x7f   : > { %p13455_p9 = scmp.lt.s32.totalorder %s14249_s12, 2  ;;  %s363_s14 = sand.u32 1, %s14245_s11  }
  0x80   : > { %p14461_p10 = por %p247_p8, %p49_p1  ;;  %s11876_s23 = sshll.u32 %s363_s14, 3 }
  0x81   : > { %s11877_s26 = sshll.u32 %s14249_s12, 7  ;;  %s367_s25 = scalar_lea.vmem [#allocation2], %s11876_s23 }
  0x82   : > { %s15005_s20 = scalar_select %p14461_p10, 1, 0 }
  0x83   : > { %s14469_s18 = scalar_lea.hbm %s14977_s0, %s11877_s26  ;;  %s374_s28 = sshll.u32 %s367_s25, 4  ;;  %s375_s28 = int_to_ptr.vmem [resolvable:$true] %s374_s28 }
  0x84   : > { %p14471_p11 = pnand %p13455_p9, %p45_p4  ;;  %s364_s29 = scalar_lea.sflag [#allocation3], %s363_s14 }
  0x85   : > { %s14141_s1 = scalar_lea.hbm %s14469_s18, 128  ;;  %s14146_s27 = scalar_lea.hbm %s14977_s0, 256 }
  0x86   : > { %p14142_p12 = scmp.ne.s32.totalorder %s14469_s18, %s14141_s1  ;;  %p14143_p7 = pneg %p14471_p11 }
  0x87   : > { %p14147_p1 = scmp.lt.s32.totalorder %s14469_s18, %s14977_s0  ;;  %p14148_p3 = scmp.lt.s32.totalorder %s14146_s27, %s14141_s1 }
  0x88   : > { %p14144_p13 = pnand %p14143_p7, %p14142_p12 }
  0x89   : > { %p14149_p4 = por %p14148_p3, %p14147_p1 }
  0x8a   : > { %p14145_p0 = pneg %p14144_p13 }
  0x8c   : > { %p14150_p2 = pnand %p14149_p4, %p14145_p0 }
  0x8e   : > { %14153 = shalt.err (!%p14150_p2)
}
  0x8f   : > { %s14154_s25 = scalar_lea.vmem %s375_s28, 128  ;;  %s14266_s14 = smov [#allocation2]  }
  0x90   : > { %p14155_p8 = scmp.ne.s32.totalorder %s375_s28, %s14154_s25  ;;  %s14159_s3 = sshll.u32 %s14266_s14, 4  ;;  %s14160_s3 = int_to_ptr.vmem [resolvable:$false] %s14159_s3 }
  0x91   : > { %s14161_s4 = scalar_lea.vmem %s14160_s3, 256  ;;  %p14162_p12 = scmp.lt.s32.totalorder %s375_s28, %s14160_s3 }
  0x92   : > { %p14157_p9 = pnand %p14155_p8, %p14143_p7  ;;  %p14163_p13 = scmp.lt.s32.totalorder %s14161_s4, %s14154_s25 }
  0x94   : > { %p14158_p10 = pneg %p14157_p9  ;;  %p14164_p6 = por %p14163_p13, %p14162_p12 }
  0x96   : > { %p14165_p5 = pnand %p14164_p6, %p14158_p10 }
  0x98   : > { %14168 = shalt.err (!%p14165_p5)
}
  0x99   : > { %13442 = dma.hbm_to_vmem [thread:$0]  (!%p14471_p11), %s14469_s18, 128, %s375_s28, %s364_s29  }
  0x9a   : > { %p15007_p0 = scmp.ne.s32.totalorder %s14995_s16, 0 }
  0x9b   : > { %s14492_s1 = sand.u32 (!%p15007_p0), 1, %s14241_s10   ;;  %p15008_p5 = scmp.ne.s32.totalorder (!%p15007_p0), %s15003_s17, 0 }
  0x9c   : > { %383 = sbr.rel (%p15007_p0) target bundleno = 2436 (0x984), region = 56  ;;  %s11879_s2 = sshll.u32 (!%p15007_p0), %s14492_s1, 3 }
  0x9d   : > { %s386_s3 = scalar_lea.sflag (!%p15007_p0), [#allocation3], %s14492_s1  ;;  %s14498_s4 = scalar_lea.vmem (!%p15007_p0), [#allocation2], %s11879_s2 }
  0xa1   : > { %14212 = dma.done.wait (%p15008_p5), %s386_s3, 128  }
  0xa2   : > { %14214 = vsyncadd (%p15008_p5), %s386_s3, 4294967168  ;;  %p15009_p6 = scmp.eq.s32.totalorder %s14340_s15, 0 }
  0xa4   : > { %14216 = dma.done.wait (%p15009_p6), [#allocation6], 16640   ;;  %p15010_p10 = pmov %p15009_p6 }
  0xa5   : > { %p15011_p11 = pmov %p15009_p6 }
  0xa6   : > { %14218 = vsyncadd (%p15010_p10), [#allocation6], 4294950656 }
  0xa7   : > { %14220 = dma.done.wait (%p15011_p11), [#allocation9], 131200   ;;  %p15012_p7 = pmov %p15009_p6 }
  0xa8   : > { %p15013_p1 = pmov %p15009_p6 }
  0xa9   : > { %14222 = vsyncadd (%p15012_p7), [#allocation9], 4294836096 }
  0xaa   : > { %14224 = dma.done.wait (%p15013_p1), [#allocation12], 32832   ;;  %p15014_p3 = pmov %p15013_p1 }
  0xab   : > { %p15015_p4 = pmov %p15013_p1 }
  0xac   : > { %14226 = vsyncadd (%p15014_p3), [#allocation12], 4294934464 }
  0xad   : > { %14228 = dma.done.wait (%p15015_p4), [#allocation15], 4112   ;;  %p15016_p2 = pmov %p15013_p1 }
  0xae   : > { %v14267_v0 = vmov 0   ;;  %v572_v1 = vld [vmem:[#allocation5 + $0x380] sm:$0xff]  ;;  %v573_v3 = vld [vmem:[#allocation5 + $0x388] sm:$0xff]  ;;  %v574_v63 = vld [vmem:[#allocation5 + $0x390] sm:$0xff]  ;;  %s13331_s16 = sshll.u32 %s14340_s15, 7  ;;  %s455_s17 = scalar_lea.vmem [#allocation17], %s11879_s2 }
  0xaf   : > { %14230 = vsyncadd (%p15016_p2), [#allocation15], 4294963184  ;;  %1260 = vmatprep.mubr.bf16.mxu0 %v14267_v0  ;;  %1301 = vmatprep.mubr.bf16.mxu1 %v14267_v0  ;;  %v580_v2 = vld [vmem:[#allocation5 + $0x3c0] sm:$0xff]  ;;  %v581_v5 = vld [vmem:[#allocation5 + $0x3c8] sm:$0xff]  ;;  %s11719_s18 = sshll.u32 %s455_s17, 4  ;;  %s11717_s29 = scalar_lea.hbm %s14986_s9, %s13331_s16  ;;  %s11720_s18 = int_to_ptr.vmem [resolvable:$true] %s11719_s18 }
  0xb0   : > { %v12002_v4 = vcombine.high %v572_v1, %v580_v2  ;;  %v12001_v6 = vcombine.low %v572_v1, %v580_v2  ;;  %v556_v7 = vld [vmem:[#allocation5 + $0x300] sm:$0xff]  ;;  %v12004_v9 = vcombine.high %v573_v3, %v581_v5  ;;  %v12003_v10 = vcombine.low %v573_v3, %v581_v5  ;;  %v557_v12 = vld [vmem:[#allocation5 + $0x308] sm:$0xff]  ;;  %v582_v1 = vld [vmem:[#allocation5 + $0x3d0] sm:$0xff]  ;;  %s11706_s26 = scalar_lea.sflag [#allocation4], %s14492_s1  ;;  %s14169_s24 = scalar_lea.vmem %s11720_s18, 128 }
  0xb1   : > { %v564_v8 = vld [vmem:[#allocation5 + $0x340] sm:$0xff]  ;;  %v565_v13 = vld [vmem:[#allocation5 + $0x348] sm:$0xff]  ;;  %v575_v2 = vld [vmem:[#allocation5 + $0x398] sm:$0xff]  ;;  %p14170_p8 = scmp.ne.s32.totalorder %s11720_s18, %s14169_s24  ;;  %p15017_p9 = scmp.ne.s32.totalorder %s15004_s21, 0 }
  0xb2   : > { %v11986_v11 = vcombine.high %v556_v7, %v564_v8  ;;  %v540_v14 = vld [vmem:[#allocation5 + $0x280] sm:$0xff]  ;;  %1228 = vmatprep.subr.bf16.mxu0 %v12002_v4  ;;  %v11988_v15 = vcombine.high %v557_v12, %v565_v13  ;;  %v541_v17 = vld [vmem:[#allocation5 + $0x288] sm:$0xff]  ;;  %1269 = vmatprep.subr.bf16.mxu1 %v12004_v9  ;;  %v11985_v19 = vcombine.low %v556_v7, %v564_v8  ;;  %v583_v3 = vld [vmem:[#allocation5 + $0x3d8] sm:$0xff]  ;;  %s14268_s27 = smov [#allocation17]  }
  0xb3   : > { %v548_v16 = vld [vmem:[#allocation5 + $0x2c0] sm:$0xff]  ;;  %v549_v18 = vld [vmem:[#allocation5 + $0x2c8] sm:$0xff]  ;;  %1229 = vmatpush1.bf16.msra.mxu0 %v12001_v6  ;;  %1270 = vmatpush1.bf16.msra.mxu1 %v12003_v10  ;;  %v11987_v20 = vcombine.low %v557_v12, %v565_v13  ;;  %v458_v5 = vld [vmem:[%s14498_s4] sm:$0xff]  ;;  %v12006_v7 = vcombine.high %v574_v63, %v582_v1  ;;  %v12008_v8 = vcombine.high %v575_v2, %v583_v3  ;;  %p14171_p12 = pnand %p14170_p8, %p15017_p9  ;;  %s14173_s23 = sshll.u32 %s14268_s27, 4  ;;  %s14174_s23 = int_to_ptr.vmem [resolvable:$false] %s14173_s23 }
  0xb4   : > { %1230 = vmatprep.subr.bf16.mxu0 %v11986_v11  ;;  %v11970_v21 = vcombine.high %v540_v14, %v548_v16  ;;  %1271 = vmatprep.subr.bf16.mxu1 %v11988_v15  ;;  %v11972_v22 = vcombine.high %v541_v17, %v549_v18  ;;  %v524_v23 = vld [vmem:[#allocation5 + $0x200] sm:$0xff]  ;;  %v525_v25 = vld [vmem:[#allocation5 + $0x208] sm:$0xff]  ;;  %v11969_v27 = vcombine.low %v540_v14, %v548_v16  ;;  %v558_v9 = vld [vmem:[#allocation5 + $0x310] sm:$0xff]  ;;  %s14175_s15 = scalar_lea.vmem %s14174_s23, 256  ;;  %p14176_p0 = scmp.lt.s32.totalorder %s11720_s18, %s14174_s23 }
  0xb5   : > { %v532_v24 = vld [vmem:[#allocation5 + $0x240] sm:$0xff]  ;;  %v533_v26 = vld [vmem:[#allocation5 + $0x248] sm:$0xff]  ;;  %v11971_v28 = vcombine.low %v541_v17, %v549_v18  ;;  %v566_v10 = vld [vmem:[#allocation5 + $0x350] sm:$0xff]  ;;  %v14523_v11 = vpack.c.bf16 %v458_v5, %v458_v5  ;;  %v12005_v14 = vcombine.low %v574_v63, %v582_v1  ;;  %v12007_v15 = vcombine.low %v575_v2, %v583_v3  ;;  %p14172_p13 = pneg %p14171_p12  ;;  %p14177_p5 = scmp.lt.s32.totalorder %s14175_s15, %s14169_s24 }
  0xb6   : > { %v11954_v29 = vcombine.high %v524_v23, %v532_v24  ;;  %v11956_v30 = vcombine.high %v525_v25, %v533_v26  ;;  %v508_v31 = vld [vmem:[#allocation5 + $0x180] sm:$0xff]  ;;  %v509_v33 = vld [vmem:[#allocation5 + $0x188] sm:$0xff]  ;;  %v11953_v35 = vcombine.low %v524_v23, %v532_v24  ;;  %v11955_v36 = vcombine.low %v525_v25, %v533_v26  ;;  %v559_v12 = vld [vmem:[#allocation5 + $0x318] sm:$0xff] }
  0xb7   : > { %1231 = vmatpush1.bf16.msra.mxu0 %v11985_v19  ;;  %1272 = vmatpush1.bf16.msra.mxu1 %v11987_v20  ;;  %v516_v32 = vld [vmem:[#allocation5 + $0x1c0] sm:$0xff]  ;;  %v517_v34 = vld [vmem:[#allocation5 + $0x1c8] sm:$0xff]  ;;  %v567_v13 = vld [vmem:[#allocation5 + $0x358] sm:$0xff]  ;;  %v11990_v16 = vcombine.high %v558_v9, %v566_v10  ;;  %p14178_p6 = por %p14177_p5, %p14176_p0 }
  0xb8   : > { %1232 = vmatprep.subr.bf16.mxu0 %v11970_v21  ;;  %1273 = vmatprep.subr.bf16.mxu1 %v11972_v22  ;;  %v11938_v37 = vcombine.high %v508_v31, %v516_v32  ;;  %v11940_v38 = vcombine.high %v509_v33, %v517_v34  ;;  %v492_v39 = vld [vmem:[#allocation5 + $0x100] sm:$0xff]  ;;  %v493_v41 = vld [vmem:[#allocation5 + $0x108] sm:$0xff]  ;;  %v11937_v43 = vcombine.low %v508_v31, %v516_v32  ;;  %v542_v18 = vld [vmem:[#allocation5 + $0x290] sm:$0xff] }
  0xb9   : > { %v500_v40 = vld [vmem:[#allocation5 + $0x140] sm:$0xff]  ;;  %v501_v42 = vld [vmem:[#allocation5 + $0x148] sm:$0xff]  ;;  %v11939_v44 = vcombine.low %v509_v33, %v517_v34  ;;  %v11992_v17 = vcombine.high %v559_v12, %v567_v13  ;;  %v550_v19 = vld [vmem:[#allocation5 + $0x2d0] sm:$0xff]  ;;  %v11989_v22 = vcombine.low %v558_v9, %v566_v10  ;;  %v11991_v23 = vcombine.low %v559_v12, %v567_v13  ;;  %p14179_p10 = pnand %p14178_p6, %p14172_p13 }
  0xba   : > { %v11922_v45 = vcombine.high %v492_v39, %v500_v40  ;;  %v11924_v46 = vcombine.high %v493_v41, %v501_v42  ;;  %v476_v47 = vld [vmem:[#allocation5 + $0x80] sm:$0xff]  ;;  %v477_v49 = vld [vmem:[#allocation5 + $0x88] sm:$0xff]  ;;  %v11921_v51 = vcombine.low %v492_v39, %v500_v40  ;;  %v11923_v52 = vcombine.low %v493_v41, %v501_v42  ;;  %v543_v20 = vld [vmem:[#allocation5 + $0x298] sm:$0xff] }
  0xbb   : > { %1233 = vmatpush1.bf16.msra.mxu0 %v11969_v27  ;;  %1274 = vmatpush1.bf16.msra.mxu1 %v11971_v28  ;;  %v484_v48 = vld [vmem:[#allocation5 + $0xc0] sm:$0xff]  ;;  %v485_v50 = vld [vmem:[#allocation5 + $0xc8] sm:$0xff]  ;;  %v551_v21 = vld [vmem:[#allocation5 + $0x2d8] sm:$0xff]  ;;  %v11974_v24 = vcombine.high %v542_v18, %v550_v19 }
  0xbc   : > { %1234 = vmatprep.subr.bf16.mxu0 %v11954_v29  ;;  %1275 = vmatprep.subr.bf16.mxu1 %v11956_v30  ;;  %v11906_v53 = vcombine.high %v476_v47, %v484_v48  ;;  %v11908_v54 = vcombine.high %v477_v49, %v485_v50  ;;  %v460_v55 = vld [vmem:[#allocation5] sm:$0xff]  ;;  %v461_v57 = vld [vmem:[#allocation5 + $0x8] sm:$0xff]  ;;  %v11905_v59 = vcombine.low %v476_v47, %v484_v48  ;;  %v526_v26 = vld [vmem:[#allocation5 + $0x210] sm:$0xff] }
  0xbd   : > { %v468_v56 = vld [vmem:[#allocation5 + $0x40] sm:$0xff]  ;;  %v469_v58 = vld [vmem:[#allocation5 + $0x48] sm:$0xff]  ;;  %v11907_v60 = vcombine.low %v477_v49, %v485_v50  ;;  %v11976_v25 = vcombine.high %v543_v20, %v551_v21  ;;  %v534_v27 = vld [vmem:[#allocation5 + $0x250] sm:$0xff]  ;;  %v11973_v30 = vcombine.low %v542_v18, %v550_v19  ;;  %v11975_v31 = vcombine.low %v543_v20, %v551_v21 }
  0xbe   : > { %v11890_v61 = vcombine.high %v460_v55, %v468_v56  ;;  %v11892_v62 = vcombine.high %v461_v57, %v469_v58  ;;  %v11889_v4 = vcombine.low %v460_v55, %v468_v56  ;;  %v11891_v6 = vcombine.low %v461_v57, %v469_v58  ;;  %v527_v28 = vld [vmem:[#allocation5 + $0x218] sm:$0xff]  ;;  %v510_v34 = vld [vmem:[#allocation5 + $0x190] sm:$0xff]  ;;  %v576_v3 = vld [vmem:[#allocation5 + $0x3a0] sm:$0xff] }
  0xbf   : > { %1235 = vmatpush1.bf16.msra.mxu0 %v11953_v35  ;;  %1276 = vmatpush1.bf16.msra.mxu1 %v11955_v36  ;;  %v535_v29 = vld [vmem:[#allocation5 + $0x258] sm:$0xff]  ;;  %v11958_v32 = vcombine.high %v526_v26, %v534_v27  ;;  %v518_v35 = vld [vmem:[#allocation5 + $0x1d0] sm:$0xff]  ;;  %v577_v5 = vld [vmem:[#allocation5 + $0x3a8] sm:$0xff] }
  0xc0   : > { %1236 = vmatprep.subr.bf16.mxu0 %v11938_v37  ;;  %1277 = vmatprep.subr.bf16.mxu1 %v11940_v38  ;;  %v11960_v33 = vcombine.high %v527_v28, %v535_v29  ;;  %v511_v36 = vld [vmem:[#allocation5 + $0x198] sm:$0xff]  ;;  %v11957_v38 = vcombine.low %v526_v26, %v534_v27  ;;  %v11959_v39 = vcombine.low %v527_v28, %v535_v29  ;;  %v494_v42 = vld [vmem:[#allocation5 + $0x110] sm:$0xff]  ;;  %v568_v9 = vld [vmem:[#allocation5 + $0x360] sm:$0xff] }
  0xc1   : > { %v519_v37 = vld [vmem:[#allocation5 + $0x1d8] sm:$0xff]  ;;  %v11942_v40 = vcombine.high %v510_v34, %v518_v35  ;;  %v478_v50 = vld [vmem:[#allocation5 + $0x90] sm:$0xff]  ;;  %v561_v13 = vld [vmem:[#allocation5 + $0x328] sm:$0xff] }
  0xc2   : > { %v11944_v41 = vcombine.high %v511_v36, %v519_v37  ;;  %v11943_v47 = vcombine.low %v511_v36, %v519_v37  ;;  %v462_v58 = vld [vmem:[#allocation5 + $0x10] sm:$0xff]  ;;  %v552_v18 = vld [vmem:[#allocation5 + $0x2e0] sm:$0xff]  ;;  %v545_v21 = vld [vmem:[#allocation5 + $0x2a8] sm:$0xff] }
  0xc3   : > { %1237 = vmatpush1.bf16.msra.mxu0 %v11937_v43  ;;  %1278 = vmatpush1.bf16.msra.mxu1 %v11939_v44  ;;  %v502_v43 = vld [vmem:[#allocation5 + $0x150] sm:$0xff]  ;;  %v495_v44 = vld [vmem:[#allocation5 + $0x118] sm:$0xff]  ;;  %v536_v26 = vld [vmem:[#allocation5 + $0x260] sm:$0xff] }
  0xc4   : > { %1238 = vmatprep.subr.bf16.mxu0 %v11922_v45  ;;  %1279 = vmatprep.subr.bf16.mxu1 %v11924_v46  ;;  %v503_v45 = vld [vmem:[#allocation5 + $0x158] sm:$0xff]  ;;  %v11941_v46 = vcombine.low %v510_v34, %v518_v35  ;;  %v11926_v48 = vcombine.high %v494_v42, %v502_v43  ;;  %v529_v29 = vld [vmem:[#allocation5 + $0x228] sm:$0xff]  ;;  %v520_v34 = vld [vmem:[#allocation5 + $0x1e0] sm:$0xff] }
  0xc5   : > { %v11928_v49 = vcombine.high %v495_v44, %v503_v45  ;;  %v11927_v55 = vcombine.low %v495_v44, %v503_v45  ;;  %v513_v37 = vld [vmem:[#allocation5 + $0x1a8] sm:$0xff] }
  0xc6   : > { %v497_v45 = vld [vmem:[#allocation5 + $0x128] sm:$0xff] }
  0xc7   : > { %1239 = vmatpush1.bf16.msra.mxu0 %v11921_v51  ;;  %1280 = vmatpush1.bf16.msra.mxu1 %v11923_v52  ;;  %v486_v51 = vld [vmem:[#allocation5 + $0xd0] sm:$0xff]  ;;  %v479_v52 = vld [vmem:[#allocation5 + $0x98] sm:$0xff] }
  0xc8   : > { %1240 = vmatprep.subr.bf16.mxu0 %v11906_v53  ;;  %1281 = vmatprep.subr.bf16.mxu1 %v11908_v54  ;;  %v487_v53 = vld [vmem:[#allocation5 + $0xd8] sm:$0xff]  ;;  %v11925_v54 = vcombine.low %v494_v42, %v502_v43  ;;  %v11910_v56 = vcombine.high %v478_v50, %v486_v51  ;;  %v504_v42 = vld [vmem:[#allocation5 + $0x160] sm:$0xff] }
  0xc9   : > { %v11912_v57 = vcombine.high %v479_v52, %v487_v53  ;;  %v11911_v63 = vcombine.low %v479_v52, %v487_v53  ;;  %v481_v53 = vld [vmem:[#allocation5 + $0xa8] sm:$0xff] }
  0xcb   : > { %1241 = vmatpush1.bf16.msra.mxu0 %v11905_v59  ;;  %1282 = vmatpush1.bf16.msra.mxu1 %v11907_v60  ;;  %v470_v59 = vld [vmem:[#allocation5 + $0x50] sm:$0xff]  ;;  %v463_v60 = vld [vmem:[#allocation5 + $0x18] sm:$0xff] }
  0xcc   : > { %1242 = vmatprep.subr.bf16.mxu0 %v11890_v61  ;;  %1283 = vmatprep.subr.bf16.mxu1 %v11892_v62  ;;  %v471_v61 = vld [vmem:[#allocation5 + $0x58] sm:$0xff]  ;;  %v11909_v62 = vcombine.low %v478_v50, %v486_v51  ;;  %v11894_v1 = vcombine.high %v462_v58, %v470_v59  ;;  %v488_v50 = vld [vmem:[#allocation5 + $0xe0] sm:$0xff] }
  0xcd   : > { %v11896_v2 = vcombine.high %v463_v60, %v471_v61  ;;  %v11895_v10 = vcombine.low %v463_v60, %v471_v61  ;;  %v465_v61 = vld [vmem:[#allocation5 + $0x28] sm:$0xff] }
  0xcf   : > { %1243 = vmatpush1.bf16.msra.mxu0 %v11889_v4  ;;  %1284 = vmatpush1.bf16.msra.mxu1 %v11891_v6  ;;  %v584_v4 = vld [vmem:[#allocation5 + $0x3e0] sm:$0xff]  ;;  %v585_v6 = vld [vmem:[#allocation5 + $0x3e8] sm:$0xff] }
  0xd0   : > { %1310 = vmatprep.subr.bf16.mxu0 %v12006_v7  ;;  %1351 = vmatprep.subr.bf16.mxu1 %v12008_v8  ;;  %v11893_v7 = vcombine.low %v462_v58, %v470_v59  ;;  %v560_v8 = vld [vmem:[#allocation5 + $0x320] sm:$0xff]  ;;  %v12010_v12 = vcombine.high %v576_v3, %v584_v4  ;;  %v12011_v19 = vcombine.low %v577_v5, %v585_v6 }
  0xd1   : > { %v11994_v20 = vcombine.high %v560_v8, %v568_v9  ;;  %v472_v58 = vld [vmem:[#allocation5 + $0x60] sm:$0xff] }
  0xd2   : > { %1261 = vmatmul.mubr.bf16.vlgmr.msra.gmra.mxu0 %v14523_v11  ;;  %1302 = vmatmul.mubr.bf16.vlgmr.msra.gmra.mxu1 %v14523_v11 }
  0xd3   : > { %1311 = vmatpush1.bf16.msra.mxu0 %v12005_v14  ;;  %1352 = vmatpush1.bf16.msra.mxu1 %v12007_v15  ;;  %v569_v14 = vld [vmem:[#allocation5 + $0x368] sm:$0xff]  ;;  %v12012_v15 = vcombine.high %v577_v5, %v585_v6  ;;  %v579_v6 = vld [vmem:[#allocation5 + $0x3b8] sm:$0xff] }
  0xd4   : > { %1312 = vmatprep.subr.bf16.mxu0 %v11990_v16  ;;  %1353 = vmatprep.subr.bf16.mxu1 %v11992_v17  ;;  %v12009_v16 = vcombine.low %v576_v3, %v584_v4  ;;  %v544_v17 = vld [vmem:[#allocation5 + $0x2a0] sm:$0xff]  ;;  %v11995_v27 = vcombine.low %v561_v13, %v569_v14  ;;  %v586_v3 = vld [vmem:[#allocation5 + $0x3f0] sm:$0xff] }
  0xd5   : > { %1342 = vmatprep.mubr.bf16.mxu0 %v14267_v0  ;;  %1383 = vmatprep.mubr.bf16.mxu1 %v14267_v0  ;;  %v11978_v28 = vcombine.high %v544_v17, %v552_v18 }
  0xd7   : > { %1313 = vmatpush1.bf16.msra.mxu0 %v11989_v22  ;;  %1354 = vmatpush1.bf16.msra.mxu1 %v11991_v23  ;;  %v553_v22 = vld [vmem:[#allocation5 + $0x2e8] sm:$0xff]  ;;  %v11996_v23 = vcombine.high %v561_v13, %v569_v14 }
  0xd8   : > { %1314 = vmatprep.subr.bf16.mxu0 %v11974_v24  ;;  %1355 = vmatprep.subr.bf16.mxu1 %v11976_v25  ;;  %v11993_v24 = vcombine.low %v560_v8, %v568_v9  ;;  %v528_v25 = vld [vmem:[#allocation5 + $0x220] sm:$0xff]  ;;  %v11979_v35 = vcombine.low %v545_v21, %v553_v22 }
  0xd9   : > { %v11962_v36 = vcombine.high %v528_v25, %v536_v26 }
  0xdb   : > { %1315 = vmatpush1.bf16.msra.mxu0 %v11973_v30  ;;  %1356 = vmatpush1.bf16.msra.mxu1 %v11975_v31  ;;  %v537_v30 = vld [vmem:[#allocation5 + $0x268] sm:$0xff]  ;;  %v11980_v31 = vcombine.high %v545_v21, %v553_v22 }
  0xdc   : > { %1316 = vmatprep.subr.bf16.mxu0 %v11958_v32  ;;  %1357 = vmatprep.subr.bf16.mxu1 %v11960_v33  ;;  %v11977_v32 = vcombine.low %v544_v17, %v552_v18  ;;  %v512_v33 = vld [vmem:[#allocation5 + $0x1a0] sm:$0xff]  ;;  %v11963_v43 = vcombine.low %v529_v29, %v537_v30  ;;  %v571_v17 = vld [vmem:[#allocation5 + $0x378] sm:$0xff] }
  0xdd   : > { %v11946_v44 = vcombine.high %v512_v33, %v520_v34 }
  0xdf   : > { %1317 = vmatpush1.bf16.msra.mxu0 %v11957_v38  ;;  %1358 = vmatpush1.bf16.msra.mxu1 %v11959_v39  ;;  %v521_v38 = vld [vmem:[#allocation5 + $0x1e8] sm:$0xff]  ;;  %v11964_v39 = vcombine.high %v529_v29, %v537_v30 }
  0xe0   : > { %1318 = vmatprep.subr.bf16.mxu0 %v11942_v40  ;;  %1359 = vmatprep.subr.bf16.mxu1 %v11944_v41  ;;  %v11961_v40 = vcombine.low %v528_v25, %v536_v26  ;;  %v496_v41 = vld [vmem:[#allocation5 + $0x120] sm:$0xff]  ;;  %v11947_v51 = vcombine.low %v513_v37, %v521_v38 }
  0xe1   : > { %v11930_v52 = vcombine.high %v496_v41, %v504_v42 }
  0xe3   : > { %1319 = vmatpush1.bf16.msra.mxu0 %v11941_v46  ;;  %1360 = vmatpush1.bf16.msra.mxu1 %v11943_v47  ;;  %v505_v46 = vld [vmem:[#allocation5 + $0x168] sm:$0xff]  ;;  %v11948_v47 = vcombine.high %v513_v37, %v521_v38 }
  0xe4   : > { %1320 = vmatprep.subr.bf16.mxu0 %v11926_v48  ;;  %1361 = vmatprep.subr.bf16.mxu1 %v11928_v49  ;;  %v11945_v48 = vcombine.low %v512_v33, %v520_v34  ;;  %v480_v49 = vld [vmem:[#allocation5 + $0xa0] sm:$0xff]  ;;  %v11931_v59 = vcombine.low %v497_v45, %v505_v46 }
  0xe5   : > { %v11914_v60 = vcombine.high %v480_v49, %v488_v50 }
  0xe7   : > { %1321 = vmatpush1.bf16.msra.mxu0 %v11925_v54  ;;  %1362 = vmatpush1.bf16.msra.mxu1 %v11927_v55  ;;  %v489_v54 = vld [vmem:[#allocation5 + $0xe8] sm:$0xff]  ;;  %v11932_v55 = vcombine.high %v497_v45, %v505_v46 }
  0xe8   : > { %1322 = vmatprep.subr.bf16.mxu0 %v11910_v56  ;;  %1363 = vmatprep.subr.bf16.mxu1 %v11912_v57  ;;  %v11929_v56 = vcombine.low %v496_v41, %v504_v42  ;;  %v464_v57 = vld [vmem:[#allocation5 + $0x20] sm:$0xff]  ;;  %v11915_v4 = vcombine.low %v481_v53, %v489_v54 }
  0xe9   : > { %v11898_v5 = vcombine.high %v464_v57, %v472_v58  ;;  %v11897_v9 = vcombine.low %v464_v57, %v472_v58  ;;  %v491_v57 = vld [vmem:[#allocation5 + $0xf8] sm:$0xff] }
  0xeb   : > { %1323 = vmatpush1.bf16.msra.mxu0 %v11909_v62  ;;  %1364 = vmatpush1.bf16.msra.mxu1 %v11911_v63  ;;  %v473_v62 = vld [vmem:[#allocation5 + $0x68] sm:$0xff]  ;;  %v11916_v63 = vcombine.high %v481_v53, %v489_v54  ;;  %v482_v53 = vld [vmem:[#allocation5 + $0xb0] sm:$0xff] }
  0xec   : > { %1324 = vmatprep.subr.bf16.mxu0 %v11894_v1  ;;  %1365 = vmatprep.subr.bf16.mxu1 %v11896_v2  ;;  %v11913_v1 = vcombine.low %v480_v49, %v488_v50  ;;  %v578_v2 = vld [vmem:[#allocation5 + $0x3b0] sm:$0xff]  ;;  %v11900_v8 = vcombine.high %v465_v61, %v473_v62  ;;  %v11899_v13 = vcombine.low %v465_v61, %v473_v62 }
  0xed   : > { %v12014_v14 = vcombine.high %v578_v2, %v586_v3  ;;  %v12013_v18 = vcombine.low %v578_v2, %v586_v3  ;;  %v490_v54 = vld [vmem:[#allocation5 + $0xf0] sm:$0xff]  ;;  %v475_v2 = vld [vmem:[#allocation5 + $0x78] sm:$0xff] }
  0xee   : > { %v466_v61 = vld [vmem:[#allocation5 + $0x30] sm:$0xff]  ;;  %v11917_v3 = vcombine.low %v482_v53, %v490_v54 }
  0xef   : > { %1325 = vmatpush1.bf16.msra.mxu0 %v11893_v7  ;;  %1366 = vmatpush1.bf16.msra.mxu1 %v11895_v10  ;;  %v587_v7 = vld [vmem:[#allocation5 + $0x3f8] sm:$0xff]  ;;  %v562_v10 = vld [vmem:[#allocation5 + $0x330] sm:$0xff] }
  0xf0   : > { %1392 = vmatprep.subr.bf16.mxu0 %v12010_v12  ;;  %1433 = vmatprep.subr.bf16.mxu1 %v12012_v15  ;;  %v570_v12 = vld [vmem:[#allocation5 + $0x370] sm:$0xff]  ;;  %v563_v15 = vld [vmem:[#allocation5 + $0x338] sm:$0xff]  ;;  %v12015_v21 = vcombine.low %v579_v6, %v587_v7 }
  0xf1   : > { %v11998_v22 = vcombine.high %v562_v10, %v570_v12  ;;  %v12000_v25 = vcombine.high %v563_v15, %v571_v17  ;;  %v11997_v26 = vcombine.low %v562_v10, %v570_v12  ;;  %v11999_v29 = vcombine.low %v563_v15, %v571_v17  ;;  %v474_v62 = vld [vmem:[#allocation5 + $0x70] sm:$0xff] }
  0xf2   : > { %1343 = vmatmul.mubr.bf16.vlgmr.msra.gmra.mxu0 %v14523_v11  ;;  %1384 = vmatmul.mubr.bf16.vlgmr.msra.gmra.mxu1 %v14523_v11  ;;  %v2020_v10 = vld [vmem:[#allocation8 + $0x5e0] sm:$0xff]  ;;  %v11901_v12 = vcombine.low %v466_v61, %v474_v62 }
  0xf3   : > { %1393 = vmatpush1.bf16.msra.mxu0 %v12009_v16  ;;  %1434 = vmatpush1.bf16.msra.mxu1 %v12011_v19  ;;  %v12016_v16 = vcombine.high %v579_v6, %v587_v7  ;;  %v546_v19 = vld [vmem:[#allocation5 + $0x2b0] sm:$0xff] }
  0xf4   : > { %1394 = vmatprep.subr.bf16.mxu0 %v11994_v20  ;;  %1435 = vmatprep.subr.bf16.mxu1 %v11996_v23  ;;  %v554_v20 = vld [vmem:[#allocation5 + $0x2f0] sm:$0xff]  ;;  %v547_v23 = vld [vmem:[#allocation5 + $0x2b8] sm:$0xff] }
  0xf5   : > { %1424 = vmatprep.mubr.bf16.mxu0 %v14267_v0  ;;  %1465 = vmatprep.mubr.bf16.mxu1 %v14267_v0  ;;  %v11982_v30 = vcombine.high %v546_v19, %v554_v20  ;;  %v11981_v34 = vcombine.low %v546_v19, %v554_v20  ;;  %v1888_v6 = vld [vmem:[#allocation8 + $0x1c0] sm:$0xff] }
  0xf6   : > { %v1892_v7 = vld [vmem:[#allocation8 + $0x1e0] sm:$0xff] }
  0xf7   : > { %1395 = vmatpush1.bf16.msra.mxu0 %v11993_v24  ;;  %1436 = vmatpush1.bf16.msra.mxu1 %v11995_v27  ;;  %v555_v24 = vld [vmem:[#allocation5 + $0x2f8] sm:$0xff]  ;;  %v530_v27 = vld [vmem:[#allocation5 + $0x230] sm:$0xff]  ;;  %v12073_v20 = vcombine.low %v1888_v6, %v1892_v7 }
  0xf8   : > { %1396 = vmatprep.subr.bf16.mxu0 %v11978_v28  ;;  %1437 = vmatprep.subr.bf16.mxu1 %v11980_v31  ;;  %v538_v28 = vld [vmem:[#allocation5 + $0x270] sm:$0xff]  ;;  %v531_v31 = vld [vmem:[#allocation5 + $0x238] sm:$0xff]  ;;  %v11984_v33 = vcombine.high %v547_v23, %v555_v24  ;;  %v11983_v37 = vcombine.low %v547_v23, %v555_v24 }
  0xf9   : > { %v11966_v38 = vcombine.high %v530_v27, %v538_v28  ;;  %v11965_v42 = vcombine.low %v530_v27, %v538_v28  ;;  %v1880_v15 = vld [vmem:[#allocation8 + $0x180] sm:$0xff] }
  0xfa   : > { %v2008_v17 = vld [vmem:[#allocation8 + $0x580] sm:$0xff] }
  0xfb   : > { %1397 = vmatpush1.bf16.msra.mxu0 %v11977_v32  ;;  %1438 = vmatpush1.bf16.msra.mxu1 %v11979_v35  ;;  %v539_v32 = vld [vmem:[#allocation5 + $0x278] sm:$0xff]  ;;  %v514_v35 = vld [vmem:[#allocation5 + $0x1b0] sm:$0xff] }
  0xfc   : > { %1398 = vmatprep.subr.bf16.mxu0 %v11962_v36  ;;  %1439 = vmatprep.subr.bf16.mxu1 %v11964_v39  ;;  %v522_v36 = vld [vmem:[#allocation5 + $0x1f0] sm:$0xff]  ;;  %v515_v39 = vld [vmem:[#allocation5 + $0x1b8] sm:$0xff]  ;;  %v11968_v41 = vcombine.high %v531_v31, %v539_v32  ;;  %v11967_v45 = vcombine.low %v531_v31, %v539_v32 }
  0xfd   : > { %v11950_v46 = vcombine.high %v514_v35, %v522_v36  ;;  %v11949_v50 = vcombine.low %v514_v35, %v522_v36  ;;  %v2012_v19 = vld [vmem:[#allocation8 + $0x5a0] sm:$0xff] }
  0xfe   : > { %v1872_v23 = vld [vmem:[#allocation8 + $0x140] sm:$0xff] }
  0xff   : > { %1399 = vmatpush1.bf16.msra.mxu0 %v11961_v40  ;;  %1440 = vmatpush1.bf16.msra.mxu1 %v11963_v43  ;;  %v523_v40 = vld [vmem:[#allocation5 + $0x1f8] sm:$0xff]  ;;  %v498_v43 = vld [vmem:[#allocation5 + $0x130] sm:$0xff] }
 0x100   : > { %1400 = vmatprep.subr.bf16.mxu0 %v11946_v44  ;;  %1441 = vmatprep.subr.bf16.mxu1 %v11948_v47  ;;  %v506_v44 = vld [vmem:[#allocation5 + $0x170] sm:$0xff]  ;;  %v499_v47 = vld [vmem:[#allocation5 + $0x138] sm:$0xff]  ;;  %v11952_v49 = vcombine.high %v515_v39, %v523_v40 }
 0x101   : > { %v11933_v58 = vcombine.low %v498_v43, %v506_v44  ;;  %v1876_v24 = vld [vmem:[#allocation8 + $0x160] sm:$0xff] }
 0x102   : > { %v2004_v27 = vld [vmem:[#allocation8 + $0x560] sm:$0xff]  ;;  %v12057_v36 = vcombine.low %v1872_v23, %v1876_v24 }
 0x103   : > { %1401 = vmatpush1.bf16.msra.mxu0 %v11945_v48  ;;  %1442 = vmatpush1.bf16.msra.mxu1 %v11947_v51  ;;  %v507_v48 = vld [vmem:[#allocation5 + $0x178] sm:$0xff]  ;;  %v11951_v51 = vcombine.low %v515_v39, %v523_v40  ;;  %v1864_v31 = vld [vmem:[#allocation8 + $0x100] sm:$0xff] }
 0x104   : > { %1402 = vmatprep.subr.bf16.mxu0 %v11930_v52  ;;  %1443 = vmatprep.subr.bf16.mxu1 %v11932_v55  ;;  %v11934_v52 = vcombine.high %v498_v43, %v506_v44  ;;  %v483_v55 = vld [vmem:[#allocation5 + $0xb8] sm:$0xff]  ;;  %v1868_v32 = vld [vmem:[#allocation8 + $0x120] sm:$0xff] }
 0x105   : > { %v1996_v35 = vld [vmem:[#allocation8 + $0x520] sm:$0xff]  ;;  %v12049_v43 = vcombine.low %v1864_v31, %v1868_v32 }
 0x106   : > { %v1856_v39 = vld [vmem:[#allocation8 + $0xc0] sm:$0xff] }
 0x107   : > { %1403 = vmatpush1.bf16.msra.mxu0 %v11929_v56  ;;  %1444 = vmatpush1.bf16.msra.mxu1 %v11931_v59  ;;  %v11936_v56 = vcombine.high %v499_v47, %v507_v48  ;;  %v11935_v59 = vcombine.low %v499_v47, %v507_v48  ;;  %v1984_v40 = vld [vmem:[#allocation8 + $0x4c0] sm:$0xff] }
 0x108   : > { %1404 = vmatprep.subr.bf16.mxu0 %v11914_v60  ;;  %1445 = vmatprep.subr.bf16.mxu1 %v11916_v63  ;;  %v11918_v60 = vcombine.high %v482_v53, %v490_v54  ;;  %v467_v63 = vld [vmem:[#allocation5 + $0x38] sm:$0xff]  ;;  %v1852_v47 = vld [vmem:[#allocation8 + $0xa0] sm:$0xff] }
 0x109   : > { %v1976_v48 = vld [vmem:[#allocation8 + $0x480] sm:$0xff] }
 0x10a   : > { %v1840_v54 = vld [vmem:[#allocation8 + $0x40] sm:$0xff] }
 0x10b   : > { %1405 = vmatpush1.bf16.msra.mxu0 %v11913_v1  ;;  %1446 = vmatpush1.bf16.msra.mxu1 %v11915_v4  ;;  %v11920_v1 = vcombine.high %v483_v55, %v491_v57  ;;  %v11919_v4 = vcombine.low %v483_v55, %v491_v57  ;;  %v1844_v55 = vld [vmem:[#allocation8 + $0x60] sm:$0xff] }
 0x10c   : > { %1406 = vmatprep.subr.bf16.mxu0 %v11898_v5  ;;  %1447 = vmatprep.subr.bf16.mxu1 %v11900_v8  ;;  %v11902_v5 = vcombine.high %v466_v61, %v474_v62  ;;  %v2016_v8 = vld [vmem:[#allocation8 + $0x5c0] sm:$0xff]  ;;  %v12026_v61 = vcombine.high %v1840_v54, %v1844_v55 }
 0x10d   : > { %v1832_v62 = vld [vmem:[#allocation8] sm:$0xff] }
 0x10f   : > { %1407 = vmatpush1.bf16.msra.mxu0 %v11897_v9  ;;  %1448 = vmatpush1.bf16.msra.mxu1 %v11899_v13  ;;  %v11904_v9 = vcombine.high %v467_v63, %v475_v2  ;;  %v11903_v13 = vcombine.low %v467_v63, %v475_v2  ;;  %v1836_v63 = vld [vmem:[#allocation8 + $0x20] sm:$0xff] }
 0x110   : > { %1474 = vmatprep.subr.bf16.mxu0 %v12014_v14  ;;  %1515 = vmatprep.subr.bf16.mxu1 %v12016_v16  ;;  %v12074_v14 = vcombine.high %v1888_v6, %v1892_v7  ;;  %v1884_v16 = vld [vmem:[#allocation8 + $0x1a0] sm:$0xff]  ;;  %v12018_v6 = vcombine.high %v1832_v62, %v1836_v63 }
 0x111   : > { %v12065_v28 = vcombine.low %v1880_v15, %v1884_v16  ;;  %v1952_v7 = vld [vmem:[#allocation8 + $0x3c0] sm:$0xff] }
 0x112   : > { %1425 = vmatmul.mubr.bf16.vlgmr.msra.gmra.mxu0 %v14523_v11  ;;  %1466 = vmatmul.mubr.bf16.vlgmr.msra.gmra.mxu1 %v14523_v11 }
 0x113   : > { %1475 = vmatpush1.bf16.msra.mxu0 %v12013_v18  ;;  %1516 = vmatpush1.bf16.msra.mxu1 %v12015_v21  ;;  %v12202_v18 = vcombine.high %v2016_v8, %v2020_v10  ;;  %v12201_v21 = vcombine.low %v2016_v8, %v2020_v10  ;;  %v1956_v8 = vld [vmem:[#allocation8 + $0x3e0] sm:$0xff] }
 0x114   : > { %1476 = vmatprep.subr.bf16.mxu0 %v11998_v22  ;;  %1517 = vmatprep.subr.bf16.mxu1 %v12000_v25  ;;  %v12066_v22 = vcombine.high %v1880_v15, %v1884_v16  ;;  %v2000_v25 = vld [vmem:[#allocation8 + $0x540] sm:$0xff]  ;;  %v12138_v15 = vcombine.high %v1952_v7, %v1956_v8 }
 0x115   : > { %1506 = vmatprep.mubr.bf16.mxu0 %v14267_v0  ;;  %1547 = vmatprep.mubr.bf16.mxu1 %v14267_v0  ;;  %v1944_v16 = vld [vmem:[#allocation8 + $0x380] sm:$0xff] }
 0x117   : > { %1477 = vmatpush1.bf16.msra.mxu0 %v11997_v26  ;;  %1518 = vmatpush1.bf16.msra.mxu1 %v11999_v29  ;;  %v12194_v26 = vcombine.high %v2008_v17, %v2012_v19  ;;  %v12193_v29 = vcombine.low %v2008_v17, %v2012_v19  ;;  %v1948_v17 = vld [vmem:[#allocation8 + $0x3a0] sm:$0xff] }
 0x118   : > { %1478 = vmatprep.subr.bf16.mxu0 %v11982_v30  ;;  %1519 = vmatprep.subr.bf16.mxu1 %v11984_v33  ;;  %v12058_v30 = vcombine.high %v1872_v23, %v1876_v24  ;;  %v1992_v33 = vld [vmem:[#allocation8 + $0x500] sm:$0xff]  ;;  %v12130_v23 = vcombine.high %v1944_v16, %v1948_v17 }
 0x119   : > { %v12177_v44 = vcombine.low %v1992_v33, %v1996_v35  ;;  %v1936_v24 = vld [vmem:[#allocation8 + $0x340] sm:$0xff] }
 0x11b   : > { %1479 = vmatpush1.bf16.msra.mxu0 %v11981_v34  ;;  %1520 = vmatpush1.bf16.msra.mxu1 %v11983_v37  ;;  %v12186_v34 = vcombine.high %v2000_v25, %v2004_v27  ;;  %v12185_v37 = vcombine.low %v2000_v25, %v2004_v27  ;;  %v1940_v25 = vld [vmem:[#allocation8 + $0x360] sm:$0xff] }
 0x11c   : > { %1480 = vmatprep.subr.bf16.mxu0 %v11966_v38  ;;  %1521 = vmatprep.subr.bf16.mxu1 %v11968_v41  ;;  %v12050_v38 = vcombine.high %v1864_v31, %v1868_v32  ;;  %v12178_v41 = vcombine.high %v1992_v33, %v1996_v35  ;;  %v12122_v31 = vcombine.high %v1936_v24, %v1940_v25  ;;  %v1928_v32 = vld [vmem:[#allocation8 + $0x300] sm:$0xff] }
 0x11d   : > { %v1932_v33 = vld [vmem:[#allocation8 + $0x320] sm:$0xff] }
 0x11f   : > { %1481 = vmatpush1.bf16.msra.mxu0 %v11965_v42  ;;  %1522 = vmatpush1.bf16.msra.mxu1 %v11967_v45  ;;  %v1988_v42 = vld [vmem:[#allocation8 + $0x4e0] sm:$0xff] }
 0x120   : > { %1482 = vmatprep.subr.bf16.mxu0 %v11950_v46  ;;  %1523 = vmatprep.subr.bf16.mxu1 %v11952_v49  ;;  %v1848_v46 = vld [vmem:[#allocation8 + $0x80] sm:$0xff]  ;;  %v12170_v49 = vcombine.high %v1984_v40, %v1988_v42 }
 0x121   : > { %v12034_v53 = vcombine.high %v1848_v46, %v1852_v47 }
 0x123   : > { %1483 = vmatpush1.bf16.msra.mxu0 %v11949_v50  ;;  %1524 = vmatpush1.bf16.msra.mxu1 %v11951_v51  ;;  %v1980_v50 = vld [vmem:[#allocation8 + $0x4a0] sm:$0xff] }
 0x124   : > { %1484 = vmatprep.subr.bf16.mxu0 %v11934_v52  ;;  %1525 = vmatprep.subr.bf16.mxu1 %v11936_v56  ;;  %v12169_v52 = vcombine.low %v1984_v40, %v1988_v42  ;;  %v1968_v56 = vld [vmem:[#allocation8 + $0x440] sm:$0xff]  ;;  %v12162_v57 = vcombine.high %v1976_v48, %v1980_v50 }
 0x125   : > { %v1924_v40 = vld [vmem:[#allocation8 + $0x2e0] sm:$0xff] }
 0x127   : > { %1485 = vmatpush1.bf16.msra.mxu0 %v11933_v58  ;;  %1526 = vmatpush1.bf16.msra.mxu1 %v11935_v59  ;;  %v1972_v58 = vld [vmem:[#allocation8 + $0x460] sm:$0xff]  ;;  %v12033_v59 = vcombine.low %v1848_v46, %v1852_v47 }
 0x128   : > { %1486 = vmatprep.subr.bf16.mxu0 %v11918_v60  ;;  %1527 = vmatprep.subr.bf16.mxu1 %v11920_v1  ;;  %v12161_v60 = vcombine.low %v1976_v48, %v1980_v50  ;;  %v1960_v1 = vld [vmem:[#allocation8 + $0x400] sm:$0xff]  ;;  %v12154_v2 = vcombine.high %v1968_v56, %v1972_v58 }
 0x129   : > { %v1912_v47 = vld [vmem:[#allocation8 + $0x280] sm:$0xff] }
 0x12a   : > { %v1916_v48 = vld [vmem:[#allocation8 + $0x2a0] sm:$0xff] }
 0x12b   : > { %1487 = vmatpush1.bf16.msra.mxu0 %v11917_v3  ;;  %1528 = vmatpush1.bf16.msra.mxu1 %v11919_v4  ;;  %v1964_v3 = vld [vmem:[#allocation8 + $0x420] sm:$0xff]  ;;  %v12025_v4 = vcombine.low %v1840_v54, %v1844_v55  ;;  %v12098_v54 = vcombine.high %v1912_v47, %v1916_v48 }
 0x12c   : > { %1488 = vmatprep.subr.bf16.mxu0 %v11902_v5  ;;  %1529 = vmatprep.subr.bf16.mxu1 %v11904_v9  ;;  %v12153_v5 = vcombine.low %v1968_v56, %v1972_v58  ;;  %v2080_v9 = vld [vmem:[#allocation8 + $0x7c0] sm:$0xff]  ;;  %v12146_v10 = vcombine.high %v1960_v1, %v1964_v3 }
 0x12d   : > { %v1904_v55 = vld [vmem:[#allocation8 + $0x240] sm:$0xff] }
 0x12e   : > { %v1908_v56 = vld [vmem:[#allocation8 + $0x260] sm:$0xff] }
 0x12f   : > { %1489 = vmatpush1.bf16.msra.mxu0 %v11901_v12  ;;  %1530 = vmatpush1.bf16.msra.mxu1 %v11903_v13  ;;  %v2084_v12 = vld [vmem:[#allocation8 + $0x7e0] sm:$0xff]  ;;  %v12017_v13 = vcombine.low %v1832_v62, %v1836_v63  ;;  %v12090_v62 = vcombine.high %v1904_v55, %v1908_v56 }
 0x130   : > { %7976 = vmatprep.subr.bf16.mxu0 %v12074_v14  ;;  %8017 = vmatprep.subr.bf16.mxu1 %v12202_v18  ;;  %v12145_v14 = vcombine.low %v1960_v1, %v1964_v3  ;;  %v2072_v18 = vld [vmem:[#allocation8 + $0x780] sm:$0xff]  ;;  %v12266_v19 = vcombine.high %v2080_v9, %v2084_v12 }
 0x131   : > { %v1896_v63 = vld [vmem:[#allocation8 + $0x200] sm:$0xff] }
 0x132   : > { %1507 = vmatmul.mubr.bf16.vlgmr.msra.gmra.mxu0 %v14523_v11  ;;  %1548 = vmatmul.mubr.bf16.vlgmr.msra.gmra.mxu1 %v14523_v11  ;;  %v1860_v11 = vld [vmem:[#allocation8 + $0xe0] sm:$0xff] }
 0x133   : > { %7977 = vmatpush1.bf16.msra.mxu0 %v12073_v20  ;;  %8018 = vmatpush1.bf16.msra.mxu1 %v12201_v21  ;;  %v12042_v45 = vcombine.high %v1856_v39, %v1860_v11  ;;  %v12041_v51 = vcombine.low %v1856_v39, %v1860_v11  ;;  %v2076_v20 = vld [vmem:[#allocation8 + $0x7a0] sm:$0xff]  ;;  %v12137_v21 = vcombine.low %v1952_v7, %v1956_v8 }
 0x134   : > { %7978 = vmatprep.subr.bf16.mxu0 %v12066_v22  ;;  %8019 = vmatprep.subr.bf16.mxu1 %v12194_v26  ;;  %v12265_v22 = vcombine.low %v2080_v9, %v2084_v12  ;;  %v2064_v26 = vld [vmem:[#allocation8 + $0x740] sm:$0xff]  ;;  %v12258_v27 = vcombine.high %v2072_v18, %v2076_v20  ;;  %v12114_v39 = vcombine.high %v1928_v32, %v1932_v33 }
 0x135   : > { %v1920_v11 = vld [vmem:[#allocation8 + $0x2c0] sm:$0xff] }
 0x136   : > { %v12106_v46 = vcombine.high %v1920_v11, %v1924_v40  ;;  %v1900_v1 = vld [vmem:[#allocation8 + $0x220] sm:$0xff] }
 0x137   : > { %7979 = vmatpush1.bf16.msra.mxu0 %v12065_v28  ;;  %8020 = vmatpush1.bf16.msra.mxu1 %v12193_v29  ;;  %v2068_v28 = vld [vmem:[#allocation8 + $0x760] sm:$0xff]  ;;  %v12129_v29 = vcombine.low %v1944_v16, %v1948_v17  ;;  %v12082_v7 = vcombine.high %v1896_v63, %v1900_v1 }
 0x138   : > { %7980 = vmatprep.subr.bf16.mxu0 %v12058_v30  ;;  %8021 = vmatprep.subr.bf16.mxu1 %v12186_v34  ;;  %v12257_v30 = vcombine.low %v2072_v18, %v2076_v20  ;;  %v2056_v34 = vld [vmem:[#allocation8 + $0x700] sm:$0xff]  ;;  %v12250_v35 = vcombine.high %v2064_v26, %v2068_v28  ;;  %v1576_v18 = vlaneseq }
 0x139   : > { %v14539_v8 = vld [vmem:[#allocation8 + $0x9c0] sm:$0xff] }
 0x13a   : > { %v14541_v9 = vld [vmem:[#allocation8 + $0x9e0] sm:$0xff] }
 0x13b   : > { %7981 = vmatpush1.bf16.msra.mxu0 %v12057_v36  ;;  %8022 = vmatpush1.bf16.msra.mxu1 %v12185_v37  ;;  %v2060_v36 = vld [vmem:[#allocation8 + $0x720] sm:$0xff]  ;;  %v12121_v37 = vcombine.low %v1936_v24, %v1940_v25  ;;  %v12330_v16 = vcombine.high %v14539_v8, %v14541_v9 }
 0x13c   : > { %7982 = vmatprep.subr.bf16.mxu0 %v12050_v38  ;;  %8023 = vmatprep.subr.bf16.mxu1 %v12178_v41  ;;  %v12249_v38 = vcombine.low %v2064_v26, %v2068_v28  ;;  %v2048_v41 = vld [vmem:[#allocation8 + $0x6c0] sm:$0xff]  ;;  %v12242_v42 = vcombine.high %v2056_v34, %v2060_v36 }
 0x13f   : > { %7983 = vmatpush1.bf16.msra.mxu0 %v12049_v43  ;;  %8024 = vmatpush1.bf16.msra.mxu1 %v12177_v44  ;;  %v2052_v43 = vld [vmem:[#allocation8 + $0x6e0] sm:$0xff]  ;;  %v12113_v44 = vcombine.low %v1928_v32, %v1932_v33 }
 0x140   : > { %7984 = vmatprep.subr.bf16.mxu0 %v12042_v45  ;;  %8025 = vmatprep.subr.bf16.mxu1 %v12170_v49  ;;  %v12241_v45 = vcombine.low %v2056_v34, %v2060_v36  ;;  %v2040_v49 = vld [vmem:[#allocation8 + $0x680] sm:$0xff]  ;;  %v12234_v50 = vcombine.high %v2048_v41, %v2052_v43 }
 0x143   : > { %7985 = vmatpush1.bf16.msra.mxu0 %v12041_v51  ;;  %8026 = vmatpush1.bf16.msra.mxu1 %v12169_v52  ;;  %v2044_v51 = vld [vmem:[#allocation8 + $0x6a0] sm:$0xff]  ;;  %v12105_v52 = vcombine.low %v1920_v11, %v1924_v40 }
 0x144   : > { %7986 = vmatprep.subr.bf16.mxu0 %v12034_v53  ;;  %8027 = vmatprep.subr.bf16.mxu1 %v12162_v57  ;;  %v12233_v53 = vcombine.low %v2048_v41, %v2052_v43  ;;  %v2032_v57 = vld [vmem:[#allocation8 + $0x640] sm:$0xff]  ;;  %v12226_v58 = vcombine.high %v2040_v49, %v2044_v51 }
 0x147   : > { %7987 = vmatpush1.bf16.msra.mxu0 %v12033_v59  ;;  %8028 = vmatpush1.bf16.msra.mxu1 %v12161_v60  ;;  %v2036_v59 = vld [vmem:[#allocation8 + $0x660] sm:$0xff]  ;;  %v12097_v60 = vcombine.low %v1912_v47, %v1916_v48 }
 0x148   : > { %7988 = vmatprep.subr.bf16.mxu0 %v12026_v61  ;;  %8029 = vmatprep.subr.bf16.mxu1 %v12154_v2  ;;  %v12225_v61 = vcombine.low %v2040_v49, %v2044_v51  ;;  %v2024_v2 = vld [vmem:[#allocation8 + $0x600] sm:$0xff]  ;;  %v12218_v3 = vcombine.high %v2032_v57, %v2036_v59 }
 0x14b   : > { %7989 = vmatpush1.bf16.msra.mxu0 %v12025_v4  ;;  %8030 = vmatpush1.bf16.msra.mxu1 %v12153_v5  ;;  %v2028_v4 = vld [vmem:[#allocation8 + $0x620] sm:$0xff]  ;;  %v12089_v5 = vcombine.low %v1904_v55, %v1908_v56 }
 0x14c   : > { %7990 = vmatprep.subr.bf16.mxu0 %v12018_v6  ;;  %8031 = vmatprep.subr.bf16.mxu1 %v12146_v10  ;;  %v12217_v6 = vcombine.low %v2032_v57, %v2036_v59  ;;  %v14543_v10 = vld [vmem:[#allocation8 + $0xdc0] sm:$0xff]  ;;  %v12210_v12 = vcombine.high %v2024_v2, %v2028_v4 }
 0x14d   : > { %v2136_v59 = vld [vmem:[#allocation8 + $0x980] sm:$0xff] }
 0x14f   : > { %7991 = vmatpush1.bf16.msra.mxu0 %v12017_v13  ;;  %8032 = vmatpush1.bf16.msra.mxu1 %v12145_v14  ;;  %v14545_v13 = vld [vmem:[#allocation8 + $0xde0] sm:$0xff]  ;;  %v12081_v14 = vcombine.low %v1896_v63, %v1900_v1 }
 0x150   : > { %7992 = vmatprep.subr.bf16.mxu0 %v12138_v15  ;;  %8033 = vmatprep.subr.bf16.mxu1 %v12266_v19  ;;  %v12209_v15 = vcombine.low %v2024_v2, %v2028_v4  ;;  %v12458_v17 = vcombine.high %v14543_v10, %v14545_v13  ;;  %v14551_v19 = vshrl.u32 %v1576_v18, 7  ;;  %v2268_v63 = vld [vmem:[#allocation8 + $0xda0] sm:$0xff]  ;;  %v12329_v2 = vcombine.low %v14539_v8, %v14541_v9 }
 0x151   : > { %v2256_v8 = vld [vmem:[#allocation8 + $0xd40] sm:$0xff] }
 0x152   : > { %v14554_v20 = vsub.s32 0, %v14551_v19  ;;  %v14565_v24 = vsub.s32 3, %v14551_v19  ;;  %v2260_v9 = vld [vmem:[#allocation8 + $0xd60] sm:$0xff] }
 0x153   : > { %7993 = vmatpush2.bf16.msra.mxu0 %v12137_v21  ;;  %8034 = vmatpush2.bf16.msra.mxu1 %v12265_v22  ;;  %v14556_v21 = vld [vmem:[#allocation7] sm:$0xff]  ;;  %v14559_v22 = vsub.s32 2, %v14551_v19  ;;  %v2120_v18 = vld [vmem:[#allocation8 + $0x900] sm:$0xff] }
 0x154   : > { %7994 = vmatprep.subr.bf16.mxu0 %v12130_v23  ;;  %8035 = vmatprep.subr.bf16.mxu1 %v12258_v27  ;;  %v14562_v23 = vsub.s32 1, %v14551_v19  ;;  %v1579_v25 = vrot.slane %v14556_v21, %v14554_v20  ;;  %v1591_v28 = vrot.slane %v14556_v21, %v14565_v24 }
 0x155   : > { %v1587_v26 = vrot.slane %v14556_v21, %v14559_v22 }
 0x156   : > { %v1583_v27 = vrot.slane %v14556_v21, %v14562_v23  ;;  %v1659_v32 = vpack.c.bf16 %v1591_v28, %v1591_v28 }
 0x157   : > { %7995 = vmatpush2.bf16.msra.mxu0 %v12129_v29  ;;  %8036 = vmatpush2.bf16.msra.mxu1 %v12257_v30  ;;  %v1656_v29 = vpack.c.bf16 %v1579_v25, %v1579_v25  ;;  %v1658_v30 = vpack.c.bf16 %v1587_v26, %v1587_v26  ;;  %v2124_v25 = vld [vmem:[#allocation8 + $0x920] sm:$0xff] }
 0x158   : > { %7996 = vmatprep.subr.bf16.mxu0 %v12122_v31  ;;  %8037 = vmatprep.subr.bf16.mxu1 %v12250_v35  ;;  %v1657_v31 = vpack.c.bf16 %v1583_v27, %v1583_v27  ;;  %v1694_v36 = vpack.i.b16 %v1659_v32, %v1659_v32  ;;  %v2248_v26 = vld [vmem:[#allocation8 + $0xd00] sm:$0xff]  ;;  %v14599_v32 = vsub.s32 7, %v14551_v19 }
 0x159   : > { %v1673_v33 = vpack.i.b16 %v1656_v29, %v1656_v29  ;;  %v1687_v34 = vpack.i.b16 %v1658_v30, %v1658_v30  ;;  %v2252_v27 = vld [vmem:[#allocation8 + $0xd20] sm:$0xff]  ;;  %v14596_v29 = vsub.s32 5, %v14551_v19  ;;  %v12441_v30 = vcombine.low %v2256_v8, %v2260_v9 }
 0x15a   : > { %v1680_v35 = vpack.i.b16 %v1657_v31, %v1657_v31  ;;  %v12306_v31 = vcombine.high %v2120_v18, %v2124_v25 }
 0x15b   : > { %7997 = vmatpush2.bf16.msra.mxu0 %v12121_v37  ;;  %8038 = vmatpush2.bf16.msra.mxu1 %v12249_v38  ;;  %v1678_v37 = vrot.slane %v1673_v33, %v14554_v20  ;;  %v12434_v33 = vcombine.high %v2248_v26, %v2252_v27 }
 0x15c   : > { %7998 = vmatprep.subr.bf16.mxu0 %v12114_v39  ;;  %8039 = vmatprep.subr.bf16.mxu1 %v12242_v42  ;;  %v1692_v39 = vrot.slane %v1687_v34, %v14554_v20  ;;  %v1685_v41 = vrot.slane %v1680_v35, %v14554_v20  ;;  %v2112_v34 = vld [vmem:[#allocation8 + $0x8c0] sm:$0xff] }
 0x15d   : > { %v2116_v35 = vld [vmem:[#allocation8 + $0x8e0] sm:$0xff] }
 0x15f   : > { %7999 = vmatpush2.bf16.msra.mxu0 %v12113_v44  ;;  %8040 = vmatpush2.bf16.msra.mxu1 %v12241_v45  ;;  %v1699_v44 = vrot.slane %v1694_v36, %v14554_v20  ;;  %v2240_v36 = vld [vmem:[#allocation8 + $0xcc0] sm:$0xff] }
 0x160   : > { %8000 = vmatprep.subr.bf16.mxu0 %v12106_v46  ;;  %8041 = vmatprep.subr.bf16.mxu1 %v12234_v50 }
 0x163   : > { %8001 = vmatpush2.bf16.msra.mxu0 %v12105_v52  ;;  %8042 = vmatpush2.bf16.msra.mxu1 %v12233_v53 }
 0x164   : > { %8002 = vmatprep.subr.bf16.mxu0 %v12098_v54  ;;  %8043 = vmatprep.subr.bf16.mxu1 %v12226_v58 }
 0x167   : > { %8003 = vmatpush2.bf16.msra.mxu0 %v12097_v60  ;;  %8044 = vmatpush2.bf16.msra.mxu1 %v12225_v61  ;;  %v2140_v60 = vld [vmem:[#allocation8 + $0x9a0] sm:$0xff] }
 0x168   : > { %8004 = vmatprep.subr.bf16.mxu0 %v12090_v62  ;;  %8045 = vmatprep.subr.bf16.mxu1 %v12218_v3  ;;  %v2264_v62 = vld [vmem:[#allocation8 + $0xd80] sm:$0xff] }
 0x16b   : > { %8005 = vmatpush2.bf16.msra.mxu0 %v12089_v5  ;;  %8046 = vmatpush2.bf16.msra.mxu1 %v12217_v6  ;;  %v12457_v5 = vcombine.low %v14543_v10, %v14545_v13  ;;  %v12322_v6 = vcombine.high %v2136_v59, %v2140_v60  ;;  %v12449_v10 = vcombine.low %v2264_v62, %v2268_v63 }
 0x16c   : > { %8006 = vmatprep.subr.bf16.mxu0 %v12082_v7  ;;  %8047 = vmatprep.subr.bf16.mxu1 %v12210_v12  ;;  %v12450_v12 = vcombine.high %v2264_v62, %v2268_v63  ;;  %v2088_v63 = vld [vmem:[#allocation8 + $0x800] sm:$0xff] }
 0x16f   : > { %8007 = vmatpush2.bf16.msra.mxu0 %v12081_v14  ;;  %8048 = vmatpush2.bf16.msra.mxu1 %v12209_v15  ;;  %v2128_v14 = vld [vmem:[#allocation8 + $0x940] sm:$0xff] }
 0x170   : > { %8058 = vmatprep.subr.bf16.mxu0 %v12330_v16  ;;  %8099 = vmatprep.subr.bf16.mxu1 %v12458_v17  ;;  %v2132_v15 = vld [vmem:[#allocation8 + $0x960] sm:$0xff]  ;;  %v12321_v16 = vcombine.low %v2136_v59, %v2140_v60  ;;  %v12442_v17 = vcombine.high %v2256_v8, %v2260_v9 }
 0x171   : > { %v12314_v13 = vcombine.high %v2128_v14, %v2132_v15  ;;  %v12313_v28 = vcombine.low %v2128_v14, %v2132_v15 }
 0x192   : > { %v1262_v38 = vpop.f32.mrf.mxu0  ;;  %v1303_v40 = vpop.f32.mrf.mxu1 }
 0x193   : > { %v1556_v11 = vpack.c.bf16 %v1262_v38, %v1262_v38  ;;  %v1558_v42 = vpack.c.bf16 %v1303_v40, %v1303_v40  ;;  %v12305_v38 = vcombine.low %v2120_v18, %v2124_v25  ;;  %v12298_v40 = vcombine.high %v2112_v34, %v2116_v35  ;;  %v2208_v18 = vld [vmem:[#allocation8 + $0xbc0] sm:$0xff] }
 0x194   : > { %v1264_v43 = vpop.f32.mrf.mxu0  ;;  %v1305_v47 = vpop.f32.mrf.mxu1  ;;  %v2212_v25 = vld [vmem:[#allocation8 + $0xbe0] sm:$0xff] }
 0x195   : > { %v1784_v45 = vadd.bf16 %v1678_v37, %v1556_v11  ;;  %v1557_v46 = vpack.c.bf16 %v1264_v43, %v1264_v43  ;;  %v1786_v48 = vadd.bf16 %v1692_v39, %v1558_v42  ;;  %v1559_v49 = vpack.c.bf16 %v1305_v47, %v1305_v47  ;;  %v2244_v37 = vld [vmem:[#allocation8 + $0xce0] sm:$0xff] }
 0x196   : > { %v1266_v50 = vpop.f32.mrf.mxu0  ;;  %v1307_v52 = vpop.f32.mrf.mxu1  ;;  %v1599_v39 = vrot.slane %v14556_v21, %v14596_v29  ;;  %v12433_v11 = vcombine.low %v2248_v26, %v2252_v27  ;;  %v12426_v42 = vcombine.high %v2240_v36, %v2244_v37  ;;  %v2104_v43 = vld [vmem:[#allocation8 + $0x880] sm:$0xff]  ;;  %v12297_v47 = vcombine.low %v2112_v34, %v2116_v35 }
 0x197   : > { %v1785_v51 = vadd.bf16 %v1685_v41, %v1557_v46  ;;  %v1800_v53 = vmul.bf16 1009007652, %v1784_v45  ;;  %v1787_v54 = vadd.bf16 %v1699_v44, %v1559_v49  ;;  %v1802_v56 = vmul.bf16 1009007652, %v1786_v48  ;;  %v2108_v44 = vld [vmem:[#allocation8 + $0x8a0] sm:$0xff] }
 0x198   : > { %v1267_v55 = vpop.f32.mrf.mxu0  ;;  %v1308_v58 = vpop.f32.mrf.mxu1  ;;  %v1607_v41 = vrot.slane %v14556_v21, %v14599_v32  ;;  %v2236_v46 = vld [vmem:[#allocation8 + $0xca0] sm:$0xff]  ;;  %v12425_v49 = vcombine.low %v2240_v36, %v2244_v37  ;;  %v12290_v50 = vcombine.high %v2104_v43, %v2108_v44 }
 0x199   : > { %v1801_v57 = vmul.bf16 1009007652, %v1785_v51  ;;  %v1803_v61 = vmul.bf16 1009007652, %v1787_v54  ;;  %v14583_v3 = vmax.bf16 %v1800_v53, %v1784_v45  ;;  %v14589_v7 = vmax.bf16 %v1802_v56, %v1786_v48  ;;  %v2232_v45 = vld [vmem:[#allocation8 + $0xc80] sm:$0xff] }
 0x19a   : > { %v1661_v48 = vpack.c.bf16 %v1599_v39, %v1599_v39  ;;  %v12418_v52 = vcombine.high %v2232_v45, %v2236_v46  ;;  %v2096_v53 = vld [vmem:[#allocation8 + $0x840] sm:$0xff]  ;;  %v12417_v59 = vcombine.low %v2232_v45, %v2236_v46 }
 0x19b   : > { %v14579_v1 = vmax.bf16 %v1801_v57, %v1785_v51  ;;  %v14585_v4 = vmax.bf16 %v1803_v61, %v1787_v54  ;;  %v1663_v51 = vpack.c.bf16 %v1607_v41, %v1607_v41  ;;  %v2100_v54 = vld [vmem:[#allocation8 + $0x860] sm:$0xff]  ;;  %v12289_v57 = vcombine.low %v2104_v43, %v2108_v44 }
 0x19c   : > { %v2224_v55 = vld [vmem:[#allocation8 + $0xc40] sm:$0xff]  ;;  %v1708_v58 = vpack.i.b16 %v1661_v48, %v1661_v48  ;;  %v12282_v60 = vcombine.high %v2096_v53, %v2100_v54  ;;  %v12281_v14 = vcombine.low %v2096_v53, %v2100_v54  ;;  %v12393_v48 = vcombine.low %v2208_v18, %v2212_v25 }
 0x19d   : > { %8008 = vmatprep.mubr.bf16.mxu0 %v14579_v1  ;;  %8049 = vmatprep.mubr.bf16.mxu1 %v14585_v4  ;;  %v2228_v56 = vld [vmem:[#allocation8 + $0xc60] sm:$0xff]  ;;  %v1722_v61 = vpack.i.b16 %v1663_v51, %v1663_v51 }
 0x19e   : > { %8009 = vmatmul.mubr.bf16.vlgmr.msra.gmra.mxu0 %v14583_v3  ;;  %8050 = vmatmul.mubr.bf16.vlgmr.msra.gmra.mxu1 %v14589_v7  ;;  %v12410_v62 = vcombine.high %v2224_v55, %v2228_v56  ;;  %v1713_v15 = vrot.slane %v1708_v58, %v14554_v20  ;;  %v12409_v9 = vcombine.low %v2224_v55, %v2228_v56  ;;  %v2200_v41 = vld [vmem:[#allocation8 + $0xb80] sm:$0xff] }
 0x19f   : > { %8059 = vmatpush1.bf16.msra.mxu0 %v12329_v2  ;;  %8100 = vmatpush1.bf16.msra.mxu1 %v12457_v5  ;;  %v2092_v2 = vld [vmem:[#allocation8 + $0x820] sm:$0xff] }
 0x1a0   : > { %8060 = vmatprep.subr.bf16.mxu0 %v12322_v6  ;;  %8101 = vmatprep.subr.bf16.mxu1 %v12450_v12  ;;  %v2216_v5 = vld [vmem:[#allocation8 + $0xc00] sm:$0xff]  ;;  %v12273_v34 = vcombine.low %v2088_v63, %v2092_v2 }
 0x1a1   : > { %v2220_v6 = vld [vmem:[#allocation8 + $0xc20] sm:$0xff] }
 0x1a2   : > { %v12401_v37 = vcombine.low %v2216_v5, %v2220_v6  ;;  %v2328_v45 = vld [vmem:[#allocation8 + $0xf80] sm:$0xff] }
 0x1a3   : > { %8061 = vmatpush1.bf16.msra.mxu0 %v12321_v16  ;;  %8102 = vmatpush1.bf16.msra.mxu1 %v12449_v10  ;;  %v12274_v16 = vcombine.high %v2088_v63, %v2092_v2  ;;  %v2332_v46 = vld [vmem:[#allocation8 + $0xfa0] sm:$0xff] }
 0x1a4   : > { %8062 = vmatprep.subr.bf16.mxu0 %v12314_v13  ;;  %8103 = vmatprep.subr.bf16.mxu1 %v12442_v17  ;;  %v1727_v13 = vrot.slane %v1722_v61, %v14554_v20  ;;  %v12402_v17 = vcombine.high %v2216_v5, %v2220_v6  ;;  %v12514_v53 = vcombine.high %v2328_v45, %v2332_v46  ;;  %v2192_v54 = vld [vmem:[#allocation8 + $0xb40] sm:$0xff]  ;;  %v14621_v5 = vsub.s32 6, %v14551_v19 }
 0x1a5   : > { %v2196_v55 = vld [vmem:[#allocation8 + $0xb60] sm:$0xff] }
 0x1a6   : > { %v2320_v56 = vld [vmem:[#allocation8 + $0xf40] sm:$0xff]  ;;  %v12378_v61 = vcombine.high %v2192_v54, %v2196_v55 }
 0x1a7   : > { %8063 = vmatpush1.bf16.msra.mxu0 %v12313_v28  ;;  %8104 = vmatpush1.bf16.msra.mxu1 %v12441_v30  ;;  %v2336_v28 = vld [vmem:[#allocation8 + $0xfc0] sm:$0xff] }
 0x1a8   : > { %8064 = vmatprep.subr.bf16.mxu0 %v12306_v31  ;;  %8105 = vmatprep.subr.bf16.mxu1 %v12434_v33  ;;  %v2340_v30 = vld [vmem:[#allocation8 + $0xfe0] sm:$0xff] }
 0x1a9   : > { %v2184_v63 = vld [vmem:[#allocation8 + $0xb00] sm:$0xff] }
 0x1aa   : > { %v2188_v2 = vld [vmem:[#allocation8 + $0xb20] sm:$0xff] }
 0x1ab   : > { %8065 = vmatpush1.bf16.msra.mxu0 %v12305_v38  ;;  %8106 = vmatpush1.bf16.msra.mxu1 %v12433_v11  ;;  %v12394_v38 = vcombine.high %v2208_v18, %v2212_v25  ;;  %v2312_v6 = vld [vmem:[#allocation8 + $0xf00] sm:$0xff] }
 0x1ac   : > { %8066 = vmatprep.subr.bf16.mxu0 %v12298_v40  ;;  %8107 = vmatprep.subr.bf16.mxu1 %v12426_v42  ;;  %v12522_v40 = vcombine.high %v2336_v28, %v2340_v30  ;;  %v2204_v42 = vld [vmem:[#allocation8 + $0xba0] sm:$0xff] }
 0x1ad   : > { %v12386_v51 = vcombine.high %v2200_v41, %v2204_v42  ;;  %v12385_v58 = vcombine.low %v2200_v41, %v2204_v42  ;;  %v2176_v18 = vld [vmem:[#allocation8 + $0xac0] sm:$0xff] }
 0x1ae   : > { %v2180_v25 = vld [vmem:[#allocation8 + $0xae0] sm:$0xff] }
 0x1af   : > { %8067 = vmatpush1.bf16.msra.mxu0 %v12297_v47  ;;  %8108 = vmatpush1.bf16.msra.mxu1 %v12425_v49  ;;  %v12361_v41 = vcombine.low %v2176_v18, %v2180_v25 }
 0x1b0   : > { %8068 = vmatprep.subr.bf16.mxu0 %v12290_v50  ;;  %8109 = vmatprep.subr.bf16.mxu1 %v12418_v52  ;;  %v12521_v50 = vcombine.low %v2336_v28, %v2340_v30  ;;  %v12369_v28 = vcombine.low %v2184_v63, %v2188_v2 }
 0x1b2   : > { %v14605_v12 = vpop.f32.mrf.mxu0  ;;  %v14608_v8 = vpop.f32.mrf.mxu1 }
 0x1b3   : > { %8069 = vmatpush1.bf16.msra.mxu0 %v12289_v57  ;;  %8110 = vmatpush1.bf16.msra.mxu1 %v12417_v59  ;;  %v2324_v57 = vld [vmem:[#allocation8 + $0xf60] sm:$0xff]  ;;  %v14618_v59 = vsub.s32 4, %v14551_v19  ;;  %v1603_v19 = vrot.slane %v14556_v21, %v14621_v5 }
 0x1b4   : > { %8070 = vmatprep.subr.bf16.mxu0 %v12282_v60  ;;  %v1346_v10 = vpop.f32.mrf.mxu0  ;;  %8111 = vmatprep.subr.bf16.mxu1 %v12410_v62  ;;  %v1387_v27 = vpop.f32.mrf.mxu1  ;;  %v12513_v60 = vcombine.low %v2328_v45, %v2332_v46  ;;  %v12506_v62 = vcombine.high %v2320_v56, %v2324_v57 }
 0x1b5   : > { %v1561_v26 = vpack.c.bf16 %v1346_v10, %v1346_v10  ;;  %v1563_v33 = vpack.c.bf16 %v1387_v27, %v1387_v27  ;;  %v12370_v10 = vcombine.high %v2184_v63, %v2188_v2  ;;  %v2308_v27 = vld [vmem:[#allocation8 + $0xee0] sm:$0xff] }
 0x1b6   : > { %v1348_v31 = vpop.f32.mrf.mxu0  ;;  %v1389_v36 = vpop.f32.mrf.mxu1 }
 0x1b7   : > { %8071 = vmatpush1.bf16.msra.mxu0 %v12281_v14  ;;  %v1789_v35 = vadd.bf16 %v1713_v15, %v1561_v26  ;;  %8112 = vmatpush1.bf16.msra.mxu1 %v12409_v9  ;;  %v1791_v39 = vadd.bf16 %v1727_v13, %v1563_v33  ;;  %v2316_v14 = vld [vmem:[#allocation8 + $0xf20] sm:$0xff]  ;;  %v12377_v15 = vcombine.low %v2192_v54, %v2196_v55  ;;  %v14625_v13 = vld [vmem:[#allocation7 + $0x8] sm:$0xff] }
 0x1b8   : > { %8072 = vmatprep.subr.bf16.mxu0 %v12274_v16  ;;  %v1349_v11 = vpop.f32.mrf.mxu0  ;;  %8113 = vmatprep.subr.bf16.mxu1 %v12402_v17  ;;  %v1390_v44 = vpop.f32.mrf.mxu1  ;;  %v1595_v9 = vrot.slane %v14556_v21, %v14618_v59  ;;  %v12505_v16 = vcombine.low %v2320_v56, %v2324_v57  ;;  %v12498_v17 = vcombine.high %v2312_v6, %v2316_v14  ;;  %v2304_v26 = vld [vmem:[#allocation8 + $0xec0] sm:$0xff] }
 0x1b9   : > { %v1805_v43 = vmul.bf16 1009007652, %v1789_v35  ;;  %v1807_v47 = vmul.bf16 1009007652, %v1791_v39  ;;  %v1615_v31 = vrot.slane %v14625_v13, %v14562_v23  ;;  %v12497_v33 = vcombine.low %v2312_v6, %v2316_v14  ;;  %v2172_v21 = vld [vmem:[#allocation8 + $0xaa0] sm:$0xff] }
 0x1ba   : > { %v1660_v30 = vpack.c.bf16 %v1595_v9, %v1595_v9  ;;  %v12490_v36 = vcombine.high %v2304_v26, %v2308_v27  ;;  %v2300_v11 = vld [vmem:[#allocation8 + $0xea0] sm:$0xff] }
 0x1bb   : > { %8073 = vmatpush1.bf16.msra.mxu0 %v12273_v34  ;;  %v14611_v49 = vmax.bf16 %v1805_v43, %v1789_v35  ;;  %8114 = vmatpush1.bf16.msra.mxu1 %v12401_v37  ;;  %v14613_v52 = vmax.bf16 %v1807_v47, %v1791_v39  ;;  %v12362_v34 = vcombine.high %v2176_v18, %v2180_v25  ;;  %v2296_v39 = vld [vmem:[#allocation8 + $0xe80] sm:$0xff] }
 0x1bc   : > { %8074 = vmatprep.subr.bf16.mxu0 %v12394_v38  ;;  %8115 = vmatprep.subr.bf16.mxu1 %v12522_v40  ;;  %v1623_v35 = vrot.slane %v14625_v13, %v14565_v24  ;;  %v1662_v37 = vpack.c.bf16 %v1603_v19, %v1603_v19  ;;  %v2168_v38 = vld [vmem:[#allocation8 + $0xa80] sm:$0xff]  ;;  %v1701_v40 = vpack.i.b16 %v1660_v30, %v1660_v30 }
 0x1bd   : > { %8090 = vmatprep.mubr.bf16.mxu0 %v14611_v49  ;;  %8131 = vmatprep.mubr.bf16.mxu1 %v14613_v52  ;;  %v1665_v42 = vpack.c.bf16 %v1615_v31, %v1615_v31  ;;  %v12489_v43 = vcombine.low %v2304_v26, %v2308_v27  ;;  %v12354_v44 = vcombine.high %v2168_v38, %v2172_v21  ;;  %v2152_v6 = vld [vmem:[#allocation8 + $0xa00] sm:$0xff] }
 0x1be   : > { %v1667_v45 = vpack.c.bf16 %v1623_v35, %v1623_v35  ;;  %v1715_v46 = vpack.i.b16 %v1662_v37, %v1662_v37  ;;  %v12482_v47 = vcombine.high %v2296_v39, %v2300_v11  ;;  %v1706_v54 = vrot.slane %v1701_v40, %v14554_v20  ;;  %v2156_v14 = vld [vmem:[#allocation8 + $0xa20] sm:$0xff] }
 0x1bf   : > { %8075 = vmatpush2.bf16.msra.mxu0 %v12393_v48  ;;  %8116 = vmatpush2.bf16.msra.mxu1 %v12521_v50  ;;  %v2160_v48 = vld [vmem:[#allocation8 + $0xa40] sm:$0xff]  ;;  %v12353_v55 = vcombine.low %v2168_v38, %v2172_v21  ;;  %v12481_v56 = vcombine.low %v2296_v39, %v2300_v11  ;;  %v1736_v57 = vpack.i.b16 %v1665_v42, %v1665_v42 }
 0x1c0   : > { %8076 = vmatprep.subr.bf16.mxu0 %v12386_v51  ;;  %8117 = vmatprep.subr.bf16.mxu1 %v12514_v53  ;;  %v2164_v50 = vld [vmem:[#allocation8 + $0xa60] sm:$0xff]  ;;  %v1720_v63 = vrot.slane %v1715_v46, %v14554_v20  ;;  %v12337_v21 = vcombine.low %v2152_v6, %v2156_v14 }
 0x1c1   : > { %v2288_v51 = vld [vmem:[#allocation8 + $0xe40] sm:$0xff] }
 0x1c2   : > { %v2292_v53 = vld [vmem:[#allocation8 + $0xe60] sm:$0xff] }
 0x1c3   : > { %8077 = vmatpush2.bf16.msra.mxu0 %v12385_v58  ;;  %8118 = vmatpush2.bf16.msra.mxu1 %v12513_v60  ;;  %v1560_v58 = vpack.c.bf16 %v14605_v12, %v14605_v12  ;;  %v12346_v60 = vcombine.high %v2160_v48, %v2164_v50  ;;  %v12474_v2 = vcombine.high %v2288_v51, %v2292_v53  ;;  %v2284_v9 = vld [vmem:[#allocation8 + $0xe20] sm:$0xff] }
 0x1c4   : > { %8078 = vmatprep.subr.bf16.mxu0 %v12378_v61  ;;  %8119 = vmatprep.subr.bf16.mxu1 %v12506_v62  ;;  %v1750_v61 = vpack.i.b16 %v1667_v45, %v1667_v45  ;;  %v1562_v62 = vpack.c.bf16 %v14608_v8, %v14608_v8  ;;  %v12473_v12 = vcombine.low %v2288_v51, %v2292_v53  ;;  %v2400_v30 = vld [vmem:[#allocation8 + $0x11c0] sm:$0xff] }
 0x1c5   : > { %v1788_v25 = vadd.bf16 %v1706_v54, %v1560_v58  ;;  %v12338_v8 = vcombine.high %v2152_v6, %v2156_v14  ;;  %v2404_v31 = vld [vmem:[#allocation8 + $0x11e0] sm:$0xff] }
 0x1c6   : > { %v1755_v26 = vrot.slane %v1750_v61, %v14554_v20  ;;  %v1790_v27 = vadd.bf16 %v1720_v63, %v1562_v62  ;;  %v2528_v35 = vld [vmem:[#allocation8 + $0x15c0] sm:$0xff]  ;;  %v12586_v42 = vcombine.high %v2400_v30, %v2404_v31 }
 0x1c7   : > { %8079 = vmatpush2.bf16.msra.mxu0 %v12377_v15  ;;  %8120 = vmatpush2.bf16.msra.mxu1 %v12505_v16  ;;  %v2280_v15 = vld [vmem:[#allocation8 + $0xe00] sm:$0xff]  ;;  %v1804_v40 = vmul.bf16 1009007652, %v1788_v25 }
 0x1c8   : > { %8080 = vmatprep.subr.bf16.mxu0 %v12370_v10  ;;  %8121 = vmatprep.subr.bf16.mxu1 %v12498_v17  ;;  %v12345_v10 = vcombine.low %v2160_v48, %v2164_v50  ;;  %v1741_v17 = vrot.slane %v1736_v57, %v14554_v20  ;;  %v1806_v45 = vmul.bf16 1009007652, %v1790_v27  ;;  %v2396_v48 = vld [vmem:[#allocation8 + $0x11a0] sm:$0xff] }
 0x1c9   : > { %v2520_v53 = vld [vmem:[#allocation8 + $0x1580] sm:$0xff]  ;;  %v14645_v57 = vmax.bf16 %v1804_v40, %v1788_v25 }
 0x1ca   : > { %v2524_v54 = vld [vmem:[#allocation8 + $0x15a0] sm:$0xff]  ;;  %v14647_v61 = vmax.bf16 %v1806_v45, %v1790_v27 }
 0x1cb   : > { %8081 = vmatpush2.bf16.msra.mxu0 %v12369_v28  ;;  %8122 = vmatpush2.bf16.msra.mxu1 %v12497_v33  ;;  %v12466_v28 = vcombine.high %v2280_v15, %v2284_v9  ;;  %v12706_v62 = vcombine.high %v2520_v53, %v2524_v54  ;;  %v2384_v63 = vld [vmem:[#allocation8 + $0x1140] sm:$0xff] }
 0x1cc   : > { %8082 = vmatprep.subr.bf16.mxu0 %v12362_v34  ;;  %8123 = vmatprep.subr.bf16.mxu1 %v12490_v36  ;;  %v2532_v36 = vld [vmem:[#allocation8 + $0x15e0] sm:$0xff] }
 0x1cd   : > { %v12714_v46 = vcombine.high %v2528_v35, %v2532_v36  ;;  %v12713_v58 = vcombine.low %v2528_v35, %v2532_v36  ;;  %v2512_v14 = vld [vmem:[#allocation8 + $0x1540] sm:$0xff]  ;;  %v1627_v36 = vrot.slane %v14625_v13, %v14618_v59 }
 0x1ce   : > { %v2508_v27 = vld [vmem:[#allocation8 + $0x1520] sm:$0xff] }
 0x1cf   : > { %8083 = vmatpush2.bf16.msra.mxu0 %v12361_v41  ;;  %8124 = vmatpush2.bf16.msra.mxu1 %v12489_v43  ;;  %v12465_v41 = vcombine.low %v2280_v15, %v2284_v9  ;;  %v2516_v15 = vld [vmem:[#allocation8 + $0x1560] sm:$0xff] }
 0x1d0   : > { %8084 = vmatprep.subr.bf16.mxu0 %v12354_v44  ;;  %8125 = vmatprep.subr.bf16.mxu1 %v12482_v47  ;;  %v2392_v47 = vld [vmem:[#allocation8 + $0x1180] sm:$0xff]  ;;  %v12698_v25 = vcombine.high %v2512_v14, %v2516_v15 }
 0x1d1   : > { %v2372_v35 = vld [vmem:[#allocation8 + $0x10e0] sm:$0xff] }
 0x1d2   : > { %v14639_v16 = vpop.f32.mrf.mxu0  ;;  %v14642_v18 = vpop.f32.mrf.mxu1  ;;  %v2488_v45 = vld [vmem:[#allocation8 + $0x1480] sm:$0xff] }
 0x1d3   : > { %8085 = vmatpush2.bf16.msra.mxu0 %v12353_v55  ;;  %8126 = vmatpush2.bf16.msra.mxu1 %v12481_v56  ;;  %v12585_v56 = vcombine.low %v2400_v30, %v2404_v31  ;;  %v12697_v30 = vcombine.low %v2512_v14, %v2516_v15 }
 0x1d4   : > { %8086 = vmatprep.subr.bf16.mxu0 %v12346_v60  ;;  %v1428_v19 = vpop.f32.mrf.mxu0  ;;  %8127 = vmatprep.subr.bf16.mxu1 %v12474_v2  ;;  %v1469_v34 = vpop.f32.mrf.mxu1  ;;  %v12578_v60 = vcombine.high %v2392_v47, %v2396_v48  ;;  %v2388_v2 = vld [vmem:[#allocation8 + $0x1160] sm:$0xff] }
 0x1d5   : > { %v1565_v33 = vpack.c.bf16 %v1428_v19, %v1428_v19  ;;  %v1567_v38 = vpack.c.bf16 %v1469_v34, %v1469_v34  ;;  %v2380_v19 = vld [vmem:[#allocation8 + $0x1120] sm:$0xff] }
 0x1d6   : > { %v1430_v37 = vpop.f32.mrf.mxu0  ;;  %v1471_v11 = vpop.f32.mrf.mxu1  ;;  %v2368_v34 = vld [vmem:[#allocation8 + $0x10c0] sm:$0xff] }
 0x1d7   : > { %8087 = vmatpush2.bf16.msra.mxu0 %v12345_v10  ;;  %v1793_v39 = vadd.bf16 %v1741_v17, %v1565_v33  ;;  %8128 = vmatpush2.bf16.msra.mxu1 %v12473_v12  ;;  %v1795_v43 = vadd.bf16 %v1755_v26, %v1567_v38  ;;  %v12577_v10 = vcombine.low %v2392_v47, %v2396_v48  ;;  %v2504_v26 = vld [vmem:[#allocation8 + $0x1500] sm:$0xff] }
 0x1d8   : > { %8088 = vmatprep.subr.bf16.mxu0 %v12338_v8  ;;  %v1431_v44 = vpop.f32.mrf.mxu0  ;;  %8129 = vmatprep.subr.bf16.mxu1 %v12466_v28  ;;  %v1472_v51 = vpop.f32.mrf.mxu1  ;;  %v12705_v12 = vcombine.low %v2520_v53, %v2524_v54  ;;  %v12570_v17 = vcombine.high %v2384_v63, %v2388_v2  ;;  %v2376_v8 = vld [vmem:[#allocation8 + $0x1100] sm:$0xff]  ;;  %v12569_v28 = vcombine.low %v2384_v63, %v2388_v2 }
 0x1d9   : > { %v1809_v50 = vmul.bf16 1009007652, %v1793_v39  ;;  %v1811_v55 = vmul.bf16 1009007652, %v1795_v43  ;;  %v12562_v31 = vcombine.high %v2376_v8, %v2380_v19  ;;  %v12690_v33 = vcombine.high %v2504_v26, %v2508_v27  ;;  %v2496_v37 = vld [vmem:[#allocation8 + $0x14c0] sm:$0xff] }
 0x1da   : > { %v2500_v38 = vld [vmem:[#allocation8 + $0x14e0] sm:$0xff]  ;;  %v12689_v11 = vcombine.low %v2504_v26, %v2508_v27  ;;  %v12554_v40 = vcombine.high %v2368_v34, %v2372_v35  ;;  %v1668_v44 = vpack.c.bf16 %v1627_v36, %v1627_v36  ;;  %v12553_v48 = vcombine.low %v2368_v34, %v2372_v35 }
 0x1db   : > { %8089 = vmatpush2.bf16.msra.mxu0 %v12337_v21  ;;  %8130 = vmatpush2.bf16.msra.mxu1 %v12465_v41  ;;  %v14649_v6 = vmax.bf16 %v1809_v50, %v1793_v39  ;;  %v14652_v9 = vmax.bf16 %v1811_v55, %v1795_v43  ;;  %v1635_v21 = vrot.slane %v14625_v13, %v14621_v5  ;;  %v2364_v43 = vld [vmem:[#allocation8 + $0x10a0] sm:$0xff] }
 0x1dc   : > { %8140 = vmatprep.subr.bf16.mxu0 %v12586_v42  ;;  %8181 = vmatprep.subr.bf16.mxu1 %v12714_v46  ;;  %v12561_v39 = vcombine.low %v2376_v8, %v2380_v19  ;;  %v12682_v41 = vcombine.high %v2496_v37, %v2500_v38  ;;  %v2360_v42 = vld [vmem:[#allocation8 + $0x1080] sm:$0xff]  ;;  %v12681_v50 = vcombine.low %v2496_v37, %v2500_v38 }
 0x1dd   : > { %v2492_v46 = vld [vmem:[#allocation8 + $0x14a0] sm:$0xff]  ;;  %v1670_v47 = vpack.c.bf16 %v1635_v21, %v1635_v21  ;;  %v12546_v51 = vcombine.high %v2360_v42, %v2364_v43  ;;  %v12545_v63 = vcombine.low %v2360_v42, %v2364_v43 }
 0x1de   : > { %8091 = vmatmul.mubr.bf16.vlgmr.msra.gmra.mxu0 %v14645_v57  ;;  %8132 = vmatmul.mubr.bf16.vlgmr.msra.gmra.mxu1 %v14647_v61  ;;  %v12674_v53 = vcombine.high %v2488_v45, %v2492_v46  ;;  %v2352_v54 = vld [vmem:[#allocation8 + $0x1040] sm:$0xff]  ;;  %v12673_v2 = vcombine.low %v2488_v45, %v2492_v46 }
 0x1df   : > { %8141 = vmatpush1.bf16.msra.mxu0 %v12585_v56  ;;  %8182 = vmatpush1.bf16.msra.mxu1 %v12713_v58  ;;  %v2356_v55 = vld [vmem:[#allocation8 + $0x1060] sm:$0xff]  ;;  %v1757_v56 = vpack.i.b16 %v1668_v44, %v1668_v44 }
 0x1e0   : > { %8142 = vmatprep.subr.bf16.mxu0 %v12578_v60  ;;  %8183 = vmatprep.subr.bf16.mxu1 %v12706_v62  ;;  %v2480_v58 = vld [vmem:[#allocation8 + $0x1440] sm:$0xff]  ;;  %v1771_v62 = vpack.i.b16 %v1670_v47, %v1670_v47  ;;  %v12538_v14 = vcombine.high %v2352_v54, %v2356_v55  ;;  %v12537_v27 = vcombine.low %v2352_v54, %v2356_v55 }
 0x1e1   : > { %8172 = vmatprep.mubr.bf16.mxu0 %v14649_v6  ;;  %8213 = vmatprep.mubr.bf16.mxu1 %v14652_v9  ;;  %v2484_v60 = vld [vmem:[#allocation8 + $0x1460] sm:$0xff] }
 0x1e2   : > { %v12666_v15 = vcombine.high %v2480_v58, %v2484_v60  ;;  %v2476_v8 = vld [vmem:[#allocation8 + $0x1420] sm:$0xff]  ;;  %v1776_v26 = vrot.slane %v1771_v62, %v14554_v20 }
 0x1e3   : > { %8143 = vmatpush1.bf16.msra.mxu0 %v12577_v10  ;;  %8184 = vmatpush1.bf16.msra.mxu1 %v12705_v12  ;;  %v2344_v10 = vld [vmem:[#allocation8 + $0x1000] sm:$0xff] }
 0x1e4   : > { %8144 = vmatprep.subr.bf16.mxu0 %v12570_v17  ;;  %8185 = vmatprep.subr.bf16.mxu1 %v12698_v25  ;;  %v2348_v12 = vld [vmem:[#allocation8 + $0x1020] sm:$0xff]  ;;  %v1762_v17 = vrot.slane %v1757_v56, %v14554_v20 }
 0x1e5   : > { %v2472_v25 = vld [vmem:[#allocation8 + $0x1400] sm:$0xff]  ;;  %v12529_v43 = vcombine.low %v2344_v10, %v2348_v12 }
 0x1e6   : > { %v12658_v36 = vcombine.high %v2472_v25, %v2476_v8  ;;  %v2464_v37 = vld [vmem:[#allocation8 + $0x13c0] sm:$0xff]  ;;  %v12657_v45 = vcombine.low %v2472_v25, %v2476_v8 }
 0x1e7   : > { %8145 = vmatpush1.bf16.msra.mxu0 %v12569_v28  ;;  %8186 = vmatpush1.bf16.msra.mxu1 %v12697_v30  ;;  %v2468_v38 = vld [vmem:[#allocation8 + $0x13e0] sm:$0xff] }
 0x1e8   : > { %8146 = vmatprep.subr.bf16.mxu0 %v12562_v31  ;;  %8187 = vmatprep.subr.bf16.mxu1 %v12690_v33  ;;  %v12665_v31 = vcombine.low %v2480_v58, %v2484_v60  ;;  %v12530_v33 = vcombine.high %v2344_v10, %v2348_v12  ;;  %v12650_v46 = vcombine.high %v2464_v37, %v2468_v38  ;;  %v2584_v54 = vld [vmem:[#allocation8 + $0x1780] sm:$0xff] }
 0x1e9   : > { %v2588_v55 = vld [vmem:[#allocation8 + $0x17a0] sm:$0xff]  ;;  %v12649_v56 = vcombine.low %v2464_v37, %v2468_v38 }
 0x1ea   : > { %v12770_v62 = vcombine.high %v2584_v54, %v2588_v55  ;;  %v12769_v12 = vcombine.low %v2584_v54, %v2588_v55  ;;  %v2440_v8 = vld [vmem:[#allocation8 + $0x1300] sm:$0xff] }
 0x1eb   : > { %8147 = vmatpush1.bf16.msra.mxu0 %v12561_v39  ;;  %8188 = vmatpush1.bf16.msra.mxu1 %v12689_v11  ;;  %v2592_v11 = vld [vmem:[#allocation8 + $0x17c0] sm:$0xff] }
 0x1ec   : > { %8148 = vmatprep.subr.bf16.mxu0 %v12554_v40  ;;  %8189 = vmatprep.subr.bf16.mxu1 %v12682_v41  ;;  %v2596_v40 = vld [vmem:[#allocation8 + $0x17e0] sm:$0xff] }
 0x1ed   : > { %v12777_v58 = vcombine.low %v2592_v11, %v2596_v40  ;;  %v2432_v37 = vld [vmem:[#allocation8 + $0x12c0] sm:$0xff] }
 0x1ee   : > { %v2436_v38 = vld [vmem:[#allocation8 + $0x12e0] sm:$0xff] }
 0x1ef   : > { %8149 = vmatpush1.bf16.msra.mxu0 %v12553_v48  ;;  %8190 = vmatpush1.bf16.msra.mxu1 %v12681_v50  ;;  %v12778_v48 = vcombine.high %v2592_v11, %v2596_v40  ;;  %v2456_v50 = vld [vmem:[#allocation8 + $0x1380] sm:$0xff]  ;;  %v1631_v11 = vrot.slane %v14625_v13, %v14596_v29 }
 0x1f0   : > { %8150 = vmatprep.subr.bf16.mxu0 %v12546_v51  ;;  %8191 = vmatprep.subr.bf16.mxu1 %v12674_v53  ;;  %v2460_v51 = vld [vmem:[#allocation8 + $0x13a0] sm:$0xff] }
 0x1f1   : > { %v12642_v60 = vcombine.high %v2456_v50, %v2460_v51  ;;  %v12641_v10 = vcombine.low %v2456_v50, %v2460_v51  ;;  %v2560_v40 = vld [vmem:[#allocation8 + $0x16c0] sm:$0xff]  ;;  %v1669_v54 = vpack.c.bf16 %v1631_v11, %v1631_v11 }
 0x1f2   : > { %v1508_v19 = vpop.f32.mrf.mxu0  ;;  %v1549_v30 = vpop.f32.mrf.mxu1  ;;  %v2424_v51 = vld [vmem:[#allocation8 + $0x1280] sm:$0xff] }
 0x1f3   : > { %8151 = vmatpush1.bf16.msra.mxu0 %v12545_v63  ;;  %v1568_v28 = vpack.c.bf16 %v1508_v19, %v1508_v19  ;;  %8192 = vmatpush1.bf16.msra.mxu1 %v12673_v2  ;;  %v1570_v35 = vpack.c.bf16 %v1549_v30, %v1549_v30  ;;  %v2448_v63 = vld [vmem:[#allocation8 + $0x1340] sm:$0xff]  ;;  %v1619_v30 = vrot.slane %v14625_v13, %v14559_v22 }
 0x1f4   : > { %8152 = vmatprep.subr.bf16.mxu0 %v12538_v14  ;;  %v14663_v34 = vpop.f32.mrf.mxu0  ;;  %8193 = vmatprep.subr.bf16.mxu1 %v12666_v15  ;;  %v14667_v39 = vpop.f32.mrf.mxu1  ;;  %v2452_v2 = vld [vmem:[#allocation8 + $0x1360] sm:$0xff] }
 0x1f5   : > { %v14665_v21 = vadd.bf16 %v1762_v17, %v1568_v28  ;;  %v14669_v41 = vadd.bf16 %v1776_v26, %v1570_v35  ;;  %v2576_v14 = vld [vmem:[#allocation8 + $0x1740] sm:$0xff]  ;;  %v12634_v17 = vcombine.high %v2448_v63, %v2452_v2  ;;  %v1611_v28 = vrot.slane %v14625_v13, %v14554_v20 }
 0x1f6   : > { %v1512_v42 = vpop.f32.mrf.mxu0  ;;  %v1553_v44 = vpop.f32.mrf.mxu1  ;;  %v2580_v15 = vld [vmem:[#allocation8 + $0x1760] sm:$0xff] }
 0x1f7   : > { %8153 = vmatpush1.bf16.msra.mxu0 %v12537_v27  ;;  %8194 = vmatpush1.bf16.msra.mxu1 %v12665_v31  ;;  %v12762_v25 = vcombine.high %v2576_v14, %v2580_v15  ;;  %v2444_v19 = vld [vmem:[#allocation8 + $0x1320] sm:$0xff]  ;;  %v12633_v31 = vcombine.low %v2448_v63, %v2452_v2  ;;  %v1664_v44 = vpack.c.bf16 %v1611_v28, %v1611_v28 }
 0x1f8   : > { %8154 = vmatprep.subr.bf16.mxu0 %v12530_v33  ;;  %v1513_v47 = vpop.f32.mrf.mxu0  ;;  %8195 = vmatprep.subr.bf16.mxu1 %v12658_v36  ;;  %v1554_v53 = vpop.f32.mrf.mxu1  ;;  %v2568_v26 = vld [vmem:[#allocation8 + $0x1700] sm:$0xff]  ;;  %v12761_v33 = vcombine.low %v2576_v14, %v2580_v15  ;;  %v12626_v35 = vcombine.high %v2440_v8, %v2444_v19  ;;  %v1564_v28 = vpack.c.bf16 %v14639_v16, %v14639_v16 }
 0x1f9   : > { %v2572_v27 = vld [vmem:[#allocation8 + $0x1720] sm:$0xff]  ;;  %v1571_v16 = vpack.c.bf16 %v14667_v39, %v14667_v39 }
 0x1fa   : > { %v12754_v36 = vcombine.high %v2568_v26, %v2572_v27  ;;  %v2564_v42 = vld [vmem:[#allocation8 + $0x16e0] sm:$0xff]  ;;  %v12753_v47 = vcombine.low %v2568_v26, %v2572_v27 }
 0x1fb   : > { %8155 = vmatpush1.bf16.msra.mxu0 %v12529_v43  ;;  %8196 = vmatpush1.bf16.msra.mxu1 %v12657_v45  ;;  %v1639_v43 = vrot.slane %v14625_v13, %v14599_v32  ;;  %v1666_v45 = vpack.c.bf16 %v1619_v30, %v1619_v30  ;;  %v12746_v50 = vcombine.high %v2560_v40, %v2564_v42  ;;  %v2428_v53 = vld [vmem:[#allocation8 + $0x12a0] sm:$0xff] }
 0x1fc   : > { %8156 = vmatprep.subr.bf16.mxu0 %v12650_v46  ;;  %8197 = vmatprep.subr.bf16.mxu1 %v12778_v48  ;;  %v12625_v46 = vcombine.low %v2440_v8, %v2444_v19  ;;  %v12618_v48 = vcombine.high %v2432_v37, %v2436_v38  ;;  %v2552_v55 = vld [vmem:[#allocation8 + $0x1680] sm:$0xff]  ;;  %v12617_v13 = vcombine.low %v2432_v37, %v2436_v38 }
 0x1fd   : > { %v12745_v63 = vcombine.low %v2560_v40, %v2564_v42  ;;  %v12610_v2 = vcombine.high %v2424_v51, %v2428_v53  ;;  %v2416_v15 = vld [vmem:[#allocation8 + $0x1240] sm:$0xff]  ;;  %v12609_v27 = vcombine.low %v2424_v51, %v2428_v53  ;;  %v1569_v38 = vpack.c.bf16 %v14663_v34, %v14663_v34 }
 0x1fe   : > { %v2412_v37 = vld [vmem:[#allocation8 + $0x1220] sm:$0xff] }
 0x1ff   : > { %8157 = vmatpush2.bf16.msra.mxu0 %v12649_v56  ;;  %8198 = vmatpush2.bf16.msra.mxu1 %v12777_v58  ;;  %v2556_v56 = vld [vmem:[#allocation8 + $0x16a0] sm:$0xff]  ;;  %v1671_v58 = vpack.c.bf16 %v1639_v43, %v1639_v43 }
 0x200   : > { %8158 = vmatprep.subr.bf16.mxu0 %v12642_v60  ;;  %8199 = vmatprep.subr.bf16.mxu1 %v12770_v62  ;;  %v1729_v60 = vpack.i.b16 %v1664_v44, %v1664_v44  ;;  %v1743_v62 = vpack.i.b16 %v1666_v45, %v1666_v45  ;;  %v12738_v14 = vcombine.high %v2552_v55, %v2556_v56  ;;  %v2536_v40 = vld [vmem:[#allocation8 + $0x1600] sm:$0xff] }
 0x201   : > { %v1778_v8 = vpack.i.b16 %v1671_v58, %v1671_v58  ;;  %v12737_v30 = vcombine.low %v2552_v55, %v2556_v56  ;;  %v2540_v42 = vld [vmem:[#allocation8 + $0x1620] sm:$0xff] }
 0x202   : > { %v1734_v19 = vrot.slane %v1729_v60, %v14554_v20  ;;  %v1748_v26 = vrot.slane %v1743_v62, %v14554_v20  ;;  %v2660_v51 = vld [vmem:[#allocation8 + $0x19e0] sm:$0xff]  ;;  %v12721_v58 = vcombine.low %v2536_v40, %v2540_v42 }
 0x203   : > { %8159 = vmatpush2.bf16.msra.mxu0 %v12641_v10  ;;  %8200 = vmatpush2.bf16.msra.mxu1 %v12769_v12  ;;  %v2420_v10 = vld [vmem:[#allocation8 + $0x1260] sm:$0xff]  ;;  %v1764_v12 = vpack.i.b16 %v1669_v54, %v1669_v54  ;;  %v1783_v43 = vrot.slane %v1778_v8, %v14554_v20 }
 0x204   : > { %8160 = vmatprep.subr.bf16.mxu0 %v12634_v17  ;;  %8201 = vmatprep.subr.bf16.mxu1 %v12762_v25  ;;  %v2544_v17 = vld [vmem:[#allocation8 + $0x1640] sm:$0xff]  ;;  %v12601_v44 = vcombine.low %v2416_v15, %v2420_v10  ;;  %v1792_v45 = vadd.bf16 %v1734_v19, %v1564_v28 }
 0x205   : > { %v2548_v25 = vld [vmem:[#allocation8 + $0x1660] sm:$0xff]  ;;  %v1769_v11 = vrot.slane %v1764_v12, %v14554_v20  ;;  %v1799_v53 = vadd.bf16 %v1783_v43, %v1571_v16 }
 0x206   : > { %v2784_v54 = vld [vmem:[#allocation8 + $0x1dc0] sm:$0xff]  ;;  %v1808_v56 = vmul.bf16 1009007652, %v1792_v45 }
 0x207   : > { %8161 = vmatpush2.bf16.msra.mxu0 %v12633_v31  ;;  %8202 = vmatpush2.bf16.msra.mxu1 %v12761_v33  ;;  %v12602_v31 = vcombine.high %v2416_v15, %v2420_v10  ;;  %v1566_v33 = vpack.c.bf16 %v14642_v18, %v14642_v18  ;;  %v12729_v18 = vcombine.low %v2544_v17, %v2548_v25  ;;  %v2788_v55 = vld [vmem:[#allocation8 + $0x1de0] sm:$0xff]  ;;  %v1815_v15 = vmul.bf16 1009007652, %v1799_v53 }
 0x208   : > { %8162 = vmatprep.subr.bf16.mxu0 %v12626_v35  ;;  %8203 = vmatprep.subr.bf16.mxu1 %v12754_v36  ;;  %v12730_v35 = vcombine.high %v2544_v17, %v2548_v25  ;;  %v2408_v36 = vld [vmem:[#allocation8 + $0x1200] sm:$0xff]  ;;  %v1797_v34 = vadd.bf16 %v1769_v11, %v1569_v38  ;;  %v14691_v25 = vmax.bf16 %v1808_v56, %v1792_v45 }
 0x209   : > { %v12593_v39 = vcombine.low %v2408_v36, %v2412_v37  ;;  %v2776_v10 = vld [vmem:[#allocation8 + $0x1d80] sm:$0xff]  ;;  %v12969_v8 = vcombine.low %v2784_v54, %v2788_v55 }
 0x20a   : > { %v2780_v12 = vld [vmem:[#allocation8 + $0x1da0] sm:$0xff] }
 0x20b   : > { %8163 = vmatpush2.bf16.msra.mxu0 %v12625_v46  ;;  %8204 = vmatpush2.bf16.msra.mxu1 %v12753_v47  ;;  %v12594_v46 = vcombine.high %v2408_v36, %v2412_v37  ;;  %v1794_v47 = vadd.bf16 %v1748_v26, %v1566_v33  ;;  %v12962_v28 = vcombine.high %v2776_v10, %v2780_v12  ;;  %v2772_v36 = vld [vmem:[#allocation8 + $0x1d60] sm:$0xff] }
 0x20c   : > { %8164 = vmatprep.subr.bf16.mxu0 %v12618_v48  ;;  %8205 = vmatprep.subr.bf16.mxu1 %v12746_v50  ;;  %v12722_v48 = vcombine.high %v2536_v40, %v2540_v42  ;;  %v2656_v50 = vld [vmem:[#allocation8 + $0x19c0] sm:$0xff]  ;;  %v14697_v33 = vmax.bf16 %v1815_v15, %v1799_v53  ;;  %v12961_v38 = vcombine.low %v2776_v10, %v2780_v12 }
 0x20d   : > { %v12842_v60 = vcombine.high %v2656_v50, %v2660_v51  ;;  %v1810_v62 = vmul.bf16 1009007652, %v1794_v47  ;;  %v12841_v17 = vcombine.low %v2656_v50, %v2660_v51  ;;  %v2632_v42 = vld [vmem:[#allocation8 + $0x1900] sm:$0xff] }
 0x20e   : > { %v2636_v16 = vld [vmem:[#allocation8 + $0x1920] sm:$0xff] }
 0x20f   : > { %8165 = vmatpush2.bf16.msra.mxu0 %v12617_v13  ;;  %8206 = vmatpush2.bf16.msra.mxu1 %v12745_v63  ;;  %v1813_v13 = vmul.bf16 1009007652, %v1797_v34  ;;  %v12970_v63 = vcombine.high %v2784_v54, %v2788_v55  ;;  %v14693_v26 = vmax.bf16 %v1810_v62, %v1794_v47  ;;  %v2760_v43 = vld [vmem:[#allocation8 + $0x1d00] sm:$0xff]  ;;  %v12817_v53 = vcombine.low %v2632_v42, %v2636_v16 }
 0x210   : > { %8166 = vmatprep.subr.bf16.mxu0 %v12610_v2  ;;  %8207 = vmatprep.subr.bf16.mxu1 %v12738_v14  ;;  %v2648_v2 = vld [vmem:[#allocation8 + $0x1980] sm:$0xff] }
 0x211   : > { %v2652_v14 = vld [vmem:[#allocation8 + $0x19a0] sm:$0xff] }
 0x212   : > { %v12834_v19 = vcombine.high %v2648_v2, %v2652_v14  ;;  %v12833_v37 = vcombine.low %v2648_v2, %v2652_v14  ;;  %v2752_v50 = vld [vmem:[#allocation8 + $0x1cc0] sm:$0xff] }
 0x213   : > { %8167 = vmatpush2.bf16.msra.mxu0 %v12609_v27  ;;  %8208 = vmatpush2.bf16.msra.mxu1 %v12737_v30  ;;  %v14695_v27 = vmax.bf16 %v1813_v13, %v1797_v34  ;;  %v2640_v30 = vld [vmem:[#allocation8 + $0x1940] sm:$0xff] }
 0x214   : > { %8168 = vmatprep.subr.bf16.mxu0 %v12602_v31  ;;  %8209 = vmatprep.subr.bf16.mxu1 %v12730_v35  ;;  %v2644_v31 = vld [vmem:[#allocation8 + $0x1960] sm:$0xff] }
 0x215   : > { %v2768_v35 = vld [vmem:[#allocation8 + $0x1d40] sm:$0xff]  ;;  %v12826_v11 = vcombine.high %v2640_v30, %v2644_v31  ;;  %v12825_v45 = vcombine.low %v2640_v30, %v2644_v31 }
 0x216   : > { %v12954_v40 = vcombine.high %v2768_v35, %v2772_v36  ;;  %v2628_v34 = vld [vmem:[#allocation8 + $0x18e0] sm:$0xff] }
 0x217   : > { %8169 = vmatpush2.bf16.msra.mxu0 %v12601_v44  ;;  %8210 = vmatpush2.bf16.msra.mxu1 %v12729_v18  ;;  %v2764_v44 = vld [vmem:[#allocation8 + $0x1d20] sm:$0xff]  ;;  %v12953_v18 = vcombine.low %v2768_v35, %v2772_v36 }
 0x218   : > { %8170 = vmatprep.subr.bf16.mxu0 %v12594_v46  ;;  %8211 = vmatprep.subr.bf16.mxu1 %v12722_v48  ;;  %v12818_v46 = vcombine.high %v2632_v42, %v2636_v16  ;;  %v12946_v47 = vcombine.high %v2760_v43, %v2764_v44  ;;  %v2624_v48 = vld [vmem:[#allocation8 + $0x18c0] sm:$0xff]  ;;  %v12945_v54 = vcombine.low %v2760_v43, %v2764_v44 }
 0x219   : > { %v2756_v51 = vld [vmem:[#allocation8 + $0x1ce0] sm:$0xff]  ;;  %v12810_v55 = vcombine.high %v2624_v48, %v2628_v34  ;;  %v12809_v13 = vcombine.low %v2624_v48, %v2628_v34 }
 0x21a   : > { %v2616_v56 = vld [vmem:[#allocation8 + $0x1880] sm:$0xff] }
 0x21b   : > { %8171 = vmatpush2.bf16.msra.mxu0 %v12593_v39  ;;  %8212 = vmatpush2.bf16.msra.mxu1 %v12721_v58  ;;  %v12938_v39 = vcombine.high %v2752_v50, %v2756_v51  ;;  %v2620_v58 = vld [vmem:[#allocation8 + $0x18a0] sm:$0xff] }
 0x21c   : > { %8222 = vmatprep.subr.bf16.mxu0 %v12842_v60  ;;  %8263 = vmatprep.subr.bf16.mxu1 %v12970_v63  ;;  %v2744_v60 = vld [vmem:[#allocation8 + $0x1c80] sm:$0xff]  ;;  %v12937_v63 = vcombine.low %v2752_v50, %v2756_v51  ;;  %v12802_v2 = vcombine.high %v2616_v56, %v2620_v58 }
 0x21d   : > { %v2748_v62 = vld [vmem:[#allocation8 + $0x1ca0] sm:$0xff] }
 0x21e   : > { %8173 = vmatmul.mubr.bf16.vlgmr.msra.gmra.mxu0 %v14691_v25  ;;  %8214 = vmatmul.mubr.bf16.vlgmr.msra.gmra.mxu1 %v14693_v26  ;;  %v12930_v14 = vcombine.high %v2744_v60, %v2748_v62  ;;  %v2608_v15 = vld [vmem:[#allocation8 + $0x1840] sm:$0xff] }
 0x21f   : > { %8223 = vmatpush1.bf16.msra.mxu0 %v12841_v17  ;;  %8264 = vmatpush1.bf16.msra.mxu1 %v12969_v8  ;;  %v2612_v10 = vld [vmem:[#allocation8 + $0x1860] sm:$0xff]  ;;  %v12801_v8 = vcombine.low %v2616_v56, %v2620_v58 }
 0x220   : > { %8224 = vmatprep.subr.bf16.mxu0 %v12834_v19  ;;  %8265 = vmatprep.subr.bf16.mxu1 %v12962_v28  ;;  %v2736_v12 = vld [vmem:[#allocation8 + $0x1c40] sm:$0xff]  ;;  %v12929_v19 = vcombine.low %v2744_v60, %v2748_v62  ;;  %v12794_v28 = vcombine.high %v2608_v15, %v2612_v10 }
 0x221   : > { %8254 = vmatprep.mubr.bf16.mxu0 %v14695_v27  ;;  %8295 = vmatprep.mubr.bf16.mxu1 %v14697_v33  ;;  %v2740_v17 = vld [vmem:[#allocation8 + $0x1c60] sm:$0xff] }
 0x222   : > { %v12922_v30 = vcombine.high %v2736_v12, %v2740_v17  ;;  %v2600_v31 = vld [vmem:[#allocation8 + $0x1800] sm:$0xff] }
 0x223   : > { %8225 = vmatpush1.bf16.msra.mxu0 %v12833_v37  ;;  %8266 = vmatpush1.bf16.msra.mxu1 %v12961_v38  ;;  %v2604_v35 = vld [vmem:[#allocation8 + $0x1820] sm:$0xff]  ;;  %v12793_v38 = vcombine.low %v2608_v15, %v2612_v10 }
 0x224   : > { %8226 = vmatprep.subr.bf16.mxu0 %v12826_v11  ;;  %8267 = vmatprep.subr.bf16.mxu1 %v12954_v40  ;;  %v2728_v36 = vld [vmem:[#allocation8 + $0x1c00] sm:$0xff]  ;;  %v12921_v11 = vcombine.low %v2736_v12, %v2740_v17  ;;  %v12786_v40 = vcombine.high %v2600_v31, %v2604_v35 }
 0x225   : > { %v2732_v37 = vld [vmem:[#allocation8 + $0x1c20] sm:$0xff] }
 0x226   : > { %v12914_v42 = vcombine.high %v2728_v36, %v2732_v37  ;;  %v2720_v16 = vld [vmem:[#allocation8 + $0x1bc0] sm:$0xff] }
 0x227   : > { %8227 = vmatpush1.bf16.msra.mxu0 %v12825_v45  ;;  %8268 = vmatpush1.bf16.msra.mxu1 %v12953_v18  ;;  %v2724_v43 = vld [vmem:[#allocation8 + $0x1be0] sm:$0xff]  ;;  %v12785_v18 = vcombine.low %v2600_v31, %v2604_v35 }
 0x228   : > { %8228 = vmatprep.subr.bf16.mxu0 %v12818_v46  ;;  %8269 = vmatprep.subr.bf16.mxu1 %v12946_v47  ;;  %v2848_v44 = vld [vmem:[#allocation8 + $0x1fc0] sm:$0xff]  ;;  %v12913_v46 = vcombine.low %v2728_v36, %v2732_v37  ;;  %v12906_v47 = vcombine.high %v2720_v16, %v2724_v43 }
 0x229   : > { %v2852_v45 = vld [vmem:[#allocation8 + $0x1fe0] sm:$0xff] }
 0x22a   : > { %v13034_v48 = vcombine.high %v2848_v44, %v2852_v45  ;;  %v2712_v34 = vld [vmem:[#allocation8 + $0x1b80] sm:$0xff] }
 0x22b   : > { %8229 = vmatpush1.bf16.msra.mxu0 %v12817_v53  ;;  %8270 = vmatpush1.bf16.msra.mxu1 %v12945_v54  ;;  %v2716_v50 = vld [vmem:[#allocation8 + $0x1ba0] sm:$0xff]  ;;  %v12905_v54 = vcombine.low %v2720_v16, %v2724_v43 }
 0x22c   : > { %8230 = vmatprep.subr.bf16.mxu0 %v12810_v55  ;;  %8271 = vmatprep.subr.bf16.mxu1 %v12938_v39  ;;  %v2840_v51 = vld [vmem:[#allocation8 + $0x1f80] sm:$0xff]  ;;  %v13033_v55 = vcombine.low %v2848_v44, %v2852_v45  ;;  %v12898_v39 = vcombine.high %v2712_v34, %v2716_v50 }
 0x22d   : > { %v2844_v53 = vld [vmem:[#allocation8 + $0x1fa0] sm:$0xff] }
 0x22e   : > { %v13026_v56 = vcombine.high %v2840_v51, %v2844_v53  ;;  %v2704_v58 = vld [vmem:[#allocation8 + $0x1b40] sm:$0xff] }
 0x22f   : > { %8231 = vmatpush1.bf16.msra.mxu0 %v12809_v13  ;;  %8272 = vmatpush1.bf16.msra.mxu1 %v12937_v63  ;;  %v2708_v60 = vld [vmem:[#allocation8 + $0x1b60] sm:$0xff]  ;;  %v12897_v63 = vcombine.low %v2712_v34, %v2716_v50 }
 0x230   : > { %8232 = vmatprep.subr.bf16.mxu0 %v12802_v2  ;;  %8273 = vmatprep.subr.bf16.mxu1 %v12930_v14  ;;  %v2832_v62 = vld [vmem:[#allocation8 + $0x1f40] sm:$0xff]  ;;  %v13025_v2 = vcombine.low %v2840_v51, %v2844_v53  ;;  %v12890_v14 = vcombine.high %v2704_v58, %v2708_v60 }
 0x231   : > { %v2836_v13 = vld [vmem:[#allocation8 + $0x1f60] sm:$0xff] }
 0x232   : > { %v13018_v15 = vcombine.high %v2832_v62, %v2836_v13  ;;  %v2696_v10 = vld [vmem:[#allocation8 + $0x1b00] sm:$0xff] }
 0x233   : > { %8233 = vmatpush1.bf16.msra.mxu0 %v12801_v8  ;;  %8274 = vmatpush1.bf16.msra.mxu1 %v12929_v19  ;;  %v2700_v12 = vld [vmem:[#allocation8 + $0x1b20] sm:$0xff]  ;;  %v12889_v19 = vcombine.low %v2704_v58, %v2708_v60 }
 0x234   : > { %8234 = vmatprep.subr.bf16.mxu0 %v12794_v28  ;;  %8275 = vmatprep.subr.bf16.mxu1 %v12922_v30  ;;  %v2824_v17 = vld [vmem:[#allocation8 + $0x1f00] sm:$0xff]  ;;  %v13017_v28 = vcombine.low %v2832_v62, %v2836_v13  ;;  %v12882_v30 = vcombine.high %v2696_v10, %v2700_v12 }
 0x235   : > { %v2828_v8 = vld [vmem:[#allocation8 + $0x1f20] sm:$0xff] }
 0x236   : > { %v13010_v31 = vcombine.high %v2824_v17, %v2828_v8  ;;  %v2688_v35 = vld [vmem:[#allocation8 + $0x1ac0] sm:$0xff] }
 0x237   : > { %8235 = vmatpush1.bf16.msra.mxu0 %v12793_v38  ;;  %8276 = vmatpush1.bf16.msra.mxu1 %v12921_v11  ;;  %v2692_v36 = vld [vmem:[#allocation8 + $0x1ae0] sm:$0xff]  ;;  %v12881_v11 = vcombine.low %v2696_v10, %v2700_v12  ;;  %v1889_v12 = vld [vmem:[#allocation8 + $0x1c8] sm:$0xff] }
 0x238   : > { %8236 = vmatprep.subr.bf16.mxu0 %v12786_v40  ;;  %8277 = vmatprep.subr.bf16.mxu1 %v12914_v42  ;;  %v2816_v37 = vld [vmem:[#allocation8 + $0x1ec0] sm:$0xff]  ;;  %v13009_v40 = vcombine.low %v2824_v17, %v2828_v8  ;;  %v12874_v42 = vcombine.high %v2688_v35, %v2692_v36  ;;  %v1893_v17 = vld [vmem:[#allocation8 + $0x1e8] sm:$0xff] }
 0x239   : > { %v2820_v38 = vld [vmem:[#allocation8 + $0x1ee0] sm:$0xff]  ;;  %v2017_v8 = vld [vmem:[#allocation8 + $0x5c8] sm:$0xff] }
 0x23a   : > { %v13002_v16 = vcombine.high %v2816_v37, %v2820_v38  ;;  %v2680_v43 = vld [vmem:[#allocation8 + $0x1a80] sm:$0xff] }
 0x23b   : > { %8237 = vmatpush1.bf16.msra.mxu0 %v12785_v18  ;;  %8278 = vmatpush1.bf16.msra.mxu1 %v12913_v46  ;;  %v2684_v44 = vld [vmem:[#allocation8 + $0x1aa0] sm:$0xff]  ;;  %v12873_v46 = vcombine.low %v2688_v35, %v2692_v36  ;;  %v12076_v35 = vcombine.high %v1889_v12, %v1893_v17  ;;  %v1814_v36 = vmul.bf16 1009007652, %v14669_v41 }
 0x23c   : > { %8238 = vmatprep.subr.bf16.mxu0 %v12906_v47  ;;  %8279 = vmatprep.subr.bf16.mxu1 %v13034_v48  ;;  %v2808_v45 = vld [vmem:[#allocation8 + $0x1e80] sm:$0xff]  ;;  %v13001_v47 = vcombine.low %v2816_v37, %v2820_v38  ;;  %v12866_v48 = vcombine.high %v2680_v43, %v2684_v44  ;;  %v1881_v38 = vld [vmem:[#allocation8 + $0x188] sm:$0xff] }
 0x23d   : > { %v2812_v18 = vld [vmem:[#allocation8 + $0x1ea0] sm:$0xff] }
 0x23e   : > { %v12994_v34 = vcombine.high %v2808_v45, %v2812_v18  ;;  %v2672_v50 = vld [vmem:[#allocation8 + $0x1a40] sm:$0xff] }
 0x23f   : > { %8239 = vmatpush2.bf16.msra.mxu0 %v12905_v54  ;;  %8280 = vmatpush2.bf16.msra.mxu1 %v13033_v55  ;;  %v2676_v51 = vld [vmem:[#allocation8 + $0x1a60] sm:$0xff]  ;;  %v12865_v55 = vcombine.low %v2680_v43, %v2684_v44 }
 0x240   : > { %8240 = vmatprep.subr.bf16.mxu0 %v12898_v39  ;;  %8281 = vmatprep.subr.bf16.mxu1 %v13026_v56  ;;  %v2800_v53 = vld [vmem:[#allocation8 + $0x1e40] sm:$0xff]  ;;  %v12993_v39 = vcombine.low %v2808_v45, %v2812_v18  ;;  %v12858_v56 = vcombine.high %v2672_v50, %v2676_v51  ;;  %v14709_v45 = vmax.bf16 %v1814_v36, %v14669_v41  ;;  %v1989_v36 = vld [vmem:[#allocation8 + $0x4e8] sm:$0xff] }
 0x241   : > { %v2804_v54 = vld [vmem:[#allocation8 + $0x1e60] sm:$0xff] }
 0x242   : > { %v12986_v58 = vcombine.high %v2800_v53, %v2804_v54  ;;  %v2664_v60 = vld [vmem:[#allocation8 + $0x1a00] sm:$0xff] }
 0x243   : > { %8241 = vmatpush2.bf16.msra.mxu0 %v12897_v63  ;;  %8282 = vmatpush2.bf16.msra.mxu1 %v13025_v2  ;;  %v2668_v62 = vld [vmem:[#allocation8 + $0x1a20] sm:$0xff]  ;;  %v12857_v2 = vcombine.low %v2672_v50, %v2676_v51  ;;  %v2001_v50 = vld [vmem:[#allocation8 + $0x548] sm:$0xff] }
 0x244   : > { %8242 = vmatprep.subr.bf16.mxu0 %v12890_v14  ;;  %8283 = vmatprep.subr.bf16.mxu1 %v13018_v15  ;;  %v2792_v13 = vld [vmem:[#allocation8 + $0x1e00] sm:$0xff]  ;;  %v12985_v14 = vcombine.low %v2800_v53, %v2804_v54  ;;  %v12850_v15 = vcombine.high %v2664_v60, %v2668_v62  ;;  %v2005_v51 = vld [vmem:[#allocation8 + $0x568] sm:$0xff] }
 0x245   : > { %v2796_v63 = vld [vmem:[#allocation8 + $0x1e20] sm:$0xff] }
 0x246   : > { %v12978_v10 = vcombine.high %v2792_v13, %v2796_v63 }
 0x247   : > { %8243 = vmatpush2.bf16.msra.mxu0 %v12889_v19  ;;  %8284 = vmatpush2.bf16.msra.mxu1 %v13017_v28  ;;  %v2021_v19 = vld [vmem:[#allocation8 + $0x5e8] sm:$0xff]  ;;  %v12849_v28 = vcombine.low %v2664_v60, %v2668_v62 }
 0x248   : > { %8244 = vmatprep.subr.bf16.mxu0 %v12882_v30  ;;  %8285 = vmatprep.subr.bf16.mxu1 %v13010_v31  ;;  %v1812_v30 = vmul.bf16 1009007652, %v14665_v21  ;;  %v12977_v31 = vcombine.low %v2792_v13, %v2796_v63  ;;  %v12204_v37 = vcombine.high %v2017_v8, %v2021_v19  ;;  %v12203_v44 = vcombine.low %v2017_v8, %v2021_v19  ;;  %v1865_v60 = vld [vmem:[#allocation8 + $0x108] sm:$0xff] }
 0x249   : > { %v1869_v62 = vld [vmem:[#allocation8 + $0x128] sm:$0xff] }
 0x24a   : > { %v14706_v43 = vmax.bf16 %v1812_v30, %v14665_v21  ;;  %v12052_v8 = vcombine.high %v1865_v60, %v1869_v62  ;;  %v1857_v30 = vld [vmem:[#allocation8 + $0xc8] sm:$0xff] }
 0x24b   : > { %8245 = vmatpush2.bf16.msra.mxu0 %v12881_v11  ;;  %8286 = vmatpush2.bf16.msra.mxu1 %v13009_v40  ;;  %v1885_v11 = vld [vmem:[#allocation8 + $0x1a8] sm:$0xff]  ;;  %v12075_v40 = vcombine.low %v1889_v12, %v1893_v17  ;;  %v12187_v17 = vcombine.low %v2001_v50, %v2005_v51 }
 0x24c   : > { %8246 = vmatprep.subr.bf16.mxu0 %v12874_v42  ;;  %8287 = vmatprep.subr.bf16.mxu1 %v13002_v16  ;;  %v2009_v42 = vld [vmem:[#allocation8 + $0x588] sm:$0xff]  ;;  %v12068_v18 = vcombine.high %v1881_v38, %v1885_v11  ;;  %v12067_v53 = vcombine.low %v1881_v38, %v1885_v11 }
 0x24d   : > { %v2013_v16 = vld [vmem:[#allocation8 + $0x5a8] sm:$0xff] }
 0x24f   : > { %8247 = vmatpush2.bf16.msra.mxu0 %v12873_v46  ;;  %8288 = vmatpush2.bf16.msra.mxu1 %v13001_v47  ;;  %v1873_v46 = vld [vmem:[#allocation8 + $0x148] sm:$0xff] }
 0x250   : > { %8248 = vmatprep.subr.bf16.mxu0 %v12866_v48  ;;  %8289 = vmatprep.subr.bf16.mxu1 %v12994_v34  ;;  %v1877_v47 = vld [vmem:[#allocation8 + $0x168] sm:$0xff]  ;;  %v12196_v34 = vcombine.high %v2009_v42, %v2013_v16 }
 0x253   : > { %8249 = vmatpush2.bf16.msra.mxu0 %v12865_v55  ;;  %8290 = vmatpush2.bf16.msra.mxu1 %v12993_v39  ;;  %v12195_v55 = vcombine.low %v2009_v42, %v2013_v16  ;;  %v12060_v39 = vcombine.high %v1873_v46, %v1877_v47  ;;  %v1849_v42 = vld [vmem:[#allocation8 + $0x88] sm:$0xff] }
 0x254   : > { %8250 = vmatprep.subr.bf16.mxu0 %v12858_v56  ;;  %8291 = vmatprep.subr.bf16.mxu1 %v12986_v58  ;;  %v12188_v58 = vcombine.high %v2001_v50, %v2005_v51  ;;  %v1853_v16 = vld [vmem:[#allocation8 + $0xa8] sm:$0xff] }
 0x255   : > { %v1841_v50 = vld [vmem:[#allocation8 + $0x48] sm:$0xff] }
 0x256   : > { %v1845_v51 = vld [vmem:[#allocation8 + $0x68] sm:$0xff] }
 0x257   : > { %8251 = vmatpush2.bf16.msra.mxu0 %v12857_v2  ;;  %8292 = vmatpush2.bf16.msra.mxu1 %v12985_v14  ;;  %v1993_v2 = vld [vmem:[#allocation8 + $0x508] sm:$0xff] }
 0x258   : > { %8252 = vmatprep.subr.bf16.mxu0 %v12850_v15  ;;  %8293 = vmatprep.subr.bf16.mxu1 %v12978_v10  ;;  %v1997_v14 = vld [vmem:[#allocation8 + $0x528] sm:$0xff]  ;;  %v12059_v10 = vcombine.low %v1873_v46, %v1877_v47 }
 0x259   : > { %v12179_v38 = vcombine.low %v1993_v2, %v1997_v14 }
 0x25b   : > { %8253 = vmatpush2.bf16.msra.mxu0 %v12849_v28  ;;  %8294 = vmatpush2.bf16.msra.mxu1 %v12977_v31  ;;  %v12180_v28 = vcombine.high %v1993_v2, %v1997_v14  ;;  %v1861_v31 = vld [vmem:[#allocation8 + $0xe8] sm:$0xff]  ;;  %v12027_v2 = vcombine.low %v1841_v50, %v1845_v51 }
 0x25c   : > { %8304 = vmatprep.subr.bf16.mxu0 %v12076_v35  ;;  %8345 = vmatprep.subr.bf16.mxu1 %v12204_v37  ;;  %v1985_v35 = vld [vmem:[#allocation8 + $0x4c8] sm:$0xff]  ;;  %v12051_v37 = vcombine.low %v1865_v60, %v1869_v62  ;;  %v12044_v11 = vcombine.high %v1857_v30, %v1861_v31  ;;  %v12043_v46 = vcombine.low %v1857_v30, %v1861_v31 }
 0x25d   : > { %v12171_v47 = vcombine.low %v1985_v35, %v1989_v36  ;;  %v1837_v60 = vld [vmem:[#allocation8 + $0x28] sm:$0xff] }
 0x25e   : > { %8255 = vmatmul.mubr.bf16.vlgmr.msra.gmra.mxu0 %v14706_v43  ;;  %v8010_v48 = vpop.f32.mrf.mxu0  ;;  %8296 = vmatmul.mubr.bf16.vlgmr.msra.gmra.mxu1 %v14709_v45  ;;  %v8051_v21 = vpop.f32.mrf.mxu1  ;;  %v1961_v62 = vld [vmem:[#allocation8 + $0x408] sm:$0xff] }
 0x25f   : > { %8305 = vmatpush1.bf16.msra.mxu0 %v12075_v40  ;;  %v14713_v54 = vadd.f32 %v8051_v21, %v8010_v48  ;;  %8336 = vmatprep.mubr.bf16.mxu0 %v14579_v1  ;;  %v12172_v40 = vcombine.high %v1985_v35, %v1989_v36  ;;  %v12036_v48 = vcombine.high %v1849_v42, %v1853_v16  ;;  %v1969_v21 = vld [vmem:[#allocation8 + $0x448] sm:$0xff] }
 0x260   : > { %8346 = vmatpush1.bf16.msra.mxu1 %v12203_v44  ;;  %v8012_v41 = vpop.f32.mrf.mxu0  ;;  %8377 = vmatprep.mubr.bf16.mxu1 %v14585_v4  ;;  %v8053_v56 = vpop.f32.mrf.mxu1  ;;  %v1977_v44 = vld [vmem:[#allocation8 + $0x488] sm:$0xff] }
 0x261   : > { %8306 = vmatprep.subr.bf16.mxu0 %v12068_v18  ;;  %v14717_v13 = vadd.f32 %v8053_v56, %v8012_v41  ;;  %8347 = vmatprep.subr.bf16.mxu1 %v12196_v34  ;;  %v1981_v18 = vld [vmem:[#allocation8 + $0x4a8] sm:$0xff]  ;;  %v12035_v41 = vcombine.low %v1849_v42, %v1853_v16 }
 0x262   : > { %v8014_v63 = vpop.f32.mrf.mxu0  ;;  %v8055_v15 = vpop.f32.mrf.mxu1  ;;  %v12164_v34 = vcombine.high %v1977_v44, %v1981_v18  ;;  %v1945_v36 = vld [vmem:[#allocation8 + $0x388] sm:$0xff] }
 0x263   : > { %8307 = vmatpush1.bf16.msra.mxu0 %v12067_v53  ;;  %v1973_v53 = vld [vmem:[#allocation8 + $0x468] sm:$0xff] }
 0x264   : > { %8348 = vmatpush1.bf16.msra.mxu1 %v12195_v55  ;;  %v8015_v12 = vpop.f32.mrf.mxu0  ;;  %8308 = vmatprep.subr.bf16.mxu0 %v12060_v39  ;;  %v8056_v19 = vpop.f32.mrf.mxu1  ;;  %v12163_v55 = vcombine.low %v1977_v44, %v1981_v18  ;;  %v12028_v39 = vcombine.high %v1841_v50, %v1845_v51  ;;  %v12156_v56 = vcombine.high %v1969_v21, %v1973_v53  ;;  %v1965_v63 = vld [vmem:[#allocation8 + $0x428] sm:$0xff] }
 0x265   : > { %8349 = vmatprep.subr.bf16.mxu1 %v12188_v58  ;;  %v1833_v58 = vld [vmem:[#allocation8 + $0x8] sm:$0xff]  ;;  %v12155_v14 = vcombine.low %v1969_v21, %v1973_v53  ;;  %v12147_v30 = vcombine.low %v1961_v62, %v1965_v63 }
 0x266   : > { %v12020_v15 = vcombine.high %v1833_v58, %v1837_v60  ;;  %v1953_v12 = vld [vmem:[#allocation8 + $0x3c8] sm:$0xff] }
 0x267   : > { %8309 = vmatpush1.bf16.msra.mxu0 %v12059_v10  ;;  %v12148_v10 = vcombine.high %v1961_v62, %v1965_v63  ;;  %v2085_v19 = vld [vmem:[#allocation8 + $0x7e8] sm:$0xff] }
 0x268   : > { %8350 = vmatpush1.bf16.msra.mxu1 %v12187_v17  ;;  %8310 = vmatprep.subr.bf16.mxu0 %v12052_v8  ;;  %v1957_v17 = vld [vmem:[#allocation8 + $0x3e8] sm:$0xff] }
 0x269   : > { %8351 = vmatprep.subr.bf16.mxu1 %v12180_v28  ;;  %v2081_v8 = vld [vmem:[#allocation8 + $0x7c8] sm:$0xff]  ;;  %v12019_v28 = vcombine.low %v1833_v58, %v1837_v60  ;;  %v12140_v31 = vcombine.high %v1953_v12, %v1957_v17 }
 0x26a   : > { %v12268_v35 = vcombine.high %v2081_v8, %v2085_v19  ;;  %v12267_v42 = vcombine.low %v2081_v8, %v2085_v19  ;;  %v1937_v18 = vld [vmem:[#allocation8 + $0x348] sm:$0xff] }
 0x26b   : > { %8311 = vmatpush1.bf16.msra.mxu0 %v12051_v37  ;;  %v1949_v37 = vld [vmem:[#allocation8 + $0x3a8] sm:$0xff] }
 0x26c   : > { %8352 = vmatpush1.bf16.msra.mxu1 %v12179_v38  ;;  %8312 = vmatprep.subr.bf16.mxu0 %v12044_v11  ;;  %v2073_v38 = vld [vmem:[#allocation8 + $0x788] sm:$0xff]  ;;  %v12132_v16 = vcombine.high %v1945_v36, %v1949_v37 }
 0x26d   : > { %8353 = vmatprep.subr.bf16.mxu1 %v12172_v40  ;;  %v2077_v11 = vld [vmem:[#allocation8 + $0x7a8] sm:$0xff]  ;;  %v12139_v40 = vcombine.low %v1953_v12, %v1957_v17 }
 0x26e   : > { %v12260_v44 = vcombine.high %v2073_v38, %v2077_v11  ;;  %v12259_v50 = vcombine.low %v2073_v38, %v2077_v11  ;;  %v1929_v53 = vld [vmem:[#allocation8 + $0x308] sm:$0xff] }
 0x26f   : > { %8313 = vmatpush1.bf16.msra.mxu0 %v12043_v46  ;;  %v1941_v46 = vld [vmem:[#allocation8 + $0x368] sm:$0xff] }
 0x270   : > { %8354 = vmatpush1.bf16.msra.mxu1 %v12171_v47  ;;  %8314 = vmatprep.subr.bf16.mxu0 %v12036_v48  ;;  %v2065_v47 = vld [vmem:[#allocation8 + $0x748] sm:$0xff]  ;;  %v12124_v51 = vcombine.high %v1937_v18, %v1941_v46 }
 0x271   : > { %8355 = vmatprep.subr.bf16.mxu1 %v12164_v34  ;;  %v2069_v48 = vld [vmem:[#allocation8 + $0x768] sm:$0xff]  ;;  %v12131_v34 = vcombine.low %v1945_v36, %v1949_v37 }
 0x272   : > { %v12252_v21 = vcombine.high %v2065_v47, %v2069_v48  ;;  %v12251_v58 = vcombine.low %v2065_v47, %v2069_v48  ;;  %v1921_v63 = vld [vmem:[#allocation8 + $0x2c8] sm:$0xff] }
 0x273   : > { %8315 = vmatpush1.bf16.msra.mxu0 %v12035_v41  ;;  %v1933_v41 = vld [vmem:[#allocation8 + $0x328] sm:$0xff] }
 0x274   : > { %8356 = vmatpush1.bf16.msra.mxu1 %v12163_v55  ;;  %8316 = vmatprep.subr.bf16.mxu0 %v12028_v39  ;;  %v2057_v55 = vld [vmem:[#allocation8 + $0x708] sm:$0xff]  ;;  %v12116_v60 = vcombine.high %v1929_v53, %v1933_v41 }
 0x275   : > { %8357 = vmatprep.subr.bf16.mxu1 %v12156_v56  ;;  %v2061_v39 = vld [vmem:[#allocation8 + $0x728] sm:$0xff]  ;;  %v12123_v56 = vcombine.low %v1937_v18, %v1941_v46 }
 0x276   : > { %v12244_v62 = vcombine.high %v2057_v55, %v2061_v39  ;;  %v12243_v12 = vcombine.low %v2057_v55, %v2061_v39  ;;  %v1913_v19 = vld [vmem:[#allocation8 + $0x288] sm:$0xff] }
 0x277   : > { %8317 = vmatpush1.bf16.msra.mxu0 %v12027_v2  ;;  %v1925_v2 = vld [vmem:[#allocation8 + $0x2e8] sm:$0xff] }
 0x278   : > { %8358 = vmatpush1.bf16.msra.mxu1 %v12155_v14  ;;  %8318 = vmatprep.subr.bf16.mxu0 %v12020_v15  ;;  %v2049_v14 = vld [vmem:[#allocation8 + $0x6c8] sm:$0xff]  ;;  %v12108_v17 = vcombine.high %v1921_v63, %v1925_v2 }
 0x279   : > { %8359 = vmatprep.subr.bf16.mxu1 %v12148_v10  ;;  %v2053_v15 = vld [vmem:[#allocation8 + $0x6e8] sm:$0xff]  ;;  %v12115_v10 = vcombine.low %v1929_v53, %v1933_v41 }
 0x27a   : > { %v12236_v8 = vcombine.high %v2049_v14, %v2053_v15  ;;  %v12235_v36 = vcombine.low %v2049_v14, %v2053_v15  ;;  %v1905_v11 = vld [vmem:[#allocation8 + $0x248] sm:$0xff] }
 0x27b   : > { %8319 = vmatpush1.bf16.msra.mxu0 %v12019_v28  ;;  %v1917_v28 = vld [vmem:[#allocation8 + $0x2a8] sm:$0xff] }
 0x27c   : > { %8360 = vmatpush1.bf16.msra.mxu1 %v12147_v30  ;;  %8320 = vmatprep.subr.bf16.mxu0 %v12140_v31  ;;  %v2041_v30 = vld [vmem:[#allocation8 + $0x688] sm:$0xff]  ;;  %v12100_v37 = vcombine.high %v1913_v19, %v1917_v28 }
 0x27d   : > { %8361 = vmatprep.subr.bf16.mxu1 %v12268_v35  ;;  %v2045_v31 = vld [vmem:[#allocation8 + $0x6a8] sm:$0xff]  ;;  %v12107_v35 = vcombine.low %v1921_v63, %v1925_v2 }
 0x27e   : > { %v12228_v38 = vcombine.high %v2041_v30, %v2045_v31  ;;  %v12227_v18 = vcombine.low %v2041_v30, %v2045_v31  ;;  %v1897_v48 = vld [vmem:[#allocation8 + $0x208] sm:$0xff] }
 0x27f   : > { %8321 = vmatpush2.bf16.msra.mxu0 %v12139_v40  ;;  %v1909_v40 = vld [vmem:[#allocation8 + $0x268] sm:$0xff] }
 0x280   : > { %8362 = vmatpush2.bf16.msra.mxu1 %v12267_v42  ;;  %8322 = vmatprep.subr.bf16.mxu0 %v12132_v16  ;;  %v2033_v42 = vld [vmem:[#allocation8 + $0x648] sm:$0xff]  ;;  %v12092_v46 = vcombine.high %v1905_v11, %v1909_v40 }
 0x281   : > { %8363 = vmatprep.subr.bf16.mxu1 %v12260_v44  ;;  %v2037_v16 = vld [vmem:[#allocation8 + $0x668] sm:$0xff]  ;;  %v12099_v44 = vcombine.low %v1913_v19, %v1917_v28 }
 0x282   : > { %v12220_v47 = vcombine.high %v2033_v42, %v2037_v16  ;;  %v12219_v53 = vcombine.low %v2033_v42, %v2037_v16  ;;  %v2145_v39 = vld [vmem:[#allocation8 + $0x9c8] sm:$0xff] }
 0x283   : > { %8323 = vmatpush2.bf16.msra.mxu0 %v12131_v34  ;;  %v1901_v34 = vld [vmem:[#allocation8 + $0x228] sm:$0xff] }
 0x284   : > { %8364 = vmatpush2.bf16.msra.mxu1 %v12259_v50  ;;  %8324 = vmatprep.subr.bf16.mxu0 %v12124_v51  ;;  %v2025_v50 = vld [vmem:[#allocation8 + $0x608] sm:$0xff]  ;;  %v12084_v41 = vcombine.high %v1897_v48, %v1901_v34 }
 0x285   : > { %8365 = vmatprep.subr.bf16.mxu1 %v12252_v21  ;;  %v2029_v51 = vld [vmem:[#allocation8 + $0x628] sm:$0xff]  ;;  %v12091_v21 = vcombine.low %v1905_v11, %v1909_v40 }
 0x286   : > { %v12212_v55 = vcombine.high %v2025_v50, %v2029_v51  ;;  %v12211_v63 = vcombine.low %v2025_v50, %v2029_v51  ;;  %v2137_v15 = vld [vmem:[#allocation8 + $0x988] sm:$0xff] }
 0x287   : > { %8325 = vmatpush2.bf16.msra.mxu0 %v12123_v56  ;;  %v2149_v56 = vld [vmem:[#allocation8 + $0x9e8] sm:$0xff] }
 0x288   : > { %8366 = vmatpush2.bf16.msra.mxu1 %v12251_v58  ;;  %8326 = vmatprep.subr.bf16.mxu0 %v12116_v60  ;;  %v2273_v58 = vld [vmem:[#allocation8 + $0xdc8] sm:$0xff]  ;;  %v12332_v2 = vcombine.high %v2145_v39, %v2149_v56 }
 0x289   : > { %8367 = vmatprep.subr.bf16.mxu1 %v12244_v62  ;;  %v2277_v60 = vld [vmem:[#allocation8 + $0xde8] sm:$0xff]  ;;  %v12083_v62 = vcombine.low %v1897_v48, %v1901_v34 }
 0x28a   : > { %v12460_v14 = vcombine.high %v2273_v58, %v2277_v60  ;;  %v12459_v19 = vcombine.low %v2273_v58, %v2277_v60  ;;  %v2129_v30 = vld [vmem:[#allocation8 + $0x948] sm:$0xff] }
 0x28b   : > { %8327 = vmatpush2.bf16.msra.mxu0 %v12115_v10  ;;  %v2141_v10 = vld [vmem:[#allocation8 + $0x9a8] sm:$0xff] }
 0x28c   : > { %8368 = vmatpush2.bf16.msra.mxu1 %v12243_v12  ;;  %8328 = vmatprep.subr.bf16.mxu0 %v12108_v17  ;;  %v12331_v12 = vcombine.low %v2145_v39, %v2149_v56  ;;  %v2265_v17 = vld [vmem:[#allocation8 + $0xd88] sm:$0xff]  ;;  %v12324_v28 = vcombine.high %v2137_v15, %v2141_v10  ;;  %v12323_v42 = vcombine.low %v2137_v15, %v2141_v10 }
 0x28d   : > { %8369 = vmatprep.subr.bf16.mxu1 %v12236_v8  ;;  %v2269_v8 = vld [vmem:[#allocation8 + $0xda8] sm:$0xff] }
 0x28e   : > { %v2133_v31 = vld [vmem:[#allocation8 + $0x968] sm:$0xff] }
 0x28f   : > { %8329 = vmatpush2.bf16.msra.mxu0 %v12107_v35  ;;  %v2121_v34 = vld [vmem:[#allocation8 + $0x908] sm:$0xff]  ;;  %v12315_v39 = vcombine.low %v2129_v30, %v2133_v31 }
 0x290   : > { %8370 = vmatpush2.bf16.msra.mxu1 %v12235_v36  ;;  %8330 = vmatprep.subr.bf16.mxu0 %v12100_v37  ;;  %v12452_v36 = vcombine.high %v2265_v17, %v2269_v8  ;;  %v2257_v37 = vld [vmem:[#allocation8 + $0xd48] sm:$0xff] }
 0x291   : > { %8371 = vmatprep.subr.bf16.mxu1 %v12228_v38  ;;  %v2261_v38 = vld [vmem:[#allocation8 + $0xd68] sm:$0xff] }
 0x292   : > { %v2125_v50 = vld [vmem:[#allocation8 + $0x928] sm:$0xff]  ;;  %v12443_v58 = vcombine.low %v2257_v37, %v2261_v38 }
 0x293   : > { %8331 = vmatpush2.bf16.msra.mxu0 %v12099_v44  ;;  %v12451_v44 = vcombine.low %v2265_v17, %v2269_v8  ;;  %v12308_v60 = vcombine.high %v2121_v34, %v2125_v50  ;;  %v2245_v15 = vld [vmem:[#allocation8 + $0xce8] sm:$0xff]  ;;  %v12307_v10 = vcombine.low %v2121_v34, %v2125_v50 }
 0x294   : > { %8372 = vmatpush2.bf16.msra.mxu1 %v12227_v18  ;;  %8332 = vmatprep.subr.bf16.mxu0 %v12092_v46  ;;  %v12316_v18 = vcombine.high %v2129_v30, %v2133_v31  ;;  %v2233_v30 = vld [vmem:[#allocation8 + $0xc88] sm:$0xff] }
 0x295   : > { %8373 = vmatprep.subr.bf16.mxu1 %v12220_v47  ;;  %v2237_v31 = vld [vmem:[#allocation8 + $0xca8] sm:$0xff] }
 0x296   : > { %v2093_v34 = vld [vmem:[#allocation8 + $0x828] sm:$0xff] }
 0x297   : > { %8333 = vmatpush2.bf16.msra.mxu0 %v12091_v21  ;;  %v2249_v21 = vld [vmem:[#allocation8 + $0xd08] sm:$0xff] }
 0x298   : > { %8374 = vmatpush2.bf16.msra.mxu1 %v12219_v53  ;;  %8334 = vmatprep.subr.bf16.mxu0 %v12084_v41  ;;  %v2253_v53 = vld [vmem:[#allocation8 + $0xd28] sm:$0xff] }
 0x299   : > { %8375 = vmatprep.subr.bf16.mxu1 %v12212_v55  ;;  %v2217_v50 = vld [vmem:[#allocation8 + $0xc08] sm:$0xff] }
 0x29b   : > { %8335 = vmatpush2.bf16.msra.mxu0 %v12083_v62  ;;  %v12436_v62 = vcombine.high %v2249_v21, %v2253_v53 }
 0x29c   : > { %8376 = vmatpush2.bf16.msra.mxu1 %v12211_v63  ;;  %8386 = vmatprep.subr.bf16.mxu0 %v12332_v2  ;;  %v2113_v63 = vld [vmem:[#allocation8 + $0x8c8] sm:$0xff] }
 0x29d   : > { %8427 = vmatprep.subr.bf16.mxu1 %v12460_v14  ;;  %v2117_v2 = vld [vmem:[#allocation8 + $0x8e8] sm:$0xff] }
 0x29e   : > { %v8092_v35 = vpop.f32.mrf.mxu0  ;;  %8337 = vmatmul.mubr.bf16.vlgmr.msra.gmra.mxu0 %v14583_v3  ;;  %v8133_v40 = vpop.f32.mrf.mxu1  ;;  %v2241_v14 = vld [vmem:[#allocation8 + $0xcc8] sm:$0xff]  ;;  %v12300_v17 = vcombine.high %v2113_v63, %v2117_v2 }
 0x29f   : > { %v8093_v11 = vadd.f32 %v8092_v35, %v14713_v54  ;;  %8378 = vmatmul.mubr.bf16.vlgmr.msra.gmra.mxu1 %v14589_v7  ;;  %8387 = vmatpush1.bf16.msra.mxu0 %v12331_v12  ;;  %v12444_v54 = vcombine.high %v2257_v37, %v2261_v38  ;;  %v12435_v12 = vcombine.low %v2249_v21, %v2253_v53 }
 0x2a0   : > { %8418 = vmatprep.mubr.bf16.mxu0 %v14611_v49  ;;  %8428 = vmatpush1.bf16.msra.mxu1 %v12459_v19  ;;  %v8094_v16 = vpop.f32.mrf.mxu0  ;;  %v8135_v48 = vpop.f32.mrf.mxu1  ;;  %v12428_v8 = vcombine.high %v2241_v14, %v2245_v15  ;;  %v2105_v19 = vld [vmem:[#allocation8 + $0x888] sm:$0xff]  ;;  %v12299_v35 = vcombine.low %v2113_v63, %v2117_v2  ;;  %v12420_v38 = vcombine.high %v2233_v30, %v2237_v31 }
 0x2a1   : > { %v14723_v46 = vadd.f32 %v8133_v40, %v8093_v11  ;;  %8459 = vmatprep.mubr.bf16.mxu1 %v14613_v52  ;;  %v8095_v47 = vadd.f32 %v8094_v16, %v14717_v13  ;;  %8388 = vmatprep.subr.bf16.mxu0 %v12324_v28  ;;  %v2109_v28 = vld [vmem:[#allocation8 + $0x8a8] sm:$0xff] }
 0x2a2   : > { %v8096_v51 = vpop.f32.mrf.mxu0  ;;  %8429 = vmatprep.subr.bf16.mxu1 %v12452_v36  ;;  %v8137_v55 = vpop.f32.mrf.mxu1  ;;  %v12427_v36 = vcombine.low %v2241_v14, %v2245_v15  ;;  %v12292_v37 = vcombine.high %v2105_v19, %v2109_v28  ;;  %v2097_v11 = vld [vmem:[#allocation8 + $0x848] sm:$0xff] }
 0x2a3   : > { %v14727_v41 = vadd.f32 %v8135_v48, %v8095_v47  ;;  %8389 = vmatpush1.bf16.msra.mxu0 %v12323_v42  ;;  %v2101_v40 = vld [vmem:[#allocation8 + $0x868] sm:$0xff] }
 0x2a4   : > { %8430 = vmatpush1.bf16.msra.mxu1 %v12451_v44  ;;  %v8097_v56 = vpop.f32.mrf.mxu0  ;;  %8390 = vmatprep.subr.bf16.mxu0 %v12316_v18  ;;  %v8138_v13 = vpop.f32.mrf.mxu1  ;;  %v2225_v42 = vld [vmem:[#allocation8 + $0xc48] sm:$0xff]  ;;  %v12291_v44 = vcombine.low %v2105_v19, %v2109_v28  ;;  %v12419_v18 = vcombine.low %v2233_v30, %v2237_v31  ;;  %v12284_v47 = vcombine.high %v2097_v11, %v2101_v40 }
 0x2a5   : > { %8431 = vmatprep.subr.bf16.mxu1 %v12444_v54  ;;  %v2229_v16 = vld [vmem:[#allocation8 + $0xc68] sm:$0xff]  ;;  %v12283_v21 = vcombine.low %v2097_v11, %v2101_v40 }
 0x2a6   : > { %v12412_v48 = vcombine.high %v2225_v42, %v2229_v16  ;;  %v2089_v54 = vld [vmem:[#allocation8 + $0x808] sm:$0xff]  ;;  %v12411_v53 = vcombine.low %v2225_v42, %v2229_v16 }
 0x2a7   : > { %8391 = vmatpush1.bf16.msra.mxu0 %v12315_v39  ;;  %v2221_v51 = vld [vmem:[#allocation8 + $0xc28] sm:$0xff]  ;;  %v12276_v55 = vcombine.high %v2089_v54, %v2093_v34 }
 0x2a8   : > { %8432 = vmatpush1.bf16.msra.mxu1 %v12443_v58  ;;  %8392 = vmatprep.subr.bf16.mxu0 %v12308_v60  ;;  %v12404_v39 = vcombine.high %v2217_v50, %v2221_v51  ;;  %v2209_v56 = vld [vmem:[#allocation8 + $0xbc8] sm:$0xff]  ;;  %v12403_v63 = vcombine.low %v2217_v50, %v2221_v51 }
 0x2a9   : > { %8433 = vmatprep.subr.bf16.mxu1 %v12436_v62  ;;  %v2213_v58 = vld [vmem:[#allocation8 + $0xbe8] sm:$0xff]  ;;  %v12275_v62 = vcombine.low %v2089_v54, %v2093_v34 }
 0x2aa   : > { %v2337_v60 = vld [vmem:[#allocation8 + $0xfc8] sm:$0xff]  ;;  %v12396_v2 = vcombine.high %v2209_v56, %v2213_v58 }
 0x2ab   : > { %8393 = vmatpush1.bf16.msra.mxu0 %v12307_v10  ;;  %v2341_v13 = vld [vmem:[#allocation8 + $0xfe8] sm:$0xff] }
 0x2ac   : > { %8434 = vmatpush1.bf16.msra.mxu1 %v12435_v12  ;;  %8394 = vmatprep.subr.bf16.mxu0 %v12300_v17  ;;  %v12524_v14 = vcombine.high %v2337_v60, %v2341_v13  ;;  %v2201_v15 = vld [vmem:[#allocation8 + $0xb88] sm:$0xff]  ;;  %v12523_v19 = vcombine.low %v2337_v60, %v2341_v13 }
 0x2ad   : > { %8435 = vmatprep.subr.bf16.mxu1 %v12428_v8  ;;  %v2205_v10 = vld [vmem:[#allocation8 + $0xba8] sm:$0xff]  ;;  %v12395_v8 = vcombine.low %v2209_v56, %v2213_v58 }
 0x2ae   : > { %v2329_v12 = vld [vmem:[#allocation8 + $0xf88] sm:$0xff]  ;;  %v12388_v28 = vcombine.high %v2201_v15, %v2205_v10 }
 0x2af   : > { %8395 = vmatpush1.bf16.msra.mxu0 %v12299_v35  ;;  %v2333_v17 = vld [vmem:[#allocation8 + $0xfa8] sm:$0xff] }
 0x2b0   : > { %8436 = vmatpush1.bf16.msra.mxu1 %v12427_v36  ;;  %8396 = vmatprep.subr.bf16.mxu0 %v12292_v37  ;;  %v12516_v30 = vcombine.high %v2329_v12, %v2333_v17  ;;  %v2193_v31 = vld [vmem:[#allocation8 + $0xb48] sm:$0xff]  ;;  %v12515_v11 = vcombine.low %v2329_v12, %v2333_v17 }
 0x2b1   : > { %8437 = vmatprep.subr.bf16.mxu1 %v12420_v38  ;;  %v2197_v35 = vld [vmem:[#allocation8 + $0xb68] sm:$0xff]  ;;  %v12387_v38 = vcombine.low %v2201_v15, %v2205_v10 }
 0x2b2   : > { %v2321_v36 = vld [vmem:[#allocation8 + $0xf48] sm:$0xff]  ;;  %v12380_v40 = vcombine.high %v2193_v31, %v2197_v35 }
 0x2b3   : > { %8397 = vmatpush1.bf16.msra.mxu0 %v12291_v44  ;;  %v2325_v37 = vld [vmem:[#allocation8 + $0xf68] sm:$0xff] }
 0x2b4   : > { %8438 = vmatpush1.bf16.msra.mxu1 %v12419_v18  ;;  %8398 = vmatprep.subr.bf16.mxu0 %v12284_v47  ;;  %v12508_v42 = vcombine.high %v2321_v36, %v2325_v37  ;;  %v2185_v16 = vld [vmem:[#allocation8 + $0xb08] sm:$0xff]  ;;  %v12507_v54 = vcombine.low %v2321_v36, %v2325_v37 }
 0x2b5   : > { %8439 = vmatprep.subr.bf16.mxu1 %v12412_v48  ;;  %v2189_v44 = vld [vmem:[#allocation8 + $0xb28] sm:$0xff]  ;;  %v12379_v48 = vcombine.low %v2193_v31, %v2197_v35 }
 0x2b6   : > { %v2313_v18 = vld [vmem:[#allocation8 + $0xf08] sm:$0xff]  ;;  %v12372_v34 = vcombine.high %v2185_v16, %v2189_v44 }
 0x2b7   : > { %8399 = vmatpush1.bf16.msra.mxu0 %v12283_v21  ;;  %v2317_v47 = vld [vmem:[#allocation8 + $0xf28] sm:$0xff] }
 0x2b8   : > { %8440 = vmatpush1.bf16.msra.mxu1 %v12411_v53  ;;  %8400 = vmatprep.subr.bf16.mxu0 %v12276_v55  ;;  %v12500_v50 = vcombine.high %v2313_v18, %v2317_v47  ;;  %v2177_v51 = vld [vmem:[#allocation8 + $0xac8] sm:$0xff]  ;;  %v12499_v56 = vcombine.low %v2313_v18, %v2317_v47 }
 0x2b9   : > { %8441 = vmatprep.subr.bf16.mxu1 %v12404_v39  ;;  %v2181_v21 = vld [vmem:[#allocation8 + $0xae8] sm:$0xff]  ;;  %v12371_v39 = vcombine.low %v2185_v16, %v2189_v44 }
 0x2ba   : > { %v2305_v53 = vld [vmem:[#allocation8 + $0xec8] sm:$0xff]  ;;  %v12364_v58 = vcombine.high %v2177_v51, %v2181_v21 }
 0x2bb   : > { %8401 = vmatpush1.bf16.msra.mxu0 %v12275_v62  ;;  %v2309_v55 = vld [vmem:[#allocation8 + $0xee8] sm:$0xff] }
 0x2bc   : > { %8442 = vmatpush1.bf16.msra.mxu1 %v12403_v63  ;;  %8402 = vmatprep.subr.bf16.mxu0 %v12396_v2  ;;  %v12492_v60 = vcombine.high %v2305_v53, %v2309_v55  ;;  %v2169_v13 = vld [vmem:[#allocation8 + $0xa88] sm:$0xff]  ;;  %v12491_v15 = vcombine.low %v2305_v53, %v2309_v55 }
 0x2bd   : > { %8443 = vmatprep.subr.bf16.mxu1 %v12524_v14  ;;  %v2173_v62 = vld [vmem:[#allocation8 + $0xaa8] sm:$0xff]  ;;  %v12363_v14 = vcombine.low %v2177_v51, %v2181_v21 }
 0x2be   : > { %v2297_v63 = vld [vmem:[#allocation8 + $0xe88] sm:$0xff]  ;;  %v12356_v10 = vcombine.high %v2169_v13, %v2173_v62 }
 0x2bf   : > { %8403 = vmatpush2.bf16.msra.mxu0 %v12395_v8  ;;  %v2301_v2 = vld [vmem:[#allocation8 + $0xea8] sm:$0xff] }
 0x2c0   : > { %8444 = vmatpush2.bf16.msra.mxu1 %v12523_v19  ;;  %8404 = vmatprep.subr.bf16.mxu0 %v12388_v28  ;;  %v12484_v12 = vcombine.high %v2297_v63, %v2301_v2  ;;  %v2161_v17 = vld [vmem:[#allocation8 + $0xa48] sm:$0xff]  ;;  %v12483_v31 = vcombine.low %v2297_v63, %v2301_v2 }
 0x2c1   : > { %8445 = vmatprep.subr.bf16.mxu1 %v12516_v30  ;;  %v2165_v8 = vld [vmem:[#allocation8 + $0xa68] sm:$0xff]  ;;  %v12355_v30 = vcombine.low %v2169_v13, %v2173_v62 }
 0x2c2   : > { %v2289_v19 = vld [vmem:[#allocation8 + $0xe48] sm:$0xff]  ;;  %v12348_v35 = vcombine.high %v2161_v17, %v2165_v8 }
 0x2c3   : > { %8405 = vmatpush2.bf16.msra.mxu0 %v12387_v38  ;;  %v2293_v28 = vld [vmem:[#allocation8 + $0xe68] sm:$0xff] }
 0x2c4   : > { %8446 = vmatpush2.bf16.msra.mxu1 %v12515_v11  ;;  %8406 = vmatprep.subr.bf16.mxu0 %v12380_v40  ;;  %v12476_v36 = vcombine.high %v2289_v19, %v2293_v28  ;;  %v2153_v37 = vld [vmem:[#allocation8 + $0xa08] sm:$0xff]  ;;  %v12475_v16 = vcombine.low %v2289_v19, %v2293_v28 }
 0x2c5   : > { %8447 = vmatprep.subr.bf16.mxu1 %v12508_v42  ;;  %v2157_v38 = vld [vmem:[#allocation8 + $0xa28] sm:$0xff]  ;;  %v12347_v42 = vcombine.low %v2161_v17, %v2165_v8 }
 0x2c6   : > { %v2281_v11 = vld [vmem:[#allocation8 + $0xe08] sm:$0xff]  ;;  %v12340_v44 = vcombine.high %v2153_v37, %v2157_v38 }
 0x2c7   : > { %8407 = vmatpush2.bf16.msra.mxu0 %v12379_v48  ;;  %v2285_v40 = vld [vmem:[#allocation8 + $0xe28] sm:$0xff] }
 0x2c8   : > { %8448 = vmatpush2.bf16.msra.mxu1 %v12507_v54  ;;  %8408 = vmatprep.subr.bf16.mxu0 %v12372_v34  ;;  %v12468_v18 = vcombine.high %v2281_v11, %v2285_v40  ;;  %v2401_v47 = vld [vmem:[#allocation8 + $0x11c8] sm:$0xff]  ;;  %v12467_v51 = vcombine.low %v2281_v11, %v2285_v40 }
 0x2c9   : > { %8449 = vmatprep.subr.bf16.mxu1 %v12500_v50  ;;  %v2405_v48 = vld [vmem:[#allocation8 + $0x11e8] sm:$0xff]  ;;  %v12339_v50 = vcombine.low %v2153_v37, %v2157_v38 }
 0x2ca   : > { %v2529_v54 = vld [vmem:[#allocation8 + $0x15c8] sm:$0xff]  ;;  %v12588_v21 = vcombine.high %v2401_v47, %v2405_v48 }
 0x2cb   : > { %8409 = vmatpush2.bf16.msra.mxu0 %v12371_v39  ;;  %v2533_v34 = vld [vmem:[#allocation8 + $0x15e8] sm:$0xff] }
 0x2cc   : > { %8450 = vmatpush2.bf16.msra.mxu1 %v12499_v56  ;;  %8410 = vmatprep.subr.bf16.mxu0 %v12364_v58  ;;  %v12716_v53 = vcombine.high %v2529_v54, %v2533_v34  ;;  %v2393_v55 = vld [vmem:[#allocation8 + $0x1188] sm:$0xff]  ;;  %v12587_v56 = vcombine.low %v2401_v47, %v2405_v48  ;;  %v12715_v13 = vcombine.low %v2529_v54, %v2533_v34 }
 0x2cd   : > { %8451 = vmatprep.subr.bf16.mxu1 %v12492_v60  ;;  %v2397_v39 = vld [vmem:[#allocation8 + $0x11a8] sm:$0xff] }
 0x2ce   : > { %v2521_v58 = vld [vmem:[#allocation8 + $0x1588] sm:$0xff]  ;;  %v12580_v62 = vcombine.high %v2393_v55, %v2397_v39  ;;  %v12579_v19 = vcombine.low %v2393_v55, %v2397_v39 }
 0x2cf   : > { %8411 = vmatpush2.bf16.msra.mxu0 %v12363_v14  ;;  %v2525_v60 = vld [vmem:[#allocation8 + $0x15a8] sm:$0xff] }
 0x2d0   : > { %8452 = vmatpush2.bf16.msra.mxu1 %v12491_v15  ;;  %8412 = vmatprep.subr.bf16.mxu0 %v12356_v10  ;;  %v2385_v63 = vld [vmem:[#allocation8 + $0x1148] sm:$0xff]  ;;  %v12708_v15 = vcombine.high %v2521_v58, %v2525_v60 }
 0x2d1   : > { %8453 = vmatprep.subr.bf16.mxu1 %v12484_v12  ;;  %v2389_v2 = vld [vmem:[#allocation8 + $0x1168] sm:$0xff] }
 0x2d2   : > { %v2513_v10 = vld [vmem:[#allocation8 + $0x1548] sm:$0xff]  ;;  %v12571_v47 = vcombine.low %v2385_v63, %v2389_v2 }
 0x2d3   : > { %8413 = vmatpush2.bf16.msra.mxu0 %v12355_v30  ;;  %v2517_v12 = vld [vmem:[#allocation8 + $0x1568] sm:$0xff]  ;;  %v12707_v30 = vcombine.low %v2521_v58, %v2525_v60 }
 0x2d4   : > { %8454 = vmatpush2.bf16.msra.mxu1 %v12483_v31  ;;  %8414 = vmatprep.subr.bf16.mxu0 %v12348_v35  ;;  %v12572_v31 = vcombine.high %v2385_v63, %v2389_v2  ;;  %v2377_v38 = vld [vmem:[#allocation8 + $0x1108] sm:$0xff]  ;;  %v12699_v54 = vcombine.low %v2513_v10, %v2517_v12 }
 0x2d5   : > { %8455 = vmatprep.subr.bf16.mxu1 %v12476_v36  ;;  %v2381_v11 = vld [vmem:[#allocation8 + $0x1128] sm:$0xff] }
 0x2d6   : > { %v12564_v34 = vcombine.high %v2377_v38, %v2381_v11  ;;  %v2501_v55 = vld [vmem:[#allocation8 + $0x14e8] sm:$0xff]  ;;  %v12563_v39 = vcombine.low %v2377_v38, %v2381_v11 }
 0x2d7   : > { %8415 = vmatpush2.bf16.msra.mxu0 %v12347_v42  ;;  %v2505_v42 = vld [vmem:[#allocation8 + $0x1508] sm:$0xff] }
 0x2d8   : > { %8456 = vmatpush2.bf16.msra.mxu1 %v12475_v16  ;;  %8416 = vmatprep.subr.bf16.mxu0 %v12340_v44  ;;  %v2509_v16 = vld [vmem:[#allocation8 + $0x1528] sm:$0xff] }
 0x2d9   : > { %8457 = vmatprep.subr.bf16.mxu1 %v12468_v18  ;;  %v2489_v63 = vld [vmem:[#allocation8 + $0x1488] sm:$0xff] }
 0x2da   : > { %v2493_v2 = vld [vmem:[#allocation8 + $0x14a8] sm:$0xff] }
 0x2db   : > { %8417 = vmatpush2.bf16.msra.mxu0 %v12339_v50  ;;  %v12692_v50 = vcombine.high %v2505_v42, %v2509_v16  ;;  %v2349_v38 = vld [vmem:[#allocation8 + $0x1028] sm:$0xff] }
 0x2dc   : > { %8458 = vmatpush2.bf16.msra.mxu1 %v12467_v51  ;;  %8468 = vmatprep.subr.bf16.mxu0 %v12588_v21  ;;  %v2369_v51 = vld [vmem:[#allocation8 + $0x10c8] sm:$0xff] }
 0x2dd   : > { %8509 = vmatprep.subr.bf16.mxu1 %v12716_v53  ;;  %v2373_v21 = vld [vmem:[#allocation8 + $0x10e8] sm:$0xff] }
 0x2de   : > { %v8174_v14 = vpop.f32.mrf.mxu0  ;;  %8419 = vmatmul.mubr.bf16.vlgmr.msra.gmra.mxu0 %v14645_v57  ;;  %v8215_v8 = vpop.f32.mrf.mxu1  ;;  %v2497_v53 = vld [vmem:[#allocation8 + $0x14c8] sm:$0xff]  ;;  %v12556_v58 = vcombine.high %v2369_v51, %v2373_v21 }
 0x2df   : > { %v8175_v17 = vadd.f32 %v8174_v14, %v14723_v46  ;;  %8460 = vmatmul.mubr.bf16.vlgmr.msra.gmra.mxu1 %v14647_v61  ;;  %8469 = vmatpush1.bf16.msra.mxu0 %v12587_v56  ;;  %v12700_v46 = vcombine.high %v2513_v10, %v2517_v12  ;;  %v12691_v56 = vcombine.low %v2505_v42, %v2509_v16  ;;  %v2473_v11 = vld [vmem:[#allocation8 + $0x1408] sm:$0xff] }
 0x2e0   : > { %8500 = vmatprep.mubr.bf16.mxu0 %v14649_v6  ;;  %8510 = vmatpush1.bf16.msra.mxu1 %v12715_v13  ;;  %v8176_v28 = vpop.f32.mrf.mxu0  ;;  %v8217_v37 = vpop.f32.mrf.mxu1  ;;  %v12684_v60 = vcombine.high %v2497_v53, %v2501_v55  ;;  %v2361_v13 = vld [vmem:[#allocation8 + $0x1088] sm:$0xff]  ;;  %v12555_v14 = vcombine.low %v2369_v51, %v2373_v21  ;;  %v12676_v12 = vcombine.high %v2489_v63, %v2493_v2 }
 0x2e1   : > { %v14733_v35 = vadd.f32 %v8215_v8, %v8175_v17  ;;  %8541 = vmatprep.mubr.bf16.mxu1 %v14652_v9  ;;  %v8177_v36 = vadd.f32 %v8176_v28, %v14727_v41  ;;  %8470 = vmatprep.subr.bf16.mxu0 %v12580_v62  ;;  %v2365_v62 = vld [vmem:[#allocation8 + $0x10a8] sm:$0xff] }
 0x2e2   : > { %v8178_v40 = vpop.f32.mrf.mxu0  ;;  %8511 = vmatprep.subr.bf16.mxu1 %v12708_v15  ;;  %v8219_v18 = vpop.f32.mrf.mxu1  ;;  %v12683_v15 = vcombine.low %v2497_v53, %v2501_v55  ;;  %v12548_v10 = vcombine.high %v2361_v13, %v2365_v62  ;;  %v2353_v17 = vld [vmem:[#allocation8 + $0x1048] sm:$0xff] }
 0x2e3   : > { %v14737_v44 = vadd.f32 %v8217_v37, %v8177_v36  ;;  %8471 = vmatpush1.bf16.msra.mxu0 %v12579_v19  ;;  %v2357_v8 = vld [vmem:[#allocation8 + $0x1068] sm:$0xff] }
 0x2e4   : > { %8512 = vmatpush1.bf16.msra.mxu1 %v12707_v30  ;;  %v8179_v48 = vpop.f32.mrf.mxu0  ;;  %8472 = vmatprep.subr.bf16.mxu0 %v12572_v31  ;;  %v8220_v41 = vpop.f32.mrf.mxu1  ;;  %v2481_v19 = vld [vmem:[#allocation8 + $0x1448] sm:$0xff]  ;;  %v12547_v30 = vcombine.low %v2361_v13, %v2365_v62  ;;  %v12675_v31 = vcombine.low %v2489_v63, %v2493_v2  ;;  %v12540_v36 = vcombine.high %v2353_v17, %v2357_v8 }
 0x2e5   : > { %8513 = vmatprep.subr.bf16.mxu1 %v12700_v46  ;;  %v2485_v28 = vld [vmem:[#allocation8 + $0x1468] sm:$0xff]  ;;  %v12539_v42 = vcombine.low %v2353_v17, %v2357_v8 }
 0x2e6   : > { %v12668_v37 = vcombine.high %v2481_v19, %v2485_v28  ;;  %v2345_v46 = vld [vmem:[#allocation8 + $0x1008] sm:$0xff]  ;;  %v12667_v16 = vcombine.low %v2481_v19, %v2485_v28 }
 0x2e7   : > { %8473 = vmatpush1.bf16.msra.mxu0 %v12571_v47  ;;  %v2477_v40 = vld [vmem:[#allocation8 + $0x1428] sm:$0xff]  ;;  %v12532_v18 = vcombine.high %v2345_v46, %v2349_v38 }
 0x2e8   : > { %8514 = vmatpush1.bf16.msra.mxu1 %v12699_v54  ;;  %8474 = vmatprep.subr.bf16.mxu0 %v12564_v34  ;;  %v12660_v47 = vcombine.high %v2473_v11, %v2477_v40  ;;  %v2465_v48 = vld [vmem:[#allocation8 + $0x13c8] sm:$0xff]  ;;  %v12659_v51 = vcombine.low %v2473_v11, %v2477_v40 }
 0x2e9   : > { %8515 = vmatprep.subr.bf16.mxu1 %v12692_v50  ;;  %v2469_v54 = vld [vmem:[#allocation8 + $0x13e8] sm:$0xff]  ;;  %v12531_v50 = vcombine.low %v2345_v46, %v2349_v38 }
 0x2ea   : > { %v2593_v34 = vld [vmem:[#allocation8 + $0x17c8] sm:$0xff]  ;;  %v12652_v21 = vcombine.high %v2465_v48, %v2469_v54 }
 0x2eb   : > { %8475 = vmatpush1.bf16.msra.mxu0 %v12563_v39  ;;  %v2597_v41 = vld [vmem:[#allocation8 + $0x17e8] sm:$0xff] }
 0x2ec   : > { %8516 = vmatpush1.bf16.msra.mxu1 %v12691_v56  ;;  %8476 = vmatprep.subr.bf16.mxu0 %v12556_v58  ;;  %v12780_v53 = vcombine.high %v2593_v34, %v2597_v41  ;;  %v2457_v55 = vld [vmem:[#allocation8 + $0x1388] sm:$0xff]  ;;  %v12779_v13 = vcombine.low %v2593_v34, %v2597_v41 }
 0x2ed   : > { %8517 = vmatprep.subr.bf16.mxu1 %v12684_v60  ;;  %v2461_v39 = vld [vmem:[#allocation8 + $0x13a8] sm:$0xff]  ;;  %v12651_v60 = vcombine.low %v2465_v48, %v2469_v54 }
 0x2ee   : > { %v2585_v56 = vld [vmem:[#allocation8 + $0x1788] sm:$0xff]  ;;  %v12644_v62 = vcombine.high %v2457_v55, %v2461_v39 }
 0x2ef   : > { %8477 = vmatpush1.bf16.msra.mxu0 %v12555_v14  ;;  %v2589_v58 = vld [vmem:[#allocation8 + $0x17a8] sm:$0xff] }
 0x2f0   : > { %8518 = vmatpush1.bf16.msra.mxu1 %v12683_v15  ;;  %8478 = vmatprep.subr.bf16.mxu0 %v12548_v10  ;;  %v12772_v63 = vcombine.high %v2585_v56, %v2589_v58  ;;  %v2449_v2 = vld [vmem:[#allocation8 + $0x1348] sm:$0xff]  ;;  %v12771_v17 = vcombine.low %v2585_v56, %v2589_v58 }
 0x2f1   : > { %8519 = vmatprep.subr.bf16.mxu1 %v12676_v12  ;;  %v2453_v14 = vld [vmem:[#allocation8 + $0x1368] sm:$0xff]  ;;  %v12643_v12 = vcombine.low %v2457_v55, %v2461_v39 }
 0x2f2   : > { %v2577_v15 = vld [vmem:[#allocation8 + $0x1748] sm:$0xff]  ;;  %v12636_v8 = vcombine.high %v2449_v2, %v2453_v14 }
 0x2f3   : > { %8479 = vmatpush1.bf16.msra.mxu0 %v12547_v30  ;;  %v2581_v10 = vld [vmem:[#allocation8 + $0x1768] sm:$0xff] }
 0x2f4   : > { %8520 = vmatpush1.bf16.msra.mxu1 %v12675_v31  ;;  %8480 = vmatprep.subr.bf16.mxu0 %v12540_v36  ;;  %v12764_v19 = vcombine.high %v2577_v15, %v2581_v10  ;;  %v2441_v28 = vld [vmem:[#allocation8 + $0x1308] sm:$0xff]  ;;  %v12763_v46 = vcombine.low %v2577_v15, %v2581_v10 }
 0x2f5   : > { %8521 = vmatprep.subr.bf16.mxu1 %v12668_v37  ;;  %v2445_v30 = vld [vmem:[#allocation8 + $0x1328] sm:$0xff]  ;;  %v12635_v37 = vcombine.low %v2449_v2, %v2453_v14 }
 0x2f6   : > { %v2569_v31 = vld [vmem:[#allocation8 + $0x1708] sm:$0xff]  ;;  %v12628_v38 = vcombine.high %v2441_v28, %v2445_v30 }
 0x2f7   : > { %8481 = vmatpush1.bf16.msra.mxu0 %v12539_v42  ;;  %v2573_v36 = vld [vmem:[#allocation8 + $0x1728] sm:$0xff] }
 0x2f8   : > { %8522 = vmatpush1.bf16.msra.mxu1 %v12667_v16  ;;  %8482 = vmatprep.subr.bf16.mxu0 %v12532_v18  ;;  %v12756_v11 = vcombine.high %v2569_v31, %v2573_v36  ;;  %v2433_v40 = vld [vmem:[#allocation8 + $0x12c8] sm:$0xff]  ;;  %v12755_v48 = vcombine.low %v2569_v31, %v2573_v36 }
 0x2f9   : > { %8523 = vmatprep.subr.bf16.mxu1 %v12660_v47  ;;  %v2437_v42 = vld [vmem:[#allocation8 + $0x12e8] sm:$0xff]  ;;  %v12627_v47 = vcombine.low %v2441_v28, %v2445_v30 }
 0x2fa   : > { %v2561_v16 = vld [vmem:[#allocation8 + $0x16c8] sm:$0xff]  ;;  %v12620_v54 = vcombine.high %v2433_v40, %v2437_v42 }
 0x2fb   : > { %8483 = vmatpush1.bf16.msra.mxu0 %v12531_v50  ;;  %v2565_v18 = vld [vmem:[#allocation8 + $0x16e8] sm:$0xff] }
 0x2fc   : > { %8524 = vmatpush1.bf16.msra.mxu1 %v12659_v51  ;;  %8484 = vmatprep.subr.bf16.mxu0 %v12652_v21  ;;  %v12748_v34 = vcombine.high %v2561_v16, %v2565_v18  ;;  %v2425_v41 = vld [vmem:[#allocation8 + $0x1288] sm:$0xff]  ;;  %v12747_v55 = vcombine.low %v2561_v16, %v2565_v18 }
 0x2fd   : > { %8525 = vmatprep.subr.bf16.mxu1 %v12780_v53  ;;  %v2429_v50 = vld [vmem:[#allocation8 + $0x12a8] sm:$0xff]  ;;  %v12619_v53 = vcombine.low %v2433_v40, %v2437_v42 }
 0x2fe   : > { %v2553_v51 = vld [vmem:[#allocation8 + $0x1688] sm:$0xff]  ;;  %v12612_v39 = vcombine.high %v2425_v41, %v2429_v50 }
 0x2ff   : > { %8485 = vmatpush2.bf16.msra.mxu0 %v12651_v60  ;;  %v2557_v21 = vld [vmem:[#allocation8 + $0x16a8] sm:$0xff] }
 0x300   : > { %8526 = vmatpush2.bf16.msra.mxu1 %v12779_v13  ;;  %8486 = vmatprep.subr.bf16.mxu0 %v12644_v62  ;;  %v12740_v56 = vcombine.high %v2553_v51, %v2557_v21  ;;  %v2417_v58 = vld [vmem:[#allocation8 + $0x1248] sm:$0xff]  ;;  %v12739_v2 = vcombine.low %v2553_v51, %v2557_v21 }
 0x301   : > { %8527 = vmatprep.subr.bf16.mxu1 %v12772_v63  ;;  %v2421_v60 = vld [vmem:[#allocation8 + $0x1268] sm:$0xff]  ;;  %v12611_v63 = vcombine.low %v2425_v41, %v2429_v50 }
 0x302   : > { %v2545_v13 = vld [vmem:[#allocation8 + $0x1648] sm:$0xff]  ;;  %v12604_v14 = vcombine.high %v2417_v58, %v2421_v60 }
 0x303   : > { %8487 = vmatpush2.bf16.msra.mxu0 %v12643_v12  ;;  %v2549_v62 = vld [vmem:[#allocation8 + $0x1668] sm:$0xff] }
 0x304   : > { %8528 = vmatpush2.bf16.msra.mxu1 %v12771_v17  ;;  %8488 = vmatprep.subr.bf16.mxu0 %v12636_v8  ;;  %v12732_v15 = vcombine.high %v2545_v13, %v2549_v62  ;;  %v2409_v10 = vld [vmem:[#allocation8 + $0x1208] sm:$0xff]  ;;  %v12731_v28 = vcombine.low %v2545_v13, %v2549_v62 }
 0x305   : > { %8529 = vmatprep.subr.bf16.mxu1 %v12764_v19  ;;  %v2413_v12 = vld [vmem:[#allocation8 + $0x1228] sm:$0xff]  ;;  %v12603_v19 = vcombine.low %v2417_v58, %v2421_v60 }
 0x306   : > { %v2537_v17 = vld [vmem:[#allocation8 + $0x1608] sm:$0xff]  ;;  %v12596_v30 = vcombine.high %v2409_v10, %v2413_v12 }
 0x307   : > { %8489 = vmatpush2.bf16.msra.mxu0 %v12635_v37  ;;  %v2541_v8 = vld [vmem:[#allocation8 + $0x1628] sm:$0xff] }
 0x308   : > { %8530 = vmatpush2.bf16.msra.mxu1 %v12763_v46  ;;  %8490 = vmatprep.subr.bf16.mxu0 %v12628_v38  ;;  %v12724_v31 = vcombine.high %v2537_v17, %v2541_v8  ;;  %v2657_v36 = vld [vmem:[#allocation8 + $0x19c8] sm:$0xff]  ;;  %v12723_v40 = vcombine.low %v2537_v17, %v2541_v8 }
 0x309   : > { %8531 = vmatprep.subr.bf16.mxu1 %v12756_v11  ;;  %v2661_v37 = vld [vmem:[#allocation8 + $0x19e8] sm:$0xff]  ;;  %v12595_v11 = vcombine.low %v2409_v10, %v2413_v12 }
 0x30a   : > { %v2785_v46 = vld [vmem:[#allocation8 + $0x1dc8] sm:$0xff]  ;;  %v12844_v42 = vcombine.high %v2657_v36, %v2661_v37 }
 0x30b   : > { %8491 = vmatpush2.bf16.msra.mxu0 %v12627_v47  ;;  %v2789_v38 = vld [vmem:[#allocation8 + $0x1de8] sm:$0xff] }
 0x30c   : > { %8532 = vmatpush2.bf16.msra.mxu1 %v12755_v48  ;;  %8492 = vmatprep.subr.bf16.mxu0 %v12620_v54  ;;  %v12972_v16 = vcombine.high %v2785_v46, %v2789_v38  ;;  %v2649_v18 = vld [vmem:[#allocation8 + $0x1988] sm:$0xff]  ;;  %v12843_v48 = vcombine.low %v2657_v36, %v2661_v37  ;;  %v12971_v41 = vcombine.low %v2785_v46, %v2789_v38 }
 0x30d   : > { %8533 = vmatprep.subr.bf16.mxu1 %v12748_v34  ;;  %v2653_v47 = vld [vmem:[#allocation8 + $0x19a8] sm:$0xff] }
 0x30e   : > { %v2777_v54 = vld [vmem:[#allocation8 + $0x1d88] sm:$0xff]  ;;  %v12836_v50 = vcombine.high %v2649_v18, %v2653_v47  ;;  %v12835_v13 = vcombine.low %v2649_v18, %v2653_v47 }
 0x30f   : > { %8493 = vmatpush2.bf16.msra.mxu0 %v12619_v53  ;;  %v2781_v34 = vld [vmem:[#allocation8 + $0x1da8] sm:$0xff] }
 0x310   : > { %8534 = vmatpush2.bf16.msra.mxu1 %v12747_v55  ;;  %8494 = vmatprep.subr.bf16.mxu0 %v12612_v39  ;;  %v2641_v51 = vld [vmem:[#allocation8 + $0x1948] sm:$0xff]  ;;  %v12964_v55 = vcombine.high %v2777_v54, %v2781_v34 }
 0x311   : > { %8535 = vmatprep.subr.bf16.mxu1 %v12740_v56  ;;  %v2645_v21 = vld [vmem:[#allocation8 + $0x1968] sm:$0xff] }
 0x312   : > { %v2769_v39 = vld [vmem:[#allocation8 + $0x1d48] sm:$0xff]  ;;  %v12827_v36 = vcombine.low %v2641_v51, %v2645_v21 }
 0x313   : > { %8495 = vmatpush2.bf16.msra.mxu0 %v12611_v63  ;;  %v2773_v56 = vld [vmem:[#allocation8 + $0x1d68] sm:$0xff]  ;;  %v12963_v63 = vcombine.low %v2777_v54, %v2781_v34 }
 0x314   : > { %8536 = vmatpush2.bf16.msra.mxu1 %v12739_v2  ;;  %8496 = vmatprep.subr.bf16.mxu0 %v12604_v14  ;;  %v12828_v2 = vcombine.high %v2641_v51, %v2645_v21  ;;  %v2633_v12 = vld [vmem:[#allocation8 + $0x1908] sm:$0xff]  ;;  %v12955_v46 = vcombine.low %v2769_v39, %v2773_v56 }
 0x315   : > { %8537 = vmatprep.subr.bf16.mxu1 %v12732_v15  ;;  %v2637_v17 = vld [vmem:[#allocation8 + $0x1928] sm:$0xff] }
 0x316   : > { %v12820_v38 = vcombine.high %v2633_v12, %v2637_v17  ;;  %v2757_v18 = vld [vmem:[#allocation8 + $0x1ce8] sm:$0xff]  ;;  %v12819_v47 = vcombine.low %v2633_v12, %v2637_v17 }
 0x317   : > { %8497 = vmatpush2.bf16.msra.mxu0 %v12603_v19  ;;  %v2761_v19 = vld [vmem:[#allocation8 + $0x1d08] sm:$0xff] }
 0x318   : > { %8538 = vmatpush2.bf16.msra.mxu1 %v12731_v28  ;;  %8498 = vmatprep.subr.bf16.mxu0 %v12596_v30  ;;  %v2765_v28 = vld [vmem:[#allocation8 + $0x1d28] sm:$0xff] }
 0x319   : > { %8539 = vmatprep.subr.bf16.mxu1 %v12724_v31  ;;  %v2745_v51 = vld [vmem:[#allocation8 + $0x1c88] sm:$0xff] }
 0x31a   : > { %v2749_v21 = vld [vmem:[#allocation8 + $0x1ca8] sm:$0xff] }
 0x31b   : > { %8499 = vmatpush2.bf16.msra.mxu0 %v12595_v11  ;;  %v12948_v11 = vcombine.high %v2761_v19, %v2765_v28  ;;  %v2605_v12 = vld [vmem:[#allocation8 + $0x1828] sm:$0xff] }
 0x31c   : > { %8540 = vmatpush2.bf16.msra.mxu1 %v12723_v40  ;;  %8550 = vmatprep.subr.bf16.mxu0 %v12844_v42  ;;  %v2625_v40 = vld [vmem:[#allocation8 + $0x18c8] sm:$0xff] }
 0x31d   : > { %8591 = vmatprep.subr.bf16.mxu1 %v12972_v16  ;;  %v2629_v42 = vld [vmem:[#allocation8 + $0x18e8] sm:$0xff] }
 0x31e   : > { %v8256_v53 = vpop.f32.mrf.mxu0  ;;  %8501 = vmatmul.mubr.bf16.vlgmr.msra.gmra.mxu0 %v14691_v25  ;;  %v8297_v60 = vpop.f32.mrf.mxu1  ;;  %v2753_v16 = vld [vmem:[#allocation8 + $0x1cc8] sm:$0xff]  ;;  %v12812_v54 = vcombine.high %v2625_v40, %v2629_v42 }
 0x31f   : > { %v8257_v58 = vadd.f32 %v8256_v53, %v14733_v35  ;;  %8542 = vmatmul.mubr.bf16.vlgmr.msra.gmra.mxu1 %v14693_v26  ;;  %8551 = vmatpush1.bf16.msra.mxu0 %v12843_v48  ;;  %v12956_v35 = vcombine.high %v2769_v39, %v2773_v56  ;;  %v12947_v48 = vcombine.low %v2761_v19, %v2765_v28  ;;  %v2729_v17 = vld [vmem:[#allocation8 + $0x1c08] sm:$0xff] }
 0x320   : > { %8582 = vmatprep.mubr.bf16.mxu0 %v14695_v27  ;;  %8592 = vmatpush1.bf16.msra.mxu1 %v12971_v41  ;;  %v8258_v62 = vpop.f32.mrf.mxu0  ;;  %v8299_v10 = vpop.f32.mrf.mxu1  ;;  %v12940_v34 = vcombine.high %v2753_v16, %v2757_v18  ;;  %v2617_v41 = vld [vmem:[#allocation8 + $0x1888] sm:$0xff]  ;;  %v12811_v53 = vcombine.low %v2625_v40, %v2629_v42  ;;  %v12932_v56 = vcombine.high %v2745_v51, %v2749_v21 }
 0x321   : > { %v14743_v14 = vadd.f32 %v8297_v60, %v8257_v58  ;;  %8623 = vmatprep.mubr.bf16.mxu1 %v14697_v33  ;;  %v8259_v15 = vadd.f32 %v8258_v62, %v14737_v44  ;;  %8552 = vmatprep.subr.bf16.mxu0 %v12836_v50  ;;  %v2621_v50 = vld [vmem:[#allocation8 + $0x18a8] sm:$0xff] }
 0x322   : > { %v8260_v8 = vpop.f32.mrf.mxu0  ;;  %8593 = vmatprep.subr.bf16.mxu1 %v12964_v55  ;;  %v8301_v31 = vpop.f32.mrf.mxu1  ;;  %v12939_v55 = vcombine.low %v2753_v16, %v2757_v18  ;;  %v12804_v39 = vcombine.high %v2617_v41, %v2621_v50  ;;  %v2609_v58 = vld [vmem:[#allocation8 + $0x1848] sm:$0xff] }
 0x323   : > { %v14747_v30 = vadd.f32 %v8299_v10, %v8259_v15  ;;  %8553 = vmatpush1.bf16.msra.mxu0 %v12835_v13  ;;  %v2613_v60 = vld [vmem:[#allocation8 + $0x1868] sm:$0xff] }
 0x324   : > { %8594 = vmatpush1.bf16.msra.mxu1 %v12963_v63  ;;  %v8261_v37 = vpop.f32.mrf.mxu0  ;;  %8554 = vmatprep.subr.bf16.mxu0 %v12828_v2  ;;  %v8302_v44 = vpop.f32.mrf.mxu1  ;;  %v2737_v13 = vld [vmem:[#allocation8 + $0x1c48] sm:$0xff]  ;;  %v12803_v63 = vcombine.low %v2617_v41, %v2621_v50  ;;  %v12931_v2 = vcombine.low %v2745_v51, %v2749_v21  ;;  %v12796_v15 = vcombine.high %v2609_v58, %v2613_v60 }
 0x325   : > { %8595 = vmatprep.subr.bf16.mxu1 %v12956_v35  ;;  %v2741_v62 = vld [vmem:[#allocation8 + $0x1c68] sm:$0xff]  ;;  %v12795_v19 = vcombine.low %v2609_v58, %v2613_v60 }
 0x326   : > { %v12924_v10 = vcombine.high %v2737_v13, %v2741_v62  ;;  %v2601_v35 = vld [vmem:[#allocation8 + $0x1808] sm:$0xff]  ;;  %v12923_v28 = vcombine.low %v2737_v13, %v2741_v62 }
 0x327   : > { %8555 = vmatpush1.bf16.msra.mxu0 %v12827_v36  ;;  %v2733_v8 = vld [vmem:[#allocation8 + $0x1c28] sm:$0xff]  ;;  %v12788_v31 = vcombine.high %v2601_v35, %v2605_v12 }
 0x328   : > { %8596 = vmatpush1.bf16.msra.mxu1 %v12955_v46  ;;  %8556 = vmatprep.subr.bf16.mxu0 %v12820_v38  ;;  %v12916_v36 = vcombine.high %v2729_v17, %v2733_v8  ;;  %v2721_v37 = vld [vmem:[#allocation8 + $0x1bc8] sm:$0xff]  ;;  %v12915_v40 = vcombine.low %v2729_v17, %v2733_v8 }
 0x329   : > { %8597 = vmatprep.subr.bf16.mxu1 %v12948_v11  ;;  %v2725_v46 = vld [vmem:[#allocation8 + $0x1be8] sm:$0xff]  ;;  %v12787_v11 = vcombine.low %v2601_v35, %v2605_v12 }
 0x32a   : > { %v2849_v38 = vld [vmem:[#allocation8 + $0x1fc8] sm:$0xff]  ;;  %v12908_v42 = vcombine.high %v2721_v37, %v2725_v46 }
 0x32b   : > { %8557 = vmatpush1.bf16.msra.mxu0 %v12819_v47  ;;  %v2853_v44 = vld [vmem:[#allocation8 + $0x1fe8] sm:$0xff] }
 0x32c   : > { %8598 = vmatpush1.bf16.msra.mxu1 %v12947_v48  ;;  %8558 = vmatprep.subr.bf16.mxu0 %v12812_v54  ;;  %v13036_v16 = vcombine.high %v2849_v38, %v2853_v44  ;;  %v2713_v18 = vld [vmem:[#allocation8 + $0x1b88] sm:$0xff]  ;;  %v13035_v41 = vcombine.low %v2849_v38, %v2853_v44 }
 0x32d   : > { %8599 = vmatprep.subr.bf16.mxu1 %v12940_v34  ;;  %v2717_v47 = vld [vmem:[#allocation8 + $0x1ba8] sm:$0xff]  ;;  %v12907_v34 = vcombine.low %v2721_v37, %v2725_v46 }
 0x32e   : > { %v2841_v48 = vld [vmem:[#allocation8 + $0x1f88] sm:$0xff]  ;;  %v12900_v50 = vcombine.high %v2713_v18, %v2717_v47 }
 0x32f   : > { %8559 = vmatpush1.bf16.msra.mxu0 %v12811_v53  ;;  %v2845_v54 = vld [vmem:[#allocation8 + $0x1fa8] sm:$0xff] }
 0x330   : > { %8600 = vmatpush1.bf16.msra.mxu1 %v12939_v55  ;;  %8560 = vmatprep.subr.bf16.mxu0 %v12804_v39  ;;  %v13028_v51 = vcombine.high %v2841_v48, %v2845_v54  ;;  %v2705_v21 = vld [vmem:[#allocation8 + $0x1b48] sm:$0xff]  ;;  %v13027_v58 = vcombine.low %v2841_v48, %v2845_v54 }
 0x331   : > { %8601 = vmatprep.subr.bf16.mxu1 %v12932_v56  ;;  %v2709_v53 = vld [vmem:[#allocation8 + $0x1b68] sm:$0xff]  ;;  %v12899_v56 = vcombine.low %v2713_v18, %v2717_v47 }
 0x332   : > { %v2833_v55 = vld [vmem:[#allocation8 + $0x1f48] sm:$0xff]  ;;  %v12892_v60 = vcombine.high %v2705_v21, %v2709_v53 }
 0x333   : > { %8561 = vmatpush1.bf16.msra.mxu0 %v12803_v63  ;;  %v2837_v39 = vld [vmem:[#allocation8 + $0x1f68] sm:$0xff] }
 0x334   : > { %8602 = vmatpush1.bf16.msra.mxu1 %v12931_v2  ;;  %8562 = vmatprep.subr.bf16.mxu0 %v12796_v15  ;;  %v13020_v13 = vcombine.high %v2833_v55, %v2837_v39  ;;  %v2697_v62 = vld [vmem:[#allocation8 + $0x1b08] sm:$0xff]  ;;  %v13019_v35 = vcombine.low %v2833_v55, %v2837_v39 }
 0x335   : > { %8603 = vmatprep.subr.bf16.mxu1 %v12924_v10  ;;  %v2701_v63 = vld [vmem:[#allocation8 + $0x1b28] sm:$0xff]  ;;  %v12891_v10 = vcombine.low %v2705_v21, %v2709_v53 }
 0x336   : > { %v2825_v2 = vld [vmem:[#allocation8 + $0x1f08] sm:$0xff]  ;;  %v12884_v12 = vcombine.high %v2697_v62, %v2701_v63 }
 0x337   : > { %8563 = vmatpush1.bf16.msra.mxu0 %v12795_v19  ;;  %v2829_v15 = vld [vmem:[#allocation8 + $0x1f28] sm:$0xff] }
 0x338   : > { %8604 = vmatpush1.bf16.msra.mxu1 %v12923_v28  ;;  %8564 = vmatprep.subr.bf16.mxu0 %v12788_v31  ;;  %v13012_v17 = vcombine.high %v2825_v2, %v2829_v15  ;;  %v2689_v8 = vld [vmem:[#allocation8 + $0x1ac8] sm:$0xff]  ;;  %v13011_v37 = vcombine.low %v2825_v2, %v2829_v15  ;;  %v1890_v15 = vld [vmem:[#allocation8 + $0x1d0] sm:$0xff] }
 0x339   : > { %8605 = vmatprep.subr.bf16.mxu1 %v12916_v36  ;;  %v2693_v19 = vld [vmem:[#allocation8 + $0x1ae8] sm:$0xff]  ;;  %v12883_v36 = vcombine.low %v2697_v62, %v2701_v63 }
 0x33a   : > { %v2817_v28 = vld [vmem:[#allocation8 + $0x1ec8] sm:$0xff]  ;;  %v12876_v46 = vcombine.high %v2689_v8, %v2693_v19 }
 0x33b   : > { %8565 = vmatpush1.bf16.msra.mxu0 %v12787_v11  ;;  %v2821_v31 = vld [vmem:[#allocation8 + $0x1ee8] sm:$0xff] }
 0x33c   : > { %8606 = vmatpush1.bf16.msra.mxu1 %v12915_v40  ;;  %8566 = vmatprep.subr.bf16.mxu0 %v12908_v42  ;;  %v13004_v38 = vcombine.high %v2817_v28, %v2821_v31  ;;  %v2681_v44 = vld [vmem:[#allocation8 + $0x1a88] sm:$0xff]  ;;  %v13003_v18 = vcombine.low %v2817_v28, %v2821_v31  ;;  %v1882_v31 = vld [vmem:[#allocation8 + $0x190] sm:$0xff] }
 0x33d   : > { %8607 = vmatprep.subr.bf16.mxu1 %v13036_v16  ;;  %v2685_v11 = vld [vmem:[#allocation8 + $0x1aa8] sm:$0xff]  ;;  %v12875_v16 = vcombine.low %v2689_v8, %v2693_v19 }
 0x33e   : > { %v2809_v40 = vld [vmem:[#allocation8 + $0x1e88] sm:$0xff]  ;;  %v12868_v47 = vcombine.high %v2681_v44, %v2685_v11 }
 0x33f   : > { %8567 = vmatpush2.bf16.msra.mxu0 %v12907_v34  ;;  %v2813_v42 = vld [vmem:[#allocation8 + $0x1ea8] sm:$0xff] }
 0x340   : > { %8608 = vmatpush2.bf16.msra.mxu1 %v13035_v41  ;;  %8568 = vmatprep.subr.bf16.mxu0 %v12900_v50  ;;  %v12996_v48 = vcombine.high %v2809_v40, %v2813_v42  ;;  %v2673_v54 = vld [vmem:[#allocation8 + $0x1a48] sm:$0xff]  ;;  %v12995_v21 = vcombine.low %v2809_v40, %v2813_v42  ;;  %v1874_v40 = vld [vmem:[#allocation8 + $0x150] sm:$0xff] }
 0x341   : > { %8609 = vmatprep.subr.bf16.mxu1 %v13028_v51  ;;  %v2677_v34 = vld [vmem:[#allocation8 + $0x1a68] sm:$0xff]  ;;  %v12867_v51 = vcombine.low %v2681_v44, %v2685_v11  ;;  %v1878_v42 = vld [vmem:[#allocation8 + $0x170] sm:$0xff] }
 0x342   : > { %v2801_v41 = vld [vmem:[#allocation8 + $0x1e48] sm:$0xff]  ;;  %v12860_v53 = vcombine.high %v2673_v54, %v2677_v34 }
 0x343   : > { %8569 = vmatpush2.bf16.msra.mxu0 %v12899_v56  ;;  %v2805_v50 = vld [vmem:[#allocation8 + $0x1e68] sm:$0xff] }
 0x344   : > { %8610 = vmatpush2.bf16.msra.mxu1 %v13027_v58  ;;  %8570 = vmatprep.subr.bf16.mxu0 %v12892_v60  ;;  %v12988_v55 = vcombine.high %v2801_v41, %v2805_v50  ;;  %v2665_v39 = vld [vmem:[#allocation8 + $0x1a08] sm:$0xff]  ;;  %v12987_v62 = vcombine.low %v2801_v41, %v2805_v50 }
 0x345   : > { %8611 = vmatprep.subr.bf16.mxu1 %v13020_v13  ;;  %v2669_v56 = vld [vmem:[#allocation8 + $0x1a28] sm:$0xff]  ;;  %v12859_v13 = vcombine.low %v2673_v54, %v2677_v34 }
 0x346   : > { %v2793_v58 = vld [vmem:[#allocation8 + $0x1e08] sm:$0xff]  ;;  %v12852_v63 = vcombine.high %v2665_v39, %v2669_v56 }
 0x347   : > { %8571 = vmatpush2.bf16.msra.mxu0 %v12891_v10  ;;  %v2797_v60 = vld [vmem:[#allocation8 + $0x1e28] sm:$0xff]  ;;  %v1894_v10 = vld [vmem:[#allocation8 + $0x1f0] sm:$0xff] }
 0x348   : > { %8612 = vmatpush2.bf16.msra.mxu1 %v13019_v35  ;;  %8572 = vmatprep.subr.bf16.mxu0 %v12884_v12  ;;  %v12980_v2 = vcombine.high %v2793_v58, %v2797_v60  ;;  %v2018_v35 = vld [vmem:[#allocation8 + $0x5d0] sm:$0xff]  ;;  %v12979_v8 = vcombine.low %v2793_v58, %v2797_v60  ;;  %v12078_v19 = vcombine.high %v1890_v15, %v1894_v10 }
 0x349   : > { %8613 = vmatprep.subr.bf16.mxu1 %v13012_v17  ;;  %v2022_v12 = vld [vmem:[#allocation8 + $0x5f0] sm:$0xff]  ;;  %v12851_v17 = vcombine.low %v2665_v39, %v2669_v56 }
 0x34a   : > { %v12206_v28 = vcombine.high %v2018_v35, %v2022_v12  ;;  %v12205_v44 = vcombine.low %v2018_v35, %v2022_v12  ;;  %v1866_v39 = vld [vmem:[#allocation8 + $0x110] sm:$0xff] }
 0x34b   : > { %8573 = vmatpush2.bf16.msra.mxu0 %v12883_v36  ;;  %v1886_v36 = vld [vmem:[#allocation8 + $0x1b0] sm:$0xff] }
 0x34c   : > { %8614 = vmatpush2.bf16.msra.mxu1 %v13011_v37  ;;  %8574 = vmatprep.subr.bf16.mxu0 %v12876_v46  ;;  %v12077_v37 = vcombine.low %v1890_v15, %v1894_v10  ;;  %v2010_v46 = vld [vmem:[#allocation8 + $0x590] sm:$0xff]  ;;  %v12070_v11 = vcombine.high %v1882_v31, %v1886_v36  ;;  %v12069_v34 = vcombine.low %v1882_v31, %v1886_v36 }
 0x34d   : > { %8615 = vmatprep.subr.bf16.mxu1 %v13004_v38  ;;  %v2014_v38 = vld [vmem:[#allocation8 + $0x5b0] sm:$0xff] }
 0x34e   : > { %v1870_v56 = vld [vmem:[#allocation8 + $0x130] sm:$0xff] }
 0x34f   : > { %8575 = vmatpush2.bf16.msra.mxu0 %v12875_v16  ;;  %v12054_v35 = vcombine.high %v1866_v39, %v1870_v56  ;;  %v1990_v31 = vld [vmem:[#allocation8 + $0x4f0] sm:$0xff]  ;;  %v12053_v36 = vcombine.low %v1866_v39, %v1870_v56 }
 0x350   : > { %8616 = vmatpush2.bf16.msra.mxu1 %v13003_v18  ;;  %8576 = vmatprep.subr.bf16.mxu0 %v12868_v47  ;;  %v12198_v18 = vcombine.high %v2010_v46, %v2014_v38  ;;  %v2002_v47 = vld [vmem:[#allocation8 + $0x550] sm:$0xff] }
 0x351   : > { %8617 = vmatprep.subr.bf16.mxu1 %v12996_v48  ;;  %v2006_v48 = vld [vmem:[#allocation8 + $0x570] sm:$0xff] }
 0x352   : > { %v12189_v10 = vcombine.low %v2002_v47, %v2006_v48  ;;  %v1834_v56 = vld [vmem:[#allocation8 + $0x10] sm:$0xff] }
 0x353   : > { %8577 = vmatpush2.bf16.msra.mxu0 %v12867_v51  ;;  %v12197_v51 = vcombine.low %v2010_v46, %v2014_v38 }
 0x354   : > { %8618 = vmatpush2.bf16.msra.mxu1 %v12995_v21  ;;  %8578 = vmatprep.subr.bf16.mxu0 %v12860_v53  ;;  %v12062_v21 = vcombine.high %v1874_v40, %v1878_v42 }
 0x355   : > { %8619 = vmatprep.subr.bf16.mxu1 %v12988_v55  ;;  %v12190_v55 = vcombine.high %v2002_v47, %v2006_v48 }
 0x357   : > { %8579 = vmatpush2.bf16.msra.mxu0 %v12859_v13  ;;  %v1994_v13 = vld [vmem:[#allocation8 + $0x510] sm:$0xff] }
 0x358   : > { %8620 = vmatpush2.bf16.msra.mxu1 %v12987_v62  ;;  %8580 = vmatprep.subr.bf16.mxu0 %v12852_v63  ;;  %v1998_v62 = vld [vmem:[#allocation8 + $0x530] sm:$0xff] }
 0x359   : > { %8621 = vmatprep.subr.bf16.mxu1 %v12980_v2  ;;  %v12061_v2 = vcombine.low %v1874_v40, %v1878_v42  ;;  %v1978_v40 = vld [vmem:[#allocation8 + $0x490] sm:$0xff] }
 0x35a   : > { %v1982_v42 = vld [vmem:[#allocation8 + $0x4b0] sm:$0xff] }
 0x35b   : > { %8581 = vmatpush2.bf16.msra.mxu0 %v12851_v17  ;;  %v12182_v17 = vcombine.high %v1994_v13, %v1998_v62  ;;  %v12166_v48 = vcombine.high %v1978_v40, %v1982_v42 }
 0x35c   : > { %8622 = vmatpush2.bf16.msra.mxu1 %v12979_v8  ;;  %8632 = vmatprep.subr.bf16.mxu0 %v12078_v19  ;;  %v1858_v8 = vld [vmem:[#allocation8 + $0xd0] sm:$0xff] }
 0x35d   : > { %8673 = vmatprep.subr.bf16.mxu1 %v12206_v28  ;;  %v1862_v19 = vld [vmem:[#allocation8 + $0xf0] sm:$0xff] }
 0x35e   : > { %v8338_v16 = vpop.f32.mrf.mxu0  ;;  %8583 = vmatmul.mubr.bf16.vlgmr.msra.gmra.mxu0 %v14706_v43  ;;  %v1986_v28 = vld [vmem:[#allocation8 + $0x4d0] sm:$0xff]  ;;  %v12046_v46 = vcombine.high %v1858_v8, %v1862_v19 }
 0x35f   : > { %v8379_v54 = vpop.f32.mrf.mxu1  ;;  %8624 = vmatmul.mubr.bf16.vlgmr.msra.gmra.mxu1 %v14709_v45  ;;  %8633 = vmatpush1.bf16.msra.mxu0 %v12077_v37  ;;  %v12181_v37 = vcombine.low %v1994_v13, %v1998_v62  ;;  %v12174_v38 = vcombine.high %v1986_v28, %v1990_v31  ;;  %v1962_v13 = vld [vmem:[#allocation8 + $0x410] sm:$0xff] }
 0x360   : > { %v14751_v41 = vadd.f32 %v8379_v54, %v8338_v16  ;;  %8664 = vmatprep.mubr.bf16.mxu0 %v14579_v1  ;;  %8674 = vmatpush1.bf16.msra.mxu1 %v12205_v44  ;;  %v8340_v50 = vpop.f32.mrf.mxu0  ;;  %v1850_v44 = vld [vmem:[#allocation8 + $0x90] sm:$0xff]  ;;  %v12045_v16 = vcombine.low %v1858_v8, %v1862_v19 }
 0x361   : > { %8705 = vmatprep.mubr.bf16.mxu1 %v14585_v4  ;;  %v8381_v53 = vpop.f32.mrf.mxu1  ;;  %8634 = vmatprep.subr.bf16.mxu0 %v12070_v11  ;;  %v1854_v11 = vld [vmem:[#allocation8 + $0xb0] sm:$0xff] }
 0x362   : > { %v14755_v58 = vadd.f32 %v8381_v53, %v8340_v50  ;;  %v8342_v60 = vpop.f32.mrf.mxu0  ;;  %8675 = vmatprep.subr.bf16.mxu1 %v12198_v18  ;;  %v12173_v18 = vcombine.low %v1986_v28, %v1990_v31  ;;  %v12038_v47 = vcombine.high %v1850_v44, %v1854_v11  ;;  %v1842_v54 = vld [vmem:[#allocation8 + $0x50] sm:$0xff]  ;;  %v12165_v53 = vcombine.low %v1978_v40, %v1982_v42 }
 0x363   : > { %v8383_v63 = vpop.f32.mrf.mxu1  ;;  %8635 = vmatpush1.bf16.msra.mxu0 %v12069_v34  ;;  %v1846_v34 = vld [vmem:[#allocation8 + $0x70] sm:$0xff] }
 0x364   : > { %8676 = vmatpush1.bf16.msra.mxu1 %v12197_v51  ;;  %v8343_v15 = vpop.f32.mrf.mxu0  ;;  %8636 = vmatprep.subr.bf16.mxu0 %v12062_v21  ;;  %v1970_v50 = vld [vmem:[#allocation8 + $0x450] sm:$0xff]  ;;  %v12037_v21 = vcombine.low %v1850_v44, %v1854_v11  ;;  %v12029_v63 = vcombine.low %v1842_v54, %v1846_v34 }
 0x365   : > { %v8384_v12 = vpop.f32.mrf.mxu1  ;;  %8677 = vmatprep.subr.bf16.mxu1 %v12190_v55  ;;  %v1974_v51 = vld [vmem:[#allocation8 + $0x470] sm:$0xff]  ;;  %v12030_v55 = vcombine.high %v1842_v54, %v1846_v34 }
 0x366   : > { %v12158_v39 = vcombine.high %v1970_v50, %v1974_v51  ;;  %v1838_v60 = vld [vmem:[#allocation8 + $0x30] sm:$0xff] }
 0x367   : > { %8637 = vmatpush1.bf16.msra.mxu0 %v12061_v2  ;;  %v1966_v62 = vld [vmem:[#allocation8 + $0x430] sm:$0xff]  ;;  %v12157_v2 = vcombine.low %v1970_v50, %v1974_v51  ;;  %v12022_v15 = vcombine.high %v1834_v56, %v1838_v60  ;;  %v12021_v19 = vcombine.low %v1834_v56, %v1838_v60 }
 0x368   : > { %8678 = vmatpush1.bf16.msra.mxu1 %v12189_v10  ;;  %8638 = vmatprep.subr.bf16.mxu0 %v12054_v35  ;;  %v12150_v10 = vcombine.high %v1962_v13, %v1966_v62  ;;  %v1954_v35 = vld [vmem:[#allocation8 + $0x3d0] sm:$0xff]  ;;  %v12149_v28 = vcombine.low %v1962_v13, %v1966_v62 }
 0x369   : > { %8679 = vmatprep.subr.bf16.mxu1 %v12182_v17  ;;  %v1958_v12 = vld [vmem:[#allocation8 + $0x3f0] sm:$0xff] }
 0x36a   : > { %v2082_v17 = vld [vmem:[#allocation8 + $0x7d0] sm:$0xff]  ;;  %v12142_v31 = vcombine.high %v1954_v35, %v1958_v12  ;;  %v12141_v11 = vcombine.low %v1954_v35, %v1958_v12 }
 0x36b   : > { %8639 = vmatpush1.bf16.msra.mxu0 %v12053_v36  ;;  %v2086_v8 = vld [vmem:[#allocation8 + $0x7f0] sm:$0xff] }
 0x36c   : > { %8680 = vmatpush1.bf16.msra.mxu1 %v12181_v37  ;;  %8640 = vmatprep.subr.bf16.mxu0 %v12046_v46  ;;  %v12270_v36 = vcombine.high %v2082_v17, %v2086_v8  ;;  %v1946_v37 = vld [vmem:[#allocation8 + $0x390] sm:$0xff]  ;;  %v12269_v40 = vcombine.low %v2082_v17, %v2086_v8 }
 0x36d   : > { %8681 = vmatprep.subr.bf16.mxu1 %v12174_v38  ;;  %v1950_v46 = vld [vmem:[#allocation8 + $0x3b0] sm:$0xff] }
 0x36e   : > { %v2074_v38 = vld [vmem:[#allocation8 + $0x790] sm:$0xff]  ;;  %v12134_v42 = vcombine.high %v1946_v37, %v1950_v46  ;;  %v12133_v34 = vcombine.low %v1946_v37, %v1950_v46 }
 0x36f   : > { %8641 = vmatpush1.bf16.msra.mxu0 %v12045_v16  ;;  %v2078_v44 = vld [vmem:[#allocation8 + $0x7b0] sm:$0xff] }
 0x370   : > { %8682 = vmatpush1.bf16.msra.mxu1 %v12173_v18  ;;  %8642 = vmatprep.subr.bf16.mxu0 %v12038_v47  ;;  %v12262_v16 = vcombine.high %v2074_v38, %v2078_v44  ;;  %v1938_v18 = vld [vmem:[#allocation8 + $0x350] sm:$0xff]  ;;  %v12261_v50 = vcombine.low %v2074_v38, %v2078_v44 }
 0x371   : > { %8683 = vmatprep.subr.bf16.mxu1 %v12166_v48  ;;  %v1942_v47 = vld [vmem:[#allocation8 + $0x370] sm:$0xff] }
 0x372   : > { %v2066_v48 = vld [vmem:[#allocation8 + $0x750] sm:$0xff]  ;;  %v12126_v51 = vcombine.high %v1938_v18, %v1942_v47  ;;  %v12125_v60 = vcombine.low %v1938_v18, %v1942_v47 }
 0x373   : > { %8643 = vmatpush1.bf16.msra.mxu0 %v12037_v21  ;;  %v2070_v54 = vld [vmem:[#allocation8 + $0x770] sm:$0xff] }
 0x374   : > { %8684 = vmatpush1.bf16.msra.mxu1 %v12165_v53  ;;  %8644 = vmatprep.subr.bf16.mxu0 %v12030_v55  ;;  %v12254_v21 = vcombine.high %v2066_v48, %v2070_v54  ;;  %v1930_v53 = vld [vmem:[#allocation8 + $0x310] sm:$0xff]  ;;  %v12253_v13 = vcombine.low %v2066_v48, %v2070_v54 }
 0x375   : > { %8685 = vmatprep.subr.bf16.mxu1 %v12158_v39  ;;  %v1934_v55 = vld [vmem:[#allocation8 + $0x330] sm:$0xff] }
 0x376   : > { %v2058_v39 = vld [vmem:[#allocation8 + $0x710] sm:$0xff]  ;;  %v12118_v62 = vcombine.high %v1930_v53, %v1934_v55  ;;  %v12117_v12 = vcombine.low %v1930_v53, %v1934_v55 }
 0x377   : > { %8645 = vmatpush1.bf16.msra.mxu0 %v12029_v63  ;;  %v2062_v56 = vld [vmem:[#allocation8 + $0x730] sm:$0xff] }
 0x378   : > { %8686 = vmatpush1.bf16.msra.mxu1 %v12157_v2  ;;  %8646 = vmatprep.subr.bf16.mxu0 %v12022_v15  ;;  %v12246_v63 = vcombine.high %v2058_v39, %v2062_v56  ;;  %v1922_v2 = vld [vmem:[#allocation8 + $0x2d0] sm:$0xff]  ;;  %v12245_v17 = vcombine.low %v2058_v39, %v2062_v56 }
 0x379   : > { %8687 = vmatprep.subr.bf16.mxu1 %v12150_v10  ;;  %v1926_v15 = vld [vmem:[#allocation8 + $0x2f0] sm:$0xff] }
 0x37a   : > { %v2050_v10 = vld [vmem:[#allocation8 + $0x6d0] sm:$0xff]  ;;  %v12110_v8 = vcombine.high %v1922_v2, %v1926_v15  ;;  %v12109_v46 = vcombine.low %v1922_v2, %v1926_v15 }
 0x37b   : > { %8647 = vmatpush1.bf16.msra.mxu0 %v12021_v19  ;;  %v2054_v35 = vld [vmem:[#allocation8 + $0x6f0] sm:$0xff] }
 0x37c   : > { %8688 = vmatpush1.bf16.msra.mxu1 %v12149_v28  ;;  %8648 = vmatprep.subr.bf16.mxu0 %v12142_v31  ;;  %v12238_v19 = vcombine.high %v2050_v10, %v2054_v35  ;;  %v1914_v28 = vld [vmem:[#allocation8 + $0x290] sm:$0xff]  ;;  %v12237_v38 = vcombine.low %v2050_v10, %v2054_v35 }
 0x37d   : > { %8689 = vmatprep.subr.bf16.mxu1 %v12270_v36  ;;  %v1918_v31 = vld [vmem:[#allocation8 + $0x2b0] sm:$0xff] }
 0x37e   : > { %v2042_v36 = vld [vmem:[#allocation8 + $0x690] sm:$0xff]  ;;  %v12102_v44 = vcombine.high %v1914_v28, %v1918_v31  ;;  %v12101_v47 = vcombine.low %v1914_v28, %v1918_v31 }
 0x37f   : > { %8649 = vmatpush2.bf16.msra.mxu0 %v12141_v11  ;;  %v2046_v37 = vld [vmem:[#allocation8 + $0x6b0] sm:$0xff] }
 0x380   : > { %8690 = vmatpush2.bf16.msra.mxu1 %v12269_v40  ;;  %8650 = vmatprep.subr.bf16.mxu0 %v12134_v42  ;;  %v12230_v11 = vcombine.high %v2042_v36, %v2046_v37  ;;  %v1906_v40 = vld [vmem:[#allocation8 + $0x250] sm:$0xff]  ;;  %v12229_v48 = vcombine.low %v2042_v36, %v2046_v37 }
 0x381   : > { %8691 = vmatprep.subr.bf16.mxu1 %v12262_v16  ;;  %v1910_v42 = vld [vmem:[#allocation8 + $0x270] sm:$0xff] }
 0x382   : > { %v2034_v16 = vld [vmem:[#allocation8 + $0x650] sm:$0xff]  ;;  %v12094_v54 = vcombine.high %v1906_v40, %v1910_v42  ;;  %v12093_v55 = vcombine.low %v1906_v40, %v1910_v42 }
 0x383   : > { %8651 = vmatpush2.bf16.msra.mxu0 %v12133_v34  ;;  %v2038_v18 = vld [vmem:[#allocation8 + $0x670] sm:$0xff] }
 0x384   : > { %8692 = vmatpush2.bf16.msra.mxu1 %v12261_v50  ;;  %8652 = vmatprep.subr.bf16.mxu0 %v12126_v51  ;;  %v12222_v34 = vcombine.high %v2034_v16, %v2038_v18  ;;  %v1898_v50 = vld [vmem:[#allocation8 + $0x210] sm:$0xff]  ;;  %v12221_v39 = vcombine.low %v2034_v16, %v2038_v18 }
 0x385   : > { %8693 = vmatprep.subr.bf16.mxu1 %v12254_v21  ;;  %v1902_v51 = vld [vmem:[#allocation8 + $0x230] sm:$0xff] }
 0x386   : > { %v2026_v21 = vld [vmem:[#allocation8 + $0x610] sm:$0xff]  ;;  %v12086_v56 = vcombine.high %v1898_v50, %v1902_v51  ;;  %v12085_v15 = vcombine.low %v1898_v50, %v1902_v51 }
 0x387   : > { %8653 = vmatpush2.bf16.msra.mxu0 %v12125_v60  ;;  %v2030_v53 = vld [vmem:[#allocation8 + $0x630] sm:$0xff] }
 0x388   : > { %8694 = vmatpush2.bf16.msra.mxu1 %v12253_v13  ;;  %8654 = vmatprep.subr.bf16.mxu0 %v12118_v62  ;;  %v12214_v60 = vcombine.high %v2026_v21, %v2030_v53  ;;  %v2146_v13 = vld [vmem:[#allocation8 + $0x9d0] sm:$0xff]  ;;  %v12213_v10 = vcombine.low %v2026_v21, %v2030_v53 }
 0x389   : > { %8695 = vmatprep.subr.bf16.mxu1 %v12246_v63  ;;  %v2150_v62 = vld [vmem:[#allocation8 + $0x9f0] sm:$0xff] }
 0x38a   : > { %v2274_v63 = vld [vmem:[#allocation8 + $0xdd0] sm:$0xff]  ;;  %v12334_v35 = vcombine.high %v2146_v13, %v2150_v62 }
 0x38b   : > { %8655 = vmatpush2.bf16.msra.mxu0 %v12117_v12  ;;  %v2278_v2 = vld [vmem:[#allocation8 + $0xdf0] sm:$0xff] }
 0x38c   : > { %8696 = vmatpush2.bf16.msra.mxu1 %v12245_v17  ;;  %8656 = vmatprep.subr.bf16.mxu0 %v12110_v8  ;;  %v12462_v12 = vcombine.high %v2274_v63, %v2278_v2  ;;  %v2138_v17 = vld [vmem:[#allocation8 + $0x990] sm:$0xff]  ;;  %v12461_v36 = vcombine.low %v2274_v63, %v2278_v2 }
 0x38d   : > { %8697 = vmatprep.subr.bf16.mxu1 %v12238_v19  ;;  %v2142_v8 = vld [vmem:[#allocation8 + $0x9b0] sm:$0xff]  ;;  %v12333_v19 = vcombine.low %v2146_v13, %v2150_v62 }
 0x38e   : > { %v2266_v28 = vld [vmem:[#allocation8 + $0xd90] sm:$0xff]  ;;  %v12326_v37 = vcombine.high %v2138_v17, %v2142_v8 }
 0x38f   : > { %8657 = vmatpush2.bf16.msra.mxu0 %v12109_v46  ;;  %v2270_v31 = vld [vmem:[#allocation8 + $0xdb0] sm:$0xff] }
 0x390   : > { %8698 = vmatpush2.bf16.msra.mxu1 %v12237_v38  ;;  %8658 = vmatprep.subr.bf16.mxu0 %v12102_v44  ;;  %v2130_v46 = vld [vmem:[#allocation8 + $0x950] sm:$0xff] }
 0x391   : > { %8699 = vmatprep.subr.bf16.mxu1 %v12230_v11  ;;  %v2134_v38 = vld [vmem:[#allocation8 + $0x970] sm:$0xff]  ;;  %v12454_v11 = vcombine.high %v2266_v28, %v2270_v31 }
 0x392   : > { %v2258_v40 = vld [vmem:[#allocation8 + $0xd50] sm:$0xff]  ;;  %v12317_v63 = vcombine.low %v2130_v46, %v2134_v38 }
 0x393   : > { %8659 = vmatpush2.bf16.msra.mxu0 %v12101_v47  ;;  %v2262_v42 = vld [vmem:[#allocation8 + $0xd70] sm:$0xff]  ;;  %v12325_v47 = vcombine.low %v2138_v17, %v2142_v8 }
 0x394   : > { %8700 = vmatpush2.bf16.msra.mxu1 %v12229_v48  ;;  %8660 = vmatprep.subr.bf16.mxu0 %v12094_v54  ;;  %v12453_v54 = vcombine.low %v2266_v28, %v2270_v31  ;;  %v2122_v53 = vld [vmem:[#allocation8 + $0x910] sm:$0xff] }
 0x395   : > { %8701 = vmatprep.subr.bf16.mxu1 %v12222_v34  ;;  %v12318_v34 = vcombine.high %v2130_v46, %v2134_v38  ;;  %v2118_v17 = vld [vmem:[#allocation8 + $0x8f0] sm:$0xff] }
 0x396   : > { %v2242_v8 = vld [vmem:[#allocation8 + $0xcd0] sm:$0xff] }
 0x397   : > { %8661 = vmatpush2.bf16.msra.mxu0 %v12093_v55  ;;  %v2126_v55 = vld [vmem:[#allocation8 + $0x930] sm:$0xff] }
 0x398   : > { %8702 = vmatpush2.bf16.msra.mxu1 %v12221_v39  ;;  %8662 = vmatprep.subr.bf16.mxu0 %v12086_v56  ;;  %v2250_v56 = vld [vmem:[#allocation8 + $0xd10] sm:$0xff]  ;;  %v12309_v28 = vcombine.low %v2122_v53, %v2126_v55 }
 0x399   : > { %8703 = vmatprep.subr.bf16.mxu1 %v12214_v60  ;;  %v2254_v60 = vld [vmem:[#allocation8 + $0xd30] sm:$0xff] }
 0x39a   : > { %v12437_v31 = vcombine.low %v2250_v56, %v2254_v60  ;;  %v2106_v46 = vld [vmem:[#allocation8 + $0x890] sm:$0xff] }
 0x39b   : > { %8663 = vmatpush2.bf16.msra.mxu0 %v12085_v15  ;;  %v12445_v15 = vcombine.low %v2258_v40, %v2262_v42  ;;  %v2110_v38 = vld [vmem:[#allocation8 + $0x8b0] sm:$0xff] }
 0x39c   : > { %8704 = vmatpush2.bf16.msra.mxu1 %v12213_v10  ;;  %8714 = vmatprep.subr.bf16.mxu0 %v12334_v35  ;;  %v12310_v10 = vcombine.high %v2122_v53, %v2126_v55  ;;  %v12438_v35 = vcombine.high %v2250_v56, %v2254_v60  ;;  %v2090_v55 = vld [vmem:[#allocation8 + $0x810] sm:$0xff] }
 0x39d   : > { %8755 = vmatprep.subr.bf16.mxu1 %v12462_v12  ;;  %v2114_v12 = vld [vmem:[#allocation8 + $0x8d0] sm:$0xff] }
 0x39e   : > { %v8420_v44 = vpop.f32.mrf.mxu0  ;;  %8665 = vmatmul.mubr.bf16.vlgmr.msra.gmra.mxu0 %v14583_v3  ;;  %v2218_v56 = vld [vmem:[#allocation8 + $0xc10] sm:$0xff] }
 0x39f   : > { %v8421_v16 = vadd.f32 %v8420_v44, %v14751_v41  ;;  %v8461_v18 = vpop.f32.mrf.mxu1  ;;  %8706 = vmatmul.mubr.bf16.vlgmr.msra.gmra.mxu1 %v14589_v7  ;;  %8715 = vmatpush1.bf16.msra.mxu0 %v12333_v19  ;;  %v12446_v41 = vcombine.high %v2258_v40, %v2262_v42  ;;  %v2246_v19 = vld [vmem:[#allocation8 + $0xcf0] sm:$0xff]  ;;  %v12301_v40 = vcombine.low %v2114_v12, %v2118_v17 }
 0x3a0   : > { %8746 = vmatprep.mubr.bf16.mxu0 %v14611_v49  ;;  %8756 = vmatpush1.bf16.msra.mxu1 %v12461_v36  ;;  %v8422_v48 = vpop.f32.mrf.mxu0  ;;  %v12302_v36 = vcombine.high %v2114_v12, %v2118_v17  ;;  %v2234_v44 = vld [vmem:[#allocation8 + $0xc90] sm:$0xff]  ;;  %v12429_v42 = vcombine.low %v2242_v8, %v2246_v19 }
 0x3a1   : > { %v14761_v50 = vadd.f32 %v8461_v18, %v8421_v16  ;;  %8787 = vmatprep.mubr.bf16.mxu1 %v14613_v52  ;;  %v8423_v51 = vadd.f32 %v8422_v48, %v14755_v58  ;;  %v8463_v21 = vpop.f32.mrf.mxu1  ;;  %8716 = vmatprep.subr.bf16.mxu0 %v12326_v37  ;;  %v12430_v37 = vcombine.high %v2242_v8, %v2246_v19  ;;  %v2102_v48 = vld [vmem:[#allocation8 + $0x870] sm:$0xff] }
 0x3a2   : > { %v8424_v39 = vpop.f32.mrf.mxu0  ;;  %8757 = vmatprep.subr.bf16.mxu1 %v12454_v11  ;;  %v2238_v11 = vld [vmem:[#allocation8 + $0xcb0] sm:$0xff]  ;;  %v12294_v16 = vcombine.high %v2106_v46, %v2110_v38 }
 0x3a3   : > { %v14765_v13 = vadd.f32 %v8463_v21, %v8423_v51  ;;  %v8465_v62 = vpop.f32.mrf.mxu1  ;;  %8717 = vmatpush1.bf16.msra.mxu0 %v12325_v47  ;;  %v12422_v18 = vcombine.high %v2234_v44, %v2238_v11  ;;  %v2098_v47 = vld [vmem:[#allocation8 + $0x850] sm:$0xff]  ;;  %v12293_v51 = vcombine.low %v2106_v46, %v2110_v38  ;;  %v12421_v21 = vcombine.low %v2234_v44, %v2238_v11 }
 0x3a4   : > { %8758 = vmatpush1.bf16.msra.mxu1 %v12453_v54  ;;  %v8425_v2 = vpop.f32.mrf.mxu0  ;;  %8718 = vmatprep.subr.bf16.mxu0 %v12318_v34  ;;  %v2226_v54 = vld [vmem:[#allocation8 + $0xc50] sm:$0xff]  ;;  %v12285_v62 = vcombine.low %v2098_v47, %v2102_v48 }
 0x3a5   : > { %v8466_v58 = vpop.f32.mrf.mxu1  ;;  %8759 = vmatprep.subr.bf16.mxu1 %v12446_v41  ;;  %v2230_v34 = vld [vmem:[#allocation8 + $0xc70] sm:$0xff]  ;;  %v12286_v41 = vcombine.high %v2098_v47, %v2102_v48 }
 0x3a6   : > { %v12414_v53 = vcombine.high %v2226_v54, %v2230_v34  ;;  %v2094_v39 = vld [vmem:[#allocation8 + $0x830] sm:$0xff] }
 0x3a7   : > { %8719 = vmatpush1.bf16.msra.mxu0 %v12317_v63  ;;  %v2222_v60 = vld [vmem:[#allocation8 + $0xc30] sm:$0xff]  ;;  %v12413_v63 = vcombine.low %v2226_v54, %v2230_v34  ;;  %v12278_v2 = vcombine.high %v2090_v55, %v2094_v39  ;;  %v12277_v17 = vcombine.low %v2090_v55, %v2094_v39 }
 0x3a8   : > { %8760 = vmatpush1.bf16.msra.mxu1 %v12445_v15  ;;  %8720 = vmatprep.subr.bf16.mxu0 %v12310_v10  ;;  %v12406_v15 = vcombine.high %v2218_v56, %v2222_v60  ;;  %v2210_v10 = vld [vmem:[#allocation8 + $0xbd0] sm:$0xff]  ;;  %v12405_v8 = vcombine.low %v2218_v56, %v2222_v60 }
 0x3a9   : > { %8761 = vmatprep.subr.bf16.mxu1 %v12438_v35  ;;  %v2214_v58 = vld [vmem:[#allocation8 + $0xbf0] sm:$0xff] }
 0x3aa   : > { %v2338_v35 = vld [vmem:[#allocation8 + $0xfd0] sm:$0xff]  ;;  %v12398_v19 = vcombine.high %v2210_v10, %v2214_v58  ;;  %v12397_v38 = vcombine.low %v2210_v10, %v2214_v58 }
 0x3ab   : > { %8721 = vmatpush1.bf16.msra.mxu0 %v12309_v28  ;;  %v2342_v12 = vld [vmem:[#allocation8 + $0xff0] sm:$0xff] }
 0x3ac   : > { %8762 = vmatpush1.bf16.msra.mxu1 %v12437_v31  ;;  %8722 = vmatprep.subr.bf16.mxu0 %v12302_v36  ;;  %v12526_v28 = vcombine.high %v2338_v35, %v2342_v12  ;;  %v2202_v31 = vld [vmem:[#allocation8 + $0xb90] sm:$0xff]  ;;  %v12525_v44 = vcombine.low %v2338_v35, %v2342_v12 }
 0x3ad   : > { %8763 = vmatprep.subr.bf16.mxu1 %v12430_v37  ;;  %v2206_v36 = vld [vmem:[#allocation8 + $0xbb0] sm:$0xff] }
 0x3ae   : > { %v2330_v37 = vld [vmem:[#allocation8 + $0xf90] sm:$0xff]  ;;  %v12390_v11 = vcombine.high %v2202_v31, %v2206_v36  ;;  %v12389_v48 = vcombine.low %v2202_v31, %v2206_v36 }
 0x3af   : > { %8723 = vmatpush1.bf16.msra.mxu0 %v12301_v40  ;;  %v2334_v46 = vld [vmem:[#allocation8 + $0xfb0] sm:$0xff] }
 0x3b0   : > { %8764 = vmatpush1.bf16.msra.mxu1 %v12429_v42  ;;  %8724 = vmatprep.subr.bf16.mxu0 %v12294_v16  ;;  %v12518_v40 = vcombine.high %v2330_v37, %v2334_v46  ;;  %v2194_v42 = vld [vmem:[#allocation8 + $0xb50] sm:$0xff]  ;;  %v12517_v54 = vcombine.low %v2330_v37, %v2334_v46 }
 0x3b1   : > { %8765 = vmatprep.subr.bf16.mxu1 %v12422_v18  ;;  %v2198_v16 = vld [vmem:[#allocation8 + $0xb70] sm:$0xff] }
 0x3b2   : > { %v2322_v18 = vld [vmem:[#allocation8 + $0xf50] sm:$0xff]  ;;  %v12382_v34 = vcombine.high %v2194_v42, %v2198_v16  ;;  %v12381_v39 = vcombine.low %v2194_v42, %v2198_v16 }
 0x3b3   : > { %8725 = vmatpush1.bf16.msra.mxu0 %v12293_v51  ;;  %v2326_v47 = vld [vmem:[#allocation8 + $0xf70] sm:$0xff] }
 0x3b4   : > { %8766 = vmatpush1.bf16.msra.mxu1 %v12421_v21  ;;  %8726 = vmatprep.subr.bf16.mxu0 %v12286_v41  ;;  %v12510_v51 = vcombine.high %v2322_v18, %v2326_v47  ;;  %v2186_v21 = vld [vmem:[#allocation8 + $0xb10] sm:$0xff]  ;;  %v12509_v56 = vcombine.low %v2322_v18, %v2326_v47 }
 0x3b5   : > { %8767 = vmatprep.subr.bf16.mxu1 %v12414_v53  ;;  %v2190_v41 = vld [vmem:[#allocation8 + $0xb30] sm:$0xff] }
 0x3b6   : > { %v2314_v53 = vld [vmem:[#allocation8 + $0xf10] sm:$0xff]  ;;  %v12374_v60 = vcombine.high %v2186_v21, %v2190_v41  ;;  %v12373_v58 = vcombine.low %v2186_v21, %v2190_v41 }
 0x3b7   : > { %8727 = vmatpush1.bf16.msra.mxu0 %v12285_v62  ;;  %v2318_v55 = vld [vmem:[#allocation8 + $0xf30] sm:$0xff] }
 0x3b8   : > { %8768 = vmatpush1.bf16.msra.mxu1 %v12413_v63  ;;  %8728 = vmatprep.subr.bf16.mxu0 %v12278_v2  ;;  %v12502_v62 = vcombine.high %v2314_v53, %v2318_v55  ;;  %v2178_v63 = vld [vmem:[#allocation8 + $0xad0] sm:$0xff]  ;;  %v12501_v35 = vcombine.low %v2314_v53, %v2318_v55 }
 0x3b9   : > { %8769 = vmatprep.subr.bf16.mxu1 %v12406_v15  ;;  %v2182_v2 = vld [vmem:[#allocation8 + $0xaf0] sm:$0xff] }
 0x3ba   : > { %v2306_v15 = vld [vmem:[#allocation8 + $0xed0] sm:$0xff]  ;;  %v12366_v12 = vcombine.high %v2178_v63, %v2182_v2  ;;  %v12365_v36 = vcombine.low %v2178_v63, %v2182_v2 }
 0x3bb   : > { %8729 = vmatpush1.bf16.msra.mxu0 %v12277_v17  ;;  %v2310_v10 = vld [vmem:[#allocation8 + $0xef0] sm:$0xff] }
 0x3bc   : > { %8770 = vmatpush1.bf16.msra.mxu1 %v12405_v8  ;;  %8730 = vmatprep.subr.bf16.mxu0 %v12398_v19  ;;  %v12494_v17 = vcombine.high %v2306_v15, %v2310_v10  ;;  %v2170_v8 = vld [vmem:[#allocation8 + $0xa90] sm:$0xff]  ;;  %v12493_v37 = vcombine.low %v2306_v15, %v2310_v10 }
 0x3bd   : > { %8771 = vmatprep.subr.bf16.mxu1 %v12526_v28  ;;  %v2174_v19 = vld [vmem:[#allocation8 + $0xab0] sm:$0xff] }
 0x3be   : > { %v2298_v28 = vld [vmem:[#allocation8 + $0xe90] sm:$0xff]  ;;  %v12358_v46 = vcombine.high %v2170_v8, %v2174_v19  ;;  %v12357_v16 = vcombine.low %v2170_v8, %v2174_v19 }
 0x3bf   : > { %8731 = vmatpush2.bf16.msra.mxu0 %v12397_v38  ;;  %v2302_v31 = vld [vmem:[#allocation8 + $0xeb0] sm:$0xff] }
 0x3c0   : > { %8772 = vmatpush2.bf16.msra.mxu1 %v12525_v44  ;;  %8732 = vmatprep.subr.bf16.mxu0 %v12390_v11  ;;  %v12486_v38 = vcombine.high %v2298_v28, %v2302_v31  ;;  %v2162_v44 = vld [vmem:[#allocation8 + $0xa50] sm:$0xff]  ;;  %v12485_v18 = vcombine.low %v2298_v28, %v2302_v31 }
 0x3c1   : > { %8773 = vmatprep.subr.bf16.mxu1 %v12518_v40  ;;  %v2166_v11 = vld [vmem:[#allocation8 + $0xa70] sm:$0xff] }
 0x3c2   : > { %v2290_v40 = vld [vmem:[#allocation8 + $0xe50] sm:$0xff]  ;;  %v12350_v47 = vcombine.high %v2162_v44, %v2166_v11  ;;  %v12349_v41 = vcombine.low %v2162_v44, %v2166_v11 }
 0x3c3   : > { %8733 = vmatpush2.bf16.msra.mxu0 %v12389_v48  ;;  %v2294_v42 = vld [vmem:[#allocation8 + $0xe70] sm:$0xff] }
 0x3c4   : > { %8774 = vmatpush2.bf16.msra.mxu1 %v12517_v54  ;;  %8734 = vmatprep.subr.bf16.mxu0 %v12382_v34  ;;  %v12478_v48 = vcombine.high %v2290_v40, %v2294_v42  ;;  %v2154_v54 = vld [vmem:[#allocation8 + $0xa10] sm:$0xff]  ;;  %v12477_v53 = vcombine.low %v2290_v40, %v2294_v42 }
 0x3c5   : > { %8775 = vmatprep.subr.bf16.mxu1 %v12510_v51  ;;  %v2158_v34 = vld [vmem:[#allocation8 + $0xa30] sm:$0xff] }
 0x3c6   : > { %v2282_v51 = vld [vmem:[#allocation8 + $0xe10] sm:$0xff]  ;;  %v12342_v55 = vcombine.high %v2154_v54, %v2158_v34  ;;  %v12341_v2 = vcombine.low %v2154_v54, %v2158_v34 }
 0x3c7   : > { %8735 = vmatpush2.bf16.msra.mxu0 %v12381_v39  ;;  %v2286_v21 = vld [vmem:[#allocation8 + $0xe30] sm:$0xff] }
 0x3c8   : > { %8776 = vmatpush2.bf16.msra.mxu1 %v12509_v56  ;;  %8736 = vmatprep.subr.bf16.mxu0 %v12374_v60  ;;  %v12470_v39 = vcombine.high %v2282_v51, %v2286_v21  ;;  %v2402_v56 = vld [vmem:[#allocation8 + $0x11d0] sm:$0xff]  ;;  %v12469_v15 = vcombine.low %v2282_v51, %v2286_v21 }
 0x3c9   : > { %8777 = vmatprep.subr.bf16.mxu1 %v12502_v62  ;;  %v2406_v60 = vld [vmem:[#allocation8 + $0x11f0] sm:$0xff] }
 0x3ca   : > { %v2530_v62 = vld [vmem:[#allocation8 + $0x15d0] sm:$0xff]  ;;  %v12590_v10 = vcombine.high %v2402_v56, %v2406_v60 }
 0x3cb   : > { %8737 = vmatpush2.bf16.msra.mxu0 %v12373_v58  ;;  %v2534_v63 = vld [vmem:[#allocation8 + $0x15f0] sm:$0xff] }
 0x3cc   : > { %8778 = vmatpush2.bf16.msra.mxu1 %v12501_v35  ;;  %8738 = vmatprep.subr.bf16.mxu0 %v12366_v12  ;;  %v12718_v58 = vcombine.high %v2530_v62, %v2534_v63  ;;  %v2394_v35 = vld [vmem:[#allocation8 + $0x1190] sm:$0xff]  ;;  %v12717_v28 = vcombine.low %v2530_v62, %v2534_v63 }
 0x3cd   : > { %8779 = vmatprep.subr.bf16.mxu1 %v12494_v17  ;;  %v2398_v12 = vld [vmem:[#allocation8 + $0x11b0] sm:$0xff]  ;;  %v12589_v17 = vcombine.low %v2402_v56, %v2406_v60 }
 0x3ce   : > { %v2522_v8 = vld [vmem:[#allocation8 + $0x1590] sm:$0xff]  ;;  %v12582_v31 = vcombine.high %v2394_v35, %v2398_v12 }
 0x3cf   : > { %8739 = vmatpush2.bf16.msra.mxu0 %v12365_v36  ;;  %v2526_v19 = vld [vmem:[#allocation8 + $0x15b0] sm:$0xff] }
 0x3d0   : > { %8780 = vmatpush2.bf16.msra.mxu1 %v12493_v37  ;;  %8740 = vmatprep.subr.bf16.mxu0 %v12358_v46  ;;  %v2386_v36 = vld [vmem:[#allocation8 + $0x1150] sm:$0xff] }
 0x3d1   : > { %8781 = vmatprep.subr.bf16.mxu1 %v12486_v38  ;;  %v2390_v37 = vld [vmem:[#allocation8 + $0x1170] sm:$0xff]  ;;  %v12710_v38 = vcombine.high %v2522_v8, %v2526_v19 }
 0x3d2   : > { %v2514_v44 = vld [vmem:[#allocation8 + $0x1550] sm:$0xff]  ;;  %v12573_v62 = vcombine.low %v2386_v36, %v2390_v37 }
 0x3d3   : > { %8741 = vmatpush2.bf16.msra.mxu0 %v12357_v16  ;;  %v2518_v11 = vld [vmem:[#allocation8 + $0x1570] sm:$0xff]  ;;  %v12581_v16 = vcombine.low %v2394_v35, %v2398_v12 }
 0x3d4   : > { %8782 = vmatpush2.bf16.msra.mxu1 %v12485_v18  ;;  %8742 = vmatprep.subr.bf16.mxu0 %v12350_v47  ;;  %v12709_v47 = vcombine.low %v2522_v8, %v2526_v19  ;;  %v2378_v21 = vld [vmem:[#allocation8 + $0x1110] sm:$0xff] }
 0x3d5   : > { %8783 = vmatprep.subr.bf16.mxu1 %v12478_v48  ;;  %v12574_v48 = vcombine.high %v2386_v36, %v2390_v37  ;;  %v2374_v35 = vld [vmem:[#allocation8 + $0x10f0] sm:$0xff] }
 0x3d6   : > { %v2498_v12 = vld [vmem:[#allocation8 + $0x14d0] sm:$0xff] }
 0x3d7   : > { %8743 = vmatpush2.bf16.msra.mxu0 %v12349_v41  ;;  %v2382_v41 = vld [vmem:[#allocation8 + $0x1130] sm:$0xff] }
 0x3d8   : > { %8784 = vmatpush2.bf16.msra.mxu1 %v12477_v53  ;;  %8744 = vmatprep.subr.bf16.mxu0 %v12342_v55  ;;  %v2506_v55 = vld [vmem:[#allocation8 + $0x1510] sm:$0xff]  ;;  %v12565_v8 = vcombine.low %v2378_v21, %v2382_v41 }
 0x3d9   : > { %8785 = vmatprep.subr.bf16.mxu1 %v12470_v39  ;;  %v2510_v39 = vld [vmem:[#allocation8 + $0x1530] sm:$0xff] }
 0x3da   : > { %v12693_v19 = vcombine.low %v2506_v55, %v2510_v39  ;;  %v2362_v36 = vld [vmem:[#allocation8 + $0x1090] sm:$0xff] }
 0x3db   : > { %8745 = vmatpush2.bf16.msra.mxu0 %v12341_v2  ;;  %v12701_v2 = vcombine.low %v2514_v44, %v2518_v11  ;;  %v2366_v37 = vld [vmem:[#allocation8 + $0x10b0] sm:$0xff] }
 0x3dc   : > { %8786 = vmatpush2.bf16.msra.mxu1 %v12469_v15  ;;  %8796 = vmatprep.subr.bf16.mxu0 %v12590_v10  ;;  %v12566_v15 = vcombine.high %v2378_v21, %v2382_v41  ;;  %v12694_v10 = vcombine.high %v2506_v55, %v2510_v39  ;;  %v2346_v41 = vld [vmem:[#allocation8 + $0x1010] sm:$0xff] }
 0x3dd   : > { %8837 = vmatprep.subr.bf16.mxu1 %v12718_v58  ;;  %v2370_v58 = vld [vmem:[#allocation8 + $0x10d0] sm:$0xff] }
 0x3de   : > { %v8502_v46 = vpop.f32.mrf.mxu0  ;;  %8747 = vmatmul.mubr.bf16.vlgmr.msra.gmra.mxu0 %v14645_v57  ;;  %v2474_v55 = vld [vmem:[#allocation8 + $0x1410] sm:$0xff] }
 0x3df   : > { %v8503_v40 = vadd.f32 %v8502_v46, %v14761_v50  ;;  %v8543_v42 = vpop.f32.mrf.mxu1  ;;  %8788 = vmatmul.mubr.bf16.vlgmr.msra.gmra.mxu1 %v14647_v61  ;;  %8797 = vmatpush1.bf16.msra.mxu0 %v12589_v17  ;;  %v12702_v50 = vcombine.high %v2514_v44, %v2518_v11  ;;  %v2502_v17 = vld [vmem:[#allocation8 + $0x14f0] sm:$0xff]  ;;  %v12557_v44 = vcombine.low %v2370_v58, %v2374_v35 }
 0x3e0   : > { %8828 = vmatprep.mubr.bf16.mxu0 %v14649_v6  ;;  %8838 = vmatpush1.bf16.msra.mxu1 %v12717_v28  ;;  %v8504_v18 = vpop.f32.mrf.mxu0  ;;  %v12558_v28 = vcombine.high %v2370_v58, %v2374_v35  ;;  %v2490_v46 = vld [vmem:[#allocation8 + $0x1490] sm:$0xff]  ;;  %v12685_v11 = vcombine.low %v2498_v12, %v2502_v17 }
 0x3e1   : > { %v14771_v54 = vadd.f32 %v8543_v42, %v8503_v40  ;;  %8869 = vmatprep.mubr.bf16.mxu1 %v14652_v9  ;;  %v8505_v34 = vadd.f32 %v8504_v18, %v14765_v13  ;;  %v8545_v51 = vpop.f32.mrf.mxu1  ;;  %8798 = vmatprep.subr.bf16.mxu0 %v12582_v31  ;;  %v12686_v31 = vcombine.high %v2498_v12, %v2502_v17  ;;  %v2358_v18 = vld [vmem:[#allocation8 + $0x1070] sm:$0xff] }
 0x3e2   : > { %v8506_v53 = vpop.f32.mrf.mxu0  ;;  %8839 = vmatprep.subr.bf16.mxu1 %v12710_v38  ;;  %v2494_v38 = vld [vmem:[#allocation8 + $0x14b0] sm:$0xff]  ;;  %v12550_v40 = vcombine.high %v2362_v36, %v2366_v37 }
 0x3e3   : > { %v14775_v56 = vadd.f32 %v8545_v51, %v8505_v34  ;;  %v8547_v60 = vpop.f32.mrf.mxu1  ;;  %8799 = vmatpush1.bf16.msra.mxu0 %v12581_v16  ;;  %v12678_v42 = vcombine.high %v2490_v46, %v2494_v38  ;;  %v2354_v16 = vld [vmem:[#allocation8 + $0x1050] sm:$0xff]  ;;  %v12549_v34 = vcombine.low %v2362_v36, %v2366_v37  ;;  %v12677_v51 = vcombine.low %v2490_v46, %v2494_v38 }
 0x3e4   : > { %8840 = vmatpush1.bf16.msra.mxu1 %v12709_v47  ;;  %v8507_v63 = vpop.f32.mrf.mxu0  ;;  %8800 = vmatprep.subr.bf16.mxu0 %v12574_v48  ;;  %v2482_v47 = vld [vmem:[#allocation8 + $0x1450] sm:$0xff]  ;;  %v12541_v60 = vcombine.low %v2354_v16, %v2358_v18 }
 0x3e5   : > { %v8548_v13 = vpop.f32.mrf.mxu1  ;;  %8841 = vmatprep.subr.bf16.mxu1 %v12702_v50  ;;  %v2486_v48 = vld [vmem:[#allocation8 + $0x1470] sm:$0xff]  ;;  %v12542_v50 = vcombine.high %v2354_v16, %v2358_v18 }
 0x3e6   : > { %v12670_v21 = vcombine.high %v2482_v47, %v2486_v48  ;;  %v2350_v53 = vld [vmem:[#allocation8 + $0x1030] sm:$0xff] }
 0x3e7   : > { %8801 = vmatpush1.bf16.msra.mxu0 %v12573_v62  ;;  %v2478_v39 = vld [vmem:[#allocation8 + $0x1430] sm:$0xff]  ;;  %v12669_v62 = vcombine.low %v2482_v47, %v2486_v48  ;;  %v12534_v63 = vcombine.high %v2346_v41, %v2350_v53  ;;  %v12533_v35 = vcombine.low %v2346_v41, %v2350_v53 }
 0x3e8   : > { %8842 = vmatpush1.bf16.msra.mxu1 %v12701_v2  ;;  %8802 = vmatprep.subr.bf16.mxu0 %v12566_v15  ;;  %v12662_v2 = vcombine.high %v2474_v55, %v2478_v39  ;;  %v2466_v15 = vld [vmem:[#allocation8 + $0x13d0] sm:$0xff]  ;;  %v12661_v12 = vcombine.low %v2474_v55, %v2478_v39 }
 0x3e9   : > { %8843 = vmatprep.subr.bf16.mxu1 %v12694_v10  ;;  %v2470_v13 = vld [vmem:[#allocation8 + $0x13f0] sm:$0xff] }
 0x3ea   : > { %v2594_v10 = vld [vmem:[#allocation8 + $0x17d0] sm:$0xff]  ;;  %v12654_v17 = vcombine.high %v2466_v15, %v2470_v13  ;;  %v12653_v37 = vcombine.low %v2466_v15, %v2470_v13 }
 0x3eb   : > { %8803 = vmatpush1.bf16.msra.mxu0 %v12565_v8  ;;  %v2598_v58 = vld [vmem:[#allocation8 + $0x17f0] sm:$0xff] }
 0x3ec   : > { %8844 = vmatpush1.bf16.msra.mxu1 %v12693_v19  ;;  %8804 = vmatprep.subr.bf16.mxu0 %v12558_v28  ;;  %v12782_v8 = vcombine.high %v2594_v10, %v2598_v58  ;;  %v2458_v19 = vld [vmem:[#allocation8 + $0x1390] sm:$0xff]  ;;  %v12781_v46 = vcombine.low %v2594_v10, %v2598_v58 }
 0x3ed   : > { %8845 = vmatprep.subr.bf16.mxu1 %v12686_v31  ;;  %v2462_v28 = vld [vmem:[#allocation8 + $0x13b0] sm:$0xff] }
 0x3ee   : > { %v2586_v31 = vld [vmem:[#allocation8 + $0x1790] sm:$0xff]  ;;  %v12646_v38 = vcombine.high %v2458_v19, %v2462_v28  ;;  %v12645_v18 = vcombine.low %v2458_v19, %v2462_v28 }
 0x3ef   : > { %8805 = vmatpush1.bf16.msra.mxu0 %v12557_v44  ;;  %v2590_v36 = vld [vmem:[#allocation8 + $0x17b0] sm:$0xff] }
 0x3f0   : > { %8846 = vmatpush1.bf16.msra.mxu1 %v12685_v11  ;;  %8806 = vmatprep.subr.bf16.mxu0 %v12550_v40  ;;  %v12774_v44 = vcombine.high %v2586_v31, %v2590_v36  ;;  %v2450_v11 = vld [vmem:[#allocation8 + $0x1350] sm:$0xff]  ;;  %v12773_v47 = vcombine.low %v2586_v31, %v2590_v36 }
 0x3f1   : > { %8847 = vmatprep.subr.bf16.mxu1 %v12678_v42  ;;  %v2454_v40 = vld [vmem:[#allocation8 + $0x1370] sm:$0xff] }
 0x3f2   : > { %v2578_v42 = vld [vmem:[#allocation8 + $0x1750] sm:$0xff]  ;;  %v12638_v48 = vcombine.high %v2450_v11, %v2454_v40  ;;  %v12637_v53 = vcombine.low %v2450_v11, %v2454_v40 }
 0x3f3   : > { %8807 = vmatpush1.bf16.msra.mxu0 %v12549_v34  ;;  %v2582_v16 = vld [vmem:[#allocation8 + $0x1770] sm:$0xff] }
 0x3f4   : > { %8848 = vmatpush1.bf16.msra.mxu1 %v12677_v51  ;;  %8808 = vmatprep.subr.bf16.mxu0 %v12542_v50  ;;  %v12766_v34 = vcombine.high %v2578_v42, %v2582_v16  ;;  %v2442_v51 = vld [vmem:[#allocation8 + $0x1310] sm:$0xff]  ;;  %v12765_v55 = vcombine.low %v2578_v42, %v2582_v16 }
 0x3f5   : > { %8849 = vmatprep.subr.bf16.mxu1 %v12670_v21  ;;  %v2446_v50 = vld [vmem:[#allocation8 + $0x1330] sm:$0xff] }
 0x3f6   : > { %v2570_v21 = vld [vmem:[#allocation8 + $0x1710] sm:$0xff]  ;;  %v12630_v39 = vcombine.high %v2442_v51, %v2446_v50  ;;  %v12629_v13 = vcombine.low %v2442_v51, %v2446_v50 }
 0x3f7   : > { %8809 = vmatpush1.bf16.msra.mxu0 %v12541_v60  ;;  %v2574_v41 = vld [vmem:[#allocation8 + $0x1730] sm:$0xff] }
 0x3f8   : > { %8850 = vmatpush1.bf16.msra.mxu1 %v12669_v62  ;;  %8810 = vmatprep.subr.bf16.mxu0 %v12534_v63  ;;  %v12758_v60 = vcombine.high %v2570_v21, %v2574_v41  ;;  %v2434_v62 = vld [vmem:[#allocation8 + $0x12d0] sm:$0xff]  ;;  %v12757_v10 = vcombine.low %v2570_v21, %v2574_v41 }
 0x3f9   : > { %8851 = vmatprep.subr.bf16.mxu1 %v12662_v2  ;;  %v2438_v63 = vld [vmem:[#allocation8 + $0x12f0] sm:$0xff] }
 0x3fa   : > { %v2562_v2 = vld [vmem:[#allocation8 + $0x16d0] sm:$0xff]  ;;  %v12622_v58 = vcombine.high %v2434_v62, %v2438_v63  ;;  %v12621_v28 = vcombine.low %v2434_v62, %v2438_v63 }
 0x3fb   : > { %8811 = vmatpush1.bf16.msra.mxu0 %v12533_v35  ;;  %v2566_v15 = vld [vmem:[#allocation8 + $0x16f0] sm:$0xff] }
 0x3fc   : > { %8852 = vmatpush1.bf16.msra.mxu1 %v12661_v12  ;;  %8812 = vmatprep.subr.bf16.mxu0 %v12654_v17  ;;  %v12750_v35 = vcombine.high %v2562_v2, %v2566_v15  ;;  %v2426_v12 = vld [vmem:[#allocation8 + $0x1290] sm:$0xff]  ;;  %v12749_v31 = vcombine.low %v2562_v2, %v2566_v15 }
 0x3fd   : > { %8853 = vmatprep.subr.bf16.mxu1 %v12782_v8  ;;  %v2430_v17 = vld [vmem:[#allocation8 + $0x12b0] sm:$0xff] }
 0x3fe   : > { %v2554_v8 = vld [vmem:[#allocation8 + $0x1690] sm:$0xff]  ;;  %v12614_v36 = vcombine.high %v2426_v12, %v2430_v17  ;;  %v12613_v40 = vcombine.low %v2426_v12, %v2430_v17 }
 0x3ff   : > { %8813 = vmatpush2.bf16.msra.mxu0 %v12653_v37  ;;  %v2558_v19 = vld [vmem:[#allocation8 + $0x16b0] sm:$0xff] }
 0x400   : > { %8854 = vmatpush2.bf16.msra.mxu1 %v12781_v46  ;;  %8814 = vmatprep.subr.bf16.mxu0 %v12646_v38  ;;  %v12742_v37 = vcombine.high %v2554_v8, %v2558_v19  ;;  %v2418_v46 = vld [vmem:[#allocation8 + $0x1250] sm:$0xff]  ;;  %v12741_v42 = vcombine.low %v2554_v8, %v2558_v19 }
 0x401   : > { %8855 = vmatprep.subr.bf16.mxu1 %v12774_v44  ;;  %v2422_v38 = vld [vmem:[#allocation8 + $0x1270] sm:$0xff] }
 0x402   : > { %v2546_v44 = vld [vmem:[#allocation8 + $0x1650] sm:$0xff]  ;;  %v12606_v16 = vcombine.high %v2418_v46, %v2422_v38  ;;  %v12605_v50 = vcombine.low %v2418_v46, %v2422_v38 }
 0x403   : > { %8815 = vmatpush2.bf16.msra.mxu0 %v12645_v18  ;;  %v2550_v11 = vld [vmem:[#allocation8 + $0x1670] sm:$0xff] }
 0x404   : > { %8856 = vmatpush2.bf16.msra.mxu1 %v12773_v47  ;;  %8816 = vmatprep.subr.bf16.mxu0 %v12638_v48  ;;  %v12734_v18 = vcombine.high %v2546_v44, %v2550_v11  ;;  %v2410_v47 = vld [vmem:[#allocation8 + $0x1210] sm:$0xff]  ;;  %v12733_v21 = vcombine.low %v2546_v44, %v2550_v11 }
 0x405   : > { %8857 = vmatprep.subr.bf16.mxu1 %v12766_v34  ;;  %v2414_v48 = vld [vmem:[#allocation8 + $0x1230] sm:$0xff] }
 0x406   : > { %v2538_v34 = vld [vmem:[#allocation8 + $0x1610] sm:$0xff]  ;;  %v12598_v41 = vcombine.high %v2410_v47, %v2414_v48  ;;  %v12597_v63 = vcombine.low %v2410_v47, %v2414_v48 }
 0x407   : > { %8817 = vmatpush2.bf16.msra.mxu0 %v12637_v53  ;;  %v2542_v51 = vld [vmem:[#allocation8 + $0x1630] sm:$0xff] }
 0x408   : > { %8858 = vmatpush2.bf16.msra.mxu1 %v12765_v55  ;;  %8818 = vmatprep.subr.bf16.mxu0 %v12630_v39  ;;  %v12726_v53 = vcombine.high %v2538_v34, %v2542_v51  ;;  %v2658_v55 = vld [vmem:[#allocation8 + $0x19d0] sm:$0xff]  ;;  %v12725_v2 = vcombine.low %v2538_v34, %v2542_v51 }
 0x409   : > { %8859 = vmatprep.subr.bf16.mxu1 %v12758_v60  ;;  %v2662_v39 = vld [vmem:[#allocation8 + $0x19f0] sm:$0xff] }
 0x40a   : > { %v2786_v60 = vld [vmem:[#allocation8 + $0x1dd0] sm:$0xff]  ;;  %v12846_v15 = vcombine.high %v2658_v55, %v2662_v39 }
 0x40b   : > { %8819 = vmatpush2.bf16.msra.mxu0 %v12629_v13  ;;  %v2790_v62 = vld [vmem:[#allocation8 + $0x1df0] sm:$0xff] }
 0x40c   : > { %8860 = vmatpush2.bf16.msra.mxu1 %v12757_v10  ;;  %8820 = vmatprep.subr.bf16.mxu0 %v12622_v58  ;;  %v12974_v13 = vcombine.high %v2786_v60, %v2790_v62  ;;  %v2650_v10 = vld [vmem:[#allocation8 + $0x1990] sm:$0xff]  ;;  %v12973_v8 = vcombine.low %v2786_v60, %v2790_v62 }
 0x40d   : > { %8861 = vmatprep.subr.bf16.mxu1 %v12750_v35  ;;  %v2654_v58 = vld [vmem:[#allocation8 + $0x19b0] sm:$0xff]  ;;  %v12845_v35 = vcombine.low %v2658_v55, %v2662_v39 }
 0x40e   : > { %v2778_v12 = vld [vmem:[#allocation8 + $0x1d90] sm:$0xff]  ;;  %v12838_v19 = vcombine.high %v2650_v10, %v2654_v58 }
 0x40f   : > { %8821 = vmatpush2.bf16.msra.mxu0 %v12621_v28  ;;  %v2782_v17 = vld [vmem:[#allocation8 + $0x1db0] sm:$0xff] }
 0x410   : > { %8862 = vmatpush2.bf16.msra.mxu1 %v12749_v31  ;;  %8822 = vmatprep.subr.bf16.mxu0 %v12614_v36  ;;  %v2642_v28 = vld [vmem:[#allocation8 + $0x1950] sm:$0xff] }
 0x411   : > { %8863 = vmatprep.subr.bf16.mxu1 %v12742_v37  ;;  %v2646_v31 = vld [vmem:[#allocation8 + $0x1970] sm:$0xff]  ;;  %v12966_v37 = vcombine.high %v2778_v12, %v2782_v17 }
 0x412   : > { %v2770_v46 = vld [vmem:[#allocation8 + $0x1d50] sm:$0xff]  ;;  %v12829_v60 = vcombine.low %v2642_v28, %v2646_v31 }
 0x413   : > { %8823 = vmatpush2.bf16.msra.mxu0 %v12613_v40  ;;  %v2774_v38 = vld [vmem:[#allocation8 + $0x1d70] sm:$0xff]  ;;  %v12837_v40 = vcombine.low %v2650_v10, %v2654_v58 }
 0x414   : > { %8864 = vmatpush2.bf16.msra.mxu1 %v12741_v42  ;;  %8824 = vmatprep.subr.bf16.mxu0 %v12606_v16  ;;  %v12965_v16 = vcombine.low %v2778_v12, %v2782_v17  ;;  %v2634_v51 = vld [vmem:[#allocation8 + $0x1910] sm:$0xff] }
 0x415   : > { %8865 = vmatprep.subr.bf16.mxu1 %v12734_v18  ;;  %v12830_v18 = vcombine.high %v2642_v28, %v2646_v31  ;;  %v2630_v10 = vld [vmem:[#allocation8 + $0x18f0] sm:$0xff] }
 0x416   : > { %v2754_v58 = vld [vmem:[#allocation8 + $0x1cd0] sm:$0xff] }
 0x417   : > { %8825 = vmatpush2.bf16.msra.mxu0 %v12605_v50  ;;  %v2638_v50 = vld [vmem:[#allocation8 + $0x1930] sm:$0xff] }
 0x418   : > { %8866 = vmatpush2.bf16.msra.mxu1 %v12733_v21  ;;  %8826 = vmatprep.subr.bf16.mxu0 %v12598_v41  ;;  %v2762_v41 = vld [vmem:[#allocation8 + $0x1d10] sm:$0xff]  ;;  %v12821_v12 = vcombine.low %v2634_v51, %v2638_v50 }
 0x419   : > { %8867 = vmatprep.subr.bf16.mxu1 %v12726_v53  ;;  %v2766_v53 = vld [vmem:[#allocation8 + $0x1d30] sm:$0xff] }
 0x41a   : > { %v12949_v17 = vcombine.low %v2762_v41, %v2766_v53  ;;  %v2618_v28 = vld [vmem:[#allocation8 + $0x1890] sm:$0xff] }
 0x41b   : > { %8827 = vmatpush2.bf16.msra.mxu0 %v12597_v63  ;;  %v12957_v63 = vcombine.low %v2770_v46, %v2774_v38  ;;  %v2622_v31 = vld [vmem:[#allocation8 + $0x18b0] sm:$0xff] }
 0x41c   : > { %8868 = vmatpush2.bf16.msra.mxu1 %v12725_v2  ;;  %8878 = vmatprep.subr.bf16.mxu0 %v12846_v15  ;;  %v12822_v2 = vcombine.high %v2634_v51, %v2638_v50  ;;  %v12950_v15 = vcombine.high %v2762_v41, %v2766_v53  ;;  %v2602_v50 = vld [vmem:[#allocation8 + $0x1810] sm:$0xff] }
 0x41d   : > { %8919 = vmatprep.subr.bf16.mxu1 %v12974_v13  ;;  %v2626_v13 = vld [vmem:[#allocation8 + $0x18d0] sm:$0xff] }
 0x41e   : > { %v8584_v36 = vpop.f32.mrf.mxu0  ;;  %8829 = vmatmul.mubr.bf16.vlgmr.msra.gmra.mxu0 %v14691_v25  ;;  %v2730_v41 = vld [vmem:[#allocation8 + $0x1c10] sm:$0xff] }
 0x41f   : > { %v8585_v44 = vadd.f32 %v8584_v36, %v14771_v54  ;;  %v8625_v11 = vpop.f32.mrf.mxu1  ;;  %8870 = vmatmul.mubr.bf16.vlgmr.msra.gmra.mxu1 %v14693_v26  ;;  %8879 = vmatpush1.bf16.msra.mxu0 %v12845_v35  ;;  %v12958_v54 = vcombine.high %v2770_v46, %v2774_v38  ;;  %v2758_v35 = vld [vmem:[#allocation8 + $0x1cf0] sm:$0xff]  ;;  %v12813_v46 = vcombine.low %v2626_v13, %v2630_v10 }
 0x420   : > { %8910 = vmatprep.mubr.bf16.mxu0 %v14695_v27  ;;  %8920 = vmatpush1.bf16.msra.mxu1 %v12973_v8  ;;  %v8586_v42 = vpop.f32.mrf.mxu0  ;;  %v12814_v8 = vcombine.high %v2626_v13, %v2630_v10  ;;  %v2746_v36 = vld [vmem:[#allocation8 + $0x1c90] sm:$0xff]  ;;  %v12941_v38 = vcombine.low %v2754_v58, %v2758_v35 }
 0x421   : > { %v14781_v47 = vadd.f32 %v8625_v11, %v8585_v44  ;;  %8951 = vmatprep.mubr.bf16.mxu1 %v14697_v33  ;;  %v8587_v48 = vadd.f32 %v8586_v42, %v14775_v56  ;;  %v8627_v34 = vpop.f32.mrf.mxu1  ;;  %8880 = vmatprep.subr.bf16.mxu0 %v12838_v19  ;;  %v12942_v19 = vcombine.high %v2754_v58, %v2758_v35  ;;  %v2614_v42 = vld [vmem:[#allocation8 + $0x1870] sm:$0xff] }
 0x422   : > { %v8588_v21 = vpop.f32.mrf.mxu0  ;;  %8921 = vmatprep.subr.bf16.mxu1 %v12966_v37  ;;  %v2750_v37 = vld [vmem:[#allocation8 + $0x1cb0] sm:$0xff]  ;;  %v12806_v44 = vcombine.high %v2618_v28, %v2622_v31 }
 0x423   : > { %v14785_v55 = vadd.f32 %v8627_v34, %v8587_v48  ;;  %v8629_v39 = vpop.f32.mrf.mxu1  ;;  %8881 = vmatpush1.bf16.msra.mxu0 %v12837_v40  ;;  %v12934_v11 = vcombine.high %v2746_v36, %v2750_v37  ;;  %v2610_v40 = vld [vmem:[#allocation8 + $0x1850] sm:$0xff]  ;;  %v12805_v48 = vcombine.low %v2618_v28, %v2622_v31  ;;  %v12933_v34 = vcombine.low %v2746_v36, %v2750_v37 }
 0x424   : > { %8922 = vmatpush1.bf16.msra.mxu1 %v12965_v16  ;;  %v8589_v62 = vpop.f32.mrf.mxu0  ;;  %8882 = vmatprep.subr.bf16.mxu0 %v12830_v18  ;;  %v2738_v16 = vld [vmem:[#allocation8 + $0x1c50] sm:$0xff]  ;;  %v12797_v39 = vcombine.low %v2610_v40, %v2614_v42 }
 0x425   : > { %v8630_v56 = vpop.f32.mrf.mxu1  ;;  %8923 = vmatprep.subr.bf16.mxu1 %v12958_v54  ;;  %v2742_v18 = vld [vmem:[#allocation8 + $0x1c70] sm:$0xff]  ;;  %v12798_v54 = vcombine.high %v2610_v40, %v2614_v42 }
 0x426   : > { %v12926_v51 = vcombine.high %v2738_v16, %v2742_v18  ;;  %v2606_v21 = vld [vmem:[#allocation8 + $0x1830] sm:$0xff] }
 0x427   : > { %8883 = vmatpush1.bf16.msra.mxu0 %v12829_v60  ;;  %v2734_v53 = vld [vmem:[#allocation8 + $0x1c30] sm:$0xff]  ;;  %v12925_v60 = vcombine.low %v2738_v16, %v2742_v18  ;;  %v12790_v62 = vcombine.high %v2602_v50, %v2606_v21  ;;  %v12789_v10 = vcombine.low %v2602_v50, %v2606_v21 }
 0x428   : > { %8924 = vmatpush1.bf16.msra.mxu1 %v12957_v63  ;;  %8884 = vmatprep.subr.bf16.mxu0 %v12822_v2  ;;  %v12918_v63 = vcombine.high %v2730_v41, %v2734_v53  ;;  %v2722_v2 = vld [vmem:[#allocation8 + $0x1bd0] sm:$0xff]  ;;  %v12917_v58 = vcombine.low %v2730_v41, %v2734_v53 }
 0x429   : > { %8925 = vmatprep.subr.bf16.mxu1 %v12950_v15  ;;  %v2726_v56 = vld [vmem:[#allocation8 + $0x1bf0] sm:$0xff] }
 0x42a   : > { %v2850_v15 = vld [vmem:[#allocation8 + $0x1fd0] sm:$0xff]  ;;  %v12910_v35 = vcombine.high %v2722_v2, %v2726_v56  ;;  %v12909_v31 = vcombine.low %v2722_v2, %v2726_v56 }
 0x42b   : > { %8885 = vmatpush1.bf16.msra.mxu0 %v12821_v12  ;;  %v2854_v13 = vld [vmem:[#allocation8 + $0x1ff0] sm:$0xff] }
 0x42c   : > { %8926 = vmatpush1.bf16.msra.mxu1 %v12949_v17  ;;  %8886 = vmatprep.subr.bf16.mxu0 %v12814_v8  ;;  %v13038_v12 = vcombine.high %v2850_v15, %v2854_v13  ;;  %v2714_v17 = vld [vmem:[#allocation8 + $0x1b90] sm:$0xff]  ;;  %v13037_v36 = vcombine.low %v2850_v15, %v2854_v13 }
 0x42d   : > { %8927 = vmatprep.subr.bf16.mxu1 %v12942_v19  ;;  %v2718_v8 = vld [vmem:[#allocation8 + $0x1bb0] sm:$0xff] }
 0x42e   : > { %v2842_v19 = vld [vmem:[#allocation8 + $0x1f90] sm:$0xff]  ;;  %v12902_v37 = vcombine.high %v2714_v17, %v2718_v8  ;;  %v12901_v42 = vcombine.low %v2714_v17, %v2718_v8 }
 0x42f   : > { %8887 = vmatpush1.bf16.msra.mxu0 %v12813_v46  ;;  %v2846_v28 = vld [vmem:[#allocation8 + $0x1fb0] sm:$0xff] }
 0x430   : > { %8928 = vmatpush1.bf16.msra.mxu1 %v12941_v38  ;;  %8888 = vmatprep.subr.bf16.mxu0 %v12806_v44  ;;  %v13030_v46 = vcombine.high %v2842_v19, %v2846_v28  ;;  %v2706_v38 = vld [vmem:[#allocation8 + $0x1b50] sm:$0xff]  ;;  %v13029_v16 = vcombine.low %v2842_v19, %v2846_v28 }
 0x431   : > { %8929 = vmatprep.subr.bf16.mxu1 %v12934_v11  ;;  %v2710_v44 = vld [vmem:[#allocation8 + $0x1b70] sm:$0xff] }
 0x432   : > { %v2834_v11 = vld [vmem:[#allocation8 + $0x1f50] sm:$0xff]  ;;  %v12894_v18 = vcombine.high %v2706_v38, %v2710_v44  ;;  %v12893_v21 = vcombine.low %v2706_v38, %v2710_v44 }
 0x433   : > { %8889 = vmatpush1.bf16.msra.mxu0 %v12805_v48  ;;  %v2838_v40 = vld [vmem:[#allocation8 + $0x1f70] sm:$0xff] }
 0x434   : > { %8930 = vmatpush1.bf16.msra.mxu1 %v12933_v34  ;;  %8890 = vmatprep.subr.bf16.mxu0 %v12798_v54  ;;  %v13022_v48 = vcombine.high %v2834_v11, %v2838_v40  ;;  %v2698_v34 = vld [vmem:[#allocation8 + $0x1b10] sm:$0xff]  ;;  %v13021_v41 = vcombine.low %v2834_v11, %v2838_v40 }
 0x435   : > { %8931 = vmatprep.subr.bf16.mxu1 %v12926_v51  ;;  %v2702_v54 = vld [vmem:[#allocation8 + $0x1b30] sm:$0xff] }
 0x436   : > { %v2826_v51 = vld [vmem:[#allocation8 + $0x1f10] sm:$0xff]  ;;  %v12886_v53 = vcombine.high %v2698_v34, %v2702_v54  ;;  %v12885_v56 = vcombine.low %v2698_v34, %v2702_v54 }
 0x437   : > { %8891 = vmatpush1.bf16.msra.mxu0 %v12797_v39  ;;  %v2830_v50 = vld [vmem:[#allocation8 + $0x1f30] sm:$0xff] }
 0x438   : > { %8932 = vmatpush1.bf16.msra.mxu1 %v12925_v60  ;;  %8892 = vmatprep.subr.bf16.mxu0 %v12790_v62  ;;  %v13014_v39 = vcombine.high %v2826_v51, %v2830_v50  ;;  %v2690_v60 = vld [vmem:[#allocation8 + $0x1ad0] sm:$0xff]  ;;  %v13013_v15 = vcombine.low %v2826_v51, %v2830_v50 }
 0x439   : > { %8933 = vmatprep.subr.bf16.mxu1 %v12918_v63  ;;  %v2694_v62 = vld [vmem:[#allocation8 + $0x1af0] sm:$0xff] }
 0x43a   : > { %v2818_v63 = vld [vmem:[#allocation8 + $0x1ed0] sm:$0xff]  ;;  %v12878_v13 = vcombine.high %v2690_v60, %v2694_v62  ;;  %v12877_v8 = vcombine.low %v2690_v60, %v2694_v62  ;;  %v2023_v60 = vld [vmem:[#allocation8 + $0x5f8] sm:$0xff] }
 0x43b   : > { %8893 = vmatpush1.bf16.msra.mxu0 %v12789_v10  ;;  %v2822_v2 = vld [vmem:[#allocation8 + $0x1ef0] sm:$0xff] }
 0x43c   : > { %8934 = vmatpush1.bf16.msra.mxu1 %v12917_v58  ;;  %8894 = vmatprep.subr.bf16.mxu0 %v12910_v35  ;;  %v13006_v10 = vcombine.high %v2818_v63, %v2822_v2  ;;  %v2682_v58 = vld [vmem:[#allocation8 + $0x1a90] sm:$0xff]  ;;  %v13005_v19 = vcombine.low %v2818_v63, %v2822_v2 }
 0x43d   : > { %8935 = vmatprep.subr.bf16.mxu1 %v13038_v12  ;;  %v2686_v35 = vld [vmem:[#allocation8 + $0x1ab0] sm:$0xff] }
 0x43e   : > { %v2810_v12 = vld [vmem:[#allocation8 + $0x1e90] sm:$0xff]  ;;  %v12870_v28 = vcombine.high %v2682_v58, %v2686_v35  ;;  %v12869_v44 = vcombine.low %v2682_v58, %v2686_v35  ;;  %v2011_v58 = vld [vmem:[#allocation8 + $0x598] sm:$0xff] }
 0x43f   : > { %8895 = vmatpush2.bf16.msra.mxu0 %v12909_v31  ;;  %v2814_v17 = vld [vmem:[#allocation8 + $0x1eb0] sm:$0xff]  ;;  %v2015_v35 = vld [vmem:[#allocation8 + $0x5b8] sm:$0xff] }
 0x440   : > { %8936 = vmatpush2.bf16.msra.mxu1 %v13037_v36  ;;  %8896 = vmatprep.subr.bf16.mxu0 %v12902_v37  ;;  %v12998_v31 = vcombine.high %v2810_v12, %v2814_v17  ;;  %v2674_v36 = vld [vmem:[#allocation8 + $0x1a50] sm:$0xff]  ;;  %v12997_v11 = vcombine.low %v2810_v12, %v2814_v17 }
 0x441   : > { %8937 = vmatprep.subr.bf16.mxu1 %v13030_v46  ;;  %v2678_v37 = vld [vmem:[#allocation8 + $0x1a70] sm:$0xff] }
 0x442   : > { %v2802_v46 = vld [vmem:[#allocation8 + $0x1e50] sm:$0xff]  ;;  %v12862_v40 = vcombine.high %v2674_v36, %v2678_v37  ;;  %v12861_v54 = vcombine.low %v2674_v36, %v2678_v37  ;;  %v2003_v36 = vld [vmem:[#allocation8 + $0x558] sm:$0xff] }
 0x443   : > { %8897 = vmatpush2.bf16.msra.mxu0 %v12901_v42  ;;  %v2806_v38 = vld [vmem:[#allocation8 + $0x1e70] sm:$0xff]  ;;  %v2007_v37 = vld [vmem:[#allocation8 + $0x578] sm:$0xff] }
 0x444   : > { %8938 = vmatpush2.bf16.msra.mxu1 %v13029_v16  ;;  %8898 = vmatprep.subr.bf16.mxu0 %v12894_v18  ;;  %v12990_v42 = vcombine.high %v2802_v46, %v2806_v38  ;;  %v2666_v16 = vld [vmem:[#allocation8 + $0x1a10] sm:$0xff]  ;;  %v12989_v51 = vcombine.low %v2802_v46, %v2806_v38 }
 0x445   : > { %8939 = vmatprep.subr.bf16.mxu1 %v13022_v48  ;;  %v2670_v18 = vld [vmem:[#allocation8 + $0x1a30] sm:$0xff] }
 0x446   : > { %v2794_v48 = vld [vmem:[#allocation8 + $0x1e10] sm:$0xff]  ;;  %v12854_v50 = vcombine.high %v2666_v16, %v2670_v18  ;;  %v12853_v62 = vcombine.low %v2666_v16, %v2670_v18  ;;  %v12192_v18 = vcombine.high %v2003_v36, %v2007_v37 }
 0x447   : > { %8899 = vmatpush2.bf16.msra.mxu0 %v12893_v21  ;;  %v2798_v34 = vld [vmem:[#allocation8 + $0x1e30] sm:$0xff] }
 0x448   : > { %8940 = vmatpush2.bf16.msra.mxu1 %v13021_v41  ;;  %8900 = vmatprep.subr.bf16.mxu0 %v12886_v53  ;;  %v12982_v21 = vcombine.high %v2794_v48, %v2798_v34  ;;  %v1891_v41 = vld [vmem:[#allocation8 + $0x1d8] sm:$0xff]  ;;  %v12981_v63 = vcombine.low %v2794_v48, %v2798_v34 }
 0x449   : > { %8941 = vmatprep.subr.bf16.mxu1 %v13014_v39  ;;  %v1895_v53 = vld [vmem:[#allocation8 + $0x1f8] sm:$0xff] }
 0x44a   : > { %v2019_v39 = vld [vmem:[#allocation8 + $0x5d8] sm:$0xff]  ;;  %v12080_v2 = vcombine.high %v1891_v41, %v1895_v53 }
 0x44b   : > { %8901 = vmatpush2.bf16.msra.mxu0 %v12885_v56  ;;  %v12208_v56 = vcombine.high %v2019_v39, %v2023_v60  ;;  %v12207_v12 = vcombine.low %v2019_v39, %v2023_v60  ;;  %v1867_v48 = vld [vmem:[#allocation8 + $0x118] sm:$0xff]  ;;  %v12191_v39 = vcombine.low %v2003_v36, %v2007_v37 }
 0x44c   : > { %8942 = vmatpush2.bf16.msra.mxu1 %v13013_v15  ;;  %8902 = vmatprep.subr.bf16.mxu0 %v12878_v13  ;;  %v1883_v15 = vld [vmem:[#allocation8 + $0x198] sm:$0xff] }
 0x44d   : > { %8943 = vmatprep.subr.bf16.mxu1 %v13006_v10  ;;  %v1887_v13 = vld [vmem:[#allocation8 + $0x1b8] sm:$0xff]  ;;  %v12079_v10 = vcombine.low %v1891_v41, %v1895_v53 }
 0x44e   : > { %v12072_v17 = vcombine.high %v1883_v15, %v1887_v13  ;;  %v12071_v38 = vcombine.low %v1883_v15, %v1887_v13  ;;  %v1871_v34 = vld [vmem:[#allocation8 + $0x138] sm:$0xff] }
 0x44f   : > { %8903 = vmatpush2.bf16.msra.mxu0 %v12877_v8  ;;  %v1875_v8 = vld [vmem:[#allocation8 + $0x158] sm:$0xff]  ;;  %v12056_v60 = vcombine.high %v1867_v48, %v1871_v34  ;;  %v12055_v13 = vcombine.low %v1867_v48, %v1871_v34 }
 0x450   : > { %8944 = vmatpush2.bf16.msra.mxu1 %v13005_v19  ;;  %8904 = vmatprep.subr.bf16.mxu0 %v12870_v28  ;;  %v1879_v19 = vld [vmem:[#allocation8 + $0x178] sm:$0xff] }
 0x451   : > { %8945 = vmatprep.subr.bf16.mxu1 %v12998_v31  ;;  %v12200_v31 = vcombine.high %v2011_v58, %v2015_v35  ;;  %v1991_v15 = vld [vmem:[#allocation8 + $0x4f8] sm:$0xff] }
 0x452   : > { %v1835_v34 = vld [vmem:[#allocation8 + $0x18] sm:$0xff] }
 0x453   : > { %8905 = vmatpush2.bf16.msra.mxu0 %v12869_v44 }
 0x454   : > { %8946 = vmatpush2.bf16.msra.mxu1 %v12997_v11  ;;  %8906 = vmatprep.subr.bf16.mxu0 %v12862_v40  ;;  %v12199_v40 = vcombine.low %v2011_v58, %v2015_v35 }
 0x455   : > { %8947 = vmatprep.subr.bf16.mxu1 %v12990_v42  ;;  %v12064_v42 = vcombine.high %v1875_v8, %v1879_v19 }
 0x457   : > { %8907 = vmatpush2.bf16.msra.mxu0 %v12861_v54 }
 0x458   : > { %8948 = vmatpush2.bf16.msra.mxu1 %v12989_v51  ;;  %8908 = vmatprep.subr.bf16.mxu0 %v12854_v50  ;;  %v1995_v50 = vld [vmem:[#allocation8 + $0x518] sm:$0xff] }
 0x459   : > { %8949 = vmatprep.subr.bf16.mxu1 %v12982_v21  ;;  %v1999_v21 = vld [vmem:[#allocation8 + $0x538] sm:$0xff] }
 0x45b   : > { %8909 = vmatpush2.bf16.msra.mxu0 %v12853_v62  ;;  %v12184_v62 = vcombine.high %v1995_v50, %v1999_v21 }
 0x45c   : > { %8950 = vmatpush2.bf16.msra.mxu1 %v12981_v63  ;;  %8960 = vmatprep.subr.bf16.mxu0 %v12080_v2  ;;  %v1859_v63 = vld [vmem:[#allocation8 + $0xd8] sm:$0xff] }
 0x45d   : > { %9001 = vmatprep.subr.bf16.mxu1 %v12208_v56  ;;  %v1863_v2 = vld [vmem:[#allocation8 + $0xf8] sm:$0xff] }
 0x45e   : > { %v8666_v28 = vpop.f32.mrf.mxu0  ;;  %8911 = vmatmul.mubr.bf16.vlgmr.msra.gmra.mxu0 %v14706_v43  ;;  %v1987_v56 = vld [vmem:[#allocation8 + $0x4d8] sm:$0xff]  ;;  %v12048_v58 = vcombine.high %v1859_v63, %v1863_v2 }
 0x45f   : > { %v8707_v46 = vpop.f32.mrf.mxu1  ;;  %8952 = vmatmul.mubr.bf16.vlgmr.msra.gmra.mxu1 %v14709_v45  ;;  %8961 = vmatpush1.bf16.msra.mxu0 %v12079_v10  ;;  %v12183_v10 = vcombine.low %v1995_v50, %v1999_v21  ;;  %v12176_v35 = vcombine.high %v1987_v56, %v1991_v15  ;;  %v1963_v50 = vld [vmem:[#allocation8 + $0x418] sm:$0xff] }
 0x460   : > { %v14789_v44 = vadd.f32 %v8707_v46, %v8666_v28  ;;  %8992 = vmatprep.mubr.bf16.mxu0 %v14579_v1  ;;  %9002 = vmatpush1.bf16.msra.mxu1 %v12207_v12  ;;  %v8668_v11 = vpop.f32.mrf.mxu0  ;;  %v12063_v1 = vcombine.low %v1875_v8, %v1879_v19  ;;  %v1851_v12 = vld [vmem:[#allocation8 + $0x98] sm:$0xff]  ;;  %v12047_v28 = vcombine.low %v1859_v63, %v1863_v2 }
 0x461   : > { %9033 = vmatprep.mubr.bf16.mxu1 %v14585_v4  ;;  %v8709_v16 = vpop.f32.mrf.mxu1  ;;  %8962 = vmatprep.subr.bf16.mxu0 %v12072_v17  ;;  %v1855_v17 = vld [vmem:[#allocation8 + $0xb8] sm:$0xff] }
 0x462   : > { %v14793_v54 = vadd.f32 %v8709_v16, %v8668_v11  ;;  %v8670_v51 = vpop.f32.mrf.mxu0  ;;  %9003 = vmatprep.subr.bf16.mxu1 %v12200_v31  ;;  %v1979_v8 = vld [vmem:[#allocation8 + $0x498] sm:$0xff]  ;;  %v12175_v31 = vcombine.low %v1987_v56, %v1991_v15  ;;  %v12040_v36 = vcombine.high %v1851_v12, %v1855_v17 }
 0x463   : > { %v8711_v41 = vpop.f32.mrf.mxu1  ;;  %8963 = vmatpush1.bf16.msra.mxu0 %v12071_v38  ;;  %v1983_v19 = vld [vmem:[#allocation8 + $0x4b8] sm:$0xff] }
 0x464   : > { %9004 = vmatpush1.bf16.msra.mxu1 %v12199_v40  ;;  %v8671_v53 = vpop.f32.mrf.mxu0  ;;  %8964 = vmatprep.subr.bf16.mxu0 %v12064_v42  ;;  %v12168_v37 = vcombine.high %v1979_v8, %v1983_v19  ;;  %v1843_v46 = vld [vmem:[#allocation8 + $0x58] sm:$0xff]  ;;  %v12039_v42 = vcombine.low %v1851_v12, %v1855_v17  ;;  %v12167_v16 = vcombine.low %v1979_v8, %v1983_v19 }
 0x465   : > { %v8712_v4 = vpop.f32.mrf.mxu1  ;;  %9005 = vmatprep.subr.bf16.mxu1 %v12192_v18  ;;  %v1847_v38 = vld [vmem:[#allocation8 + $0x78] sm:$0xff] }
 0x466   : > { %v1971_v11 = vld [vmem:[#allocation8 + $0x458] sm:$0xff]  ;;  %v12032_v18 = vcombine.high %v1843_v46, %v1847_v38  ;;  %v12031_v41 = vcombine.low %v1843_v46, %v1847_v38 }
 0x467   : > { %8965 = vmatpush1.bf16.msra.mxu0 %v12063_v1  ;;  %v1975_v40 = vld [vmem:[#allocation8 + $0x478] sm:$0xff] }
 0x468   : > { %9006 = vmatpush1.bf16.msra.mxu1 %v12191_v39  ;;  %8966 = vmatprep.subr.bf16.mxu0 %v12056_v60  ;;  %v12160_v48 = vcombine.high %v1971_v11, %v1975_v40  ;;  %v1839_v51 = vld [vmem:[#allocation8 + $0x38] sm:$0xff]  ;;  %v12159_v1 = vcombine.low %v1971_v11, %v1975_v40 }
 0x469   : > { %9007 = vmatprep.subr.bf16.mxu1 %v12184_v62  ;;  %v1967_v21 = vld [vmem:[#allocation8 + $0x438] sm:$0xff]  ;;  %v12024_v53 = vcombine.high %v1835_v34, %v1839_v51  ;;  %v12023_v2 = vcombine.low %v1835_v34, %v1839_v51 }
 0x46a   : > { %v12152_v39 = vcombine.high %v1963_v50, %v1967_v21  ;;  %v1955_v60 = vld [vmem:[#allocation8 + $0x3d8] sm:$0xff]  ;;  %v12151_v56 = vcombine.low %v1963_v50, %v1967_v21 }
 0x46b   : > { %8967 = vmatpush1.bf16.msra.mxu0 %v12055_v13  ;;  %v1959_v4 = vld [vmem:[#allocation8 + $0x3f8] sm:$0xff] }
 0x46c   : > { %9008 = vmatpush1.bf16.msra.mxu1 %v12183_v10  ;;  %8968 = vmatprep.subr.bf16.mxu0 %v12048_v58  ;;  %v2083_v62 = vld [vmem:[#allocation8 + $0x7d8] sm:$0xff]  ;;  %v12144_v15 = vcombine.high %v1955_v60, %v1959_v4  ;;  %v12143_v17 = vcombine.low %v1955_v60, %v1959_v4 }
 0x46d   : > { %9009 = vmatprep.subr.bf16.mxu1 %v12176_v35  ;;  %v2087_v63 = vld [vmem:[#allocation8 + $0x7f8] sm:$0xff] }
 0x46e   : > { %v12272_v13 = vcombine.high %v2083_v62, %v2087_v63  ;;  %v1947_v10 = vld [vmem:[#allocation8 + $0x398] sm:$0xff]  ;;  %v12271_v8 = vcombine.low %v2083_v62, %v2087_v63 }
 0x46f   : > { %8969 = vmatpush1.bf16.msra.mxu0 %v12047_v28  ;;  %v1951_v58 = vld [vmem:[#allocation8 + $0x3b8] sm:$0xff] }
 0x470   : > { %9010 = vmatpush1.bf16.msra.mxu1 %v12175_v31  ;;  %8970 = vmatprep.subr.bf16.mxu0 %v12040_v36  ;;  %v2075_v35 = vld [vmem:[#allocation8 + $0x798] sm:$0xff]  ;;  %v12136_v19 = vcombine.high %v1947_v10, %v1951_v58  ;;  %v12135_v38 = vcombine.low %v1947_v10, %v1951_v58 }
 0x471   : > { %9011 = vmatprep.subr.bf16.mxu1 %v12168_v37  ;;  %v2079_v12 = vld [vmem:[#allocation8 + $0x7b8] sm:$0xff] }
 0x472   : > { %v12264_v28 = vcombine.high %v2075_v35, %v2079_v12  ;;  %v1939_v31 = vld [vmem:[#allocation8 + $0x358] sm:$0xff]  ;;  %v12263_v11 = vcombine.low %v2075_v35, %v2079_v12 }
 0x473   : > { %8971 = vmatpush1.bf16.msra.mxu0 %v12039_v42  ;;  %v1943_v36 = vld [vmem:[#allocation8 + $0x378] sm:$0xff] }
 0x474   : > { %9012 = vmatpush1.bf16.msra.mxu1 %v12167_v16  ;;  %8972 = vmatprep.subr.bf16.mxu0 %v12032_v18  ;;  %v2067_v37 = vld [vmem:[#allocation8 + $0x758] sm:$0xff]  ;;  %v12128_v40 = vcombine.high %v1939_v31, %v1943_v36  ;;  %v12127_v51 = vcombine.low %v1939_v31, %v1943_v36 }
 0x475   : > { %9013 = vmatprep.subr.bf16.mxu1 %v12160_v48  ;;  %v2071_v46 = vld [vmem:[#allocation8 + $0x778] sm:$0xff] }
 0x476   : > { %v12256_v42 = vcombine.high %v2067_v37, %v2071_v46  ;;  %v1931_v16 = vld [vmem:[#allocation8 + $0x318] sm:$0xff]  ;;  %v12255_v50 = vcombine.low %v2067_v37, %v2071_v46 }
 0x477   : > { %8973 = vmatpush1.bf16.msra.mxu0 %v12031_v41  ;;  %v1935_v18 = vld [vmem:[#allocation8 + $0x338] sm:$0xff] }
 0x478   : > { %9014 = vmatpush1.bf16.msra.mxu1 %v12159_v1  ;;  %8974 = vmatprep.subr.bf16.mxu0 %v12024_v53  ;;  %v2059_v48 = vld [vmem:[#allocation8 + $0x718] sm:$0xff]  ;;  %v12120_v21 = vcombine.high %v1931_v16, %v1935_v18  ;;  %v12119_v4 = vcombine.low %v1931_v16, %v1935_v18 }
 0x479   : > { %9015 = vmatprep.subr.bf16.mxu1 %v12152_v39  ;;  %v2063_v34 = vld [vmem:[#allocation8 + $0x738] sm:$0xff] }
 0x47a   : > { %v12248_v41 = vcombine.high %v2059_v48, %v2063_v34  ;;  %v1923_v1 = vld [vmem:[#allocation8 + $0x2d8] sm:$0xff]  ;;  %v12247_v62 = vcombine.low %v2059_v48, %v2063_v34 }
 0x47b   : > { %8975 = vmatpush1.bf16.msra.mxu0 %v12023_v2  ;;  %v1927_v53 = vld [vmem:[#allocation8 + $0x2f8] sm:$0xff] }
 0x47c   : > { %9016 = vmatpush1.bf16.msra.mxu1 %v12151_v56  ;;  %8976 = vmatprep.subr.bf16.mxu0 %v12144_v15  ;;  %v2051_v39 = vld [vmem:[#allocation8 + $0x6d8] sm:$0xff]  ;;  %v12112_v63 = vcombine.high %v1923_v1, %v1927_v53  ;;  %v12111_v58 = vcombine.low %v1923_v1, %v1927_v53 }
 0x47d   : > { %9017 = vmatprep.subr.bf16.mxu1 %v12272_v13  ;;  %v2055_v60 = vld [vmem:[#allocation8 + $0x6f8] sm:$0xff] }
 0x47e   : > { %v12240_v2 = vcombine.high %v2051_v39, %v2055_v60  ;;  %v1915_v56 = vld [vmem:[#allocation8 + $0x298] sm:$0xff]  ;;  %v12239_v35 = vcombine.low %v2051_v39, %v2055_v60 }
 0x47f   : > { %8977 = vmatpush2.bf16.msra.mxu0 %v12143_v17  ;;  %v1919_v15 = vld [vmem:[#allocation8 + $0x2b8] sm:$0xff] }
 0x480   : > { %9018 = vmatpush2.bf16.msra.mxu1 %v12271_v8  ;;  %8978 = vmatprep.subr.bf16.mxu0 %v12136_v19  ;;  %v2043_v13 = vld [vmem:[#allocation8 + $0x698] sm:$0xff]  ;;  %v12104_v12 = vcombine.high %v1915_v56, %v1919_v15  ;;  %v12103_v36 = vcombine.low %v1915_v56, %v1919_v15 }
 0x481   : > { %9019 = vmatprep.subr.bf16.mxu1 %v12264_v28  ;;  %v2047_v10 = vld [vmem:[#allocation8 + $0x6b8] sm:$0xff] }
 0x482   : > { %v12232_v17 = vcombine.high %v2043_v13, %v2047_v10  ;;  %v1907_v8 = vld [vmem:[#allocation8 + $0x258] sm:$0xff]  ;;  %v12231_v37 = vcombine.low %v2043_v13, %v2047_v10 }
 0x483   : > { %8979 = vmatpush2.bf16.msra.mxu0 %v12135_v38  ;;  %v1911_v19 = vld [vmem:[#allocation8 + $0x278] sm:$0xff] }
 0x484   : > { %9020 = vmatpush2.bf16.msra.mxu1 %v12263_v11  ;;  %8980 = vmatprep.subr.bf16.mxu0 %v12128_v40  ;;  %v2035_v28 = vld [vmem:[#allocation8 + $0x658] sm:$0xff]  ;;  %v12096_v46 = vcombine.high %v1907_v8, %v1911_v19  ;;  %v12095_v18 = vcombine.low %v1907_v8, %v1911_v19 }
 0x485   : > { %9021 = vmatprep.subr.bf16.mxu1 %v12256_v42  ;;  %v2039_v31 = vld [vmem:[#allocation8 + $0x678] sm:$0xff] }
 0x486   : > { %v12224_v38 = vcombine.high %v2035_v28, %v2039_v31  ;;  %v1899_v11 = vld [vmem:[#allocation8 + $0x218] sm:$0xff]  ;;  %v12223_v48 = vcombine.low %v2035_v28, %v2039_v31 }
 0x487   : > { %8981 = vmatpush2.bf16.msra.mxu0 %v12127_v51  ;;  %v1903_v40 = vld [vmem:[#allocation8 + $0x238] sm:$0xff] }
 0x488   : > { %9022 = vmatpush2.bf16.msra.mxu1 %v12255_v50  ;;  %8982 = vmatprep.subr.bf16.mxu0 %v12120_v21  ;;  %v2027_v42 = vld [vmem:[#allocation8 + $0x618] sm:$0xff]  ;;  %v12088_v34 = vcombine.high %v1899_v11, %v1903_v40  ;;  %v12087_v53 = vcombine.low %v1899_v11, %v1903_v40 }
 0x489   : > { %9023 = vmatprep.subr.bf16.mxu1 %v12248_v41  ;;  %v2031_v16 = vld [vmem:[#allocation8 + $0x638] sm:$0xff] }
 0x48a   : > { %v12216_v51 = vcombine.high %v2027_v42, %v2031_v16  ;;  %v2147_v50 = vld [vmem:[#allocation8 + $0x9d8] sm:$0xff]  ;;  %v12215_v39 = vcombine.low %v2027_v42, %v2031_v16 }
 0x48b   : > { %8983 = vmatpush2.bf16.msra.mxu0 %v12119_v4  ;;  %v2151_v21 = vld [vmem:[#allocation8 + $0x9f8] sm:$0xff] }
 0x48c   : > { %9024 = vmatpush2.bf16.msra.mxu1 %v12247_v62  ;;  %8984 = vmatprep.subr.bf16.mxu0 %v12112_v63  ;;  %v2275_v41 = vld [vmem:[#allocation8 + $0xdd8] sm:$0xff]  ;;  %v12336_v60 = vcombine.high %v2147_v50, %v2151_v21 }
 0x48d   : > { %9025 = vmatprep.subr.bf16.mxu1 %v12240_v2  ;;  %v2279_v1 = vld [vmem:[#allocation8 + $0xdf8] sm:$0xff]  ;;  %v12335_v2 = vcombine.low %v2147_v50, %v2151_v21 }
 0x48e   : > { %v12464_v4 = vcombine.high %v2275_v41, %v2279_v1  ;;  %v2139_v62 = vld [vmem:[#allocation8 + $0x998] sm:$0xff]  ;;  %v12463_v13 = vcombine.low %v2275_v41, %v2279_v1 }
 0x48f   : > { %8985 = vmatpush2.bf16.msra.mxu0 %v12111_v58  ;;  %v2143_v63 = vld [vmem:[#allocation8 + $0x9b8] sm:$0xff] }
 0x490   : > { %9026 = vmatpush2.bf16.msra.mxu1 %v12239_v35  ;;  %8986 = vmatprep.subr.bf16.mxu0 %v12104_v12  ;;  %v2267_v56 = vld [vmem:[#allocation8 + $0xd98] sm:$0xff]  ;;  %v12328_v10 = vcombine.high %v2139_v62, %v2143_v63 }
 0x491   : > { %9027 = vmatprep.subr.bf16.mxu1 %v12232_v17  ;;  %v2271_v15 = vld [vmem:[#allocation8 + $0xdb8] sm:$0xff] }
 0x492   : > { %v2131_v58 = vld [vmem:[#allocation8 + $0x958] sm:$0xff]  ;;  %v12456_v17 = vcombine.high %v2267_v56, %v2271_v15 }
 0x493   : > { %8987 = vmatpush2.bf16.msra.mxu0 %v12103_v36  ;;  %v2135_v35 = vld [vmem:[#allocation8 + $0x978] sm:$0xff]  ;;  %v12327_v36 = vcombine.low %v2139_v62, %v2143_v63 }
 0x494   : > { %9028 = vmatpush2.bf16.msra.mxu1 %v12231_v37  ;;  %8988 = vmatprep.subr.bf16.mxu0 %v12096_v46  ;;  %v2259_v8 = vld [vmem:[#allocation8 + $0xd58] sm:$0xff]  ;;  %v12455_v46 = vcombine.low %v2267_v56, %v2271_v15 }
 0x495   : > { %9029 = vmatprep.subr.bf16.mxu1 %v12224_v38  ;;  %v2263_v19 = vld [vmem:[#allocation8 + $0xd78] sm:$0xff]  ;;  %v12320_v38 = vcombine.high %v2131_v58, %v2135_v35 }
 0x496   : > { %v2123_v42 = vld [vmem:[#allocation8 + $0x918] sm:$0xff] }
 0x497   : > { %8989 = vmatpush2.bf16.msra.mxu0 %v12095_v18  ;;  %v2127_v16 = vld [vmem:[#allocation8 + $0x938] sm:$0xff] }
 0x498   : > { %9030 = vmatpush2.bf16.msra.mxu1 %v12223_v48  ;;  %8990 = vmatprep.subr.bf16.mxu0 %v12088_v34  ;;  %v2251_v18 = vld [vmem:[#allocation8 + $0xd18] sm:$0xff]  ;;  %v12312_v21 = vcombine.high %v2123_v42, %v2127_v16 }
 0x499   : > { %9031 = vmatprep.subr.bf16.mxu1 %v12216_v51  ;;  %v2255_v48 = vld [vmem:[#allocation8 + $0xd38] sm:$0xff]  ;;  %v12319_v51 = vcombine.low %v2131_v58, %v2135_v35 }
 0x49a   : > { %v12440_v41 = vcombine.high %v2251_v18, %v2255_v48  ;;  %v2115_v1 = vld [vmem:[#allocation8 + $0x8d8] sm:$0xff]  ;;  %v12439_v62 = vcombine.low %v2251_v18, %v2255_v48 }
 0x49b   : > { %8991 = vmatpush2.bf16.msra.mxu0 %v12087_v53  ;;  %v2119_v53 = vld [vmem:[#allocation8 + $0x8f8] sm:$0xff] }
 0x49c   : > { %9032 = vmatpush2.bf16.msra.mxu1 %v12215_v39  ;;  %9042 = vmatprep.subr.bf16.mxu0 %v12336_v60  ;;  %v2243_v39 = vld [vmem:[#allocation8 + $0xcd8] sm:$0xff]  ;;  %v12304_v63 = vcombine.high %v2115_v1, %v2119_v53  ;;  %v12303_v58 = vcombine.low %v2115_v1, %v2119_v53 }
 0x49d   : > { %9083 = vmatprep.subr.bf16.mxu1 %v12464_v4  ;;  %v2247_v60 = vld [vmem:[#allocation8 + $0xcf8] sm:$0xff]  ;;  %v12311_v4 = vcombine.low %v2123_v42, %v2127_v16 }
 0x49e   : > { %v8748_v12 = vpop.f32.mrf.mxu0  ;;  %8993 = vmatmul.mubr.bf16.vlgmr.msra.gmra.mxu0 %v14583_v3  ;;  %v2107_v56 = vld [vmem:[#allocation8 + $0x898] sm:$0xff]  ;;  %v12431_v35 = vcombine.low %v2243_v39, %v2247_v60 }
 0x49f   : > { %v8749_v28 = vadd.f32 %v8748_v12, %v14789_v44  ;;  %v8789_v31 = vpop.f32.mrf.mxu1  ;;  %9034 = vmatmul.mubr.bf16.vlgmr.msra.gmra.mxu1 %v14589_v7  ;;  %9043 = vmatpush1.bf16.msra.mxu0 %v12335_v2  ;;  %v12448_v44 = vcombine.high %v2259_v8, %v2263_v19  ;;  %v12432_v2 = vcombine.high %v2243_v39, %v2247_v60  ;;  %v2111_v15 = vld [vmem:[#allocation8 + $0x8b8] sm:$0xff] }
 0x4a0   : > { %9074 = vmatprep.mubr.bf16.mxu0 %v14611_v49  ;;  %9084 = vmatpush1.bf16.msra.mxu1 %v12463_v13  ;;  %v8750_v37 = vpop.f32.mrf.mxu0  ;;  %v2235_v13 = vld [vmem:[#allocation8 + $0xc98] sm:$0xff]  ;;  %v12296_v12 = vcombine.high %v2107_v56, %v2111_v15 }
 0x4a1   : > { %v14799_v11 = vadd.f32 %v8789_v31, %v8749_v28  ;;  %9115 = vmatprep.mubr.bf16.mxu1 %v14613_v52  ;;  %v8751_v3 = vadd.f32 %v8750_v37, %v14793_v54  ;;  %v8791_v40 = vpop.f32.mrf.mxu1  ;;  %9044 = vmatprep.subr.bf16.mxu0 %v12328_v10  ;;  %v12447_v52 = vcombine.low %v2259_v8, %v2263_v19  ;;  %v2239_v10 = vld [vmem:[#allocation8 + $0xcb8] sm:$0xff] }
 0x4a2   : > { %v8752_v7 = vpop.f32.mrf.mxu0  ;;  %9085 = vmatprep.subr.bf16.mxu1 %v12456_v17  ;;  %v12424_v17 = vcombine.high %v2235_v13, %v2239_v10  ;;  %v2099_v8 = vld [vmem:[#allocation8 + $0x858] sm:$0xff]  ;;  %v12423_v37 = vcombine.low %v2235_v13, %v2239_v10 }
 0x4a3   : > { %v14803_v49 = vadd.f32 %v8791_v40, %v8751_v3  ;;  %v8793_v34 = vpop.f32.mrf.mxu1  ;;  %9045 = vmatpush1.bf16.msra.mxu0 %v12327_v36  ;;  %v2103_v19 = vld [vmem:[#allocation8 + $0x878] sm:$0xff]  ;;  %v12295_v36 = vcombine.low %v2107_v56, %v2111_v15 }
 0x4a4   : > { %9086 = vmatpush1.bf16.msra.mxu1 %v12455_v46  ;;  %v8753_v50 = vpop.f32.mrf.mxu0  ;;  %9046 = vmatprep.subr.bf16.mxu0 %v12320_v38  ;;  %v2227_v28 = vld [vmem:[#allocation8 + $0xc58] sm:$0xff]  ;;  %v12288_v46 = vcombine.high %v2099_v8, %v2103_v19  ;;  %v12287_v16 = vcombine.low %v2099_v8, %v2103_v19 }
 0x4a5   : > { %v8794_v54 = vpop.f32.mrf.mxu1  ;;  %9087 = vmatprep.subr.bf16.mxu1 %v12448_v44  ;;  %v2231_v31 = vld [vmem:[#allocation8 + $0xc78] sm:$0xff] }
 0x4a6   : > { %v12416_v38 = vcombine.high %v2227_v28, %v2231_v31  ;;  %v2091_v3 = vld [vmem:[#allocation8 + $0x818] sm:$0xff]  ;;  %v12415_v7 = vcombine.low %v2227_v28, %v2231_v31 }
 0x4a7   : > { %9047 = vmatpush1.bf16.msra.mxu0 %v12319_v51  ;;  %v2095_v40 = vld [vmem:[#allocation8 + $0x838] sm:$0xff] }
 0x4a8   : > { %9088 = vmatpush1.bf16.msra.mxu1 %v12447_v52  ;;  %9048 = vmatprep.subr.bf16.mxu0 %v12312_v21  ;;  %v2219_v44 = vld [vmem:[#allocation8 + $0xc18] sm:$0xff]  ;;  %v12280_v18 = vcombine.high %v2091_v3, %v2095_v40  ;;  %v12279_v21 = vcombine.low %v2091_v3, %v2095_v40 }
 0x4a9   : > { %9089 = vmatprep.subr.bf16.mxu1 %v12440_v41  ;;  %v2223_v42 = vld [vmem:[#allocation8 + $0xc38] sm:$0xff] }
 0x4aa   : > { %v12408_v48 = vcombine.high %v2219_v44, %v2223_v42  ;;  %v2211_v34 = vld [vmem:[#allocation8 + $0xbd8] sm:$0xff]  ;;  %v12407_v54 = vcombine.low %v2219_v44, %v2223_v42 }
 0x4ab   : > { %9049 = vmatpush1.bf16.msra.mxu0 %v12311_v4  ;;  %v2215_v51 = vld [vmem:[#allocation8 + $0xbf8] sm:$0xff] }
 0x4ac   : > { %9090 = vmatpush1.bf16.msra.mxu1 %v12439_v62  ;;  %9050 = vmatprep.subr.bf16.mxu0 %v12304_v63  ;;  %v2339_v50 = vld [vmem:[#allocation8 + $0xfd8] sm:$0xff]  ;;  %v12400_v41 = vcombine.high %v2211_v34, %v2215_v51  ;;  %v12399_v62 = vcombine.low %v2211_v34, %v2215_v51 }
 0x4ad   : > { %9091 = vmatprep.subr.bf16.mxu1 %v12432_v2  ;;  %v2343_v52 = vld [vmem:[#allocation8 + $0xff8] sm:$0xff] }
 0x4ae   : > { %v12528_v1 = vcombine.high %v2339_v50, %v2343_v52  ;;  %v2203_v53 = vld [vmem:[#allocation8 + $0xb98] sm:$0xff]  ;;  %v12527_v63 = vcombine.low %v2339_v50, %v2343_v52 }
 0x4af   : > { %9051 = vmatpush1.bf16.msra.mxu0 %v12303_v58  ;;  %v2207_v39 = vld [vmem:[#allocation8 + $0xbb8] sm:$0xff] }
 0x4b0   : > { %9092 = vmatpush1.bf16.msra.mxu1 %v12431_v35  ;;  %9052 = vmatprep.subr.bf16.mxu0 %v12296_v12  ;;  %v2331_v60 = vld [vmem:[#allocation8 + $0xf98] sm:$0xff]  ;;  %v12392_v2 = vcombine.high %v2203_v53, %v2207_v39  ;;  %v12391_v35 = vcombine.low %v2203_v53, %v2207_v39 }
 0x4b1   : > { %9093 = vmatprep.subr.bf16.mxu1 %v12424_v17  ;;  %v2335_v4 = vld [vmem:[#allocation8 + $0xfb8] sm:$0xff] }
 0x4b2   : > { %v12520_v56 = vcombine.high %v2331_v60, %v2335_v4  ;;  %v2195_v15 = vld [vmem:[#allocation8 + $0xb58] sm:$0xff]  ;;  %v12519_v12 = vcombine.low %v2331_v60, %v2335_v4 }
 0x4b3   : > { %9053 = vmatpush1.bf16.msra.mxu0 %v12295_v36  ;;  %v2199_v13 = vld [vmem:[#allocation8 + $0xb78] sm:$0xff] }
 0x4b4   : > { %9094 = vmatpush1.bf16.msra.mxu1 %v12423_v37  ;;  %9054 = vmatprep.subr.bf16.mxu0 %v12288_v46  ;;  %v2323_v10 = vld [vmem:[#allocation8 + $0xf58] sm:$0xff]  ;;  %v12384_v17 = vcombine.high %v2195_v15, %v2199_v13  ;;  %v12383_v37 = vcombine.low %v2195_v15, %v2199_v13 }
 0x4b5   : > { %9095 = vmatprep.subr.bf16.mxu1 %v12416_v38  ;;  %v2327_v58 = vld [vmem:[#allocation8 + $0xf78] sm:$0xff] }
 0x4b6   : > { %v12512_v8 = vcombine.high %v2323_v10, %v2327_v58  ;;  %v2187_v19 = vld [vmem:[#allocation8 + $0xb18] sm:$0xff]  ;;  %v12511_v46 = vcombine.low %v2323_v10, %v2327_v58 }
 0x4b7   : > { %9055 = vmatpush1.bf16.msra.mxu0 %v12287_v16  ;;  %v2191_v28 = vld [vmem:[#allocation8 + $0xb38] sm:$0xff] }
 0x4b8   : > { %9096 = vmatpush1.bf16.msra.mxu1 %v12415_v7  ;;  %9056 = vmatprep.subr.bf16.mxu0 %v12280_v18  ;;  %v2315_v31 = vld [vmem:[#allocation8 + $0xf18] sm:$0xff]  ;;  %v12376_v38 = vcombine.high %v2187_v19, %v2191_v28  ;;  %v12375_v7 = vcombine.low %v2187_v19, %v2191_v28 }
 0x4b9   : > { %9097 = vmatprep.subr.bf16.mxu1 %v12408_v48  ;;  %v2319_v36 = vld [vmem:[#allocation8 + $0xf38] sm:$0xff] }
 0x4ba   : > { %v12504_v3 = vcombine.high %v2315_v31, %v2319_v36  ;;  %v2179_v40 = vld [vmem:[#allocation8 + $0xad8] sm:$0xff]  ;;  %v12503_v18 = vcombine.low %v2315_v31, %v2319_v36 }
 0x4bb   : > { %9057 = vmatpush1.bf16.msra.mxu0 %v12279_v21  ;;  %v2183_v44 = vld [vmem:[#allocation8 + $0xaf8] sm:$0xff] }
 0x4bc   : > { %9098 = vmatpush1.bf16.msra.mxu1 %v12407_v54  ;;  %9058 = vmatprep.subr.bf16.mxu0 %v12400_v41  ;;  %v2307_v42 = vld [vmem:[#allocation8 + $0xed8] sm:$0xff]  ;;  %v12368_v48 = vcombine.high %v2179_v40, %v2183_v44  ;;  %v12367_v54 = vcombine.low %v2179_v40, %v2183_v44 }
 0x4bd   : > { %9099 = vmatprep.subr.bf16.mxu1 %v12528_v1  ;;  %v2311_v16 = vld [vmem:[#allocation8 + $0xef8] sm:$0xff] }
 0x4be   : > { %v12496_v34 = vcombine.high %v2307_v42, %v2311_v16  ;;  %v2171_v51 = vld [vmem:[#allocation8 + $0xa98] sm:$0xff]  ;;  %v12495_v41 = vcombine.low %v2307_v42, %v2311_v16 }
 0x4bf   : > { %9059 = vmatpush2.bf16.msra.mxu0 %v12399_v62  ;;  %v2175_v50 = vld [vmem:[#allocation8 + $0xab8] sm:$0xff] }
 0x4c0   : > { %9100 = vmatpush2.bf16.msra.mxu1 %v12527_v63  ;;  %9060 = vmatprep.subr.bf16.mxu0 %v12392_v2  ;;  %v2299_v52 = vld [vmem:[#allocation8 + $0xe98] sm:$0xff]  ;;  %v12360_v1 = vcombine.high %v2171_v51, %v2175_v50  ;;  %v12359_v63 = vcombine.low %v2171_v51, %v2175_v50 }
 0x4c1   : > { %9101 = vmatprep.subr.bf16.mxu1 %v12520_v56  ;;  %v2303_v21 = vld [vmem:[#allocation8 + $0xeb8] sm:$0xff] }
 0x4c2   : > { %v12488_v53 = vcombine.high %v2299_v52, %v2303_v21  ;;  %v2163_v39 = vld [vmem:[#allocation8 + $0xa58] sm:$0xff]  ;;  %v12487_v2 = vcombine.low %v2299_v52, %v2303_v21 }
 0x4c3   : > { %9061 = vmatpush2.bf16.msra.mxu0 %v12391_v35  ;;  %v2167_v60 = vld [vmem:[#allocation8 + $0xa78] sm:$0xff] }
 0x4c4   : > { %9102 = vmatpush2.bf16.msra.mxu1 %v12519_v12  ;;  %9062 = vmatprep.subr.bf16.mxu0 %v12384_v17  ;;  %v2291_v4 = vld [vmem:[#allocation8 + $0xe58] sm:$0xff]  ;;  %v12352_v56 = vcombine.high %v2163_v39, %v2167_v60  ;;  %v12351_v12 = vcombine.low %v2163_v39, %v2167_v60 }
 0x4c5   : > { %9103 = vmatprep.subr.bf16.mxu1 %v12512_v8  ;;  %v2295_v62 = vld [vmem:[#allocation8 + $0xe78] sm:$0xff] }
 0x4c6   : > { %v12480_v15 = vcombine.high %v2291_v4, %v2295_v62  ;;  %v2155_v13 = vld [vmem:[#allocation8 + $0xa18] sm:$0xff]  ;;  %v12479_v17 = vcombine.low %v2291_v4, %v2295_v62 }
 0x4c7   : > { %9063 = vmatpush2.bf16.msra.mxu0 %v12383_v37  ;;  %v2159_v10 = vld [vmem:[#allocation8 + $0xa38] sm:$0xff] }
 0x4c8   : > { %9104 = vmatpush2.bf16.msra.mxu1 %v12511_v46  ;;  %9064 = vmatprep.subr.bf16.mxu0 %v12376_v38  ;;  %v2283_v58 = vld [vmem:[#allocation8 + $0xe18] sm:$0xff]  ;;  %v12344_v8 = vcombine.high %v2155_v13, %v2159_v10  ;;  %v12343_v46 = vcombine.low %v2155_v13, %v2159_v10 }
 0x4c9   : > { %9105 = vmatprep.subr.bf16.mxu1 %v12504_v3  ;;  %v2287_v35 = vld [vmem:[#allocation8 + $0xe38] sm:$0xff] }
 0x4ca   : > { %v12472_v19 = vcombine.high %v2283_v58, %v2287_v35  ;;  %v2403_v28 = vld [vmem:[#allocation8 + $0x11d8] sm:$0xff]  ;;  %v12471_v38 = vcombine.low %v2283_v58, %v2287_v35 }
 0x4cb   : > { %9065 = vmatpush2.bf16.msra.mxu0 %v12375_v7  ;;  %v2407_v31 = vld [vmem:[#allocation8 + $0x11f8] sm:$0xff] }
 0x4cc   : > { %9106 = vmatpush2.bf16.msra.mxu1 %v12503_v18  ;;  %9066 = vmatprep.subr.bf16.mxu0 %v12368_v48  ;;  %v2531_v36 = vld [vmem:[#allocation8 + $0x15d8] sm:$0xff]  ;;  %v12592_v3 = vcombine.high %v2403_v28, %v2407_v31  ;;  %v12591_v16 = vcombine.low %v2403_v28, %v2407_v31 }
 0x4cd   : > { %9107 = vmatprep.subr.bf16.mxu1 %v12496_v34  ;;  %v2535_v37 = vld [vmem:[#allocation8 + $0x15f8] sm:$0xff] }
 0x4ce   : > { %v12720_v40 = vcombine.high %v2531_v36, %v2535_v37  ;;  %v2395_v44 = vld [vmem:[#allocation8 + $0x1198] sm:$0xff]  ;;  %v12719_v48 = vcombine.low %v2531_v36, %v2535_v37 }
 0x4cf   : > { %9067 = vmatpush2.bf16.msra.mxu0 %v12367_v54  ;;  %v2399_v42 = vld [vmem:[#allocation8 + $0x11b8] sm:$0xff] }
 0x4d0   : > { %9108 = vmatpush2.bf16.msra.mxu1 %v12495_v41  ;;  %9068 = vmatprep.subr.bf16.mxu0 %v12360_v1  ;;  %v2523_v7 = vld [vmem:[#allocation8 + $0x1598] sm:$0xff]  ;;  %v12584_v34 = vcombine.high %v2395_v44, %v2399_v42  ;;  %v12583_v39 = vcombine.low %v2395_v44, %v2399_v42 }
 0x4d1   : > { %9109 = vmatprep.subr.bf16.mxu1 %v12488_v53  ;;  %v2527_v18 = vld [vmem:[#allocation8 + $0x15b8] sm:$0xff] }
 0x4d2   : > { %v2387_v51 = vld [vmem:[#allocation8 + $0x1158] sm:$0xff]  ;;  %v12712_v21 = vcombine.high %v2523_v7, %v2527_v18  ;;  %v12711_v4 = vcombine.low %v2523_v7, %v2527_v18 }
 0x4d3   : > { %9069 = vmatpush2.bf16.msra.mxu0 %v12359_v63  ;;  %v2391_v50 = vld [vmem:[#allocation8 + $0x1178] sm:$0xff] }
 0x4d4   : > { %9110 = vmatpush2.bf16.msra.mxu1 %v12487_v2  ;;  %9070 = vmatprep.subr.bf16.mxu0 %v12352_v56  ;;  %v2515_v54 = vld [vmem:[#allocation8 + $0x1558] sm:$0xff]  ;;  %v12576_v62 = vcombine.high %v2387_v51, %v2391_v50  ;;  %v12575_v35 = vcombine.low %v2387_v51, %v2391_v50 }
 0x4d5   : > { %9111 = vmatprep.subr.bf16.mxu1 %v12480_v15  ;;  %v2519_v41 = vld [vmem:[#allocation8 + $0x1578] sm:$0xff] }
 0x4d6   : > { %v2379_v56 = vld [vmem:[#allocation8 + $0x1118] sm:$0xff] }
 0x4d7   : > { %9071 = vmatpush2.bf16.msra.mxu0 %v12351_v12  ;;  %v2383_v15 = vld [vmem:[#allocation8 + $0x1138] sm:$0xff] }
 0x4d8   : > { %9112 = vmatpush2.bf16.msra.mxu1 %v12479_v17  ;;  %9072 = vmatprep.subr.bf16.mxu0 %v12344_v8  ;;  %v2507_v13 = vld [vmem:[#allocation8 + $0x1518] sm:$0xff]  ;;  %v12568_v17 = vcombine.high %v2379_v56, %v2383_v15  ;;  %v12567_v37 = vcombine.low %v2379_v56, %v2383_v15 }
 0x4d9   : > { %9113 = vmatprep.subr.bf16.mxu1 %v12472_v19  ;;  %v2511_v10 = vld [vmem:[#allocation8 + $0x1538] sm:$0xff] }
 0x4da   : > { %v12696_v8 = vcombine.high %v2507_v13, %v2511_v10  ;;  %v2371_v19 = vld [vmem:[#allocation8 + $0x10d8] sm:$0xff] }
 0x4db   : > { %9073 = vmatpush2.bf16.msra.mxu0 %v12343_v46  ;;  %v2375_v28 = vld [vmem:[#allocation8 + $0x10f8] sm:$0xff]  ;;  %v12695_v46 = vcombine.low %v2507_v13, %v2511_v10 }
 0x4dc   : > { %9114 = vmatpush2.bf16.msra.mxu1 %v12471_v38  ;;  %9124 = vmatprep.subr.bf16.mxu0 %v12592_v3  ;;  %v2499_v31 = vld [vmem:[#allocation8 + $0x14d8] sm:$0xff]  ;;  %v12560_v38 = vcombine.high %v2371_v19, %v2375_v28  ;;  %v12559_v7 = vcombine.low %v2371_v19, %v2375_v28 }
 0x4dd   : > { %9165 = vmatprep.subr.bf16.mxu1 %v12720_v40  ;;  %v2503_v36 = vld [vmem:[#allocation8 + $0x14f8] sm:$0xff] }
 0x4de   : > { %v8830_v52 = vpop.f32.mrf.mxu0  ;;  %9075 = vmatmul.mubr.bf16.vlgmr.msra.gmra.mxu0 %v14645_v57  ;;  %v12688_v3 = vcombine.high %v2499_v31, %v2503_v36  ;;  %v2363_v40 = vld [vmem:[#allocation8 + $0x1098] sm:$0xff]  ;;  %v12687_v18 = vcombine.low %v2499_v31, %v2503_v36 }
 0x4df   : > { %v8831_v1 = vadd.f32 %v8830_v52, %v14799_v11  ;;  %v8871_v53 = vpop.f32.mrf.mxu1  ;;  %9116 = vmatmul.mubr.bf16.vlgmr.msra.gmra.mxu1 %v14647_v61  ;;  %9125 = vmatpush1.bf16.msra.mxu0 %v12591_v16  ;;  %v12704_v11 = vcombine.high %v2515_v54, %v2519_v41  ;;  %v2367_v44 = vld [vmem:[#allocation8 + $0x10b8] sm:$0xff] }
 0x4e0   : > { %9156 = vmatprep.mubr.bf16.mxu0 %v14649_v6  ;;  %9166 = vmatpush1.bf16.msra.mxu1 %v12719_v48  ;;  %v8832_v60 = vpop.f32.mrf.mxu0  ;;  %v2491_v42 = vld [vmem:[#allocation8 + $0x1498] sm:$0xff]  ;;  %v12552_v48 = vcombine.high %v2363_v40, %v2367_v44 }
 0x4e1   : > { %v14809_v63 = vadd.f32 %v8871_v53, %v8831_v1  ;;  %9197 = vmatprep.mubr.bf16.mxu1 %v14652_v9  ;;  %v8833_v57 = vadd.f32 %v8832_v60, %v14803_v49  ;;  %v8873_v2 = vpop.f32.mrf.mxu1  ;;  %9126 = vmatprep.subr.bf16.mxu0 %v12584_v34  ;;  %v12703_v9 = vcombine.low %v2515_v54, %v2519_v41  ;;  %v2495_v16 = vld [vmem:[#allocation8 + $0x14b8] sm:$0xff] }
 0x4e2   : > { %v8834_v61 = vpop.f32.mrf.mxu0  ;;  %9167 = vmatprep.subr.bf16.mxu1 %v12712_v21  ;;  %v12680_v34 = vcombine.high %v2491_v42, %v2495_v16  ;;  %v2355_v51 = vld [vmem:[#allocation8 + $0x1058] sm:$0xff]  ;;  %v12551_v54 = vcombine.low %v2363_v40, %v2367_v44  ;;  %v12679_v41 = vcombine.low %v2491_v42, %v2495_v16 }
 0x4e3   : > { %v14813_v6 = vadd.f32 %v8873_v2, %v8833_v57  ;;  %v8875_v58 = vpop.f32.mrf.mxu1  ;;  %9127 = vmatpush1.bf16.msra.mxu0 %v12583_v39  ;;  %v2359_v50 = vld [vmem:[#allocation8 + $0x1078] sm:$0xff] }
 0x4e4   : > { %9168 = vmatpush1.bf16.msra.mxu1 %v12711_v4  ;;  %v8835_v12 = vpop.f32.mrf.mxu0  ;;  %9128 = vmatprep.subr.bf16.mxu0 %v12576_v62  ;;  %v2483_v52 = vld [vmem:[#allocation8 + $0x1458] sm:$0xff]  ;;  %v12544_v1 = vcombine.high %v2355_v51, %v2359_v50  ;;  %v12543_v57 = vcombine.low %v2355_v51, %v2359_v50 }
 0x4e5   : > { %v8876_v49 = vpop.f32.mrf.mxu1  ;;  %9169 = vmatprep.subr.bf16.mxu1 %v12704_v11  ;;  %v2487_v21 = vld [vmem:[#allocation8 + $0x1478] sm:$0xff] }
 0x4e6   : > { %v12672_v53 = vcombine.high %v2483_v52, %v2487_v21  ;;  %v2347_v39 = vld [vmem:[#allocation8 + $0x1018] sm:$0xff]  ;;  %v12671_v2 = vcombine.low %v2483_v52, %v2487_v21 }
 0x4e7   : > { %9129 = vmatpush1.bf16.msra.mxu0 %v12575_v35  ;;  %v2351_v60 = vld [vmem:[#allocation8 + $0x1038] sm:$0xff] }
 0x4e8   : > { %9170 = vmatpush1.bf16.msra.mxu1 %v12703_v9  ;;  %9130 = vmatprep.subr.bf16.mxu0 %v12568_v17  ;;  %v2475_v4 = vld [vmem:[#allocation8 + $0x1418] sm:$0xff]  ;;  %v12536_v11 = vcombine.high %v2347_v39, %v2351_v60  ;;  %v12535_v58 = vcombine.low %v2347_v39, %v2351_v60 }
 0x4e9   : > { %9171 = vmatprep.subr.bf16.mxu1 %v12696_v8  ;;  %v2479_v62 = vld [vmem:[#allocation8 + $0x1438] sm:$0xff] }
 0x4ea   : > { %v12664_v56 = vcombine.high %v2475_v4, %v2479_v62  ;;  %v2467_v15 = vld [vmem:[#allocation8 + $0x13d8] sm:$0xff]  ;;  %v12663_v35 = vcombine.low %v2475_v4, %v2479_v62 }
 0x4eb   : > { %9131 = vmatpush1.bf16.msra.mxu0 %v12567_v37  ;;  %v2471_v61 = vld [vmem:[#allocation8 + $0x13f8] sm:$0xff] }
 0x4ec   : > { %9172 = vmatpush1.bf16.msra.mxu1 %v12695_v46  ;;  %9132 = vmatprep.subr.bf16.mxu0 %v12560_v38  ;;  %v2595_v13 = vld [vmem:[#allocation8 + $0x17d8] sm:$0xff]  ;;  %v12656_v12 = vcombine.high %v2467_v15, %v2471_v61  ;;  %v12655_v28 = vcombine.low %v2467_v15, %v2471_v61 }
 0x4ed   : > { %9173 = vmatprep.subr.bf16.mxu1 %v12688_v3  ;;  %v2599_v10 = vld [vmem:[#allocation8 + $0x17f8] sm:$0xff] }
 0x4ee   : > { %v12784_v9 = vcombine.high %v2595_v13, %v2599_v10  ;;  %v2459_v17 = vld [vmem:[#allocation8 + $0x1398] sm:$0xff]  ;;  %v12783_v31 = vcombine.low %v2595_v13, %v2599_v10 }
 0x4ef   : > { %9133 = vmatpush1.bf16.msra.mxu0 %v12559_v7  ;;  %v2463_v49 = vld [vmem:[#allocation8 + $0x13b8] sm:$0xff] }
 0x4f0   : > { %9174 = vmatpush1.bf16.msra.mxu1 %v12687_v18  ;;  %9134 = vmatprep.subr.bf16.mxu0 %v12552_v48  ;;  %v2587_v8 = vld [vmem:[#allocation8 + $0x1798] sm:$0xff]  ;;  %v12648_v36 = vcombine.high %v2459_v17, %v2463_v49  ;;  %v12647_v44 = vcombine.low %v2459_v17, %v2463_v49 }
 0x4f1   : > { %9175 = vmatprep.subr.bf16.mxu1 %v12680_v34  ;;  %v2591_v19 = vld [vmem:[#allocation8 + $0x17b8] sm:$0xff] }
 0x4f2   : > { %v12776_v37 = vcombine.high %v2587_v8, %v2591_v19  ;;  %v2451_v46 = vld [vmem:[#allocation8 + $0x1358] sm:$0xff]  ;;  %v12775_v42 = vcombine.low %v2587_v8, %v2591_v19 }
 0x4f3   : > { %9135 = vmatpush1.bf16.msra.mxu0 %v12551_v54  ;;  %v2455_v38 = vld [vmem:[#allocation8 + $0x1378] sm:$0xff] }
 0x4f4   : > { %9176 = vmatpush1.bf16.msra.mxu1 %v12679_v41  ;;  %9136 = vmatprep.subr.bf16.mxu0 %v12544_v1  ;;  %v2579_v3 = vld [vmem:[#allocation8 + $0x1758] sm:$0xff]  ;;  %v12640_v16 = vcombine.high %v2451_v46, %v2455_v38  ;;  %v12639_v50 = vcombine.low %v2451_v46, %v2455_v38 }
 0x4f5   : > { %9177 = vmatprep.subr.bf16.mxu1 %v12672_v53  ;;  %v2583_v40 = vld [vmem:[#allocation8 + $0x1778] sm:$0xff] }
 0x4f6   : > { %v12768_v7 = vcombine.high %v2579_v3, %v2583_v40  ;;  %v2443_v18 = vld [vmem:[#allocation8 + $0x1318] sm:$0xff]  ;;  %v12767_v52 = vcombine.low %v2579_v3, %v2583_v40 }
 0x4f7   : > { %9137 = vmatpush1.bf16.msra.mxu0 %v12543_v57  ;;  %v2447_v48 = vld [vmem:[#allocation8 + $0x1338] sm:$0xff] }
 0x4f8   : > { %9178 = vmatpush1.bf16.msra.mxu1 %v12671_v2  ;;  %9138 = vmatprep.subr.bf16.mxu0 %v12536_v11  ;;  %v2571_v34 = vld [vmem:[#allocation8 + $0x1718] sm:$0xff]  ;;  %v12632_v21 = vcombine.high %v2443_v18, %v2447_v48  ;;  %v12631_v60 = vcombine.low %v2443_v18, %v2447_v48 }
 0x4f9   : > { %9179 = vmatprep.subr.bf16.mxu1 %v12664_v56  ;;  %v2575_v51 = vld [vmem:[#allocation8 + $0x1738] sm:$0xff] }
 0x4fa   : > { %v12760_v54 = vcombine.high %v2571_v34, %v2575_v51  ;;  %v2435_v41 = vld [vmem:[#allocation8 + $0x12d8] sm:$0xff]  ;;  %v12759_v4 = vcombine.low %v2571_v34, %v2575_v51 }
 0x4fb   : > { %9139 = vmatpush1.bf16.msra.mxu0 %v12535_v58  ;;  %v2439_v1 = vld [vmem:[#allocation8 + $0x12f8] sm:$0xff] }
 0x4fc   : > { %9180 = vmatpush1.bf16.msra.mxu1 %v12663_v35  ;;  %9140 = vmatprep.subr.bf16.mxu0 %v12656_v12  ;;  %v2563_v53 = vld [vmem:[#allocation8 + $0x16d8] sm:$0xff]  ;;  %v12624_v62 = vcombine.high %v2435_v41, %v2439_v1  ;;  %v12623_v61 = vcombine.low %v2435_v41, %v2439_v1 }
 0x4fd   : > { %9181 = vmatprep.subr.bf16.mxu1 %v12784_v9  ;;  %v2567_v39 = vld [vmem:[#allocation8 + $0x16f8] sm:$0xff] }
 0x4fe   : > { %v12752_v57 = vcombine.high %v2563_v53, %v2567_v39  ;;  %v2427_v2 = vld [vmem:[#allocation8 + $0x1298] sm:$0xff]  ;;  %v12751_v13 = vcombine.low %v2563_v53, %v2567_v39 }
 0x4ff   : > { %9141 = vmatpush2.bf16.msra.mxu0 %v12655_v28  ;;  %v2431_v11 = vld [vmem:[#allocation8 + $0x12b8] sm:$0xff] }
 0x500   : > { %9182 = vmatpush2.bf16.msra.mxu1 %v12783_v31  ;;  %9142 = vmatprep.subr.bf16.mxu0 %v12648_v36  ;;  %v2555_v56 = vld [vmem:[#allocation8 + $0x1698] sm:$0xff]  ;;  %v12616_v10 = vcombine.high %v2427_v2, %v2431_v11  ;;  %v12615_v49 = vcombine.low %v2427_v2, %v2431_v11 }
 0x501   : > { %9183 = vmatprep.subr.bf16.mxu1 %v12776_v37  ;;  %v2559_v15 = vld [vmem:[#allocation8 + $0x16b8] sm:$0xff] }
 0x502   : > { %v12744_v58 = vcombine.high %v2555_v56, %v2559_v15  ;;  %v2419_v35 = vld [vmem:[#allocation8 + $0x1258] sm:$0xff]  ;;  %v12743_v8 = vcombine.low %v2555_v56, %v2559_v15 }
 0x503   : > { %9143 = vmatpush2.bf16.msra.mxu0 %v12647_v44  ;;  %v2423_v12 = vld [vmem:[#allocation8 + $0x1278] sm:$0xff] }
 0x504   : > { %9184 = vmatpush2.bf16.msra.mxu1 %v12775_v42  ;;  %9144 = vmatprep.subr.bf16.mxu0 %v12640_v16  ;;  %v2547_v9 = vld [vmem:[#allocation8 + $0x1658] sm:$0xff]  ;;  %v12608_v19 = vcombine.high %v2419_v35, %v2423_v12  ;;  %v12607_v38 = vcombine.low %v2419_v35, %v2423_v12 }
 0x505   : > { %9185 = vmatprep.subr.bf16.mxu1 %v12768_v7  ;;  %v2551_v17 = vld [vmem:[#allocation8 + $0x1678] sm:$0xff] }
 0x506   : > { %v12736_v28 = vcombine.high %v2547_v9, %v2551_v17  ;;  %v2411_v31 = vld [vmem:[#allocation8 + $0x1218] sm:$0xff]  ;;  %v12735_v3 = vcombine.low %v2547_v9, %v2551_v17 }
 0x507   : > { %9145 = vmatpush2.bf16.msra.mxu0 %v12639_v50  ;;  %v2415_v36 = vld [vmem:[#allocation8 + $0x1238] sm:$0xff] }
 0x508   : > { %9186 = vmatpush2.bf16.msra.mxu1 %v12767_v52  ;;  %9146 = vmatprep.subr.bf16.mxu0 %v12632_v21  ;;  %v2539_v37 = vld [vmem:[#allocation8 + $0x1618] sm:$0xff]  ;;  %v12600_v40 = vcombine.high %v2411_v31, %v2415_v36  ;;  %v12599_v48 = vcombine.low %v2411_v31, %v2415_v36 }
 0x509   : > { %9187 = vmatprep.subr.bf16.mxu1 %v12760_v54  ;;  %v2543_v46 = vld [vmem:[#allocation8 + $0x1638] sm:$0xff] }
 0x50a   : > { %v12728_v44 = vcombine.high %v2539_v37, %v2543_v46  ;;  %v2659_v42 = vld [vmem:[#allocation8 + $0x19d8] sm:$0xff]  ;;  %v12727_v34 = vcombine.low %v2539_v37, %v2543_v46 }
 0x50b   : > { %9147 = vmatpush2.bf16.msra.mxu0 %v12631_v60  ;;  %v2663_v16 = vld [vmem:[#allocation8 + $0x19f8] sm:$0xff] }
 0x50c   : > { %9188 = vmatpush2.bf16.msra.mxu1 %v12759_v4  ;;  %9148 = vmatprep.subr.bf16.mxu0 %v12624_v62  ;;  %v2787_v7 = vld [vmem:[#allocation8 + $0x1dd8] sm:$0xff]  ;;  %v12848_v51 = vcombine.high %v2659_v42, %v2663_v16  ;;  %v12847_v54 = vcombine.low %v2659_v42, %v2663_v16 }
 0x50d   : > { %9189 = vmatprep.subr.bf16.mxu1 %v12752_v57  ;;  %v2791_v18 = vld [vmem:[#allocation8 + $0x1df8] sm:$0xff] }
 0x50e   : > { %v12976_v50 = vcombine.high %v2787_v7, %v2791_v18  ;;  %v2651_v52 = vld [vmem:[#allocation8 + $0x1998] sm:$0xff]  ;;  %v12975_v53 = vcombine.low %v2787_v7, %v2791_v18 }
 0x50f   : > { %9149 = vmatpush2.bf16.msra.mxu0 %v12623_v61  ;;  %v2655_v21 = vld [vmem:[#allocation8 + $0x19b8] sm:$0xff] }
 0x510   : > { %9190 = vmatpush2.bf16.msra.mxu1 %v12751_v13  ;;  %9150 = vmatprep.subr.bf16.mxu0 %v12616_v10  ;;  %v2779_v41 = vld [vmem:[#allocation8 + $0x1d98] sm:$0xff]  ;;  %v12840_v39 = vcombine.high %v2651_v52, %v2655_v21  ;;  %v12839_v61 = vcombine.low %v2651_v52, %v2655_v21 }
 0x511   : > { %9191 = vmatprep.subr.bf16.mxu1 %v12744_v58  ;;  %v2783_v1 = vld [vmem:[#allocation8 + $0x1db8] sm:$0xff] }
 0x512   : > { %v2643_v60 = vld [vmem:[#allocation8 + $0x1958] sm:$0xff]  ;;  %v12968_v57 = vcombine.high %v2779_v41, %v2783_v1  ;;  %v12967_v10 = vcombine.low %v2779_v41, %v2783_v1 }
 0x513   : > { %9151 = vmatpush2.bf16.msra.mxu0 %v12615_v49  ;;  %v2647_v4 = vld [vmem:[#allocation8 + $0x1978] sm:$0xff] }
 0x514   : > { %9192 = vmatpush2.bf16.msra.mxu1 %v12743_v8  ;;  %9152 = vmatprep.subr.bf16.mxu0 %v12608_v19  ;;  %v2771_v2 = vld [vmem:[#allocation8 + $0x1d58] sm:$0xff]  ;;  %v12832_v58 = vcombine.high %v2643_v60, %v2647_v4 }
 0x515   : > { %9193 = vmatprep.subr.bf16.mxu1 %v12736_v28  ;;  %v2775_v11 = vld [vmem:[#allocation8 + $0x1d78] sm:$0xff]  ;;  %v12831_v28 = vcombine.low %v2643_v60, %v2647_v4 }
 0x516   : > { %v2635_v9 = vld [vmem:[#allocation8 + $0x1918] sm:$0xff] }
 0x517   : > { %9153 = vmatpush2.bf16.msra.mxu0 %v12607_v38  ;;  %v2639_v17 = vld [vmem:[#allocation8 + $0x1938] sm:$0xff] }
 0x518   : > { %9194 = vmatpush2.bf16.msra.mxu1 %v12735_v3  ;;  %9154 = vmatprep.subr.bf16.mxu0 %v12600_v40  ;;  %v2763_v49 = vld [vmem:[#allocation8 + $0x1d18] sm:$0xff]  ;;  %v12824_v36 = vcombine.high %v2635_v9, %v2639_v17 }
 0x519   : > { %9195 = vmatprep.subr.bf16.mxu1 %v12728_v44  ;;  %v2767_v8 = vld [vmem:[#allocation8 + $0x1d38] sm:$0xff]  ;;  %v12823_v44 = vcombine.low %v2635_v9, %v2639_v17 }
 0x51a   : > { %v12952_v37 = vcombine.high %v2763_v49, %v2767_v8  ;;  %v2627_v46 = vld [vmem:[#allocation8 + $0x18d8] sm:$0xff]  ;;  %v12951_v42 = vcombine.low %v2763_v49, %v2767_v8 }
 0x51b   : > { %9155 = vmatpush2.bf16.msra.mxu0 %v12599_v48  ;;  %v2631_v38 = vld [vmem:[#allocation8 + $0x18f8] sm:$0xff] }
 0x51c   : > { %9196 = vmatpush2.bf16.msra.mxu1 %v12727_v34  ;;  %9206 = vmatprep.subr.bf16.mxu0 %v12848_v51  ;;  %v2755_v3 = vld [vmem:[#allocation8 + $0x1cd8] sm:$0xff]  ;;  %v12816_v16 = vcombine.high %v2627_v46, %v2631_v38 }
 0x51d   : > { %9247 = vmatprep.subr.bf16.mxu1 %v12976_v50  ;;  %v2759_v40 = vld [vmem:[#allocation8 + $0x1cf8] sm:$0xff]  ;;  %v12815_v50 = vcombine.low %v2627_v46, %v2631_v38 }
 0x51e   : > { %v8912_v62 = vpop.f32.mrf.mxu0  ;;  %9157 = vmatmul.mubr.bf16.vlgmr.msra.gmra.mxu0 %v14691_v25  ;;  %v12944_v7 = vcombine.high %v2755_v3, %v2759_v40  ;;  %v2619_v18 = vld [vmem:[#allocation8 + $0x1898] sm:$0xff]  ;;  %v12943_v52 = vcombine.low %v2755_v3, %v2759_v40 }
 0x51f   : > { %v8913_v56 = vadd.f32 %v8912_v62, %v14809_v63  ;;  %v8953_v15 = vpop.f32.mrf.mxu1  ;;  %9198 = vmatmul.mubr.bf16.vlgmr.msra.gmra.mxu1 %v14693_v26  ;;  %9207 = vmatpush1.bf16.msra.mxu0 %v12847_v54  ;;  %v12960_v63 = vcombine.high %v2771_v2, %v2775_v11  ;;  %v2623_v48 = vld [vmem:[#allocation8 + $0x18b8] sm:$0xff] }
 0x520   : > { %9238 = vmatprep.mubr.bf16.mxu0 %v14695_v27  ;;  %9248 = vmatpush1.bf16.msra.mxu1 %v12975_v53  ;;  %v8914_v13 = vpop.f32.mrf.mxu0  ;;  %v2747_v34 = vld [vmem:[#allocation8 + $0x1c98] sm:$0xff]  ;;  %v12808_v21 = vcombine.high %v2619_v18, %v2623_v48  ;;  %v12807_v60 = vcombine.low %v2619_v18, %v2623_v48 }
 0x521   : > { %v14819_v35 = vadd.f32 %v8953_v15, %v8913_v56  ;;  %9279 = vmatprep.mubr.bf16.mxu1 %v14697_v33  ;;  %v8915_v25 = vadd.f32 %v8914_v13, %v14813_v6  ;;  %v8955_v12 = vpop.f32.mrf.mxu1  ;;  %9208 = vmatprep.subr.bf16.mxu0 %v12840_v39  ;;  %v12959_v33 = vcombine.low %v2771_v2, %v2775_v11  ;;  %v2751_v51 = vld [vmem:[#allocation8 + $0x1cb8] sm:$0xff] }
 0x522   : > { %v8916_v26 = vpop.f32.mrf.mxu0  ;;  %9249 = vmatprep.subr.bf16.mxu1 %v12968_v57  ;;  %v12936_v54 = vcombine.high %v2747_v34, %v2751_v51  ;;  %v2611_v41 = vld [vmem:[#allocation8 + $0x1858] sm:$0xff]  ;;  %v12935_v4 = vcombine.low %v2747_v34, %v2751_v51 }
 0x523   : > { %v14823_v27 = vadd.f32 %v8955_v12, %v8915_v25  ;;  %v8957_v19 = vpop.f32.mrf.mxu1  ;;  %9209 = vmatpush1.bf16.msra.mxu0 %v12839_v61  ;;  %v2615_v1 = vld [vmem:[#allocation8 + $0x1878] sm:$0xff] }
 0x524   : > { %9250 = vmatpush1.bf16.msra.mxu1 %v12967_v10  ;;  %v8917_v31 = vpop.f32.mrf.mxu0  ;;  %9210 = vmatprep.subr.bf16.mxu0 %v12832_v58  ;;  %v2739_v53 = vld [vmem:[#allocation8 + $0x1c58] sm:$0xff]  ;;  %v12800_v62 = vcombine.high %v2611_v41, %v2615_v1  ;;  %v12799_v61 = vcombine.low %v2611_v41, %v2615_v1 }
 0x525   : > { %v8958_v6 = vpop.f32.mrf.mxu1  ;;  %9251 = vmatprep.subr.bf16.mxu1 %v12960_v63  ;;  %v2743_v39 = vld [vmem:[#allocation8 + $0x1c78] sm:$0xff] }
 0x526   : > { %v12928_v57 = vcombine.high %v2739_v53, %v2743_v39  ;;  %v2603_v2 = vld [vmem:[#allocation8 + $0x1818] sm:$0xff]  ;;  %v12927_v13 = vcombine.low %v2739_v53, %v2743_v39 }
 0x527   : > { %9211 = vmatpush1.bf16.msra.mxu0 %v12831_v28  ;;  %v2607_v11 = vld [vmem:[#allocation8 + $0x1838] sm:$0xff] }
 0x528   : > { %9252 = vmatpush1.bf16.msra.mxu1 %v12959_v33  ;;  %9212 = vmatprep.subr.bf16.mxu0 %v12824_v36  ;;  %v2731_v56 = vld [vmem:[#allocation8 + $0x1c18] sm:$0xff]  ;;  %v12792_v10 = vcombine.high %v2603_v2, %v2607_v11  ;;  %v12791_v17 = vcombine.low %v2603_v2, %v2607_v11  ;;  %v14825_v2 = vld [vmem:[#allocation10] sm:$0xff] }
 0x529   : > { %9253 = vmatprep.subr.bf16.mxu1 %v12952_v37  ;;  %v2735_v15 = vld [vmem:[#allocation8 + $0x1c38] sm:$0xff] }
 0x52a   : > { %v12920_v58 = vcombine.high %v2731_v56, %v2735_v15  ;;  %v2723_v25 = vld [vmem:[#allocation8 + $0x1bd8] sm:$0xff]  ;;  %v12919_v26 = vcombine.low %v2731_v56, %v2735_v15 }
 0x52b   : > { %9213 = vmatpush1.bf16.msra.mxu0 %v12823_v44  ;;  %v2727_v12 = vld [vmem:[#allocation8 + $0x1bf8] sm:$0xff] }
 0x52c   : > { %9254 = vmatpush1.bf16.msra.mxu1 %v12951_v42  ;;  %9214 = vmatprep.subr.bf16.mxu0 %v12816_v16  ;;  %v2851_v63 = vld [vmem:[#allocation8 + $0x1fd8] sm:$0xff]  ;;  %v12912_v49 = vcombine.high %v2723_v25, %v2727_v12  ;;  %v12911_v36 = vcombine.low %v2723_v25, %v2727_v12 }
 0x52d   : > { %9255 = vmatprep.subr.bf16.mxu1 %v12944_v7  ;;  %v2855_v9 = vld [vmem:[#allocation8 + $0x1ff8] sm:$0xff] }
 0x52e   : > { %v13040_v8 = vcombine.high %v2851_v63, %v2855_v9  ;;  %v2715_v19 = vld [vmem:[#allocation8 + $0x1b98] sm:$0xff]  ;;  %v13039_v6 = vcombine.low %v2851_v63, %v2855_v9 }
 0x52f   : > { %9215 = vmatpush1.bf16.msra.mxu0 %v12815_v50  ;;  %v2719_v28 = vld [vmem:[#allocation8 + $0x1bb8] sm:$0xff] }
 0x530   : > { %9256 = vmatpush1.bf16.msra.mxu1 %v12943_v52  ;;  %9216 = vmatprep.subr.bf16.mxu0 %v12808_v21  ;;  %v2843_v31 = vld [vmem:[#allocation8 + $0x1f98] sm:$0xff]  ;;  %v12904_v37 = vcombine.high %v2715_v19, %v2719_v28  ;;  %v12903_v42 = vcombine.low %v2715_v19, %v2719_v28 }
 0x531   : > { %9257 = vmatprep.subr.bf16.mxu1 %v12936_v54  ;;  %v2847_v33 = vld [vmem:[#allocation8 + $0x1fb8] sm:$0xff] }
 0x532   : > { %v13032_v46 = vcombine.high %v2843_v31, %v2847_v33  ;;  %v2707_v38 = vld [vmem:[#allocation8 + $0x1b58] sm:$0xff]  ;;  %v13031_v16 = vcombine.low %v2843_v31, %v2847_v33 }
 0x533   : > { %9217 = vmatpush1.bf16.msra.mxu0 %v12807_v60  ;;  %v2711_v3 = vld [vmem:[#allocation8 + $0x1b78] sm:$0xff] }
 0x534   : > { %9258 = vmatpush1.bf16.msra.mxu1 %v12935_v4  ;;  %9218 = vmatprep.subr.bf16.mxu0 %v12800_v62  ;;  %v2835_v40 = vld [vmem:[#allocation8 + $0x1f58] sm:$0xff]  ;;  %v12896_v7 = vcombine.high %v2707_v38, %v2711_v3  ;;  %v12895_v52 = vcombine.low %v2707_v38, %v2711_v3 }
 0x535   : > { %9259 = vmatprep.subr.bf16.mxu1 %v12928_v57  ;;  %v2839_v44 = vld [vmem:[#allocation8 + $0x1f78] sm:$0xff] }
 0x536   : > { %v13024_v18 = vcombine.high %v2835_v40, %v2839_v44  ;;  %v2699_v48 = vld [vmem:[#allocation8 + $0x1b18] sm:$0xff]  ;;  %v13023_v21 = vcombine.low %v2835_v40, %v2839_v44 }
 0x537   : > { %9219 = vmatpush1.bf16.msra.mxu0 %v12799_v61  ;;  %v2703_v34 = vld [vmem:[#allocation8 + $0x1b38] sm:$0xff]  ;;  %v9305_v61 = vrot.slane %v14825_v2, %v14562_v23 }
 0x538   : > { %9260 = vmatpush1.bf16.msra.mxu1 %v12927_v13  ;;  %9220 = vmatprep.subr.bf16.mxu0 %v12792_v10  ;;  %v2827_v51 = vld [vmem:[#allocation8 + $0x1f18] sm:$0xff]  ;;  %v12888_v54 = vcombine.high %v2699_v48, %v2703_v34  ;;  %v12887_v4 = vcombine.low %v2699_v48, %v2703_v34  ;;  %v9289_v48 = vpack.c.bf16 %v14747_v30, %v14747_v30 }
 0x539   : > { %9261 = vmatprep.subr.bf16.mxu1 %v12920_v58  ;;  %v2831_v50 = vld [vmem:[#allocation8 + $0x1f38] sm:$0xff]  ;;  %v9313_v58 = vrot.slane %v14825_v2, %v14565_v24 }
 0x53a   : > { %v13016_v41 = vcombine.high %v2827_v51, %v2831_v50  ;;  %v2691_v1 = vld [vmem:[#allocation8 + $0x1ad8] sm:$0xff]  ;;  %v13015_v62 = vcombine.low %v2827_v51, %v2831_v50  ;;  %v9291_v51 = vpack.c.bf16 %v14785_v55, %v14785_v55 }
 0x53b   : > { %9221 = vmatpush1.bf16.msra.mxu0 %v12791_v17  ;;  %v2695_v53 = vld [vmem:[#allocation8 + $0x1af8] sm:$0xff]  ;;  %v9341_v28 = vpack.c.bf16 %v9313_v58, %v9313_v58 }
 0x53c   : > { %9262 = vmatpush1.bf16.msra.mxu1 %v12919_v26  ;;  %9222 = vmatprep.subr.bf16.mxu0 %v12912_v49  ;;  %v2819_v39 = vld [vmem:[#allocation8 + $0x1ed8] sm:$0xff]  ;;  %v12880_v57 = vcombine.high %v2691_v1, %v2695_v53  ;;  %v12879_v25 = vcombine.low %v2691_v1, %v2695_v53  ;;  %v9339_v49 = vpack.c.bf16 %v9305_v61, %v9305_v61 }
 0x53d   : > { %9263 = vmatprep.subr.bf16.mxu1 %v13040_v8  ;;  %v2823_v60 = vld [vmem:[#allocation8 + $0x1ef8] sm:$0xff]  ;;  %v9368_v44 = vpack.i.b16 %v9341_v28, %v9341_v28 }
 0x53e   : > { %v13008_v11 = vcombine.high %v2819_v39, %v2823_v60  ;;  %v2683_v56 = vld [vmem:[#allocation8 + $0x1a98] sm:$0xff]  ;;  %v13007_v12 = vcombine.low %v2819_v39, %v2823_v60  ;;  %v9354_v38 = vpack.i.b16 %v9339_v49, %v9339_v49 }
 0x53f   : > { %9223 = vmatpush2.bf16.msra.mxu0 %v12911_v36  ;;  %v2687_v15 = vld [vmem:[#allocation8 + $0x1ab8] sm:$0xff]  ;;  %v9373_v50 = vrot.slane %v9368_v44, %v14554_v20 }
 0x540   : > { %9264 = vmatpush2.bf16.msra.mxu1 %v13039_v6  ;;  %9224 = vmatprep.subr.bf16.mxu0 %v12904_v37  ;;  %v2811_v13 = vld [vmem:[#allocation8 + $0x1e98] sm:$0xff]  ;;  %v12872_v63 = vcombine.high %v2683_v56, %v2687_v15  ;;  %v12871_v31 = vcombine.low %v2683_v56, %v2687_v15  ;;  %v9359_v34 = vrot.slane %v9354_v38, %v14554_v20 }
 0x541   : > { %9265 = vmatprep.subr.bf16.mxu1 %v13032_v46  ;;  %v2815_v10 = vld [vmem:[#allocation8 + $0x1eb8] sm:$0xff]  ;;  %v9405_v53 = vadd.bf16 %v9373_v50, %v9291_v51 }
 0x542   : > { %v13000_v9 = vcombine.high %v2811_v13, %v2815_v10  ;;  %v2675_v17 = vld [vmem:[#allocation8 + $0x1a58] sm:$0xff]  ;;  %v12999_v33 = vcombine.low %v2811_v13, %v2815_v10  ;;  %v9403_v1 = vadd.bf16 %v9359_v34, %v9289_v48 }
 0x543   : > { %9225 = vmatpush2.bf16.msra.mxu0 %v12903_v42  ;;  %v2679_v26 = vld [vmem:[#allocation8 + $0x1a78] sm:$0xff] }
 0x544   : > { %9266 = vmatpush2.bf16.msra.mxu1 %v13031_v16  ;;  %9226 = vmatprep.subr.bf16.mxu0 %v12896_v7  ;;  %v2803_v8 = vld [vmem:[#allocation8 + $0x1e58] sm:$0xff]  ;;  %v12864_v36 = vcombine.high %v2675_v17, %v2679_v26  ;;  %v12863_v42 = vcombine.low %v2675_v17, %v2679_v26 }
 0x545   : > { %9267 = vmatprep.subr.bf16.mxu1 %v13024_v18  ;;  %v2807_v19 = vld [vmem:[#allocation8 + $0x1e78] sm:$0xff] }
 0x546   : > { %v12992_v6 = vcombine.high %v2803_v8, %v2807_v19  ;;  %v2667_v37 = vld [vmem:[#allocation8 + $0x1a18] sm:$0xff]  ;;  %v12991_v16 = vcombine.low %v2803_v8, %v2807_v19 }
 0x547   : > { %9227 = vmatpush2.bf16.msra.mxu0 %v12895_v52  ;;  %v2671_v46 = vld [vmem:[#allocation8 + $0x1a38] sm:$0xff] }
 0x548   : > { %9268 = vmatpush2.bf16.msra.mxu1 %v13023_v21  ;;  %9228 = vmatprep.subr.bf16.mxu0 %v12888_v54  ;;  %v2795_v3 = vld [vmem:[#allocation8 + $0x1e18] sm:$0xff]  ;;  %v12856_v7 = vcombine.high %v2667_v37, %v2671_v46  ;;  %v12855_v52 = vcombine.low %v2667_v37, %v2671_v46 }
 0x549   : > { %9269 = vmatprep.subr.bf16.mxu1 %v13016_v41  ;;  %v2799_v40 = vld [vmem:[#allocation8 + $0x1e38] sm:$0xff] }
 0x54a   : > { %v12984_v18 = vcombine.high %v2795_v3, %v2799_v40  ;;  %v12983_v21 = vcombine.low %v2795_v3, %v2799_v40  ;;  %v13515_v54 = vld [vmem:[#allocation11 + $0xe4] ss:$16 sps:$4 sm:$0xff]   ;;  %v13513_v39 = vld [vmem:[#allocation11 + $0xe0] ss:$16 sps:$4 sm:$0xff]  }
 0x54b   : > { %9229 = vmatpush2.bf16.msra.mxu0 %v12887_v4  ;;  %v13518_v41 = vld [vmem:[#allocation11 + $0x2e4] ss:$16 sps:$4 sm:$0xff]   ;;  %v13516_v30 = vld [vmem:[#allocation11 + $0x2e0] ss:$16 sps:$4 sm:$0xff]   ;;  %v14839_v4 = vmax.bf16 %v14267_v0, %v9403_v1 }
 0x54c   : > { %9270 = vmatpush2.bf16.msra.mxu1 %v13015_v62  ;;  %9230 = vmatprep.subr.bf16.mxu0 %v12880_v57  ;;  %v13521_v60 = vld [vmem:[#allocation11 + $0xc4] ss:$16 sps:$4 sm:$0xff]   ;;  %v13519_v56 = vld [vmem:[#allocation11 + $0xc0] ss:$16 sps:$4 sm:$0xff]  }
 0x54d   : > { %9271 = vmatprep.subr.bf16.mxu1 %v13008_v11  ;;  %v13524_v62 = vld [vmem:[#allocation11 + $0x2c4] ss:$16 sps:$4 sm:$0xff]   ;;  %v14843_v11 = vmax.bf16 %v14267_v0, %v9405_v53  ;;  %v13522_v13 = vld [vmem:[#allocation11 + $0x2c0] ss:$16 sps:$4 sm:$0xff]  }
 0x54e   : > { %v13530_v58 = vld [vmem:[#allocation11 + $0x2a4] ss:$16 sps:$4 sm:$0xff]   ;;  %v13528_v17 = vld [vmem:[#allocation11 + $0x2a0] ss:$16 sps:$4 sm:$0xff]  }
 0x54f   : > { %9231 = vmatpush2.bf16.msra.mxu0 %v12879_v25  ;;  %v13533_v26 = vld [vmem:[#allocation11 + $0x84] ss:$16 sps:$4 sm:$0xff]   ;;  %v13531_v19 = vld [vmem:[#allocation11 + $0x80] ss:$16 sps:$4 sm:$0xff]  }
 0x550   : > { %9272 = vmatpush2.bf16.msra.mxu1 %v13007_v12  ;;  %9232 = vmatprep.subr.bf16.mxu0 %v12872_v63  ;;  %v13525_v63 = vld [vmem:[#allocation11 + $0xa0] ss:$16 sps:$4 sm:$0xff]   ;;  %v13536_v8 = vld [vmem:[#allocation11 + $0x284] ss:$16 sps:$4 sm:$0xff]  }
 0x551   : > { %9273 = vmatprep.subr.bf16.mxu1 %v13000_v9  ;;  %v13534_v28 = vld [vmem:[#allocation11 + $0x280] ss:$16 sps:$4 sm:$0xff]   ;;  %v13545_v37 = vld [vmem:[#allocation11 + $0x44] ss:$16 sps:$4 sm:$0xff]  }
 0x552   : > { %v13548_v46 = vld [vmem:[#allocation11 + $0x244] ss:$16 sps:$4 sm:$0xff]   ;;  %v13543_v38 = vld [vmem:[#allocation11 + $0x40] ss:$16 sps:$4 sm:$0xff]  }
 0x553   : > { %9233 = vmatpush2.bf16.msra.mxu0 %v12871_v31  ;;  %v13539_v31 = vld [vmem:[#allocation11 + $0x64] ss:$16 sps:$4 sm:$0xff]   ;;  %v13546_v3 = vld [vmem:[#allocation11 + $0x240] ss:$16 sps:$4 sm:$0xff]  }
 0x554   : > { %9274 = vmatpush2.bf16.msra.mxu1 %v12999_v33  ;;  %9234 = vmatprep.subr.bf16.mxu0 %v12864_v36  ;;  %v13542_v33 = vld [vmem:[#allocation11 + $0x264] ss:$16 sps:$4 sm:$0xff]   ;;  %v13537_v36 = vld [vmem:[#allocation11 + $0x60] ss:$16 sps:$4 sm:$0xff]  }
 0x555   : > { %9275 = vmatprep.subr.bf16.mxu1 %v12992_v6  ;;  %v13540_v6 = vld [vmem:[#allocation11 + $0x260] ss:$16 sps:$4 sm:$0xff]   ;;  %v13551_v40 = vld [vmem:[#allocation11 + $0x24] ss:$16 sps:$4 sm:$0xff]  }
 0x556   : > { %v13554_v44 = vld [vmem:[#allocation11 + $0x224] ss:$16 sps:$4 sm:$0xff]   ;;  %v13555_v48 = vld [vmem:[#allocation11] ss:$16 sps:$4 sm:$0xff]  }
 0x557   : > { %9235 = vmatpush2.bf16.msra.mxu0 %v12863_v42  ;;  %v13549_v42 = vld [vmem:[#allocation11 + $0x20] ss:$16 sps:$4 sm:$0xff]   ;;  %v13563_v51 = vld [vmem:[#allocation11 + $0x1e4] ss:$16 sps:$4 sm:$0xff]  }
 0x558   : > { %9276 = vmatpush2.bf16.msra.mxu1 %v12991_v16  ;;  %9236 = vmatprep.subr.bf16.mxu0 %v12856_v7  ;;  %v13552_v16 = vld [vmem:[#allocation11 + $0x220] ss:$16 sps:$4 sm:$0xff]   ;;  %v13557_v7 = vld [vmem:[#allocation11 + $0x4] ss:$16 sps:$4 sm:$0xff]  }
 0x559   : > { %9277 = vmatprep.subr.bf16.mxu1 %v12984_v18  ;;  %v13560_v18 = vld [vmem:[#allocation11 + $0x204] ss:$16 sps:$4 sm:$0xff]   ;;  %v13558_v34 = vld [vmem:[#allocation11 + $0x200] ss:$16 sps:$4 sm:$0xff]  }
 0x55a   : > { %v13566_v50 = vld [vmem:[#allocation11 + $0x3e4] ss:$16 sps:$4 sm:$0xff]   ;;  %v13567_v1 = vld [vmem:[#allocation11 + $0x1c0] ss:$16 sps:$4 sm:$0xff]  }
 0x55b   : > { %9237 = vmatpush2.bf16.msra.mxu0 %v12855_v52  ;;  %v13561_v52 = vld [vmem:[#allocation11 + $0x1e0] ss:$16 sps:$4 sm:$0xff]  }
 0x55c   : > { %9278 = vmatpush2.bf16.msra.mxu1 %v12983_v21  ;;  %10954 = vmatprep.subr.bf16.mxu0 %v13515_v54  ;;  %v13564_v21 = vld [vmem:[#allocation11 + $0x3e0] ss:$16 sps:$4 sm:$0xff]   ;;  %v13569_v54 = vld [vmem:[#allocation11 + $0x1c4] ss:$16 sps:$4 sm:$0xff]  }
 0x55d   : > { %10995 = vmatprep.subr.bf16.mxu1 %v13518_v41  ;;  %v13572_v41 = vld [vmem:[#allocation11 + $0x3c4] ss:$16 sps:$4 sm:$0xff]   ;;  %v13570_v53 = vld [vmem:[#allocation11 + $0x3c0] ss:$16 sps:$4 sm:$0xff]  }
 0x55e   : > { %v8994_v55 = vpop.f32.mrf.mxu0  ;;  %9239 = vmatmul.mubr.bf16.vlgmr.msra.gmra.mxu0 %v14706_v43  ;;  %v13527_v43 = vld [vmem:[#allocation11 + $0xa4] ss:$16 sps:$4 sm:$0xff]  }
 0x55f   : > { %v9035_v57 = vpop.f32.mrf.mxu1  ;;  %9280 = vmatmul.mubr.bf16.vlgmr.msra.gmra.mxu1 %v14709_v45  ;;  %10955 = vmatpush1.bf16.msra.mxu0 %v13513_v39  ;;  %v13575_v39 = vld [vmem:[#allocation11 + $0x1a4] ss:$16 sps:$4 sm:$0xff]  }
 0x560   : > { %v14845_v15 = vadd.f32 %v9035_v57, %v8994_v55  ;;  %10986 = vmatprep.mubr.bf16.mxu0 %v14839_v4  ;;  %10996 = vmatpush1.bf16.msra.mxu1 %v13516_v30  ;;  %v8996_v61 = vpop.f32.mrf.mxu0  ;;  %v13578_v30 = vld [vmem:[#allocation11 + $0x3a4] ss:$16 sps:$4 sm:$0xff]   ;;  %v13576_v55 = vld [vmem:[#allocation11 + $0x3a0] ss:$16 sps:$4 sm:$0xff]  }
 0x561   : > { %11027 = vmatprep.mubr.bf16.mxu1 %v14843_v11  ;;  %v9037_v10 = vpop.f32.mrf.mxu1  ;;  %10956 = vmatprep.subr.bf16.mxu0 %v13521_v60  ;;  %v13573_v60 = vld [vmem:[#allocation11 + $0x1a0] ss:$16 sps:$4 sm:$0xff]   ;;  %v13584_v57 = vld [vmem:[#allocation11 + $0x384] ss:$16 sps:$4 sm:$0xff]  }
 0x562   : > { %v14849_v25 = vadd.f32 %v9037_v10, %v8996_v61  ;;  %v8998_v45 = vpop.f32.mrf.mxu0  ;;  %10997 = vmatprep.subr.bf16.mxu1 %v13524_v62  ;;  %v13581_v62 = vld [vmem:[#allocation11 + $0x184] ss:$16 sps:$4 sm:$0xff]   ;;  %v9301_v61 = vrot.slane %v14825_v2, %v14554_v20  ;;  %v9309_v10 = vrot.slane %v14825_v2, %v14559_v22 }
 0x563   : > { %v9039_v12 = vpop.f32.mrf.mxu1  ;;  %10957 = vmatpush1.bf16.msra.mxu0 %v13519_v56  ;;  %v13579_v56 = vld [vmem:[#allocation11 + $0x180] ss:$16 sps:$4 sm:$0xff]   ;;  %v9321_v45 = vrot.slane %v14825_v2, %v14596_v29  ;;  %v13602_v29 = vld [vmem:[#allocation11 + $0x324] ss:$16 sps:$4 sm:$0xff]  }
 0x564   : > { %10998 = vmatpush1.bf16.msra.mxu1 %v13522_v13  ;;  %v8999_v9 = vpop.f32.mrf.mxu0  ;;  %10958 = vmatprep.subr.bf16.mxu0 %v13527_v43  ;;  %v13582_v13 = vld [vmem:[#allocation11 + $0x380] ss:$16 sps:$4 sm:$0xff]   ;;  %v13587_v43 = vld [vmem:[#allocation11 + $0x164] ss:$16 sps:$4 sm:$0xff]  }
 0x565   : > { %v9040_v49 = vpop.f32.mrf.mxu1  ;;  %10999 = vmatprep.subr.bf16.mxu1 %v13530_v58  ;;  %v13590_v58 = vld [vmem:[#allocation11 + $0x364] ss:$16 sps:$4 sm:$0xff]   ;;  %v13585_v12 = vld [vmem:[#allocation11 + $0x160] ss:$16 sps:$4 sm:$0xff]  }
 0x566   : > { %v13588_v9 = vld [vmem:[#allocation11 + $0x360] ss:$16 sps:$4 sm:$0xff]   ;;  %v13596_v49 = vld [vmem:[#allocation11 + $0x344] ss:$16 sps:$4 sm:$0xff]  }
 0x567   : > { %10959 = vmatpush1.bf16.msra.mxu0 %v13525_v63  ;;  %v9338_v63 = vpack.c.bf16 %v9301_v61, %v9301_v61 }
 0x568   : > { %11000 = vmatpush1.bf16.msra.mxu1 %v13528_v17  ;;  %10960 = vmatprep.subr.bf16.mxu0 %v13533_v26  ;;  %v13593_v17 = vld [vmem:[#allocation11 + $0x144] ss:$16 sps:$4 sm:$0xff]   ;;  %v9340_v26 = vpack.c.bf16 %v9309_v10, %v9309_v10  ;;  %v13675_v10 = vld [vmem:[#allocation11 + $0x6c0] ss:$16 sps:$4 sm:$0xff]  }
 0x569   : > { %11001 = vmatprep.subr.bf16.mxu1 %v13536_v8  ;;  %v9343_v8 = vpack.c.bf16 %v9321_v45, %v9321_v45 }
 0x56b   : > { %10961 = vmatpush1.bf16.msra.mxu0 %v13531_v19  ;;  %v13591_v19 = vld [vmem:[#allocation11 + $0x140] ss:$16 sps:$4 sm:$0xff]  }
 0x56c   : > { %11002 = vmatpush1.bf16.msra.mxu1 %v13534_v28  ;;  %10962 = vmatprep.subr.bf16.mxu0 %v13539_v31  ;;  %v9347_v28 = vpack.i.b16 %v9338_v63, %v9338_v63  ;;  %v13594_v31 = vld [vmem:[#allocation11 + $0x340] ss:$16 sps:$4 sm:$0xff]  }
 0x56d   : > { %11003 = vmatprep.subr.bf16.mxu1 %v13542_v33  ;;  %v13599_v33 = vld [vmem:[#allocation11 + $0x124] ss:$16 sps:$4 sm:$0xff]   ;;  %v13615_v63 = vld [vmem:[#allocation11 + $0x4a0] ss:$16 sps:$4 sm:$0xff]  }
 0x56f   : > { %10963 = vmatpush1.bf16.msra.mxu0 %v13537_v36  ;;  %v9361_v36 = vpack.i.b16 %v9340_v26, %v9340_v26 }
 0x570   : > { %11004 = vmatpush1.bf16.msra.mxu1 %v13540_v6  ;;  %10964 = vmatprep.subr.bf16.mxu0 %v13545_v37  ;;  %v9382_v6 = vpack.i.b16 %v9343_v8, %v9343_v8  ;;  %v13597_v37 = vld [vmem:[#allocation11 + $0x120] ss:$16 sps:$4 sm:$0xff]   ;;  %v13689_v8 = vld [vmem:[#allocation11 + $0x684] ss:$16 sps:$4 sm:$0xff]  }
 0x571   : > { %11005 = vmatprep.subr.bf16.mxu1 %v13548_v46  ;;  %v9288_v46 = vpack.c.bf16 %v14743_v14, %v14743_v14  ;;  %v13603_v14 = vld [vmem:[#allocation11 + $0x100] ss:$16 sps:$4 sm:$0xff]  }
 0x573   : > { %10965 = vmatpush1.bf16.msra.mxu0 %v13543_v38  ;;  %v9352_v38 = vrot.slane %v9347_v28, %v14554_v20  ;;  %v13687_v28 = vld [vmem:[#allocation11 + $0x680] ss:$16 sps:$4 sm:$0xff]  }
 0x574   : > { %11006 = vmatpush1.bf16.msra.mxu1 %v13546_v3  ;;  %10966 = vmatprep.subr.bf16.mxu0 %v13551_v40  ;;  %v13600_v3 = vld [vmem:[#allocation11 + $0x320] ss:$16 sps:$4 sm:$0xff]   ;;  %v13605_v40 = vld [vmem:[#allocation11 + $0x104] ss:$16 sps:$4 sm:$0xff]  }
 0x575   : > { %11007 = vmatprep.subr.bf16.mxu1 %v13554_v44  ;;  %v9290_v44 = vpack.c.bf16 %v14781_v47, %v14781_v47 }
 0x577   : > { %10967 = vmatpush1.bf16.msra.mxu0 %v13549_v42  ;;  %v9366_v42 = vrot.slane %v9361_v36, %v14554_v20  ;;  %v13626_v36 = vld [vmem:[#allocation11 + $0x444] ss:$16 sps:$4 sm:$0xff]  }
 0x578   : > { %11008 = vmatpush1.bf16.msra.mxu1 %v13552_v16  ;;  %10968 = vmatprep.subr.bf16.mxu0 %v13557_v7  ;;  %v13608_v16 = vld [vmem:[#allocation11 + $0x304] ss:$16 sps:$4 sm:$0xff]   ;;  %v9293_v7 = vpack.c.bf16 %v14823_v27, %v14823_v27 }
 0x579   : > { %11009 = vmatprep.subr.bf16.mxu1 %v13560_v18  ;;  %v9387_v18 = vrot.slane %v9382_v6, %v14554_v20  ;;  %v13614_v27 = vld [vmem:[#allocation11 + $0x4c4] ss:$16 sps:$4 sm:$0xff]  }
 0x57a   : > { %v13701_v6 = vld [vmem:[#allocation11 + $0x644] ss:$16 sps:$4 sm:$0xff]  }
 0x57b   : > { %10969 = vmatpush1.bf16.msra.mxu0 %v13555_v48  ;;  %v9402_v48 = vadd.bf16 %v9352_v38, %v9288_v46  ;;  %v9407_v47 = vadd.bf16 %v9387_v18, %v9293_v7  ;;  %v13629_v46 = vld [vmem:[#allocation11 + $0x424] ss:$16 sps:$4 sm:$0xff]   ;;  %v13699_v38 = vld [vmem:[#allocation11 + $0x640] ss:$16 sps:$4 sm:$0xff]  }
 0x57c   : > { %11010 = vmatpush1.bf16.msra.mxu1 %v13558_v34  ;;  %10970 = vmatprep.subr.bf16.mxu0 %v13563_v51  ;;  %v13606_v34 = vld [vmem:[#allocation11 + $0x300] ss:$16 sps:$4 sm:$0xff]   ;;  %v13611_v51 = vld [vmem:[#allocation11 + $0x4e4] ss:$16 sps:$4 sm:$0xff]  }
 0x57d   : > { %11011 = vmatprep.subr.bf16.mxu1 %v13566_v50  ;;  %v9404_v50 = vadd.bf16 %v9366_v42, %v9290_v44  ;;  %v13632_v44 = vld [vmem:[#allocation11 + $0x404] ss:$16 sps:$4 sm:$0xff]   ;;  %v13705_v42 = vld [vmem:[#allocation11 + $0x620] ss:$16 sps:$4 sm:$0xff]  }
 0x57e   : > { %v13630_v7 = vld [vmem:[#allocation11 + $0x400] ss:$16 sps:$4 sm:$0xff]   ;;  %v13635_v18 = vld [vmem:[#allocation11 + $0x5e4] ss:$16 sps:$4 sm:$0xff]  }
 0x57f   : > { %10971 = vmatpush2.bf16.msra.mxu0 %v13561_v52  ;;  %v13671_v52 = vld [vmem:[#allocation11 + $0x6e4] ss:$16 sps:$4 sm:$0xff]  }
 0x580   : > { %11012 = vmatpush2.bf16.msra.mxu1 %v13564_v21  ;;  %10972 = vmatprep.subr.bf16.mxu0 %v13569_v54  ;;  %v13609_v21 = vld [vmem:[#allocation11 + $0x4e0] ss:$16 sps:$4 sm:$0xff]   ;;  %v14867_v54 = vmax.bf16 %v14267_v0, %v9402_v48  ;;  %v13719_v48 = vld [vmem:[#allocation11 + $0x7e4] ss:$16 sps:$4 sm:$0xff]  }
 0x581   : > { %11013 = vmatprep.subr.bf16.mxu1 %v13572_v41  ;;  %v14870_v41 = vmax.bf16 %v14267_v0, %v9404_v50  ;;  %v13717_v50 = vld [vmem:[#allocation11 + $0x7e0] ss:$16 sps:$4 sm:$0xff]  }
 0x583   : > { %10973 = vmatpush2.bf16.msra.mxu0 %v13567_v1  ;;  %v13669_v1 = vld [vmem:[#allocation11 + $0x6e0] ss:$16 sps:$4 sm:$0xff]  }
 0x584   : > { %11014 = vmatpush2.bf16.msra.mxu1 %v13570_v53  ;;  %10974 = vmatprep.subr.bf16.mxu0 %v13575_v39  ;;  %v14874_v39 = vmax.bf16 %v14267_v0, %v9407_v47  ;;  %v13636_v47 = vld [vmem:[#allocation11 + $0x5c0] ss:$16 sps:$4 sm:$0xff]  }
 0x585   : > { %11015 = vmatprep.subr.bf16.mxu1 %v13578_v30  ;;  %v13677_v30 = vld [vmem:[#allocation11 + $0x6c4] ss:$16 sps:$4 sm:$0xff]  }
 0x587   : > { %10975 = vmatpush2.bf16.msra.mxu0 %v13573_v60 }
 0x588   : > { %11016 = vmatpush2.bf16.msra.mxu1 %v13576_v55  ;;  %10976 = vmatprep.subr.bf16.mxu0 %v13581_v62  ;;  %v13612_v62 = vld [vmem:[#allocation11 + $0x4c0] ss:$16 sps:$4 sm:$0xff]  }
 0x589   : > { %11017 = vmatprep.subr.bf16.mxu1 %v13584_v57 }
 0x58b   : > { %10977 = vmatpush2.bf16.msra.mxu0 %v13579_v56  ;;  %v13617_v56 = vld [vmem:[#allocation11 + $0x4a4] ss:$16 sps:$4 sm:$0xff]  }
 0x58c   : > { %11018 = vmatpush2.bf16.msra.mxu1 %v13582_v13  ;;  %10978 = vmatprep.subr.bf16.mxu0 %v13587_v43 }
 0x58d   : > { %11019 = vmatprep.subr.bf16.mxu1 %v13590_v58 }
 0x58f   : > { %10979 = vmatpush2.bf16.msra.mxu0 %v13585_v12 }
 0x590   : > { %11020 = vmatpush2.bf16.msra.mxu1 %v13588_v9  ;;  %10980 = vmatprep.subr.bf16.mxu0 %v13593_v17  ;;  %v13620_v17 = vld [vmem:[#allocation11 + $0x484] ss:$16 sps:$4 sm:$0xff]  }
 0x591   : > { %11021 = vmatprep.subr.bf16.mxu1 %v13596_v49  ;;  %v13681_v49 = vld [vmem:[#allocation11 + $0x6a0] ss:$16 sps:$4 sm:$0xff]  }
 0x593   : > { %10981 = vmatpush2.bf16.msra.mxu0 %v13591_v19  ;;  %v13623_v19 = vld [vmem:[#allocation11 + $0x464] ss:$16 sps:$4 sm:$0xff]  }
 0x594   : > { %11022 = vmatpush2.bf16.msra.mxu1 %v13594_v31  ;;  %10982 = vmatprep.subr.bf16.mxu0 %v13599_v33  ;;  %v13695_v31 = vld [vmem:[#allocation11 + $0x664] ss:$16 sps:$4 sm:$0xff]   ;;  %v13621_v33 = vld [vmem:[#allocation11 + $0x460] ss:$16 sps:$4 sm:$0xff]  }
 0x595   : > { %11023 = vmatprep.subr.bf16.mxu1 %v13602_v29  ;;  %v13693_v29 = vld [vmem:[#allocation11 + $0x660] ss:$16 sps:$4 sm:$0xff]  }
 0x597   : > { %10983 = vmatpush2.bf16.msra.mxu0 %v13597_v37  ;;  %v13624_v37 = vld [vmem:[#allocation11 + $0x440] ss:$16 sps:$4 sm:$0xff]  }
 0x598   : > { %11024 = vmatpush2.bf16.msra.mxu1 %v13600_v3  ;;  %10984 = vmatprep.subr.bf16.mxu0 %v13605_v40  ;;  %v13707_v3 = vld [vmem:[#allocation11 + $0x624] ss:$16 sps:$4 sm:$0xff]   ;;  %v13627_v40 = vld [vmem:[#allocation11 + $0x420] ss:$16 sps:$4 sm:$0xff]  }
 0x599   : > { %11025 = vmatprep.subr.bf16.mxu1 %v13608_v16  ;;  %v13713_v16 = vld [vmem:[#allocation11 + $0x604] ss:$16 sps:$4 sm:$0xff]  }
 0x59b   : > { %10985 = vmatpush2.bf16.msra.mxu0 %v13603_v14  ;;  %v13711_v14 = vld [vmem:[#allocation11 + $0x600] ss:$16 sps:$4 sm:$0xff]  }
 0x59c   : > { %11026 = vmatpush2.bf16.msra.mxu1 %v13606_v34  ;;  %11036 = vmatprep.subr.bf16.mxu0 %v13611_v51  ;;  %v13633_v34 = vld [vmem:[#allocation11 + $0x5e0] ss:$16 sps:$4 sm:$0xff]   ;;  %v13638_v51 = vld [vmem:[#allocation11 + $0x5c4] ss:$16 sps:$4 sm:$0xff]  }
 0x59d   : > { %11077 = vmatprep.subr.bf16.mxu1 %v13671_v52  ;;  %v13725_v52 = vld [vmem:[#allocation11 + $0x7c4] ss:$16 sps:$4 sm:$0xff]  }
 0x59e   : > { %v9076_v53 = vpop.f32.mrf.mxu0  ;;  %10987 = vmatmul.mubr.bf16.vlgmr.msra.gmra.mxu0 %v14867_v54 }
 0x59f   : > { %v9077_v60 = vadd.f32 %v9076_v53, %v14845_v15  ;;  %v9117_v55 = vpop.f32.mrf.mxu1  ;;  %11028 = vmatmul.mubr.bf16.vlgmr.msra.gmra.mxu1 %v14870_v41  ;;  %11037 = vmatpush1.bf16.msra.mxu0 %v13609_v21  ;;  %v13683_v15 = vld [vmem:[#allocation11 + $0x6a4] ss:$16 sps:$4 sm:$0xff]   ;;  %v13639_v53 = vld [vmem:[#allocation11 + $0x5a0] ss:$16 sps:$4 sm:$0xff]  }
 0x5a0   : > { %11068 = vmatprep.mubr.bf16.mxu0 %v14874_v39  ;;  %v9078_v57 = vpop.f32.mrf.mxu0  ;;  %11038 = vmatprep.subr.bf16.mxu0 %v13614_v27  ;;  %v13641_v21 = vld [vmem:[#allocation11 + $0x5a4] ss:$16 sps:$4 sm:$0xff]   ;;  %v13723_v27 = vld [vmem:[#allocation11 + $0x7c0] ss:$16 sps:$4 sm:$0xff]  }
 0x5a1   : > { %v14879_v61 = vadd.f32 %v9117_v55, %v9077_v60  ;;  %v9079_v13 = vadd.f32 %v9078_v57, %v14849_v25  ;;  %v9119_v43 = vpop.f32.mrf.mxu1  ;;  %11078 = vmatpush1.bf16.msra.mxu1 %v13669_v1  ;;  %v13618_v25 = vld [vmem:[#allocation11 + $0x480] ss:$16 sps:$4 sm:$0xff]   ;;  %v13731_v1 = vld [vmem:[#allocation11 + $0x7a4] ss:$16 sps:$4 sm:$0xff]   ;;  %v9317_v57 = vrot.slane %v14825_v2, %v14618_v59 }
 0x5a2   : > { %v9080_v58 = vpop.f32.mrf.mxu0  ;;  %11079 = vmatprep.subr.bf16.mxu1 %v13677_v30  ;;  %v13644_v30 = vld [vmem:[#allocation11 + $0x584] ss:$16 sps:$4 sm:$0xff]   ;;  %v13729_v60 = vld [vmem:[#allocation11 + $0x7a0] ss:$16 sps:$4 sm:$0xff]  }
 0x5a3   : > { %v14882_v45 = vadd.f32 %v9119_v43, %v9079_v13  ;;  %v9121_v12 = vpop.f32.mrf.mxu1  ;;  %11039 = vmatpush1.bf16.msra.mxu0 %v13612_v62  ;;  %v13737_v55 = vld [vmem:[#allocation11 + $0x784] ss:$16 sps:$4 sm:$0xff]   ;;  %v13642_v62 = vld [vmem:[#allocation11 + $0x580] ss:$16 sps:$4 sm:$0xff]   ;;  %v9342_v58 = vpack.c.bf16 %v9317_v57, %v9317_v57  ;;  %v13698_v57 = vld [vmem:[#allocation11 + $0x1ec] ss:$16 sps:$4 sm:$0xff]  }
 0x5a4   : > { %v9081_v9 = vpop.f32.mrf.mxu0  ;;  %11040 = vmatprep.subr.bf16.mxu0 %v13617_v56  ;;  %v13647_v56 = vld [vmem:[#allocation11 + $0x564] ss:$16 sps:$4 sm:$0xff]   ;;  %v13735_v13 = vld [vmem:[#allocation11 + $0x780] ss:$16 sps:$4 sm:$0xff]  }
 0x5a5   : > { %v9122_v26 = vpop.f32.mrf.mxu1  ;;  %11080 = vmatpush1.bf16.msra.mxu1 %v13675_v10  ;;  %v13743_v43 = vld [vmem:[#allocation11 + $0x764] ss:$16 sps:$4 sm:$0xff]   ;;  %v13645_v10 = vld [vmem:[#allocation11 + $0x560] ss:$16 sps:$4 sm:$0xff]  }
 0x5a6   : > { %11081 = vmatprep.subr.bf16.mxu1 %v13683_v15  ;;  %v13650_v15 = vld [vmem:[#allocation11 + $0x544] ss:$16 sps:$4 sm:$0xff]   ;;  %v13741_v12 = vld [vmem:[#allocation11 + $0x760] ss:$16 sps:$4 sm:$0xff]  }
 0x5a7   : > { %11041 = vmatpush1.bf16.msra.mxu0 %v13615_v63  ;;  %v13749_v63 = vld [vmem:[#allocation11 + $0x744] ss:$16 sps:$4 sm:$0xff]   ;;  %v13648_v9 = vld [vmem:[#allocation11 + $0x540] ss:$16 sps:$4 sm:$0xff]  }
 0x5a8   : > { %11042 = vmatprep.subr.bf16.mxu0 %v13620_v17  ;;  %v9375_v17 = vpack.i.b16 %v9342_v58, %v9342_v58  ;;  %v13653_v59 = vld [vmem:[#allocation11 + $0x524] ss:$16 sps:$4 sm:$0xff]   ;;  %v13747_v26 = vld [vmem:[#allocation11 + $0x740] ss:$16 sps:$4 sm:$0xff]   ;;  %v13708_v58 = vld [vmem:[#allocation11 + $0x1a8] ss:$16 sps:$4 sm:$0xff]  }
 0x5a9   : > { %11082 = vmatpush1.bf16.msra.mxu1 %v13681_v49  ;;  %v13755_v49 = vld [vmem:[#allocation11 + $0x724] ss:$16 sps:$4 sm:$0xff]  }
 0x5aa   : > { %11083 = vmatprep.subr.bf16.mxu1 %v13689_v8  ;;  %v13651_v8 = vld [vmem:[#allocation11 + $0x520] ss:$16 sps:$4 sm:$0xff]  }
 0x5ab   : > { %11043 = vmatpush1.bf16.msra.mxu0 %v13618_v25  ;;  %v9292_v25 = vpack.c.bf16 %v14819_v35, %v14819_v35 }
 0x5ac   : > { %11044 = vmatprep.subr.bf16.mxu0 %v13623_v19  ;;  %v9380_v19 = vrot.slane %v9375_v17, %v14554_v20  ;;  %v13728_v17 = vld [vmem:[#allocation11 + $0x14c] ss:$16 sps:$4 sm:$0xff]  }
 0x5ad   : > { %11084 = vmatpush1.bf16.msra.mxu1 %v13687_v28  ;;  %v13656_v28 = vld [vmem:[#allocation11 + $0x504] ss:$16 sps:$4 sm:$0xff]  }
 0x5ae   : > { %11085 = vmatprep.subr.bf16.mxu1 %v13695_v31  ;;  %v13753_v31 = vld [vmem:[#allocation11 + $0x720] ss:$16 sps:$4 sm:$0xff]  }
 0x5af   : > { %11045 = vmatpush1.bf16.msra.mxu0 %v13621_v33  ;;  %v13761_v33 = vld [vmem:[#allocation11 + $0x704] ss:$16 sps:$4 sm:$0xff]  }
 0x5b0   : > { %11046 = vmatprep.subr.bf16.mxu0 %v13626_v36  ;;  %v13654_v36 = vld [vmem:[#allocation11 + $0x500] ss:$16 sps:$4 sm:$0xff]  }
 0x5b1   : > { %11086 = vmatpush1.bf16.msra.mxu1 %v13693_v29  ;;  %v9406_v29 = vadd.bf16 %v9380_v19, %v9292_v25  ;;  %v9325_v25 = vrot.slane %v14825_v2, %v14621_v5  ;;  %v13738_v19 = vld [vmem:[#allocation11 + $0x108] ss:$16 sps:$4 sm:$0xff]  }
 0x5b2   : > { %11087 = vmatprep.subr.bf16.mxu1 %v13701_v6  ;;  %v13659_v6 = vld [vmem:[#allocation11 + $0xec] ss:$16 sps:$4 sm:$0xff]  }
 0x5b3   : > { %11047 = vmatpush1.bf16.msra.mxu0 %v13624_v37  ;;  %v13759_v37 = vld [vmem:[#allocation11 + $0x700] ss:$16 sps:$4 sm:$0xff]   ;;  %v14890_v35 = vmax.bf16 %v14267_v0, %v9406_v29  ;;  %v13744_v29 = vld [vmem:[#allocation11 + $0x4e8] ss:$16 sps:$4 sm:$0xff]  }
 0x5b4   : > { %11048 = vmatprep.subr.bf16.mxu0 %v13629_v46  ;;  %v13767_v46 = vld [vmem:[#allocation11 + $0x2ec] ss:$16 sps:$4 sm:$0xff]  }
 0x5b5   : > { %11088 = vmatpush1.bf16.msra.mxu1 %v13699_v38  ;;  %v13657_v38 = vld [vmem:[#allocation11 + $0xe8] ss:$16 sps:$4 sm:$0xff]  }
 0x5b6   : > { %11089 = vmatprep.subr.bf16.mxu1 %v13707_v3  ;;  %v13662_v3 = vld [vmem:[#allocation11 + $0xcc] ss:$16 sps:$4 sm:$0xff]  }
 0x5b7   : > { %11049 = vmatpush1.bf16.msra.mxu0 %v13627_v40 }
 0x5b8   : > { %11050 = vmatprep.subr.bf16.mxu0 %v13632_v44 }
 0x5b9   : > { %11090 = vmatpush1.bf16.msra.mxu1 %v13705_v42 }
 0x5ba   : > { %11091 = vmatprep.subr.bf16.mxu1 %v13713_v16  ;;  %v13660_v16 = vld [vmem:[#allocation11 + $0xc8] ss:$16 sps:$4 sm:$0xff]  }
 0x5bb   : > { %11051 = vmatpush1.bf16.msra.mxu0 %v13630_v7 }
 0x5bc   : > { %11052 = vmatprep.subr.bf16.mxu0 %v13635_v18  ;;  %v13665_v18 = vld [vmem:[#allocation11 + $0xac] ss:$16 sps:$4 sm:$0xff]  }
 0x5bd   : > { %11092 = vmatpush1.bf16.msra.mxu1 %v13711_v14 }
 0x5be   : > { %11093 = vmatprep.subr.bf16.mxu1 %v13719_v48 }
 0x5bf   : > { %11053 = vmatpush2.bf16.msra.mxu0 %v13633_v34 }
 0x5c0   : > { %11054 = vmatprep.subr.bf16.mxu0 %v13638_v51 }
 0x5c1   : > { %11094 = vmatpush2.bf16.msra.mxu1 %v13717_v50  ;;  %v13663_v50 = vld [vmem:[#allocation11 + $0xa8] ss:$16 sps:$4 sm:$0xff]  }
 0x5c2   : > { %11095 = vmatprep.subr.bf16.mxu1 %v13725_v52 }
 0x5c3   : > { %11055 = vmatpush2.bf16.msra.mxu0 %v13636_v47 }
 0x5c4   : > { %11056 = vmatprep.subr.bf16.mxu0 %v13641_v21  ;;  %v13666_v21 = vld [vmem:[#allocation11 + $0x88] ss:$16 sps:$4 sm:$0xff]  }
 0x5c5   : > { %11096 = vmatpush2.bf16.msra.mxu1 %v13723_v27  ;;  %v13672_v27 = vld [vmem:[#allocation11 + $0x68] ss:$16 sps:$4 sm:$0xff]  }
 0x5c6   : > { %11097 = vmatprep.subr.bf16.mxu1 %v13731_v1  ;;  %v13680_v1 = vld [vmem:[#allocation11 + $0x4c] ss:$16 sps:$4 sm:$0xff]  }
 0x5c7   : > { %11057 = vmatpush2.bf16.msra.mxu0 %v13639_v53  ;;  %v13678_v53 = vld [vmem:[#allocation11 + $0x48] ss:$16 sps:$4 sm:$0xff]  }
 0x5c8   : > { %11058 = vmatprep.subr.bf16.mxu0 %v13644_v30  ;;  %v13686_v30 = vld [vmem:[#allocation11 + $0x2c] ss:$16 sps:$4 sm:$0xff]  }
 0x5c9   : > { %11098 = vmatpush2.bf16.msra.mxu1 %v13729_v60  ;;  %v13684_v60 = vld [vmem:[#allocation11 + $0x28] ss:$16 sps:$4 sm:$0xff]  }
 0x5ca   : > { %11099 = vmatprep.subr.bf16.mxu1 %v13737_v55  ;;  %v13692_v55 = vld [vmem:[#allocation11 + $0xc] ss:$16 sps:$4 sm:$0xff]  }
 0x5cb   : > { %11059 = vmatpush2.bf16.msra.mxu0 %v13642_v62  ;;  %v13690_v62 = vld [vmem:[#allocation11 + $0x8] ss:$16 sps:$4 sm:$0xff]  }
 0x5cc   : > { %11060 = vmatprep.subr.bf16.mxu0 %v13647_v56  ;;  %v13696_v56 = vld [vmem:[#allocation11 + $0x1e8] ss:$16 sps:$4 sm:$0xff]  }
 0x5cd   : > { %11100 = vmatpush2.bf16.msra.mxu1 %v13735_v13  ;;  %v13704_v13 = vld [vmem:[#allocation11 + $0x1cc] ss:$16 sps:$4 sm:$0xff]  }
 0x5ce   : > { %11101 = vmatprep.subr.bf16.mxu1 %v13743_v43  ;;  %v13702_v43 = vld [vmem:[#allocation11 + $0x1c8] ss:$16 sps:$4 sm:$0xff]  }
 0x5cf   : > { %11061 = vmatpush2.bf16.msra.mxu0 %v13645_v10  ;;  %v13710_v10 = vld [vmem:[#allocation11 + $0x1ac] ss:$16 sps:$4 sm:$0xff]  }
 0x5d0   : > { %11062 = vmatprep.subr.bf16.mxu0 %v13650_v15  ;;  %v13716_v15 = vld [vmem:[#allocation11 + $0x18c] ss:$16 sps:$4 sm:$0xff]  }
 0x5d1   : > { %11102 = vmatpush2.bf16.msra.mxu1 %v13741_v12  ;;  %v13714_v12 = vld [vmem:[#allocation11 + $0x188] ss:$16 sps:$4 sm:$0xff]  }
 0x5d2   : > { %11103 = vmatprep.subr.bf16.mxu1 %v13749_v63  ;;  %v13722_v63 = vld [vmem:[#allocation11 + $0x16c] ss:$16 sps:$4 sm:$0xff]  }
 0x5d3   : > { %11063 = vmatpush2.bf16.msra.mxu0 %v13648_v9  ;;  %v13720_v9 = vld [vmem:[#allocation11 + $0x168] ss:$16 sps:$4 sm:$0xff]  }
 0x5d4   : > { %11064 = vmatprep.subr.bf16.mxu0 %v13653_v59  ;;  %v13726_v59 = vld [vmem:[#allocation11 + $0x148] ss:$16 sps:$4 sm:$0xff]  }
 0x5d5   : > { %11104 = vmatpush2.bf16.msra.mxu1 %v13747_v26  ;;  %v13734_v26 = vld [vmem:[#allocation11 + $0x12c] ss:$16 sps:$4 sm:$0xff]  }
 0x5d6   : > { %11105 = vmatprep.subr.bf16.mxu1 %v13755_v49  ;;  %v13732_v49 = vld [vmem:[#allocation11 + $0x128] ss:$16 sps:$4 sm:$0xff]  }
 0x5d7   : > { %11065 = vmatpush2.bf16.msra.mxu0 %v13651_v8  ;;  %v13740_v8 = vld [vmem:[#allocation11 + $0x10c] ss:$16 sps:$4 sm:$0xff]  }
 0x5d8   : > { %11066 = vmatprep.subr.bf16.mxu0 %v13656_v28  ;;  %v9329_v28 = vrot.slane %v14825_v2, %v14599_v32 }
 0x5d9   : > { %11106 = vmatpush2.bf16.msra.mxu1 %v13753_v31  ;;  %v13746_v31 = vld [vmem:[#allocation11 + $0x4ec] ss:$16 sps:$4 sm:$0xff]  }
 0x5da   : > { %11107 = vmatprep.subr.bf16.mxu1 %v13761_v33  ;;  %v9344_v33 = vpack.c.bf16 %v9325_v25, %v9325_v25  ;;  %v13795_v25 = vld [vmem:[#allocation11 + $0x248] ss:$16 sps:$4 sm:$0xff]  }
 0x5db   : > { %11067 = vmatpush2.bf16.msra.mxu0 %v13654_v36 }
 0x5dc   : > { %11118 = vmatprep.subr.bf16.mxu0 %v13659_v6  ;;  %v9345_v6 = vpack.c.bf16 %v9329_v28, %v9329_v28  ;;  %v13798_v28 = vld [vmem:[#allocation11 + $0x5c8] ss:$16 sps:$4 sm:$0xff]  }
 0x5dd   : > { %11108 = vmatpush2.bf16.msra.mxu1 %v13759_v37  ;;  %v13752_v37 = vld [vmem:[#allocation11 + $0x4cc] ss:$16 sps:$4 sm:$0xff]  }
 0x5de   : > { %v9158_v40 = vpop.f32.mrf.mxu0  ;;  %11069 = vmatmul.mubr.bf16.vlgmr.msra.gmra.mxu0 %v14890_v35  ;;  %11159 = vmatprep.subr.bf16.mxu1 %v13767_v46  ;;  %v9396_v2 = vpack.i.b16 %v9345_v6, %v9345_v6  ;;  %v13812_v6 = vld [vmem:[#allocation11 + $0x58c] ss:$16 sps:$4 sm:$0xff]  }
 0x5df   : > { %v9159_v44 = vadd.f32 %v9158_v40, %v14879_v61  ;;  %v9199_v42 = vpop.f32.mrf.mxu1  ;;  %11119 = vmatpush1.bf16.msra.mxu0 %v13657_v38  ;;  %11150 = vmatprep.mubr.bf16.mxu0 %v14839_v4  ;;  %v13668_v61 = vld [vmem:[#allocation11 + $0x8c] ss:$16 sps:$4 sm:$0xff]   ;;  %v9389_v38 = vpack.i.b16 %v9344_v33, %v9344_v33  ;;  %v13750_v40 = vld [vmem:[#allocation11 + $0x4c8] ss:$16 sps:$4 sm:$0xff]  }
 0x5e0   : > { %v14895_v7 = vpop.f32.mrf.mxu0  ;;  %11120 = vmatprep.subr.bf16.mxu0 %v13662_v3  ;;  %v13674_v4 = vld [vmem:[#allocation11 + $0x6c] ss:$16 sps:$4 sm:$0xff]   ;;  %v13801_v33 = vld [vmem:[#allocation11 + $0x228] ss:$16 sps:$4 sm:$0xff]  }
 0x5e1   : > { %v14897_v14 = vadd.f32 %v9199_v42, %v9159_v44  ;;  %v14899_v48 = vpop.f32.mrf.mxu1  ;;  %v9161_v36 = vadd.f32 %v14895_v7, %v14882_v45  ;;  %v13758_v44 = vld [vmem:[#allocation11 + $0x4ac] ss:$16 sps:$4 sm:$0xff]  }
 0x5e2   : > { %v9162_v34 = vpop.f32.mrf.mxu0 }
 0x5e3   : > { %v9203_v51 = vpop.f32.mrf.mxu1  ;;  %11121 = vmatpush1.bf16.msra.mxu0 %v13660_v16  ;;  %v9202_v5 = vadd.f32 %v14899_v48, %v9161_v36  ;;  %v9401_v48 = vrot.slane %v9396_v2, %v14554_v20  ;;  %v13809_v36 = vld [vmem:[#allocation11 + $0x20c] ss:$16 sps:$4 sm:$0xff]   ;;  %v13816_v2 = vld [vmem:[#allocation11 + $0x568] ss:$16 sps:$4 sm:$0xff]  }
 0x5e4   : > { %v9163_v52 = vpop.f32.mrf.mxu0  ;;  %11122 = vmatprep.subr.bf16.mxu0 %v13665_v18  ;;  %v9394_v18 = vrot.slane %v9389_v38, %v14554_v20  ;;  %v13810_v38 = vld [vmem:[#allocation11 + $0x588] ss:$16 sps:$4 sm:$0xff]  }
 0x5e5   : > { %v9204_v47 = vpop.f32.mrf.mxu1 }
 0x5e7   : > { %11123 = vmatpush1.bf16.msra.mxu0 %v13663_v50  ;;  %v13756_v50 = vld [vmem:[#allocation11 + $0x4a8] ss:$16 sps:$4 sm:$0xff]  }
 0x5e8   : > { %11124 = vmatprep.subr.bf16.mxu0 %v13668_v61 }
 0x5eb   : > { %11125 = vmatpush1.bf16.msra.mxu0 %v13666_v21 }
 0x5ec   : > { %11126 = vmatprep.subr.bf16.mxu0 %v13674_v4 }
 0x5ef   : > { %11127 = vmatpush1.bf16.msra.mxu0 %v13672_v27  ;;  %v13762_v27 = vld [vmem:[#allocation11 + $0x488] ss:$16 sps:$4 sm:$0xff]  }
 0x5f0   : > { %11128 = vmatprep.subr.bf16.mxu0 %v13680_v1  ;;  %v13770_v1 = vld [vmem:[#allocation11 + $0x46c] ss:$16 sps:$4 sm:$0xff]  }
 0x5f3   : > { %11129 = vmatpush1.bf16.msra.mxu0 %v13678_v53 }
 0x5f4   : > { %11130 = vmatprep.subr.bf16.mxu0 %v13686_v30  ;;  %v13765_v30 = vld [vmem:[#allocation11 + $0x2e8] ss:$16 sps:$4 sm:$0xff]  }
 0x5f7   : > { %11131 = vmatpush1.bf16.msra.mxu0 %v13684_v60 }
 0x5f8   : > { %11132 = vmatprep.subr.bf16.mxu0 %v13692_v55  ;;  %v13773_v55 = vld [vmem:[#allocation11 + $0x2cc] ss:$16 sps:$4 sm:$0xff]  }
 0x5fb   : > { %11133 = vmatpush1.bf16.msra.mxu0 %v13690_v62  ;;  %v13768_v62 = vld [vmem:[#allocation11 + $0x468] ss:$16 sps:$4 sm:$0xff]  }
 0x5fc   : > { %11134 = vmatprep.subr.bf16.mxu0 %v13698_v57  ;;  %v13776_v57 = vld [vmem:[#allocation11 + $0x44c] ss:$16 sps:$4 sm:$0xff]  }
 0x5ff   : > { %11135 = vmatpush2.bf16.msra.mxu0 %v13696_v56  ;;  %v13771_v56 = vld [vmem:[#allocation11 + $0x2c8] ss:$16 sps:$4 sm:$0xff]  }
 0x600   : > { %11136 = vmatprep.subr.bf16.mxu0 %v13704_v13  ;;  %v13779_v13 = vld [vmem:[#allocation11 + $0x2ac] ss:$16 sps:$4 sm:$0xff]  }
 0x603   : > { %11137 = vmatpush2.bf16.msra.mxu0 %v13702_v43  ;;  %v13774_v43 = vld [vmem:[#allocation11 + $0x448] ss:$16 sps:$4 sm:$0xff]  }
 0x604   : > { %11138 = vmatprep.subr.bf16.mxu0 %v13710_v10  ;;  %v13777_v10 = vld [vmem:[#allocation11 + $0x2a8] ss:$16 sps:$4 sm:$0xff]  }
 0x607   : > { %11139 = vmatpush2.bf16.msra.mxu0 %v13708_v58  ;;  %v13785_v58 = vld [vmem:[#allocation11 + $0x28c] ss:$16 sps:$4 sm:$0xff]  }
 0x608   : > { %11140 = vmatprep.subr.bf16.mxu0 %v13716_v15  ;;  %v13780_v15 = vld [vmem:[#allocation11 + $0x428] ss:$16 sps:$4 sm:$0xff]  }
 0x60b   : > { %11141 = vmatpush2.bf16.msra.mxu0 %v13714_v12  ;;  %v13788_v12 = vld [vmem:[#allocation11 + $0x40c] ss:$16 sps:$4 sm:$0xff]  }
 0x60c   : > { %11142 = vmatprep.subr.bf16.mxu0 %v13722_v63  ;;  %v13783_v63 = vld [vmem:[#allocation11 + $0x288] ss:$16 sps:$4 sm:$0xff]  }
 0x60f   : > { %11143 = vmatpush2.bf16.msra.mxu0 %v13720_v9  ;;  %v13791_v9 = vld [vmem:[#allocation11 + $0x26c] ss:$16 sps:$4 sm:$0xff]  }
 0x610   : > { %11144 = vmatprep.subr.bf16.mxu0 %v13728_v17  ;;  %v13794_v17 = vld [vmem:[#allocation11 + $0x5ec] ss:$16 sps:$4 sm:$0xff]  }
 0x613   : > { %11145 = vmatpush2.bf16.msra.mxu0 %v13726_v59  ;;  %v13789_v59 = vld [vmem:[#allocation11 + $0x268] ss:$16 sps:$4 sm:$0xff]  }
 0x614   : > { %11146 = vmatprep.subr.bf16.mxu0 %v13734_v26  ;;  %v13797_v26 = vld [vmem:[#allocation11 + $0x24c] ss:$16 sps:$4 sm:$0xff]  }
 0x617   : > { %11147 = vmatpush2.bf16.msra.mxu0 %v13732_v49  ;;  %v13792_v49 = vld [vmem:[#allocation11 + $0x5e8] ss:$16 sps:$4 sm:$0xff]  }
 0x618   : > { %11148 = vmatprep.subr.bf16.mxu0 %v13740_v8  ;;  %v13800_v8 = vld [vmem:[#allocation11 + $0x5cc] ss:$16 sps:$4 sm:$0xff]  }
 0x61b   : > { %11149 = vmatpush2.bf16.msra.mxu0 %v13738_v19  ;;  %v13803_v19 = vld [vmem:[#allocation11 + $0x22c] ss:$16 sps:$4 sm:$0xff]  }
 0x61c   : > { %11200 = vmatprep.subr.bf16.mxu0 %v13746_v31  ;;  %v13806_v31 = vld [vmem:[#allocation11 + $0x5ac] ss:$16 sps:$4 sm:$0xff]  }
 0x61e   : > { %v9240_v46 = vpop.f32.mrf.mxu0  ;;  %11151 = vmatmul.mubr.bf16.vlgmr.msra.gmra.mxu0 %v14867_v54 }
 0x61f   : > { %v9241_v3 = vadd.f32 %v9240_v46, %v14897_v14  ;;  %v9281_v32 = vpop.f32.mrf.mxu1  ;;  %11201 = vmatpush1.bf16.msra.mxu0 %v13744_v29  ;;  %11232 = vmatprep.mubr.bf16.mxu0 %v14874_v39  ;;  %v13764_v39 = vld [vmem:[#allocation11 + $0x48c] ss:$16 sps:$4 sm:$0xff]   ;;  %v13804_v29 = vld [vmem:[#allocation11 + $0x5a8] ss:$16 sps:$4 sm:$0xff]  }
 0x620   : > { %v9242_v45 = vpop.f32.mrf.mxu0  ;;  %11202 = vmatprep.subr.bf16.mxu0 %v13752_v37  ;;  %v13807_v37 = vld [vmem:[#allocation11 + $0x208] ss:$16 sps:$4 sm:$0xff]   ;;  %v13815_v46 = vld [vmem:[#allocation11 + $0x3ec] ss:$16 sps:$4 sm:$0xff]  }
 0x621   : > { %v9282_v42 = vadd.f32 %v9281_v32, %v9241_v3  ;;  %v9243_v16 = vadd.f32 %v9242_v45, %v9202_v5  ;;  %v9283_v7 = vpop.f32.mrf.mxu1  ;;  %v13818_v5 = vld [vmem:[#allocation11 + $0x56c] ss:$16 sps:$4 sm:$0xff]   ;;  %v13813_v3 = vld [vmem:[#allocation11 + $0x3e8] ss:$16 sps:$4 sm:$0xff]  }
 0x622   : > { %v9244_v34 = vpop.f32.mrf.mxu0  ;;  %v13821_v32 = vld [vmem:[#allocation11 + $0x3cc] ss:$16 sps:$4 sm:$0xff]   ;;  %v13819_v45 = vld [vmem:[#allocation11 + $0x3c8] ss:$16 sps:$4 sm:$0xff]  }
 0x623   : > { %v9294_v54 = vpack.c.bf16 %v9282_v42, %v9282_v42  ;;  %v9284_v51 = vadd.f32 %v9283_v7, %v9243_v16  ;;  %v9285_v14 = vpop.f32.mrf.mxu1  ;;  %11203 = vmatpush1.bf16.msra.mxu0 %v13750_v40  ;;  %v13824_v40 = vld [vmem:[#allocation11 + $0x54c] ss:$16 sps:$4 sm:$0xff]   ;;  %v13822_v42 = vld [vmem:[#allocation11 + $0x548] ss:$16 sps:$4 sm:$0xff]  }
 0x624   : > { %v9245_v52 = vpop.f32.mrf.mxu0  ;;  %11204 = vmatprep.subr.bf16.mxu0 %v13758_v44  ;;  %v13827_v44 = vld [vmem:[#allocation11 + $0x3ac] ss:$16 sps:$4 sm:$0xff]   ;;  %v13825_v7 = vld [vmem:[#allocation11 + $0x3a8] ss:$16 sps:$4 sm:$0xff]  }
 0x625   : > { %v9295_v61 = vpack.c.bf16 %v9284_v51, %v9284_v51  ;;  %v9286_v47 = vpop.f32.mrf.mxu1  ;;  %v9408_v21 = vadd.bf16 %v9394_v18, %v9294_v54  ;;  %v13830_v16 = vld [vmem:[#allocation11 + $0x52c] ss:$16 sps:$4 sm:$0xff]   ;;  %v13828_v34 = vld [vmem:[#allocation11 + $0x528] ss:$16 sps:$4 sm:$0xff]  }
 0x626   : > { %v13833_v18 = vld [vmem:[#allocation11 + $0x38c] ss:$16 sps:$4 sm:$0xff]   ;;  %v13831_v51 = vld [vmem:[#allocation11 + $0x388] ss:$16 sps:$4 sm:$0xff]  }
 0x627   : > { %v9409_v4 = vadd.bf16 %v9401_v48, %v9295_v61  ;;  %11205 = vmatpush1.bf16.msra.mxu0 %v13756_v50  ;;  %v14917_v60 = vmax.bf16 %v14267_v0, %v9408_v21  ;;  %v13836_v54 = vld [vmem:[#allocation11 + $0x50c] ss:$16 sps:$4 sm:$0xff]   ;;  %v13834_v14 = vld [vmem:[#allocation11 + $0x508] ss:$16 sps:$4 sm:$0xff]  }
 0x628   : > { %11206 = vmatprep.subr.bf16.mxu0 %v13764_v39  ;;  %v13839_v48 = vld [vmem:[#allocation11 + $0x36c] ss:$16 sps:$4 sm:$0xff]   ;;  %v13837_v52 = vld [vmem:[#allocation11 + $0x368] ss:$16 sps:$4 sm:$0xff]  }
 0x629   : > { %v14914_v53 = vmax.bf16 %v14267_v0, %v9409_v4  ;;  %v13782_v0 = vld [vmem:[#allocation11 + $0x42c] ss:$16 sps:$4 sm:$0xff]   ;;  %v13840_v47 = vld [vmem:[#allocation11 + $0x348] ss:$16 sps:$4 sm:$0xff]  }
 0x62a   : > { %v13897_v50 = vld [vmem:[#allocation14 + $0x78] sm:$0xff]  }
 0x62b   : > { %11109 = vmatprep.mubr.bf16.mxu1 %v14914_v53  ;;  %11207 = vmatpush1.bf16.msra.mxu0 %v13762_v27  ;;  %v13842_v39 = vld [vmem:[#allocation11 + $0x34c] ss:$16 sps:$4 sm:$0xff]   ;;  %v13899_v27 = vld [vmem:[#allocation14 + $0x70] sm:$0xff]  }
 0x62c   : > { %11110 = vmatmul.mubr.bf16.vlgmr.msra.gmra.mxu1 %v14917_v60  ;;  %11208 = vmatprep.subr.bf16.mxu0 %v13770_v1  ;;  %v13898_v61 = vld [vmem:[#allocation14 + $0x38] sm:$0xff]  }
 0x62d   : > { %11160 = vmatpush1.bf16.msra.mxu1 %v13765_v30  ;;  %11191 = vmatprep.mubr.bf16.mxu1 %v14843_v11  ;;  %v13786_v11 = vld [vmem:[#allocation11 + $0x408] ss:$16 sps:$4 sm:$0xff]   ;;  %v13845_v4 = vld [vmem:[#allocation11 + $0x32c] ss:$16 sps:$4 sm:$0xff]  }
 0x62e   : > { %11161 = vmatprep.subr.bf16.mxu1 %v13773_v55  ;;  %v13900_v30 = vld [vmem:[#allocation14 + $0x30] sm:$0xff]  }
 0x62f   : > { %11209 = vmatpush1.bf16.msra.mxu0 %v13768_v62 }
 0x630   : > { %11210 = vmatprep.subr.bf16.mxu0 %v13776_v57 }
 0x631   : > { %11162 = vmatpush1.bf16.msra.mxu1 %v13771_v56  ;;  %v13843_v56 = vld [vmem:[#allocation11 + $0x328] ss:$16 sps:$4 sm:$0xff]  }
 0x632   : > { %11163 = vmatprep.subr.bf16.mxu1 %v13779_v13 }
 0x633   : > { %11211 = vmatpush1.bf16.msra.mxu0 %v13774_v43 }
 0x634   : > { %11212 = vmatprep.subr.bf16.mxu0 %v13782_v0  ;;  %v13848_v0 = vld [vmem:[#allocation11 + $0x30c] ss:$16 sps:$4 sm:$0xff]  }
 0x635   : > { %11164 = vmatpush1.bf16.msra.mxu1 %v13777_v10  ;;  %v13901_v10 = vld [vmem:[#allocation14 + $0x68] sm:$0xff]  }
 0x636   : > { %11165 = vmatprep.subr.bf16.mxu1 %v13785_v58  ;;  %v13902_v58 = vld [vmem:[#allocation14 + $0x28] sm:$0xff]  }
 0x637   : > { %11213 = vmatpush1.bf16.msra.mxu0 %v13780_v15 }
 0x638   : > { %11214 = vmatprep.subr.bf16.mxu0 %v13788_v12  ;;  %v13903_v12 = vld [vmem:[#allocation14 + $0x60] sm:$0xff]  }
 0x639   : > { %11166 = vmatpush1.bf16.msra.mxu1 %v13783_v63 }
 0x63a   : > { %11167 = vmatprep.subr.bf16.mxu1 %v13791_v9  ;;  %v13846_v9 = vld [vmem:[#allocation11 + $0x308] ss:$16 sps:$4 sm:$0xff]  }
 0x63b   : > { %11215 = vmatpush1.bf16.msra.mxu0 %v13786_v11  ;;  %v13851_v11 = vld [vmem:[#allocation11 + $0x6ec] ss:$16 sps:$4 sm:$0xff]  }
 0x63c   : > { %11216 = vmatprep.subr.bf16.mxu0 %v13794_v17  ;;  %v13904_v17 = vld [vmem:[#allocation14 + $0x20] sm:$0xff]  }
 0x63d   : > { %11168 = vmatpush1.bf16.msra.mxu1 %v13789_v59  ;;  %v13905_v59 = vld [vmem:[#allocation14 + $0x58] sm:$0xff]  }
 0x63e   : > { %11169 = vmatprep.subr.bf16.mxu1 %v13797_v26  ;;  %v13849_v26 = vld [vmem:[#allocation11 + $0x6e8] ss:$16 sps:$4 sm:$0xff]  }
 0x63f   : > { %11217 = vmatpush2.bf16.msra.mxu0 %v13792_v49  ;;  %v13854_v49 = vld [vmem:[#allocation11 + $0x6cc] ss:$16 sps:$4 sm:$0xff]  }
 0x640   : > { %11218 = vmatprep.subr.bf16.mxu0 %v13800_v8  ;;  %v13906_v8 = vld [vmem:[#allocation14 + $0x18] sm:$0xff]  }
 0x641   : > { %11170 = vmatpush1.bf16.msra.mxu1 %v13795_v25  ;;  %v13852_v25 = vld [vmem:[#allocation11 + $0x6c8] ss:$16 sps:$4 sm:$0xff]  }
 0x642   : > { %11171 = vmatprep.subr.bf16.mxu1 %v13803_v19  ;;  %v13857_v19 = vld [vmem:[#allocation11 + $0x6ac] ss:$16 sps:$4 sm:$0xff]  }
 0x643   : > { %11219 = vmatpush2.bf16.msra.mxu0 %v13798_v28  ;;  %v13907_v28 = vld [vmem:[#allocation14 + $0x50] sm:$0xff]  }
 0x644   : > { %11220 = vmatprep.subr.bf16.mxu0 %v13806_v31  ;;  %v13908_v31 = vld [vmem:[#allocation14 + $0x10] sm:$0xff]  }
 0x645   : > { %11172 = vmatpush1.bf16.msra.mxu1 %v13801_v33  ;;  %v13855_v33 = vld [vmem:[#allocation11 + $0x6a8] ss:$16 sps:$4 sm:$0xff]  }
 0x646   : > { %11173 = vmatprep.subr.bf16.mxu1 %v13809_v36  ;;  %v13860_v36 = vld [vmem:[#allocation11 + $0x68c] ss:$16 sps:$4 sm:$0xff]  }
 0x647   : > { %11221 = vmatpush2.bf16.msra.mxu0 %v13804_v29  ;;  %v13909_v29 = vld [vmem:[#allocation14 + $0x48] sm:$0xff]  }
 0x648   : > { %11222 = vmatprep.subr.bf16.mxu0 %v13812_v6  ;;  %v13910_v6 = vld [vmem:[#allocation14 + $0x8] sm:$0xff]  }
 0x649   : > { %11174 = vmatpush1.bf16.msra.mxu1 %v13807_v37  ;;  %v13911_v37 = vld [vmem:[#allocation14 + $0x40] sm:$0xff]  }
 0x64a   : > { %11175 = vmatprep.subr.bf16.mxu1 %v13815_v46  ;;  %v13912_v46 = vld [vmem:[#allocation14] sm:$0xff]  }
 0x64b   : > { %11223 = vmatpush2.bf16.msra.mxu0 %v13810_v38  ;;  %v13861_v38 = vld [vmem:[#allocation11 + $0x668] ss:$16 sps:$4 sm:$0xff]  }
 0x64c   : > { %11224 = vmatprep.subr.bf16.mxu0 %v13818_v5  ;;  %v13866_v5 = vld [vmem:[#allocation11 + $0x64c] ss:$16 sps:$4 sm:$0xff]  }
 0x64d   : > { %11176 = vmatpush2.bf16.msra.mxu1 %v13813_v3  ;;  %v13864_v3 = vld [vmem:[#allocation11 + $0x648] ss:$16 sps:$4 sm:$0xff]  }
 0x64e   : > { %11177 = vmatprep.subr.bf16.mxu1 %v13821_v32  ;;  %v13869_v32 = vld [vmem:[#allocation11 + $0x62c] ss:$16 sps:$4 sm:$0xff]  }
 0x64f   : > { %11225 = vmatpush2.bf16.msra.mxu0 %v13816_v2  ;;  %v13867_v2 = vld [vmem:[#allocation11 + $0x628] ss:$16 sps:$4 sm:$0xff]  }
 0x650   : > { %11226 = vmatprep.subr.bf16.mxu0 %v13824_v40  ;;  %v13872_v40 = vld [vmem:[#allocation11 + $0x60c] ss:$16 sps:$4 sm:$0xff]  }
 0x651   : > { %11178 = vmatpush2.bf16.msra.mxu1 %v13819_v45  ;;  %v13870_v45 = vld [vmem:[#allocation11 + $0x608] ss:$16 sps:$4 sm:$0xff]  }
 0x652   : > { %11179 = vmatprep.subr.bf16.mxu1 %v13827_v44  ;;  %v13875_v44 = vld [vmem:[#allocation11 + $0x7ec] ss:$16 sps:$4 sm:$0xff]  }
 0x653   : > { %11227 = vmatpush2.bf16.msra.mxu0 %v13822_v42  ;;  %v13873_v42 = vld [vmem:[#allocation11 + $0x7e8] ss:$16 sps:$4 sm:$0xff]  }
 0x654   : > { %11228 = vmatprep.subr.bf16.mxu0 %v13830_v16  ;;  %v13878_v16 = vld [vmem:[#allocation11 + $0x7cc] ss:$16 sps:$4 sm:$0xff]  }
 0x655   : > { %11180 = vmatpush2.bf16.msra.mxu1 %v13825_v7  ;;  %v13876_v7 = vld [vmem:[#allocation11 + $0x7c8] ss:$16 sps:$4 sm:$0xff]  }
 0x656   : > { %11181 = vmatprep.subr.bf16.mxu1 %v13833_v18  ;;  %v13881_v18 = vld [vmem:[#allocation11 + $0x7ac] ss:$16 sps:$4 sm:$0xff]  }
 0x657   : > { %11229 = vmatpush2.bf16.msra.mxu0 %v13828_v34  ;;  %v13879_v34 = vld [vmem:[#allocation11 + $0x7a8] ss:$16 sps:$4 sm:$0xff]  }
 0x658   : > { %11230 = vmatprep.subr.bf16.mxu0 %v13836_v54  ;;  %v13884_v54 = vld [vmem:[#allocation11 + $0x78c] ss:$16 sps:$4 sm:$0xff]  }
 0x659   : > { %11182 = vmatpush2.bf16.msra.mxu1 %v13831_v51  ;;  %v13882_v51 = vld [vmem:[#allocation11 + $0x788] ss:$16 sps:$4 sm:$0xff]  }
 0x65a   : > { %11183 = vmatprep.subr.bf16.mxu1 %v13839_v48  ;;  %v13887_v48 = vld [vmem:[#allocation11 + $0x76c] ss:$16 sps:$4 sm:$0xff]  }
 0x65b   : > { %11231 = vmatpush2.bf16.msra.mxu0 %v13834_v14  ;;  %v13885_v14 = vld [vmem:[#allocation11 + $0x768] ss:$16 sps:$4 sm:$0xff]  }
 0x65c   : > { %13334 = vmatprep.subr.bf16.mxu0 %v13897_v50  ;;  %v13890_v50 = vld [vmem:[#allocation11 + $0x74c] ss:$16 sps:$4 sm:$0xff]  }
 0x65d   : > { %11184 = vmatpush2.bf16.msra.mxu1 %v13837_v52  ;;  %v13888_v52 = vld [vmem:[#allocation11 + $0x748] ss:$16 sps:$4 sm:$0xff]  }
 0x65e   : > { %v10988_v21 = vpop.f32.mrf.mxu0  ;;  %11233 = vmatmul.mubr.bf16.vlgmr.msra.gmra.mxu0 %v14890_v35  ;;  %11185 = vmatprep.subr.bf16.mxu1 %v13842_v39 }
 0x65f   : > { %v11029_v1 = vpop.f32.mrf.mxu1  ;;  %13335 = vmatpush3.bf16.msra.mxu0 %v13898_v61  ;;  %v13893_v61 = vld [vmem:[#allocation11 + $0x72c] ss:$16 sps:$4 sm:$0xff]  }
 0x660   : > { %v14923_v55 = vadd.f32 %v11029_v1, %v10988_v21  ;;  %v10990_v62 = vpop.f32.mrf.mxu0  ;;  %13336 = vmatprep.subr.bf16.mxu0 %v13899_v27  ;;  %v13891_v27 = vld [vmem:[#allocation11 + $0x728] ss:$16 sps:$4 sm:$0xff]  }
 0x661   : > { %v11031_v57 = vpop.f32.mrf.mxu1  ;;  %11186 = vmatpush2.bf16.msra.mxu1 %v13840_v47 }
 0x662   : > { %v14925_v13 = vadd.f32 %v11031_v57, %v10990_v62  ;;  %v10992_v43 = vpop.f32.mrf.mxu0  ;;  %11187 = vmatprep.subr.bf16.mxu1 %v13845_v4  ;;  %v13894_v57 = vld [vmem:[#allocation11 + $0x708] ss:$16 sps:$4 sm:$0xff]  }
 0x663   : > { %v11033_v35 = vpop.f32.mrf.mxu1  ;;  %13337 = vmatpush3.bf16.msra.mxu0 %v13900_v30  ;;  %v13896_v30 = vld [vmem:[#allocation11 + $0x70c] ss:$16 sps:$4 sm:$0xff]  }
 0x664   : > { %v10993_v15 = vpop.f32.mrf.mxu0  ;;  %13338 = vmatprep.subr.bf16.mxu0 %v13901_v10  ;;  %v13914_v43 = vld [vmem:[#allocation14 + $0xb8] sm:$0xff]   ;;  %v13918_v10 = vld [vmem:[#allocation14 + $0xa8] sm:$0xff]   ;;  %v13919_v35 = vld [vmem:[#allocation14 + $0xe0] sm:$0xff]  }
 0x665   : > { %v11034_v63 = vpop.f32.mrf.mxu1  ;;  %11188 = vmatpush2.bf16.msra.mxu1 %v13843_v56  ;;  %v13913_v56 = vld [vmem:[#allocation14 + $0xf8] sm:$0xff]  }
 0x666   : > { %11189 = vmatprep.subr.bf16.mxu1 %v13848_v0  ;;  %v13915_v0 = vld [vmem:[#allocation14 + $0xf0] sm:$0xff]   ;;  %v13921_v15 = vld [vmem:[#allocation14 + $0xd8] sm:$0xff]  }
 0x667   : > { %13339 = vmatpush3.bf16.msra.mxu0 %v13902_v58  ;;  %v13920_v58 = vld [vmem:[#allocation14 + $0xa0] sm:$0xff]   ;;  %v11286_v63 = vld [vmem:[#allocation13] sm:$0xf] }
 0x668   : > { %13340 = vmatprep.subr.bf16.mxu0 %v13903_v12  ;;  %v13922_v12 = vld [vmem:[#allocation14 + $0x98] sm:$0xff]  }
 0x669   : > { %11190 = vmatpush2.bf16.msra.mxu1 %v13846_v9 }
 0x66a   : > { %11241 = vmatprep.subr.bf16.mxu1 %v13851_v11  ;;  %v11291_v11 = vrot.slane %v11286_v63, %v14554_v20 }
 0x66b   : > { %13341 = vmatpush3.bf16.msra.mxu0 %v13904_v17 }
 0x66c   : > { %11192 = vmatmul.mubr.bf16.vlgmr.msra.gmra.mxu1 %v14870_v41  ;;  %13342 = vmatprep.subr.bf16.mxu0 %v13905_v59  ;;  %v13858_v41 = vld [vmem:[#allocation11 + $0x688] ss:$16 sps:$4 sm:$0xff]   ;;  %v11295_v59 = vrot.slane %v11286_v63, %v14562_v23 }
 0x66d   : > { %11242 = vmatpush1.bf16.msra.mxu1 %v13849_v26  ;;  %11273 = vmatprep.mubr.bf16.mxu1 %v14914_v53  ;;  %v13863_v53 = vld [vmem:[#allocation11 + $0x66c] ss:$16 sps:$4 sm:$0xff]  }
 0x66e   : > { %11243 = vmatprep.subr.bf16.mxu1 %v13854_v49  ;;  %v11308_v49 = vpack.c.bf16 %v11291_v11, %v11291_v11 }
 0x66f   : > { %13343 = vmatpush3.bf16.msra.mxu0 %v13906_v8  ;;  %v11309_v8 = vpack.c.bf16 %v11295_v59, %v11295_v59 }
 0x670   : > { %13344 = vmatprep.subr.bf16.mxu0 %v13907_v28 }
 0x671   : > { %11244 = vmatpush1.bf16.msra.mxu1 %v13852_v25  ;;  %v11313_v25 = vpack.i.b16 %v11308_v49, %v11308_v49 }
 0x672   : > { %11245 = vmatprep.subr.bf16.mxu1 %v13857_v19  ;;  %v11320_v19 = vpack.i.b16 %v11309_v8, %v11309_v8 }
 0x673   : > { %13345 = vmatpush3.bf16.msra.mxu0 %v13908_v31 }
 0x674   : > { %13346 = vmatprep.subr.bf16.mxu0 %v13909_v29 }
 0x675   : > { %11246 = vmatpush1.bf16.msra.mxu1 %v13855_v33  ;;  %v11318_v33 = vrot.slane %v11313_v25, %v14554_v20  ;;  %v13297_v25 = vld [vmem:[#allocation16] ss:$0 sm:$0xff] }
 0x676   : > { %11247 = vmatprep.subr.bf16.mxu1 %v13860_v36  ;;  %v13923_v36 = vld [vmem:[#allocation14 + $0xd0] sm:$0xff]  }
 0x677   : > { %13347 = vmatpush3.bf16.msra.mxu0 %v13910_v6  ;;  %v13924_v6 = vld [vmem:[#allocation14 + $0x90] sm:$0xff]  }
 0x678   : > { %13348 = vmatprep.subr.bf16.mxu0 %v13911_v37 }
 0x679   : > { %11248 = vmatpush1.bf16.msra.mxu1 %v13858_v41 }
 0x67a   : > { %11249 = vmatprep.subr.bf16.mxu1 %v13863_v53  ;;  %v11325_v53 = vrot.slane %v11320_v19, %v14554_v20 }
 0x67b   : > { %13349 = vmatpush3.bf16.msra.mxu0 %v13912_v46 }
 0x67d   : > { %11250 = vmatpush1.bf16.msra.mxu1 %v13861_v38 }
 0x67e   : > { %11251 = vmatprep.subr.bf16.mxu1 %v13866_v5  ;;  %v13925_v5 = vld [vmem:[#allocation14 + $0xc8] sm:$0xff]  }
 0x681   : > { %11252 = vmatpush1.bf16.msra.mxu1 %v13864_v3 }
 0x682   : > { %11253 = vmatprep.subr.bf16.mxu1 %v13869_v32  ;;  %v13926_v32 = vld [vmem:[#allocation14 + $0x88] sm:$0xff]  }
 0x685   : > { %11254 = vmatpush1.bf16.msra.mxu1 %v13867_v2 }
 0x686   : > { %11255 = vmatprep.subr.bf16.mxu1 %v13872_v40 }
 0x689   : > { %11256 = vmatpush1.bf16.msra.mxu1 %v13870_v45 }
 0x68a   : > { %11257 = vmatprep.subr.bf16.mxu1 %v13875_v44  ;;  %v13927_v44 = vld [vmem:[#allocation14 + $0xc0] sm:$0xff]  }
 0x68d   : > { %11258 = vmatpush2.bf16.msra.mxu1 %v13873_v42  ;;  %v13928_v42 = vld [vmem:[#allocation14 + $0x80] sm:$0xff]  }
 0x68e   : > { %11259 = vmatprep.subr.bf16.mxu1 %v13878_v16 }
 0x691   : > { %11260 = vmatpush2.bf16.msra.mxu1 %v13876_v7 }
 0x692   : > { %11261 = vmatprep.subr.bf16.mxu1 %v13881_v18 }
 0x695   : > { %11262 = vmatpush2.bf16.msra.mxu1 %v13879_v34 }
 0x696   : > { %11263 = vmatprep.subr.bf16.mxu1 %v13884_v54 }
 0x699   : > { %11264 = vmatpush2.bf16.msra.mxu1 %v13882_v51 }
 0x69a   : > { %11265 = vmatprep.subr.bf16.mxu1 %v13887_v48 }
 0x69d   : > { %11266 = vmatpush2.bf16.msra.mxu1 %v13885_v14 }
 0x69e   : > { %v11070_v39 = vpop.f32.mrf.mxu0  ;;  %11267 = vmatprep.subr.bf16.mxu1 %v13890_v50 }
 0x69f   : > { %v11071_v47 = vadd.f32 %v11070_v39, %v14923_v55  ;;  %v13916_v55 = vld [vmem:[#allocation14 + $0xb0] sm:$0xff]   ;;  %v11299_v39 = vrot.slane %v11286_v63, %v14559_v22 }
 0x6a0   : > { %v11072_v21 = vpop.f32.mrf.mxu0 }
 0x6a1   : > { %v11073_v4 = vadd.f32 %v11072_v21, %v14925_v13  ;;  %11268 = vmatpush2.bf16.msra.mxu1 %v13888_v52  ;;  %v13917_v13 = vld [vmem:[#allocation14 + $0xe8] sm:$0xff]  }
 0x6a2   : > { %v11074_v1 = vpop.f32.mrf.mxu0  ;;  %11269 = vmatprep.subr.bf16.mxu1 %v13893_v61  ;;  %v11303_v61 = vrot.slane %v11286_v63, %v14565_v24 }
 0x6a4   : > { %v11075_v62 = vpop.f32.mrf.mxu0 }
 0x6a5   : > { %11270 = vmatpush2.bf16.msra.mxu1 %v13891_v27 }
 0x6a6   : > { %11271 = vmatprep.subr.bf16.mxu1 %v13896_v30 }
 0x6a9   : > { %11272 = vmatpush2.bf16.msra.mxu1 %v13894_v57 }
 0x6aa   : > { %13356 = vmatprep.subr.bf16.mxu1 %v13913_v56 }
 0x6ac   : > { %11274 = vmatmul.mubr.bf16.vlgmr.msra.gmra.mxu1 %v14917_v60 }
 0x6ad   : > { %13357 = vmatpush3.bf16.msra.mxu1 %v13914_v43 }
 0x6ae   : > { %13358 = vmatprep.subr.bf16.mxu1 %v13915_v0 }
 0x6b1   : > { %13359 = vmatpush3.bf16.msra.mxu1 %v13916_v55 }
 0x6b2   : > { %13360 = vmatprep.subr.bf16.mxu1 %v13917_v13 }
 0x6b5   : > { %13361 = vmatpush3.bf16.msra.mxu1 %v13918_v10 }
 0x6b6   : > { %13362 = vmatprep.subr.bf16.mxu1 %v13919_v35 }
 0x6b9   : > { %13363 = vmatpush3.bf16.msra.mxu1 %v13920_v58 }
 0x6ba   : > { %13364 = vmatprep.subr.bf16.mxu1 %v13921_v15 }
 0x6bd   : > { %13365 = vmatpush3.bf16.msra.mxu1 %v13922_v12 }
 0x6be   : > { %13366 = vmatprep.subr.bf16.mxu1 %v13923_v36 }
 0x6c1   : > { %13367 = vmatpush3.bf16.msra.mxu1 %v13924_v6 }
 0x6c2   : > { %13368 = vmatprep.subr.bf16.mxu1 %v13925_v5 }
 0x6c5   : > { %13369 = vmatpush3.bf16.msra.mxu1 %v13926_v32 }
 0x6c6   : > { %13370 = vmatprep.subr.bf16.mxu1 %v13927_v44 }
 0x6c9   : > { %13371 = vmatpush3.bf16.msra.mxu1 %v13928_v42 }
 0x6de   : > { %v11152_v60 = vpop.f32.mrf.mxu0 }
 0x6e0   : > { %v11154_v9 = vpop.f32.mrf.mxu0 }
 0x6e2   : > { %v11156_v17 = vpop.f32.mrf.mxu0 }
 0x6e4   : > { %v11157_v26 = vpop.f32.mrf.mxu0 }
 0x6ec   : > { %v11111_v28 = vpop.f32.mrf.mxu1 }
 0x6ed   : > { %v11112_v31 = vadd.f32 %v11111_v28, %v11071_v47  ;;  %v11310_v47 = vpack.c.bf16 %v11299_v39, %v11299_v39 }
 0x6ee   : > { %v11113_v29 = vpop.f32.mrf.mxu1 }
 0x6ef   : > { %v11282_v41 = vpack.c.bf16 %v11112_v31, %v11112_v31  ;;  %v11114_v37 = vadd.f32 %v11113_v29, %v11073_v4  ;;  %v11311_v4 = vpack.c.bf16 %v11303_v61, %v11303_v61  ;;  %v11327_v1 = vpack.i.b16 %v11310_v47, %v11310_v47 }
 0x6f0   : > { %v11115_v46 = vpop.f32.mrf.mxu1 }
 0x6f1   : > { %v11340_v23 = vadd.bf16 %v11318_v33, %v11282_v41  ;;  %v11283_v38 = vpack.c.bf16 %v11114_v37, %v11114_v37  ;;  %v11334_v62 = vpack.i.b16 %v11311_v4, %v11311_v4  ;;  %v11332_v43 = vrot.slane %v11327_v1, %v14554_v20 }
 0x6f2   : > { %v11116_v3 = vpop.f32.mrf.mxu1 }
 0x6f3   : > { %v11341_v2 = vadd.bf16 %v11325_v53, %v11283_v38  ;;  %v11344_v40 = vmul.bf16 1009007652, %v11340_v23  ;;  %v11339_v35 = vrot.slane %v11334_v62, %v14554_v20 }
 0x6f5   : > { %v11345_v45 = vmul.bf16 1009007652, %v11341_v2  ;;  %v11348_v7 = vmax.bf16 %v11344_v40, %v11340_v23 }
 0x6f7   : > { %v11349_v16 = vmax.bf16 %v11345_v45, %v11341_v2 }
 0x6f9   : > { %11647 = vmatprep.mubr.bf16.mxu0 %v11349_v16 }
 0x6fa   : > { %11648 = vmatmul.mubr.bf16.vlgmr.msra.gmra.mxu0 %v11348_v7 }
 0x71e   : > { %v11234_v18 = vpop.f32.mrf.mxu0 }
 0x720   : > { %v11236_v34 = vpop.f32.mrf.mxu0 }
 0x722   : > { %v11238_v54 = vpop.f32.mrf.mxu0 }
 0x724   : > { %v11239_v51 = vpop.f32.mrf.mxu0 }
 0x72c   : > { %v11193_v48 = vpop.f32.mrf.mxu1 }
 0x72d   : > { %v11194_v21 = vadd.f32 %v11193_v48, %v11152_v60 }
 0x72e   : > { %v11195_v14 = vpop.f32.mrf.mxu1 }
 0x72f   : > { %v11196_v27 = vadd.f32 %v11195_v14, %v11154_v9  ;;  %v11235_v30 = vadd.f32 %v11234_v18, %v11194_v21 }
 0x730   : > { %v11197_v50 = vpop.f32.mrf.mxu1 }
 0x731   : > { %v11237_v0 = vadd.f32 %v11236_v34, %v11196_v27 }
 0x732   : > { %v11198_v52 = vpop.f32.mrf.mxu1 }
 0x76c   : > { %v11275_v57 = vpop.f32.mrf.mxu1 }
 0x76d   : > { %v11276_v56 = vadd.f32 %v11275_v57, %v11235_v30 }
 0x76e   : > { %v11277_v55 = vpop.f32.mrf.mxu1 }
 0x76f   : > { %v11284_v13 = vpack.c.bf16 %v11276_v56, %v11276_v56  ;;  %v11278_v10 = vadd.f32 %v11277_v55, %v11237_v0 }
 0x770   : > { %v11279_v22 = vpop.f32.mrf.mxu1 }
 0x771   : > { %v11342_v58 = vadd.bf16 %v11332_v43, %v11284_v13  ;;  %v11285_v24 = vpack.c.bf16 %v11278_v10, %v11278_v10 }
 0x772   : > { %v11280_v15 = vpop.f32.mrf.mxu1 }
 0x773   : > { %v11343_v12 = vadd.bf16 %v11339_v35, %v11285_v24  ;;  %v11346_v60 = vmul.bf16 1009007652, %v11342_v58 }
 0x775   : > { %v11347_v63 = vmul.bf16 1009007652, %v11343_v12  ;;  %v11350_v11 = vmax.bf16 %v11346_v60, %v11342_v58 }
 0x777   : > { %v11351_v9 = vmax.bf16 %v11347_v63, %v11343_v12 }
 0x779   : > { %11687 = vmatprep.mubr.bf16.mxu1 %v11351_v9 }
 0x77a   : > { %11688 = vmatmul.mubr.bf16.vlgmr.msra.gmra.mxu1 %v11350_v11 }
 0x7ba   : > { %v13350_v17 = vpop.f32.mrf.mxu0 }
 0x7bc   : > { %v13351_v59 = vpop.f32.mrf.mxu0 }
 0x7bd   : > { %v13352_v26 = vadd.f32 %v13351_v59, %v13350_v17 }
 0x7be   : > { %v13353_v49 = vpop.f32.mrf.mxu0 }
 0x7bf   : > { %v11650_v28 = vadd.f32 %v13352_v26, %v13297_v25 }
 0x7c0   : > { %v13354_v8 = vpop.f32.mrf.mxu0 }
 0x83a   : > { %v13372_v19 = vpop.f32.mrf.mxu1 }
 0x83c   : > { %v13373_v20 = vpop.f32.mrf.mxu1 }
 0x83d   : > { %v13374_v31 = vadd.f32 %v13373_v20, %v13372_v19 }
 0x83e   : > { %v13375_v33 = vpop.f32.mrf.mxu1 }
 0x83f   : > { %v11690_v36 = vadd.f32 %v13374_v31, %v11650_v28 }
 0x840   : > { %v13376_v29 = vpop.f32.mrf.mxu1 }
 0x841   : > { %11695 = vmax.xlane.f32.xlu0 %v11690_v36 }
 0x8ca   : > { %v11696_v6 = vpop.xlane.xlu0 %11695 }
 0x8cb   : > { %v11697_v41 = vsub.f32 %v11690_v36, %v11696_v6 }
 0x8cd   : > { %v11698_v37 = vmul.f32 1.442695, %v11697_v41 }
 0x8cf   : > { %13929 = vpow2.f32 %v11698_v37 }
 0x8dc   : > { %v13930_v53 = vpop.eup %13929 }
 0x8dd   : > { %11700 = vadd.xlane.f32.xlu0 %v13930_v53 }
 0x966   : > { %v11701_v46 = vpop.xlane.xlu0 %11700 }
 0x967   : > { %13931 = vrcp.f32 %v11701_v46 }
 0x974   : > { %v13932_v23 = vpop.eup %13931 }
 0x975   : > { %v11703_v38 = vmul.f32 %v13932_v23, %v13930_v53 }
 0x977   : > { %11704 = vst [vmem:[%s455_s17] sm:$0xff] %v11703_v38 }
 0x978   : > { %14182 = shalt.err (!%p14179_p10)
}
 0x979   : > { %s14183_s25 = scalar_lea.hbm %s11717_s29, 128  ;;  %s14187_s2 = scalar_lea.hbm %s14986_s9, 256 }
 0x97a   : > { %p14184_p11 = scmp.ne.s32.totalorder %s11717_s29, %s14183_s25  ;;  %p14188_p3 = scmp.lt.s32.totalorder %s11717_s29, %s14986_s9 }
 0x97b   : > { %p14189_p4 = scmp.lt.s32.totalorder %s14187_s2, %s14183_s25 }
 0x97c   : > { %p14185_p7 = pnand %p14184_p11, %p15017_p9 }
 0x97d   : > { %p14190_p2 = por %p14189_p4, %p14188_p3 }
 0x97e   : > { %p14186_p1 = pneg %p14185_p7 }
 0x980   : > { %p14191_p8 = pnand %p14190_p2, %p14186_p1 }
 0x982   : > { %14194 = shalt.err (!%p14191_p8)
}
 0x983   : > { %13412 = dma.vmem_to_hbm [thread:$0]  (%p15017_p9), %s11720_s18, 128, %s11717_s29, %s11706_s26  }
 0x984 PF: > { %s11731_s16 = sand.u32 1, %s14237_s30   ;;  %p15018_p12 = scmp.ne.s32.totalorder %s15005_s20, 0 }
 0x985   : > { %p15019_p13 = scmp.ge.s32.totalorder %s14249_s12, 2  ;;  %s11732_s17 = scalar_lea.sflag [#allocation4], %s11731_s16 }
 0x987   : > { %p13444_p0 = pnand %p15019_p13, %p15018_p12 }
 0x989   : > { %p13445_p5 = pneg %p13444_p0 }
 0x98b   : > { %14232 = dma.done.wait (%p13445_p5), %s11732_s17, 128  }
 0x98c   : > { %14234 = vsyncadd (%p13445_p5), %s11732_s17, 4294967168  ;;  %p26_p6 = scmp.ge.s32.totalorder %s14435_s19, 4   ;;  %s15020_s30 = smov %s14241_s10 }
 0x98d   : > { %s15021_s10 = smov %s14245_s11  ;;  %s15022_s11 = smov %s14447_s13 }
 0x98e   : > { %s15023_s12 = smov %s14435_s19  ;;  %28 = sbr.rel (!%p26_p6) target bundleno = 14 (0xe), region = 133 }
 0x993   :  { %11737 = vsyncpa [#allocation3], 1 }
 0x994   :  { %11739 = vsyncpa [#allocation3 + $0x1], 1 }
 0x995   :  { %11740 = vsyncpa [#allocation6], 1 }
 0x996   :  { %11741 = vsyncpa [#allocation9], 1 }
 0x997   :  { %11742 = vsyncpa [#allocation12], 1 }
 0x998   :  { %11743 = vsyncpa [#allocation15], 1 }
 0x999   :  { %11744 = vsyncpa [#allocation4], 1 }
 0x99a   :  { %11746 = vsyncpa [#allocation4 + $0x1], 1 }

</bundles_post_ra>
